<compile_context>
chip_gen: v7x
topology: tpu7x:2x2x1
jax: 0.10.0
libtpu: 0.0.40
codegen_flags: <defaults>
</compile_context>

<pallas_src>
import functools

import jax
import jax.numpy as jnp
from jax.experimental import pallas as pl
from jax.experimental.pallas import tpu as pltpu

HIDDEN = 1024
OUT_LANES = 128  # fc3 output padded to one full lane group for dense stores


def _mlp_kernel(x_ref, w1_ref, b1_ref, w2_ref, b2_ref, w3_ref, b3_ref, o_ref):
    """Fused 3-layer MLP on one row tile. bf16 MXU inputs, f32 accumulation."""
    # fc1 + bias + ReLU   (dropout p=0.5 is identity in eval mode)
    h1 = jnp.dot(x_ref[...], w1_ref[...], preferred_element_type=jnp.float32)
    h1 = jnp.maximum(h1 + b1_ref[...], 0.0)

    # fc2 + bias + ReLU
    h2 = jnp.dot(h1.astype(jnp.bfloat16), w2_ref[...],
                 preferred_element_type=jnp.float32)
    h2 = jnp.maximum(h2 + b2_ref[...], 0.0)

    # fc3 (domain logit).  W3 is zero-padded to 128 output lanes so the store
    # is lane-dense; only column 0 is meaningful.
    out = jnp.dot(h2.astype(jnp.bfloat16), w3_ref[...],
                  preferred_element_type=jnp.float32)
    o_ref[...] = (out + b3_ref[0, 0]).astype(o_ref.dtype)


@functools.partial(jax.jit, static_argnames=("tile_m", "single_buffer_weights"))
def _forward_padded(x, w1, b1, w2, b2, w3, b3, *, tile_m, single_buffer_weights):
    """x: (n_pad, C) bf16, n_pad % tile_m == 0.  Returns (n_pad, 128) f32."""
    n_pad, c = x.shape
    grid = (n_pad // tile_m,)

    def _wspec(shape):
        # Grid-invariant operand: single-buffer it when supported.
        if single_buffer_weights:
            return pl.BlockSpec(shape, lambda i: (0, 0),
                                pipeline_mode=pl.Buffered(1))
        return pl.BlockSpec(shape, lambda i: (0, 0))

    return pl.pallas_call(
        _mlp_kernel,
        out_shape=jax.ShapeDtypeStruct((n_pad, OUT_LANES), jnp.float32),
        grid=grid,
        in_specs=[
            pl.BlockSpec((tile_m, c), lambda i: (i, 0)),         # x tile (bf16)
            _wspec((c, HIDDEN)),                                 # W1 (bf16)
            _wspec((1, HIDDEN)),                                 # b1 (f32)
            _wspec((HIDDEN, HIDDEN)),                            # W2 (bf16)
            _wspec((1, HIDDEN)),                                 # b2 (f32)
            _wspec((HIDDEN, OUT_LANES)),                         # W3 padded (bf16)
            pl.BlockSpec(memory_space=pltpu.MemorySpace.SMEM),   # b3 scalar
        ],
        out_specs=pl.BlockSpec((tile_m, OUT_LANES), lambda i: (i, 0)),
        compiler_params=pltpu.CompilerParams(
            dimension_semantics=("parallel",),   # shards grid across v7x cores
        ),
    )(x, w1, b1, w2, b2, w3, b3)


_SINGLE_BUFFER_OK = None  # lazily probed: does this JAX accept pl.Buffered(1)?


def _round_up(v, m):
    return (v + m - 1) // m * m


def prepare_params(w1_oi, b1, w2_oi, b2, w3_oi, b3):
    """PyTorch-layout f32 params ((out, in) weights) -> kernel-ready params."""
    w1 = jnp.asarray(w1_oi, jnp.float32).T.astype(jnp.bfloat16)   # (C, 1024)
    w2 = jnp.asarray(w2_oi, jnp.float32).T.astype(jnp.bfloat16)   # (1024, 1024)
    w3 = jnp.asarray(w3_oi, jnp.float32).T.astype(jnp.bfloat16)   # (1024, 1)
    w3_pad = jnp.pad(w3, ((0, 0), (0, OUT_LANES - 1)))            # (1024, 128)
    b1 = jnp.asarray(b1, jnp.float32).reshape(1, HIDDEN)
    b2 = jnp.asarray(b2, jnp.float32).reshape(1, HIDDEN)
    b3 = jnp.asarray(b3, jnp.float32).reshape(1, 1)
    return w1, b1, w2, b2, w3_pad, b3


def da_instance_head(x, params, *, tile_m=256):
    """x: (N, C) float.  params from prepare_params().  Returns (N, 1) f32."""
    global _SINGLE_BUFFER_OK
    w1, b1, w2, b2, w3_pad, b3 = params
    n, c = x.shape
    assert tile_m >= 8 and tile_m % 8 == 0, "tile_m must be a multiple of 8"

    # For small N collapse to a single grid step; otherwise use the full tile.
    tm = max(8, min(tile_m, _round_up(n, 8)))
    n_pad = _round_up(n, tm)

    xb = jnp.asarray(x, jnp.float32).astype(jnp.bfloat16)
    if n_pad != n:
        xb = jnp.pad(xb, ((0, n_pad - n), (0, 0)))   # padded rows stripped below
    args = (xb, w1, b1, w2, b2, w3_pad, b3)

    if _SINGLE_BUFFER_OK is None:
        # One-time probe: prefer single-buffered invariant weights, but never
        # let an unsupported pipeline_mode stop the kernel from running.
        try:
            probe = _forward_padded(*args, tile_m=tm, single_buffer_weights=True)
            jax.block_until_ready(probe)
            _SINGLE_BUFFER_OK = True
        except Exception:
            _SINGLE_BUFFER_OK = False

    out_full = _forward_padded(*args, tile_m=tm,
                               single_buffer_weights=_SINGLE_BUFFER_OK)
    return out_full[:n, :1]


def init_params(key, in_channels):
    """PyTorch-layout init matching the module: normal weights, zero biases."""
    k1, k2, k3 = jax.random.split(key, 3)
    w1_oi = 0.01 * jax.random.normal(k1, (HIDDEN, in_channels), jnp.float32)
    w2_oi = 0.01 * jax.random.normal(k2, (HIDDEN, HIDDEN), jnp.float32)
    w3_oi = 0.05 * jax.random.normal(k3, (1, HIDDEN), jnp.float32)
    b1 = jnp.zeros((HIDDEN,), jnp.float32)
    b2 = jnp.zeros((HIDDEN,), jnp.float32)
    b3 = jnp.zeros((1,), jnp.float32)
    return w1_oi, b1, w2_oi, b2, w3_oi, b3


def reference(x, w1_oi, b1, w2_oi, b2, w3_oi, b3):
    """Pure-JAX reference mirroring the kernel's bf16-in / f32-accumulate math."""
    bf = jnp.bfloat16

    def dot(a, w_oi):
        return jnp.dot(a.astype(bf), w_oi.T.astype(bf),
                       preferred_element_type=jnp.float32)

    h1 = jnp.maximum(dot(x, w1_oi) + b1[None, :], 0.0)
    h2 = jnp.maximum(dot(h1, w2_oi) + b2[None, :], 0.0)
    return dot(h2, w3_oi) + b3[None, :]


if __name__ == "__main__":
    key = jax.random.PRNGKey(0)
    kx, kp = jax.random.split(key)

    num_instances = 16       # N (instance proposals)
    in_channels = 32         # C

    x = jax.random.normal(kx, (num_instances, in_channels), jnp.float32)
    torch_layout_params = init_params(kp, in_channels)
    params = prepare_params(*torch_layout_params)

    out = da_instance_head(x, params, tile_m=256)
    out = jax.block_until_ready(out)

    ref = reference(x, *torch_layout_params)
    assert out.shape == (num_instances, 1)
    max_err = float(jnp.max(jnp.abs(out - ref)))
    assert jnp.allclose(out, ref, atol=5e-4, rtol=1e-2), (
        f"mismatch vs reference, max abs err = {max_err}")

    print("KERNEL_OK")
</pallas_src>

<mosaic_0001>
module attributes {stable_mosaic.version = 11 : i64} {
  func.func @_mlp_kernel(%arg0: i32, %arg1: memref<16x32xbf16, #tpu.memory_space<vmem>>, %arg2: memref<32x1024xbf16, #tpu.memory_space<vmem>>, %arg3: memref<1x1024xf32, #tpu.memory_space<vmem>>, %arg4: memref<1024x1024xbf16, #tpu.memory_space<vmem>>, %arg5: memref<1x1024xf32, #tpu.memory_space<vmem>>, %arg6: memref<1024x128xbf16, #tpu.memory_space<vmem>>, %arg7: memref<1x1xf32, #tpu.memory_space<smem>>, %arg8: memref<16x128xf32, #tpu.memory_space<vmem>>) attributes {dimension_semantics = [#tpu.dimension_semantics<parallel>], iteration_bounds = array<i64: 1>, scalar_prefetch = 0 : i64, scratch_operands = 0 : i64, tpu.core_type = #tpu.core_type<tc>, window_params = [{transform_indices = @transform_0, window_bounds = array<i64: 16, 32>}, {pipeline_mode = #tpu.pipeline_mode<synchronous>, transform_indices = @transform_1, window_bounds = array<i64: 32, 1024>}, {pipeline_mode = #tpu.pipeline_mode<synchronous>, transform_indices = @transform_2, window_bounds = array<i64: 1, 1024>}, {pipeline_mode = #tpu.pipeline_mode<synchronous>, transform_indices = @transform_3, window_bounds = array<i64: 1024, 1024>}, {pipeline_mode = #tpu.pipeline_mode<synchronous>, transform_indices = @transform_4, window_bounds = array<i64: 1, 1024>}, {pipeline_mode = #tpu.pipeline_mode<synchronous>, transform_indices = @transform_5, window_bounds = array<i64: 1024, 128>}, {transform_indices = @transform_6, window_bounds = array<i64: 1, 1>}, {transform_indices = @transform_7, window_bounds = array<i64: 16, 128>}]} {
    %c0 = arith.constant 0 : index
    %c0_0 = arith.constant 0 : index
    %0 = vector.load %arg1[%c0, %c0_0] : memref<16x32xbf16, #tpu.memory_space<vmem>>, vector<16x32xbf16>
    %c0_1 = arith.constant 0 : index
    %c0_2 = arith.constant 0 : index
    %1 = vector.load %arg2[%c0_1, %c0_2] : memref<32x1024xbf16, #tpu.memory_space<vmem>>, vector<32x1024xbf16>
    %cst = arith.constant dense<0.000000e+00> : vector<16x1024xf32>
    %2 = tpu.matmul %0, %1, %cst {dimension_numbers = #tpu.dot_dimension_numbers<[1], [0], [0], [1], [0, 0, 1, 1], [], []>} : vector<16x32xbf16>, vector<32x1024xbf16>, vector<16x1024xf32> -> vector<16x1024xf32>
    %c0_3 = arith.constant 0 : index
    %c0_4 = arith.constant 0 : index
    %3 = vector.load %arg3[%c0_3, %c0_4] : memref<1x1024xf32, #tpu.memory_space<vmem>>, vector<1x1024xf32>
    %4 = vector.broadcast %3 : vector<1x1024xf32> to vector<16x1024xf32>
    %5 = arith.addf %2, %4 : vector<16x1024xf32>
    %cst_5 = arith.constant 0.000000e+00 : f32
    %6 = vector.broadcast %cst_5 : f32 to vector<16x1024xf32>
    %7 = arith.maximumf %5, %6 : vector<16x1024xf32>
    %8 = arith.truncf %7 : vector<16x1024xf32> to vector<16x1024xbf16>
    %c0_6 = arith.constant 0 : index
    %c0_7 = arith.constant 0 : index
    %9 = vector.load %arg4[%c0_6, %c0_7] : memref<1024x1024xbf16, #tpu.memory_space<vmem>>, vector<1024x1024xbf16>
    %cst_8 = arith.constant dense<0.000000e+00> : vector<16x1024xf32>
    %10 = tpu.matmul %8, %9, %cst_8 {dimension_numbers = #tpu.dot_dimension_numbers<[1], [0], [0], [1], [0, 0, 1, 1], [], []>} : vector<16x1024xbf16>, vector<1024x1024xbf16>, vector<16x1024xf32> -> vector<16x1024xf32>
    %c0_9 = arith.constant 0 : index
    %c0_10 = arith.constant 0 : index
    %11 = vector.load %arg5[%c0_9, %c0_10] : memref<1x1024xf32, #tpu.memory_space<vmem>>, vector<1x1024xf32>
    %12 = vector.broadcast %11 : vector<1x1024xf32> to vector<16x1024xf32>
    %13 = arith.addf %10, %12 : vector<16x1024xf32>
    %cst_11 = arith.constant 0.000000e+00 : f32
    %14 = vector.broadcast %cst_11 : f32 to vector<16x1024xf32>
    %15 = arith.maximumf %13, %14 : vector<16x1024xf32>
    %16 = arith.truncf %15 : vector<16x1024xf32> to vector<16x1024xbf16>
    %c0_12 = arith.constant 0 : index
    %c0_13 = arith.constant 0 : index
    %17 = vector.load %arg6[%c0_12, %c0_13] : memref<1024x128xbf16, #tpu.memory_space<vmem>>, vector<1024x128xbf16>
    %cst_14 = arith.constant dense<0.000000e+00> : vector<16x128xf32>
    %18 = tpu.matmul %16, %17, %cst_14 {dimension_numbers = #tpu.dot_dimension_numbers<[1], [0], [0], [1], [0, 0, 1, 1], [], []>} : vector<16x1024xbf16>, vector<1024x128xbf16>, vector<16x128xf32> -> vector<16x128xf32>
    %c0_15 = arith.constant 0 : index
    %c0_16 = arith.constant 0 : index
    %19 = memref.load %arg7[%c0_15, %c0_16] : memref<1x1xf32, #tpu.memory_space<smem>>
    %20 = vector.broadcast %19 : f32 to vector<16x128xf32>
    %21 = arith.addf %18, %20 : vector<16x128xf32>
    %c0_17 = arith.constant 0 : index
    %c0_18 = arith.constant 0 : index
    %22 = vector.load %arg8[%c0_17, %c0_18] : memref<16x128xf32, #tpu.memory_space<vmem>>, vector<16x128xf32>
    tpu.vector_store %arg8[%c0_17, %c0_18], %21 {strides = array<i32>} : memref<16x128xf32, #tpu.memory_space<vmem>>, vector<16x128xf32>,
    return
  }
  func.func @transform_0(%arg0: i32) -> (i32, i32) {
    %c0_i32 = arith.constant 0 : i32
    %c0_i32_0 = arith.constant 0 : i32
    return %arg0, %c0_i32 : i32, i32
  }
  func.func @transform_1(%arg0: i32) -> (i32, i32) {
    %c0_i32 = arith.constant 0 : i32
    %c0_i32_0 = arith.constant 0 : i32
    %c0_i32_1 = arith.constant 0 : i32
    return %c0_i32, %c0_i32_0 : i32, i32
  }
  func.func @transform_2(%arg0: i32) -> (i32, i32) {
    %c0_i32 = arith.constant 0 : i32
    %c0_i32_0 = arith.constant 0 : i32
    %c0_i32_1 = arith.constant 0 : i32
    return %c0_i32, %c0_i32_0 : i32, i32
  }
  func.func @transform_3(%arg0: i32) -> (i32, i32) {
    %c0_i32 = arith.constant 0 : i32
    %c0_i32_0 = arith.constant 0 : i32
    %c0_i32_1 = arith.constant 0 : i32
    return %c0_i32, %c0_i32_0 : i32, i32
  }
  func.func @transform_4(%arg0: i32) -> (i32, i32) {
    %c0_i32 = arith.constant 0 : i32
    %c0_i32_0 = arith.constant 0 : i32
    %c0_i32_1 = arith.constant 0 : i32
    return %c0_i32, %c0_i32_0 : i32, i32
  }
  func.func @transform_5(%arg0: i32) -> (i32, i32) {
    %c0_i32 = arith.constant 0 : i32
    %c0_i32_0 = arith.constant 0 : i32
    %c0_i32_1 = arith.constant 0 : i32
    return %c0_i32, %c0_i32_0 : i32, i32
  }
  func.func @transform_6(%arg0: i32) -> (i32, i32) {
    %c0_i32 = arith.constant 0 : i32
    %c0_i32_0 = arith.constant 0 : i32
    %c0_i32_1 = arith.constant 0 : i32
    return %c0_i32, %c0_i32_0 : i32, i32
  }
  func.func @transform_7(%arg0: i32) -> (i32, i32) {
    %c0_i32 = arith.constant 0 : i32
    %c0_i32_0 = arith.constant 0 : i32
    return %arg0, %c0_i32 : i32, i32
  }
}

module attributes {stable_mosaic.version = 11 : i64} {
  func.func @_mlp_kernel(%arg0: i32, %arg1: memref<16x32xbf16, #tpu.memory_space<vmem>>, %arg2: memref<32x1024xbf16, #tpu.memory_space<vmem>>, %arg3: memref<1x1024xf32, #tpu.memory_space<vmem>>, %arg4: memref<1024x1024xbf16, #tpu.memory_space<vmem>>, %arg5: memref<1x1024xf32, #tpu.memory_space<vmem>>, %arg6: memref<1024x128xbf16, #tpu.memory_space<vmem>>, %arg7: memref<1x1xf32, #tpu.memory_space<smem>>, %arg8: memref<16x128xf32, #tpu.memory_space<vmem>>) attributes {dimension_semantics = [#tpu.dimension_semantics<parallel>], iteration_bounds = array<i64: 1>, scalar_prefetch = 0 : i64, scratch_operands = 0 : i64, tpu.core_type = #tpu.core_type<tc>, window_params = [{transform_indices = @transform_0, window_bounds = array<i64: 16, 32>}, {pipeline_mode = #tpu.pipeline_mode<synchronous>, transform_indices = @transform_1, window_bounds = array<i64: 32, 1024>}, {pipeline_mode = #tpu.pipeline_mode<synchronous>, transform_indices = @transform_2, window_bounds = array<i64: 1, 1024>}, {pipeline_mode = #tpu.pipeline_mode<synchronous>, transform_indices = @transform_3, window_bounds = array<i64: 1024, 1024>}, {pipeline_mode = #tpu.pipeline_mode<synchronous>, transform_indices = @transform_4, window_bounds = array<i64: 1, 1024>}, {pipeline_mode = #tpu.pipeline_mode<synchronous>, transform_indices = @transform_5, window_bounds = array<i64: 1024, 128>}, {transform_indices = @transform_6, window_bounds = array<i64: 1, 1>}, {transform_indices = @transform_7, window_bounds = array<i64: 16, 128>}]} {
    %c0 = arith.constant 0 : index
    %c0_0 = arith.constant 0 : index
    %0 = vector.load %arg1[%c0, %c0_0] : memref<16x32xbf16, #tpu.memory_space<vmem>>, vector<16x32xbf16>
    %c0_1 = arith.constant 0 : index
    %c0_2 = arith.constant 0 : index
    %1 = vector.load %arg2[%c0_1, %c0_2] : memref<32x1024xbf16, #tpu.memory_space<vmem>>, vector<32x1024xbf16>
    %cst = arith.constant dense<0.000000e+00> : vector<16x1024xf32>
    %2 = tpu.matmul %0, %1, %cst {dimension_numbers = #tpu.dot_dimension_numbers<[1], [0], [0], [1], [0, 0, 1, 1], [], []>} : vector<16x32xbf16>, vector<32x1024xbf16>, vector<16x1024xf32> -> vector<16x1024xf32>
    %c0_3 = arith.constant 0 : index
    %c0_4 = arith.constant 0 : index
    %3 = vector.load %arg3[%c0_3, %c0_4] : memref<1x1024xf32, #tpu.memory_space<vmem>>, vector<1x1024xf32>
    %4 = vector.broadcast %3 : vector<1x1024xf32> to vector<16x1024xf32>
    %5 = arith.addf %2, %4 : vector<16x1024xf32>
    %cst_5 = arith.constant 0.000000e+00 : f32
    %6 = vector.broadcast %cst_5 : f32 to vector<16x1024xf32>
    %7 = arith.maximumf %5, %6 : vector<16x1024xf32>
    %8 = arith.truncf %7 : vector<16x1024xf32> to vector<16x1024xbf16>
    %c0_6 = arith.constant 0 : index
    %c0_7 = arith.constant 0 : index
    %9 = vector.load %arg4[%c0_6, %c0_7] : memref<1024x1024xbf16, #tpu.memory_space<vmem>>, vector<1024x1024xbf16>
    %cst_8 = arith.constant dense<0.000000e+00> : vector<16x1024xf32>
    %10 = tpu.matmul %8, %9, %cst_8 {dimension_numbers = #tpu.dot_dimension_numbers<[1], [0], [0], [1], [0, 0, 1, 1], [], []>} : vector<16x1024xbf16>, vector<1024x1024xbf16>, vector<16x1024xf32> -> vector<16x1024xf32>
    %c0_9 = arith.constant 0 : index
    %c0_10 = arith.constant 0 : index
    %11 = vector.load %arg5[%c0_9, %c0_10] : memref<1x1024xf32, #tpu.memory_space<vmem>>, vector<1x1024xf32>
    %12 = vector.broadcast %11 : vector<1x1024xf32> to vector<16x1024xf32>
    %13 = arith.addf %10, %12 : vector<16x1024xf32>
    %cst_11 = arith.constant 0.000000e+00 : f32
    %14 = vector.broadcast %cst_11 : f32 to vector<16x1024xf32>
    %15 = arith.maximumf %13, %14 : vector<16x1024xf32>
    %16 = arith.truncf %15 : vector<16x1024xf32> to vector<16x1024xbf16>
    %c0_12 = arith.constant 0 : index
    %c0_13 = arith.constant 0 : index
    %17 = vector.load %arg6[%c0_12, %c0_13] : memref<1024x128xbf16, #tpu.memory_space<vmem>>, vector<1024x128xbf16>
    %cst_14 = arith.constant dense<0.000000e+00> : vector<16x128xf32>
    %18 = tpu.matmul %16, %17, %cst_14 {dimension_numbers = #tpu.dot_dimension_numbers<[1], [0], [0], [1], [0, 0, 1, 1], [], []>} : vector<16x1024xbf16>, vector<1024x128xbf16>, vector<16x128xf32> -> vector<16x128xf32>
    %c0_15 = arith.constant 0 : index
    %c0_16 = arith.constant 0 : index
    %19 = memref.load %arg7[%c0_15, %c0_16] : memref<1x1xf32, #tpu.memory_space<smem>>
    %20 = vector.broadcast %19 : f32 to vector<16x128xf32>
    %21 = arith.addf %18, %20 : vector<16x128xf32>
    %c0_17 = arith.constant 0 : index
    %c0_18 = arith.constant 0 : index
    %22 = vector.load %arg8[%c0_17, %c0_18] : memref<16x128xf32, #tpu.memory_space<vmem>>, vector<16x128xf32>
    tpu.vector_store %arg8[%c0_17, %c0_18], %21 {strides = array<i32>} : memref<16x128xf32, #tpu.memory_space<vmem>>, vector<16x128xf32>,
    return
  }
  func.func @transform_0(%arg0: i32) -> (i32, i32) {
    %c0_i32 = arith.constant 0 : i32
    %c0_i32_0 = arith.constant 0 : i32
    return %arg0, %c0_i32 : i32, i32
  }
  func.func @transform_1(%arg0: i32) -> (i32, i32) {
    %c0_i32 = arith.constant 0 : i32
    %c0_i32_0 = arith.constant 0 : i32
    %c0_i32_1 = arith.constant 0 : i32
    return %c0_i32, %c0_i32_0 : i32, i32
  }
  func.func @transform_2(%arg0: i32) -> (i32, i32) {
    %c0_i32 = arith.constant 0 : i32
    %c0_i32_0 = arith.constant 0 : i32
    %c0_i32_1 = arith.constant 0 : i32
    return %c0_i32, %c0_i32_0 : i32, i32
  }
  func.func @transform_3(%arg0: i32) -> (i32, i32) {
    %c0_i32 = arith.constant 0 : i32
    %c0_i32_0 = arith.constant 0 : i32
    %c0_i32_1 = arith.constant 0 : i32
    return %c0_i32, %c0_i32_0 : i32, i32
  }
  func.func @transform_4(%arg0: i32) -> (i32, i32) {
    %c0_i32 = arith.constant 0 : i32
    %c0_i32_0 = arith.constant 0 : i32
    %c0_i32_1 = arith.constant 0 : i32
    return %c0_i32, %c0_i32_0 : i32, i32
  }
  func.func @transform_5(%arg0: i32) -> (i32, i32) {
    %c0_i32 = arith.constant 0 : i32
    %c0_i32_0 = arith.constant 0 : i32
    %c0_i32_1 = arith.constant 0 : i32
    return %c0_i32, %c0_i32_0 : i32, i32
  }
  func.func @transform_6(%arg0: i32) -> (i32, i32) {
    %c0_i32 = arith.constant 0 : i32
    %c0_i32_0 = arith.constant 0 : i32
    %c0_i32_1 = arith.constant 0 : i32
    return %c0_i32, %c0_i32_0 : i32, i32
  }
  func.func @transform_7(%arg0: i32) -> (i32, i32) {
    %c0_i32 = arith.constant 0 : i32
    %c0_i32_0 = arith.constant 0 : i32
    return %arg0, %c0_i32 : i32, i32
  }
}

</mosaic_0001>

<bundles_post_ra>
// kernel: _forward_padded.1
= control target key start
LH: loop header
LB: loop body
LE: loop exit
PB: predicated region body
PF: predicated region fallthrough
CT: control target
= control target key end

     0   :  { %13 = vsyncpa [#allocation4], 0  ;;  %s6265_s0 = inlined_call_operand.hbm [shape: bf16[16,32], index: 0, kind: input, shape index: {}]   ;;  %s6266_s1 = inlined_call_operand.hbm [shape: bf16[32,1024], index: 1, kind: input, shape index: {}]   ;;  %s6267_s2 = inlined_call_operand.hbm [shape: f32[1,1024], index: 2, kind: input, shape index: {}]   ;;  %s6268_s3 = inlined_call_operand.hbm [shape: bf16[1024,1024], index: 3, kind: input, shape index: {}]   ;;  %s6269_s4 = inlined_call_operand.hbm [shape: f32[1,1024], index: 4, kind: input, shape index: {}]   ;;  %s6270_s5 = inlined_call_operand.hbm [shape: bf16[1024,128], index: 5, kind: input, shape index: {}]   ;;  %s6271_s6 = inlined_call_operand.<no memory space> [shape: f32[1,1], index: 6, kind: input, shape index: {}]   ;;  %s6272_s7 = inlined_call_operand.hbm [shape: f32[16,128], index: 7, kind: output, shape index: {}]  }
   0x1   :  { %14 = vsyncpa [#allocation7], 0 }
   0x2   :  { %15 = vsyncpa [#allocation10], 0 }
   0x3   :  { %16 = vsyncpa [#allocation13], 0 }
   0x4   :  { %17 = vsyncpa [#allocation5], 0  ;;  %s5970_s24 = smov [#allocation6]   ;;  %s5806_s28 = scalar_lea.hbm %s6266_s1, 2048 }
   0x5   :  { %s35_s25 = sshll.u32 %s5970_s24, 4  ;;  %p5807_p0 = scmp.ne.s32.totalorder %s6266_s1, %s5806_s28  ;;  %s36_s25 = int_to_ptr.vmem [resolvable:$true] %s35_s25 }
   0x6   :  { %p5810_p1 = scmp.lt.u32.totalorder %s5806_s28, %s6266_s1 }
   0x8   :  { %p5812_p2 = pnand %p5810_p1, %p5807_p0 }
   0xa   :  { %5815 = shalt.err (!%p5812_p2)
}
   0xb   :  { %s5816_s10 = scalar_lea.vmem %s36_s25, 2048  ;;  %p5821_p4 = scmp.lt.s32.totalorder %s36_s25, %s36_s25 }
   0xc   :  { %p5817_p3 = scmp.ne.s32.totalorder %s36_s25, %s5816_s10  ;;  %p5822_p5 = scmp.lt.s32.totalorder %s5816_s10, %s5816_s10 }
   0xe   :  { %p5823_p6 = por %p5822_p5, %p5821_p4 }
  0x10   :  { %p5824_p7 = pnand %p5823_p6, %p5817_p3 }
  0x12   :  { %5827 = shalt.err (!%p5824_p7)
}
  0x13   :  { %s5971_s11 = smov 512   ;;  %s5972_s12 = smov 32  }
  0x14   :  { %41 = dma.hbm_to_vmem [thread:$0]  %s6266_s1, 2048, %s36_s25, [#allocation7], %s5971_s11, %s5971_s11, %s5972_s12  }
  0x15   :  { %s5973_s15 = smov [#allocation9]   ;;  %s5974_s17 = smov [#allocation3]  }
  0x16   :  { %s57_s16 = sshll.u32 %s5973_s15, 4  ;;  %s23_s18 = sshll.u32 %s5974_s17, 4  ;;  %s58_s16 = int_to_ptr.vmem [resolvable:$true] %s57_s16  ;;  %s24_s18 = int_to_ptr.vmem [resolvable:$true] %s23_s18 }
  0x17   :  { %s5828_s21 = scalar_lea.hbm %s6268_s3, 65536 }
  0x18   :  { %p5829_p8 = scmp.ne.s32.totalorder %s6268_s3, %s5828_s21  ;;  %p5832_p9 = scmp.lt.u32.totalorder %s5828_s21, %s6268_s3 }
  0x1a   :  { %p5834_p10 = pnand %p5832_p9, %p5829_p8 }
  0x1c   :  { %5837 = shalt.err (!%p5834_p10)
}
  0x1d   :  { %s5838_s1 = scalar_lea.vmem %s58_s16, 65536  ;;  %p5843_p12 = scmp.lt.s32.totalorder %s58_s16, %s58_s16 }
  0x1e   :  { %p5839_p11 = scmp.ne.s32.totalorder %s58_s16, %s5838_s1  ;;  %p5844_p13 = scmp.lt.s32.totalorder %s5838_s1, %s5838_s1 }
  0x20   :  { %p5845_p0 = por %p5844_p13, %p5843_p12 }
  0x22   :  { %p5846_p1 = pnand %p5845_p0, %p5839_p11 }
  0x24   :  { %5849 = shalt.err (!%p5846_p1)
}
  0x25   :  { %63 = dma.hbm_to_vmem [thread:$0]  %s6268_s3, 65536, %s58_s16, [#allocation10], %s5971_s11, %s5971_s11, %s5972_s12  }
  0x26   :  { %s5850_s30 = scalar_lea.hbm %s6265_s0, 128 }
  0x27   :  { %p5851_p2 = scmp.ne.s32.totalorder %s6265_s0, %s5850_s30  ;;  %p5854_p3 = scmp.lt.u32.totalorder %s5850_s30, %s6265_s0 }
  0x29   :  { %p5856_p4 = pnand %p5854_p3, %p5851_p2 }
  0x2b   :  { %5859 = shalt.err (!%p5856_p4)
}
  0x2c   :  { %s5860_s14 = scalar_lea.vmem %s24_s18, 128  ;;  %p5865_p6 = scmp.lt.s32.totalorder %s24_s18, %s24_s18 }
  0x2d   :  { %p5861_p5 = scmp.ne.s32.totalorder %s24_s18, %s5860_s14  ;;  %p5866_p7 = scmp.lt.s32.totalorder %s5860_s14, %s5860_s14 }
  0x2f   :  { %p5867_p8 = por %p5866_p7, %p5865_p6 }
  0x31   :  { %p5868_p9 = pnand %p5867_p8, %p5861_p5 }
  0x33   :  { %5871 = shalt.err (!%p5868_p9)
}
  0x34   :  { %s5975_s3 = smov 64   ;;  %s5976_s11 = smov 4  }
  0x35   :  { %29 = dma.hbm_to_vmem [thread:$0]  %s6265_s0, 128, %s24_s18, [#allocation4], %s5975_s3, %s5975_s3, %s5976_s11  }
  0x36   :  { %s5977_s16 = smov [#allocation8]   ;;  %s5978_s19 = smov [#allocation11]  }
  0x37   :  { %s48_s17 = sshll.u32 %s5977_s16, 4  ;;  %s70_s20 = sshll.u32 %s5978_s19, 4  ;;  %s49_s17 = int_to_ptr.vmem [resolvable:$true] %s48_s17  ;;  %s71_s20 = int_to_ptr.vmem [resolvable:$true] %s70_s20 }
  0x38   :  { %s5872_s23 = scalar_lea.hbm %s6267_s2, 128 }
  0x39   :  { %p5873_p10 = scmp.ne.s32.totalorder %s6267_s2, %s5872_s23  ;;  %p5876_p11 = scmp.lt.u32.totalorder %s5872_s23, %s6267_s2 }
  0x3b   :  { %p5878_p12 = pnand %p5876_p11, %p5873_p10 }
  0x3d   :  { %5881 = shalt.err (!%p5878_p12)
}
  0x3e   :  { %s5882_s0 = scalar_lea.vmem %s49_s17, 128  ;;  %p5887_p0 = scmp.lt.s32.totalorder %s49_s17, %s49_s17 }
  0x3f   :  { %p5883_p13 = scmp.ne.s32.totalorder %s49_s17, %s5882_s0  ;;  %p5888_p1 = scmp.lt.s32.totalorder %s5882_s0, %s5882_s0 }
  0x41   :  { %p5889_p2 = por %p5888_p1, %p5887_p0 }
  0x43   :  { %p5890_p3 = pnand %p5889_p2, %p5883_p13 }
  0x45   :  { %5893 = shalt.err (!%p5890_p3)
}
  0x46   :  { %51 = dma.hbm_to_vmem [thread:$0]  %s6267_s2, 128, %s49_s17, [#allocation7]  }
  0x47   :  { %s5894_s30 = scalar_lea.hbm %s6269_s4, 128 }
  0x48   :  { %p5895_p4 = scmp.ne.s32.totalorder %s6269_s4, %s5894_s30  ;;  %p5898_p5 = scmp.lt.u32.totalorder %s5894_s30, %s6269_s4 }
  0x4a   :  { %p5900_p6 = pnand %p5898_p5, %p5895_p4 }
  0x4c   :  { %5903 = shalt.err (!%p5900_p6)
}
  0x4d   :  { %s5904_s14 = scalar_lea.vmem %s71_s20, 128  ;;  %p5909_p8 = scmp.lt.s32.totalorder %s71_s20, %s71_s20 }
  0x4e   :  { %p5905_p7 = scmp.ne.s32.totalorder %s71_s20, %s5904_s14  ;;  %p5910_p9 = scmp.lt.s32.totalorder %s5904_s14, %s5904_s14 }
  0x50   :  { %p5911_p10 = por %p5910_p9, %p5909_p8 }
  0x52   :  { %p5912_p11 = pnand %p5911_p10, %p5905_p7 }
  0x54   :  { %5915 = shalt.err (!%p5912_p11)
}
  0x55   :  { %73 = dma.hbm_to_vmem [thread:$0]  %s6269_s4, 128, %s71_s20, [#allocation10]  }
  0x56   :  { %s5979_s15 = smov [#allocation12]   ;;  %s5916_s21 = scalar_lea.hbm %s6270_s5, 8192 }
  0x57   :  { %s79_s16 = sshll.u32 %s5979_s15, 4  ;;  %p5917_p12 = scmp.ne.s32.totalorder %s6270_s5, %s5916_s21  ;;  %s80_s16 = int_to_ptr.vmem [resolvable:$true] %s79_s16 }
  0x58   :  { %p5920_p13 = scmp.lt.u32.totalorder %s5916_s21, %s6270_s5 }
  0x5a   :  { %p5922_p0 = pnand %p5920_p13, %p5917_p12 }
  0x5c   :  { %5925 = shalt.err (!%p5922_p0)
}
  0x5d   :  { %s5926_s1 = scalar_lea.vmem %s80_s16, 8192  ;;  %p5931_p2 = scmp.lt.s32.totalorder %s80_s16, %s80_s16 }
  0x5e   :  { %p5927_p1 = scmp.ne.s32.totalorder %s80_s16, %s5926_s1  ;;  %p5932_p3 = scmp.lt.s32.totalorder %s5926_s1, %s5926_s1 }
  0x60   :  { %p5933_p4 = por %p5932_p3, %p5931_p2 }
  0x62   :  { %p5934_p5 = pnand %p5933_p4, %p5927_p1 }
  0x64   :  { %5937 = shalt.err (!%p5934_p5)
}
  0x65   :  { %85 = dma.hbm_to_vmem [thread:$0]  %s6270_s5, 8192, %s80_s16, [#allocation13], %s5975_s3, %s5975_s3, %s5976_s11  }
  0x66   :  { %5960 = dma.done.wait [#allocation4], 128  }
  0x67   :  { %5961 = vsyncadd [#allocation4], 4294967168 }
  0x68   :  { %5962 = dma.done.wait [#allocation7], 2176  }
  0x69   :  { %5963 = vsyncadd [#allocation7], 4294965120 }
  0x6a   :  { %5964 = dma.done.wait [#allocation10], 65664  }
  0x6b   :  { %5965 = vsyncadd [#allocation10], 4294901632 }
  0x6c   :  { %5966 = dma.done.wait [#allocation13], 8192  }
  0x6d   :  { %5967 = vsyncadd [#allocation13], 4294959104  ;;  %v5980_v0 = vmov 0   ;;  %v109_v1 = vld [vmem:[#allocation6] sm:$0xff]  ;;  %v110_v8 = vld [vmem:[#allocation6 + $0x8] sm:$0xff]  ;;  %vm252_vm0 = vcmask 261120  }
  0x6e   :  { %288 = vmatprep.mubr.bf16.mxu0 %v5980_v0  ;;  %331 = vmatprep.mubr.bf16.mxu1 %v5980_v0  ;;  %v113_v2 = vld [vmem:[#allocation6 + $0x20] sm:$0xff]  ;;  %v114_v9 = vld [vmem:[#allocation6 + $0x28] sm:$0xff]  ;;  %v111_v14 = vld [vmem:[#allocation6 + $0x10] sm:$0xff] }
  0x6f   :  { %v117_v3 = vld [vmem:[#allocation6 + $0x40] sm:$0xff]  ;;  %v4980_v4 = vcombine.high %v109_v1, %v113_v2  ;;  %v4979_v5 = vcombine.low %v109_v1, %v113_v2  ;;  %v4982_v10 = vcombine.high %v110_v8, %v114_v9  ;;  %v4981_v11 = vcombine.low %v110_v8, %v114_v9  ;;  %v118_v12 = vld [vmem:[#allocation6 + $0x48] sm:$0xff]  ;;  %v115_v17 = vld [vmem:[#allocation6 + $0x30] sm:$0xff] }
  0x70   :  { %v121_v6 = vld [vmem:[#allocation6 + $0x60] sm:$0xff]  ;;  %v122_v13 = vld [vmem:[#allocation6 + $0x68] sm:$0xff]  ;;  %v4984_v18 = vcombine.high %v111_v14, %v115_v17  ;;  %v112_v19 = vld [vmem:[#allocation6 + $0x18] sm:$0xff]  ;;  %v4983_v26 = vcombine.low %v111_v14, %v115_v17 }
  0x71   :  { %v4988_v7 = vcombine.high %v117_v3, %v121_v6  ;;  %256 = vmatprep.subr.bf16.mxu0 %v4980_v4  ;;  %v4987_v15 = vcombine.low %v117_v3, %v121_v6  ;;  %v4990_v16 = vcombine.high %v118_v12, %v122_v13  ;;  %299 = vmatprep.subr.bf16.mxu1 %v4982_v10  ;;  %v116_v20 = vld [vmem:[#allocation6 + $0x38] sm:$0xff]  ;;  %v119_v22 = vld [vmem:[#allocation6 + $0x50] sm:$0xff]  ;;  %v452_v31 = vld [vmem:[#allocation9] sm:$0xff] }
  0x72   :  { %257 = vmatpush1.bf16.msra.mxu0 %v4979_v5  ;;  %300 = vmatpush1.bf16.msra.mxu1 %v4981_v11  ;;  %v4989_v21 = vcombine.low %v118_v12, %v122_v13  ;;  %v123_v23 = vld [vmem:[#allocation6 + $0x70] sm:$0xff]  ;;  %v5741_v24 = vld [vmem:[#allocation3] sm:$0xff]   ;;  %v4986_v25 = vcombine.high %v112_v19, %v116_v20  ;;  %v4985_v30 = vcombine.low %v112_v19, %v116_v20  ;;  %v456_v32 = vld [vmem:[#allocation9 + $0x20] sm:$0xff] }
  0x73   :  { %258 = vmatprep.subr.bf16.mxu0 %v4988_v7  ;;  %301 = vmatprep.subr.bf16.mxu1 %v4990_v16  ;;  %v120_v27 = vld [vmem:[#allocation6 + $0x58] sm:$0xff]  ;;  %v4992_v29 = vcombine.high %v119_v22, %v123_v23  ;;  %v4991_v34 = vcombine.low %v119_v22, %v123_v23  ;;  %v453_v35 = vld [vmem:[#allocation9 + $0x8] sm:$0xff]  ;;  %v5000_v37 = vcombine.high %v452_v31, %v456_v32  ;;  %v460_v39 = vld [vmem:[#allocation9 + $0x40] sm:$0xff] }
  0x74   :  { %v124_v28 = vld [vmem:[#allocation6 + $0x78] sm:$0xff]  ;;  %v457_v36 = vld [vmem:[#allocation9 + $0x28] sm:$0xff]  ;;  %v464_v40 = vld [vmem:[#allocation9 + $0x60] sm:$0xff]  ;;  %v4999_v42 = vcombine.low %v452_v31, %v456_v32 }
  0x75   :  { %v4994_v33 = vcombine.high %v120_v27, %v124_v28  ;;  %v4993_v38 = vcombine.low %v120_v27, %v124_v28  ;;  %v5002_v41 = vcombine.high %v453_v35, %v457_v36  ;;  %v461_v43 = vld [vmem:[#allocation9 + $0x48] sm:$0xff]  ;;  %v5008_v45 = vcombine.high %v460_v39, %v464_v40  ;;  %v468_v47 = vld [vmem:[#allocation9 + $0x80] sm:$0xff] }
  0x76   :  { %259 = vmatpush1.bf16.msra.mxu0 %v4987_v15  ;;  %302 = vmatpush1.bf16.msra.mxu1 %v4989_v21  ;;  %v465_v44 = vld [vmem:[#allocation9 + $0x68] sm:$0xff]  ;;  %v5001_v46 = vcombine.low %v453_v35, %v457_v36  ;;  %v472_v48 = vld [vmem:[#allocation9 + $0xa0] sm:$0xff]  ;;  %v5007_v50 = vcombine.low %v460_v39, %v464_v40 }
  0x77   :  { %342 = vmatprep.subr.bf16.mxu0 %v4984_v18  ;;  %385 = vmatprep.subr.bf16.mxu1 %v4986_v25  ;;  %v5010_v49 = vcombine.high %v461_v43, %v465_v44  ;;  %v469_v51 = vld [vmem:[#allocation9 + $0x88] sm:$0xff]  ;;  %v5016_v53 = vcombine.high %v468_v47, %v472_v48  ;;  %v5009_v54 = vcombine.low %v461_v43, %v465_v44  ;;  %v476_v55 = vld [vmem:[#allocation9 + $0xc0] sm:$0xff] }
  0x78   :  { %v473_v52 = vld [vmem:[#allocation9 + $0xa8] sm:$0xff]  ;;  %v480_v56 = vld [vmem:[#allocation9 + $0xe0] sm:$0xff]  ;;  %v5015_v58 = vcombine.low %v468_v47, %v472_v48 }
  0x79   :  { %4995 = vmatmul.mubr.msk.bf16.vlgmr.msra.gmra.mrb[0].mxu0 %vm252_vm0, %v5741_v24  ;;  %4996 = vmatmul.mubr.msk.bf16.vlgmr.msra.gmra.mrb[0].mxu1 %vm252_vm0, %v5741_v24  ;;  %v5018_v57 = vcombine.high %v469_v51, %v473_v52  ;;  %v477_v59 = vld [vmem:[#allocation9 + $0xc8] sm:$0xff]  ;;  %v484_v61 = vld [vmem:[#allocation9 + $0x100] sm:$0xff]  ;;  %v5024_v62 = vcombine.high %v476_v55, %v480_v56  ;;  %v5023_v4 = vcombine.low %v476_v55, %v480_v56 }
  0x7a   :  { %343 = vmatpush1.bf16.msra.mxu0 %v4983_v26  ;;  %374 = vmatprep.mubr.bf16.mxu0 %v5980_v0  ;;  %v481_v60 = vld [vmem:[#allocation9 + $0xe8] sm:$0xff]  ;;  %v488_v63 = vld [vmem:[#allocation9 + $0x120] sm:$0xff] }
  0x7b   :  { %344 = vmatprep.subr.bf16.mxu0 %v4992_v29  ;;  %386 = vmatpush1.bf16.msra.mxu1 %v4985_v30  ;;  %v485_v1 = vld [vmem:[#allocation9 + $0x108] sm:$0xff]  ;;  %v5026_v3 = vcombine.high %v477_v59, %v481_v60  ;;  %v492_v5 = vld [vmem:[#allocation9 + $0x140] sm:$0xff]  ;;  %v5032_v7 = vcombine.high %v484_v61, %v488_v63  ;;  %v5025_v8 = vcombine.low %v477_v59, %v481_v60 }
  0x7c   :  { %417 = vmatprep.mubr.bf16.mxu1 %v5980_v0  ;;  %387 = vmatprep.subr.bf16.mxu1 %v4994_v33  ;;  %v5017_v0 = vcombine.low %v469_v51, %v473_v52  ;;  %v489_v2 = vld [vmem:[#allocation9 + $0x128] sm:$0xff]  ;;  %v496_v6 = vld [vmem:[#allocation9 + $0x160] sm:$0xff]  ;;  %v5031_v12 = vcombine.low %v484_v61, %v488_v63 }
  0x7d   :  { %v493_v9 = vld [vmem:[#allocation9 + $0x148] sm:$0xff]  ;;  %v5034_v11 = vcombine.high %v485_v1, %v489_v2  ;;  %v500_v13 = vld [vmem:[#allocation9 + $0x180] sm:$0xff]  ;;  %v5040_v15 = vcombine.high %v492_v5, %v496_v6  ;;  %v5033_v16 = vcombine.low %v485_v1, %v489_v2  ;;  %v5039_v20 = vcombine.low %v492_v5, %v496_v6 }
  0x7e   :  { %345 = vmatpush1.bf16.msra.mxu0 %v4991_v34  ;;  %v497_v10 = vld [vmem:[#allocation9 + $0x168] sm:$0xff]  ;;  %v504_v14 = vld [vmem:[#allocation9 + $0x1a0] sm:$0xff] }
  0x7f   :  { %3566 = vmatprep.subr.bf16.mxu0 %v5000_v37  ;;  %388 = vmatpush1.bf16.msra.mxu1 %v4993_v38  ;;  %v501_v17 = vld [vmem:[#allocation9 + $0x188] sm:$0xff]  ;;  %v5042_v19 = vcombine.high %v493_v9, %v497_v10  ;;  %v508_v21 = vld [vmem:[#allocation9 + $0x1c0] sm:$0xff]  ;;  %v5048_v23 = vcombine.high %v500_v13, %v504_v14  ;;  %v5047_v28 = vcombine.low %v500_v13, %v504_v14 }
  0x80   :  { %3738 = vmatprep.subr.bf16.mxu1 %v5002_v41  ;;  %v505_v18 = vld [vmem:[#allocation9 + $0x1a8] sm:$0xff]  ;;  %v512_v22 = vld [vmem:[#allocation9 + $0x1e0] sm:$0xff] }
  0x81   :  { %4997 = vmatmul.mubr.msk.bf16.vlgmr.msra.gmra.mrb[4].mxu0 %vm252_vm0, %v5741_v24  ;;  %v509_v25 = vld [vmem:[#allocation9 + $0x1c8] sm:$0xff]  ;;  %v5050_v27 = vcombine.high %v501_v17, %v505_v18  ;;  %v516_v29 = vld [vmem:[#allocation9 + $0x200] sm:$0xff]  ;;  %v5056_v31 = vcombine.high %v508_v21, %v512_v22  ;;  %v5049_v32 = vcombine.low %v501_v17, %v505_v18  ;;  %v5055_v36 = vcombine.low %v508_v21, %v512_v22 }
  0x82   :  { %3567 = vmatpush1.bf16.msra.mxu0 %v4999_v42  ;;  %4998 = vmatmul.mubr.msk.bf16.vlgmr.msra.gmra.mrb[4].mxu1 %vm252_vm0, %v5741_v24  ;;  %v5041_v24 = vcombine.low %v493_v9, %v497_v10  ;;  %v513_v26 = vld [vmem:[#allocation9 + $0x1e8] sm:$0xff]  ;;  %v520_v30 = vld [vmem:[#allocation9 + $0x220] sm:$0xff] }
  0x83   :  { %3568 = vmatprep.subr.bf16.mxu0 %v5008_v45  ;;  %3739 = vmatpush1.bf16.msra.mxu1 %v5001_v46  ;;  %v517_v33 = vld [vmem:[#allocation9 + $0x208] sm:$0xff]  ;;  %v5058_v35 = vcombine.high %v509_v25, %v513_v26  ;;  %v524_v37 = vld [vmem:[#allocation9 + $0x240] sm:$0xff]  ;;  %v5064_v39 = vcombine.high %v516_v29, %v520_v30  ;;  %v5057_v40 = vcombine.low %v509_v25, %v513_v26 }
  0x84   :  { %3740 = vmatprep.subr.bf16.mxu1 %v5010_v49  ;;  %v521_v34 = vld [vmem:[#allocation9 + $0x228] sm:$0xff]  ;;  %v528_v38 = vld [vmem:[#allocation9 + $0x260] sm:$0xff]  ;;  %v5063_v44 = vcombine.low %v516_v29, %v520_v30 }
  0x85   :  { %v525_v41 = vld [vmem:[#allocation9 + $0x248] sm:$0xff]  ;;  %v5066_v43 = vcombine.high %v517_v33, %v521_v34  ;;  %v532_v45 = vld [vmem:[#allocation9 + $0x280] sm:$0xff]  ;;  %v5072_v47 = vcombine.high %v524_v37, %v528_v38  ;;  %v5065_v48 = vcombine.low %v517_v33, %v521_v34  ;;  %v5071_v52 = vcombine.low %v524_v37, %v528_v38 }
  0x86   :  { %3569 = vmatpush1.bf16.msra.mxu0 %v5007_v50  ;;  %v529_v42 = vld [vmem:[#allocation9 + $0x268] sm:$0xff]  ;;  %v536_v46 = vld [vmem:[#allocation9 + $0x2a0] sm:$0xff] }
  0x87   :  { %3570 = vmatprep.subr.bf16.mxu0 %v5016_v53  ;;  %3741 = vmatpush1.bf16.msra.mxu1 %v5009_v54  ;;  %v533_v49 = vld [vmem:[#allocation9 + $0x288] sm:$0xff]  ;;  %v5074_v51 = vcombine.high %v525_v41, %v529_v42  ;;  %v540_v53 = vld [vmem:[#allocation9 + $0x2c0] sm:$0xff]  ;;  %v5080_v55 = vcombine.high %v532_v45, %v536_v46  ;;  %v5073_v56 = vcombine.low %v525_v41, %v529_v42  ;;  %v127_v42 = vlaneseq }
  0x88   :  { %3742 = vmatprep.subr.bf16.mxu1 %v5018_v57  ;;  %v537_v50 = vld [vmem:[#allocation9 + $0x2a8] sm:$0xff]  ;;  %v544_v54 = vld [vmem:[#allocation9 + $0x2e0] sm:$0xff]  ;;  %v5079_v60 = vcombine.low %v532_v45, %v536_v46  ;;  %v6125_v45 = vld [vmem:[#allocation8] sm:$0xff] }
  0x89   :  { %v541_v57 = vld [vmem:[#allocation9 + $0x2c8] sm:$0xff]  ;;  %v5082_v59 = vcombine.high %v533_v49, %v537_v50  ;;  %v548_v61 = vld [vmem:[#allocation9 + $0x300] sm:$0xff]  ;;  %v5088_v63 = vcombine.high %v540_v53, %v544_v54 }
  0x8a   :  { %3571 = vmatpush1.bf16.msra.mxu0 %v5015_v58  ;;  %v545_v58 = vld [vmem:[#allocation9 + $0x2e8] sm:$0xff]  ;;  %v556_v5 = vld [vmem:[#allocation9 + $0x340] sm:$0xff] }
  0x8b   :  { %3572 = vmatprep.subr.bf16.mxu0 %v5024_v62  ;;  %3743 = vmatpush1.bf16.msra.mxu1 %v5017_v0  ;;  %v552_v62 = vld [vmem:[#allocation9 + $0x320] sm:$0xff]  ;;  %v5081_v0 = vcombine.low %v533_v49, %v537_v50  ;;  %v549_v1 = vld [vmem:[#allocation9 + $0x308] sm:$0xff] }
  0x8c   :  { %3744 = vmatprep.subr.bf16.mxu1 %v5026_v3  ;;  %v553_v2 = vld [vmem:[#allocation9 + $0x328] sm:$0xff]  ;;  %v5090_v3 = vcombine.high %v541_v57, %v545_v58  ;;  %v560_v6 = vld [vmem:[#allocation9 + $0x360] sm:$0xff] }
  0x8d   :  { %v557_v9 = vld [vmem:[#allocation9 + $0x348] sm:$0xff]  ;;  %v5104_v13 = vcombine.high %v556_v5, %v560_v6  ;;  %v5097_v14 = vcombine.low %v549_v1, %v553_v2  ;;  %v564_v18 = vld [vmem:[#allocation9 + $0x380] sm:$0xff] }
  0x8e   :  { %3573 = vmatpush1.bf16.msra.mxu0 %v5023_v4  ;;  %v5087_v4 = vcombine.low %v540_v53, %v544_v54  ;;  %v561_v10 = vld [vmem:[#allocation9 + $0x368] sm:$0xff]  ;;  %v572_v26 = vld [vmem:[#allocation9 + $0x3c0] sm:$0xff] }
  0x8f   :  { %3574 = vmatprep.subr.bf16.mxu0 %v5032_v7  ;;  %3745 = vmatpush1.bf16.msra.mxu1 %v5025_v8  ;;  %v5096_v7 = vcombine.high %v548_v61, %v552_v62  ;;  %v5089_v8 = vcombine.low %v541_v57, %v545_v58  ;;  %v5105_v17 = vcombine.low %v557_v9, %v561_v10  ;;  %v569_v22 = vld [vmem:[#allocation9 + $0x3a8] sm:$0xff]  ;;  %v6106_v34 = vld [vmem:[#allocation9 + $0x400] sm:$0xff] }
  0x90   :  { %3746 = vmatprep.subr.bf16.mxu1 %v5034_v11  ;;  %v5098_v11 = vcombine.high %v549_v1, %v553_v2  ;;  %v577_v30 = vld [vmem:[#allocation9 + $0x3e8] sm:$0xff] }
  0x91   :  { %v6114_v38 = vld [vmem:[#allocation9 + $0x428] sm:$0xff] }
  0x92   :  { %3575 = vmatpush1.bf16.msra.mxu0 %v5031_v12  ;;  %v5095_v12 = vcombine.low %v548_v61, %v552_v62 }
  0x93   :  { %3576 = vmatprep.subr.bf16.mxu0 %v5040_v15  ;;  %3747 = vmatpush1.bf16.msra.mxu1 %v5033_v16  ;;  %v5106_v15 = vcombine.high %v557_v9, %v561_v10  ;;  %v5103_v16 = vcombine.low %v556_v5, %v560_v6 }
  0x94   :  { %3748 = vmatprep.subr.bf16.mxu1 %v5042_v19  ;;  %v568_v19 = vld [vmem:[#allocation9 + $0x3a0] sm:$0xff] }
  0x95   :  { %v5112_v21 = vcombine.high %v564_v18, %v568_v19 }
  0x96   :  { %3577 = vmatpush1.bf16.msra.mxu0 %v5039_v20  ;;  %v565_v20 = vld [vmem:[#allocation9 + $0x388] sm:$0xff] }
  0x97   :  { %3578 = vmatprep.subr.bf16.mxu0 %v5048_v23  ;;  %3749 = vmatpush1.bf16.msra.mxu1 %v5041_v24  ;;  %v5111_v23 = vcombine.low %v564_v18, %v568_v19  ;;  %v5113_v24 = vcombine.low %v565_v20, %v569_v22  ;;  %v5114_v25 = vcombine.high %v565_v20, %v569_v22 }
  0x98   :  { %3750 = vmatprep.subr.bf16.mxu1 %v5050_v27  ;;  %v576_v27 = vld [vmem:[#allocation9 + $0x3e0] sm:$0xff] }
  0x99   :  { %v5120_v29 = vcombine.high %v572_v26, %v576_v27 }
  0x9a   :  { %3579 = vmatpush1.bf16.msra.mxu0 %v5047_v28  ;;  %v573_v28 = vld [vmem:[#allocation9 + $0x3c8] sm:$0xff] }
  0x9b   :  { %3580 = vmatprep.subr.bf16.mxu0 %v5056_v31  ;;  %3751 = vmatpush1.bf16.msra.mxu1 %v5049_v32  ;;  %v5119_v31 = vcombine.low %v572_v26, %v576_v27  ;;  %v5121_v32 = vcombine.low %v573_v28, %v577_v30  ;;  %v5122_v33 = vcombine.high %v573_v28, %v577_v30  ;;  %v596_v26 = vld [vmem:[#allocation9 + $0x480] sm:$0xff] }
  0x9c   :  { %3752 = vmatprep.subr.bf16.mxu1 %v5058_v35  ;;  %v6108_v35 = vld [vmem:[#allocation9 + $0x420] sm:$0xff] }
  0x9d   :  { %v5128_v37 = vcombine.high %v6106_v34, %v6108_v35  ;;  %v600_v30 = vld [vmem:[#allocation9 + $0x4a0] sm:$0xff] }
  0x9e   :  { %3581 = vmatpush1.bf16.msra.mxu0 %v5055_v36  ;;  %v6110_v36 = vld [vmem:[#allocation9 + $0x408] sm:$0xff] }
  0x9f   :  { %3582 = vmatprep.subr.bf16.mxu0 %v5064_v39  ;;  %3753 = vmatpush1.bf16.msra.mxu1 %v5057_v40  ;;  %v5127_v39 = vcombine.low %v6106_v34, %v6108_v35  ;;  %v5129_v40 = vcombine.low %v6110_v36, %v6114_v38  ;;  %v5130_v41 = vcombine.high %v6110_v36, %v6114_v38 }
  0xa0   :  { %3754 = vmatprep.subr.bf16.mxu1 %v5066_v43  ;;  %v6122_v43 = vshrl.u32 %v127_v42, 7  ;;  %v5143_v36 = vcombine.low %v596_v26, %v600_v30 }
  0xa2   :  { %3583 = vmatpush1.bf16.msra.mxu0 %v5063_v44  ;;  %v129_v44 = vsub.s32 0, %v6122_v43  ;;  %v133_v46 = vsub.s32 1, %v6122_v43  ;;  %v145_v54 = vsub.s32 4, %v6122_v43 }
  0xa3   :  { %3584 = vmatprep.subr.bf16.mxu0 %v5072_v47  ;;  %3755 = vmatpush1.bf16.msra.mxu1 %v5065_v48  ;;  %v137_v47 = vsub.s32 2, %v6122_v43  ;;  %v141_v48 = vsub.s32 3, %v6122_v43 }
  0xa4   :  { %3756 = vmatprep.subr.bf16.mxu1 %v5074_v51  ;;  %v130_v49 = vrot.slane %v6125_v45, %v129_v44  ;;  %v134_v50 = vrot.slane %v6125_v45, %v133_v46 }
  0xa5   :  { %v138_v51 = vrot.slane %v6125_v45, %v137_v47  ;;  %v142_v53 = vrot.slane %v6125_v45, %v141_v48 }
  0xa6   :  { %3585 = vmatpush1.bf16.msra.mxu0 %v5071_v52 }
  0xa7   :  { %3586 = vmatprep.subr.bf16.mxu0 %v5080_v55  ;;  %3757 = vmatpush1.bf16.msra.mxu1 %v5073_v56  ;;  %v149_v55 = vsub.s32 5, %v6122_v43 }
  0xa8   :  { %3758 = vmatprep.subr.bf16.mxu1 %v5082_v59 }
  0xa9   :  { %v150_v5 = vrot.slane %v6125_v45, %v149_v55 }
  0xaa   :  { %3587 = vmatpush1.bf16.msra.mxu0 %v5079_v60 }
  0xab   :  { %3588 = vmatprep.subr.bf16.mxu0 %v5088_v63  ;;  %3759 = vmatpush1.bf16.msra.mxu1 %v5081_v0 }
  0xac   :  { %3760 = vmatprep.subr.bf16.mxu1 %v5090_v3 }
  0xae   :  { %3589 = vmatpush1.bf16.msra.mxu0 %v5087_v4  ;;  %v146_v4 = vrot.slane %v6125_v45, %v145_v54 }
  0xaf   :  { %3590 = vmatprep.subr.bf16.mxu0 %v5096_v7  ;;  %3761 = vmatpush1.bf16.msra.mxu1 %v5089_v8  ;;  %v588_v8 = vld [vmem:[#allocation9 + $0x440] sm:$0xff] }
  0xb0   :  { %3762 = vmatprep.subr.bf16.mxu1 %v5098_v11 }
  0xb2   :  { %3591 = vmatpush1.bf16.msra.mxu0 %v5095_v12 }
  0xb3   :  { %3592 = vmatprep.subr.bf16.mxu0 %v5104_v13  ;;  %3763 = vmatpush1.bf16.msra.mxu1 %v5097_v14  ;;  %v592_v14 = vld [vmem:[#allocation9 + $0x460] sm:$0xff] }
  0xb4   :  { %3764 = vmatprep.subr.bf16.mxu1 %v5106_v15  ;;  %v589_v15 = vld [vmem:[#allocation9 + $0x448] sm:$0xff] }
  0xb6   :  { %3593 = vmatpush1.bf16.msra.mxu0 %v5103_v16  ;;  %v593_v16 = vld [vmem:[#allocation9 + $0x468] sm:$0xff] }
  0xb7   :  { %3765 = vmatpush1.bf16.msra.mxu1 %v5105_v17  ;;  %3594 = vmatprep.subr.bf16.mxu0 %v5112_v21 }
  0xb8   :  { %3766 = vmatprep.subr.bf16.mxu1 %v5114_v25  ;;  %v5138_v25 = vcombine.high %v589_v15, %v593_v16 }
  0xba   :  { %3595 = vmatpush1.bf16.msra.mxu0 %v5111_v23 }
  0xbb   :  { %3767 = vmatpush1.bf16.msra.mxu1 %v5113_v24  ;;  %3596 = vmatprep.subr.bf16.mxu0 %v5120_v29  ;;  %v5136_v24 = vcombine.high %v588_v8, %v592_v14 }
  0xbc   :  { %3768 = vmatprep.subr.bf16.mxu1 %v5122_v33 }
  0xbe   :  { %3597 = vmatpush1.bf16.msra.mxu0 %v5119_v31  ;;  %v597_v31 = vld [vmem:[#allocation9 + $0x488] sm:$0xff] }
  0xbf   :  { %3769 = vmatpush1.bf16.msra.mxu1 %v5121_v32  ;;  %3609 = vmatprep.subr.bf16.mxu0 %v5128_v37  ;;  %v601_v32 = vld [vmem:[#allocation9 + $0x4a8] sm:$0xff] }
  0xc0   :  { %3781 = vmatprep.subr.bf16.mxu1 %v5130_v41  ;;  %v5145_v38 = vcombine.low %v597_v31, %v601_v32 }
 0x14c   :  { %v290_v52 = vpop.f32.mrb[0].mxu0  ;;  %v333_v60 = vpop.f32.mrb[0].mxu1 }
 0x14d   :  { %v291_v56 = vadd.f32 %v290_v52, %v130_v49  ;;  %v292_v57 = vpop.f32.mrb[1].mxu0  ;;  %v334_v63 = vadd.f32 %v333_v60, %v138_v51  ;;  %v335_v0 = vpop.f32.mrb[1].mxu1  ;;  %v5137_v52 = vcombine.low %v589_v15, %v593_v16 }
 0x14e   :  { %v293_v58 = vadd.f32 %v292_v57, %v134_v50  ;;  %v294_v59 = vpop.f32.mrb[2].mxu0  ;;  %v336_v2 = vadd.f32 %v335_v0, %v142_v53  ;;  %v337_v3 = vpop.f32.mrb[2].mxu1  ;;  %v5144_v57 = vcombine.high %v596_v26, %v600_v30 }
 0x14f   :  { %v295_v61 = vadd.f32 %v294_v59, %v130_v49  ;;  %v296_v62 = vpop.f32.mrb[3].mxu0  ;;  %v428_v6 = vmax.f32 %v291_v56, 0.0  ;;  %v430_v9 = vmax.f32 %v334_v63, 0.0  ;;  %v338_v10 = vadd.f32 %v337_v3, %v138_v51  ;;  %v339_v11 = vpop.f32.mrb[3].mxu1  ;;  %v604_v59 = vld [vmem:[#allocation9 + $0x4c0] sm:$0xff]  ;;  %v609_v63 = vld [vmem:[#allocation9 + $0x4e8] sm:$0xff] }
 0x150   :  { %v297_v1 = vadd.f32 %v296_v62, %v134_v50  ;;  %v429_v12 = vmax.f32 %v293_v58, 0.0  ;;  %v431_v17 = vmax.f32 %v336_v2, 0.0  ;;  %v340_v18 = vadd.f32 %v339_v11, %v142_v53  ;;  %v605_v62 = vld [vmem:[#allocation9 + $0x4c8] sm:$0xff]  ;;  %v616_v2 = vld [vmem:[#allocation9 + $0x520] sm:$0xff] }
 0x151   :  { %v436_v7 = vmax.f32 %v295_v61, 0.0  ;;  %v438_v20 = vmax.f32 %v338_v10, 0.0  ;;  %v5135_v51 = vcombine.low %v588_v8, %v592_v14  ;;  %v5146_v58 = vcombine.high %v597_v31, %v601_v32  ;;  %v608_v61 = vld [vmem:[#allocation9 + $0x4e0] sm:$0xff]  ;;  %v613_v3 = vld [vmem:[#allocation9 + $0x508] sm:$0xff] }
 0x152   :  { %v437_v13 = vmax.f32 %v297_v1, 0.0  ;;  %v439_v22 = vmax.f32 %v340_v18, 0.0  ;;  %v5154_v0 = vcombine.high %v605_v62, %v609_v63  ;;  %v612_v1 = vld [vmem:[#allocation9 + $0x500] sm:$0xff]  ;;  %v621_v11 = vld [vmem:[#allocation9 + $0x548] sm:$0xff] }
 0x153   :  { %v6150_v19 = vpack.c.bf16 %v436_v7, %v428_v6  ;;  %v6154_v27 = vpack.c.bf16 %v438_v20, %v430_v9  ;;  %v5153_v6 = vcombine.low %v605_v62, %v609_v63  ;;  %v5160_v7 = vcombine.high %v612_v1, %v616_v2  ;;  %v620_v9 = vld [vmem:[#allocation9 + $0x540] sm:$0xff]  ;;  %v629_v20 = vld [vmem:[#allocation9 + $0x588] sm:$0xff] }
 0x154   :  { %v6152_v21 = vpack.c.bf16 %v437_v13, %v429_v12  ;;  %v376_v23 = vpop.f32.mrb[4].mxu0  ;;  %v6158_v33 = vpack.c.bf16 %v439_v22, %v431_v17  ;;  %v624_v10 = vld [vmem:[#allocation9 + $0x560] sm:$0xff]  ;;  %v625_v12 = vld [vmem:[#allocation9 + $0x568] sm:$0xff]  ;;  %v5159_v13 = vcombine.low %v612_v1, %v616_v2 }
 0x155   :  { %v377_v28 = vadd.f32 %v376_v23, %v146_v4  ;;  %v378_v29 = vpop.f32.mrb[5].mxu0  ;;  %v5168_v15 = vcombine.high %v620_v9, %v624_v10  ;;  %v5170_v16 = vcombine.high %v621_v11, %v625_v12  ;;  %v628_v17 = vld [vmem:[#allocation9 + $0x580] sm:$0xff]  ;;  %v633_v22 = vld [vmem:[#allocation9 + $0x5a8] sm:$0xff]  ;;  %v5167_v23 = vcombine.low %v620_v9, %v624_v10  ;;  %v419_v26 = vpop.f32.mrb[4].mxu1 }
 0x156   :  { %3598 = vmatprep.mubr.bf16.mxu0 %v6152_v21  ;;  %3770 = vmatprep.mubr.bf16.mxu1 %v6152_v21  ;;  %v379_v37 = vadd.f32 %v378_v29, %v150_v5  ;;  %v380_v41 = vpop.f32.mrb[6].mxu0  ;;  %v632_v18 = vld [vmem:[#allocation9 + $0x5a0] sm:$0xff]  ;;  %v5178_v30 = vcombine.high %v629_v20, %v633_v22  ;;  %v421_v32 = vpop.f32.mrb[5].mxu1  ;;  %v653_v10 = vld [vmem:[#allocation9 + $0x648] sm:$0xff] }
 0x157   :  { %3599 = vmatmul.mubr.bf16.vlgmr.msra.gmra.mrb[8].mxu0 %v6150_v19  ;;  %3771 = vmatmul.mubr.bf16.vlgmr.msra.gmra.mrb[8].mxu1 %v6150_v19  ;;  %v432_v42 = vmax.f32 %v377_v28, 0.0  ;;  %v381_v49 = vadd.f32 %v380_v41, %v146_v4  ;;  %v382_v50 = vpop.f32.mrb[7].mxu0  ;;  %v617_v4 = vld [vmem:[#allocation9 + $0x528] sm:$0xff]  ;;  %v157_v28 = vsub.s32 7, %v6122_v43  ;;  %v5176_v29 = vcombine.high %v628_v17, %v632_v18  ;;  %v636_v31 = vld [vmem:[#allocation9 + $0x5c0] sm:$0xff] }
 0x158   :  { %3610 = vmatpush1.bf16.msra.mxu0 %v5127_v39  ;;  %3782 = vmatpush1.bf16.msra.mxu1 %v5129_v40  ;;  %v433_v53 = vmax.f32 %v379_v37, 0.0  ;;  %v383_v56 = vadd.f32 %v382_v50, %v150_v5  ;;  %v5152_v40 = vcombine.high %v604_v59, %v608_v61  ;;  %v5151_v5 = vcombine.low %v604_v59, %v608_v61  ;;  %v640_v37 = vld [vmem:[#allocation9 + $0x5e0] sm:$0xff]  ;;  %v637_v41 = vld [vmem:[#allocation9 + $0x5c8] sm:$0xff] }
 0x159   :  { %3611 = vmatprep.subr.bf16.mxu0 %v5136_v24  ;;  %3783 = vmatprep.subr.bf16.mxu1 %v5138_v25  ;;  %v440_v60 = vmax.f32 %v381_v49, 0.0  ;;  %v5162_v8 = vcombine.high %v613_v3, %v617_v4  ;;  %v5161_v14 = vcombine.low %v613_v3, %v617_v4  ;;  %v5169_v24 = vcombine.low %v621_v11, %v625_v12  ;;  %v644_v62 = vld [vmem:[#allocation9 + $0x600] sm:$0xff]  ;;  %v657_v11 = vld [vmem:[#allocation9 + $0x668] sm:$0xff] }
 0x15a   :  { %3641 = vmatprep.mubr.bf16.mxu0 %v6158_v33  ;;  %3813 = vmatprep.mubr.bf16.mxu1 %v6158_v33  ;;  %v441_v34 = vmax.f32 %v383_v56, 0.0  ;;  %v153_v25 = vsub.s32 6, %v6122_v43  ;;  %v158_v50 = vrot.slane %v6125_v45, %v157_v28  ;;  %v5183_v2 = vcombine.low %v636_v31, %v640_v37  ;;  %v656_v9 = vld [vmem:[#allocation9 + $0x660] sm:$0xff] }
 0x15b   :  { %v6170_v35 = vpack.c.bf16 %v440_v60, %v432_v42  ;;  %v641_v42 = vld [vmem:[#allocation9 + $0x5e8] sm:$0xff]  ;;  %v5184_v60 = vcombine.high %v636_v31, %v640_v37 }
 0x15c   :  { %3612 = vmatpush1.bf16.msra.mxu0 %v5135_v51  ;;  %3784 = vmatpush1.bf16.msra.mxu1 %v5137_v52  ;;  %v6172_v39 = vpack.c.bf16 %v441_v34, %v433_v53  ;;  %v154_v49 = vrot.slane %v6125_v45, %v153_v25  ;;  %v423_v51 = vpop.f32.mrb[6].mxu1  ;;  %v5175_v52 = vcombine.low %v628_v17, %v632_v18  ;;  %v648_v34 = vld [vmem:[#allocation9 + $0x620] sm:$0xff]  ;;  %v661_v18 = vld [vmem:[#allocation9 + $0x688] sm:$0xff] }
 0x15d   :  { %3613 = vmatprep.subr.bf16.mxu0 %v5144_v57  ;;  %3785 = vmatprep.subr.bf16.mxu1 %v5146_v58  ;;  %v5177_v53 = vcombine.low %v629_v20, %v633_v22  ;;  %v422_v57 = vadd.f32 %v421_v32, %v158_v50  ;;  %v425_v59 = vpop.f32.mrb[7].mxu1  ;;  %v5186_v61 = vcombine.high %v637_v41, %v641_v42  ;;  %v664_v17 = vld [vmem:[#allocation9 + $0x6a0] sm:$0xff]  ;;  %v665_v20 = vld [vmem:[#allocation9 + $0x6a8] sm:$0xff] }
 0x15e   :  { %v420_v56 = vadd.f32 %v419_v26, %v154_v49  ;;  %v424_v58 = vadd.f32 %v423_v51, %v154_v49  ;;  %v426_v63 = vadd.f32 %v425_v59, %v158_v50  ;;  %v5185_v3 = vcombine.low %v637_v41, %v641_v42  ;;  %v669_v31 = vld [vmem:[#allocation9 + $0x6c8] sm:$0xff]  ;;  %v676_v50 = vld [vmem:[#allocation9 + $0x700] sm:$0xff] }
 0x15f   :  { %v435_v45 = vmax.f32 %v422_v57, 0.0  ;;  %v5191_v12 = vcombine.low %v644_v62, %v648_v34  ;;  %v5210_v26 = vcombine.high %v661_v18, %v665_v20  ;;  %v673_v32 = vld [vmem:[#allocation9 + $0x6e8] sm:$0xff]  ;;  %v5209_v41 = vcombine.low %v661_v18, %v665_v20  ;;  %v680_v51 = vld [vmem:[#allocation9 + $0x720] sm:$0xff] }
 0x160   :  { %3614 = vmatpush1.bf16.msra.mxu0 %v5143_v36  ;;  %3786 = vmatpush1.bf16.msra.mxu1 %v5145_v38  ;;  %v645_v36 = vld [vmem:[#allocation9 + $0x608] sm:$0xff]  ;;  %v443_v1 = vmax.f32 %v426_v63, 0.0  ;;  %v5218_v49 = vcombine.high %v669_v31, %v673_v32  ;;  %v5217_v57 = vcombine.low %v669_v31, %v673_v32  ;;  %v712_v18 = vld [vmem:[#allocation9 + $0x820] sm:$0xff] }
 0x161   :  { %3615 = vmatprep.subr.bf16.mxu0 %v5152_v40  ;;  %3787 = vmatprep.subr.bf16.mxu1 %v5154_v0  ;;  %v649_v38 = vld [vmem:[#allocation9 + $0x628] sm:$0xff]  ;;  %v434_v40 = vmax.f32 %v420_v56, 0.0  ;;  %v442_v0 = vmax.f32 %v424_v58, 0.0  ;;  %v5224_v58 = vcombine.high %v676_v50, %v680_v51  ;;  %v720_v31 = vld [vmem:[#allocation9 + $0x860] sm:$0xff] }
 0x162   :  { %v689_v63 = vld [vmem:[#allocation9 + $0x768] sm:$0xff] }
 0x163   :  { %v6182_v4 = vpack.c.bf16 %v442_v0, %v434_v40  ;;  %v696_v0 = vld [vmem:[#allocation9 + $0x7a0] sm:$0xff]  ;;  %v709_v20 = vld [vmem:[#allocation9 + $0x808] sm:$0xff] }
 0x164   :  { %3616 = vmatpush1.bf16.msra.mxu0 %v5151_v5  ;;  %3788 = vmatpush1.bf16.msra.mxu1 %v5153_v6  ;;  %v5192_v5 = vcombine.high %v644_v62, %v648_v34  ;;  %v5194_v6 = vcombine.high %v645_v36, %v649_v38  ;;  %v685_v62 = vld [vmem:[#allocation9 + $0x748] sm:$0xff]  ;;  %v5223_v34 = vcombine.low %v676_v50, %v680_v51  ;;  %v724_v51 = vld [vmem:[#allocation9 + $0x880] sm:$0xff] }
 0x165   :  { %3617 = vmatprep.subr.bf16.mxu0 %v5160_v7  ;;  %3789 = vmatprep.subr.bf16.mxu1 %v5162_v8  ;;  %v652_v7 = vld [vmem:[#allocation9 + $0x640] sm:$0xff]  ;;  %v6184_v8 = vpack.c.bf16 %v443_v1, %v435_v45  ;;  %v5234_v40 = vcombine.high %v685_v62, %v689_v63  ;;  %v693_v1 = vld [vmem:[#allocation9 + $0x788] sm:$0xff] }
 0x166   :  { %v5199_v22 = vcombine.low %v652_v7, %v656_v9  ;;  %v692_v45 = vld [vmem:[#allocation9 + $0x780] sm:$0xff]  ;;  %v717_v32 = vld [vmem:[#allocation9 + $0x848] sm:$0xff] }
 0x168   :  { %3618 = vmatpush1.bf16.msra.mxu0 %v5159_v13  ;;  %3790 = vmatpush1.bf16.msra.mxu1 %v5161_v14  ;;  %v5193_v13 = vcombine.low %v645_v36, %v649_v38  ;;  %v5200_v14 = vcombine.high %v652_v7, %v656_v9  ;;  %v700_v9 = vld [vmem:[#allocation9 + $0x7c0] sm:$0xff] }
 0x169   :  { %3619 = vmatprep.subr.bf16.mxu0 %v5168_v15  ;;  %3791 = vmatprep.subr.bf16.mxu1 %v5170_v16  ;;  %v5202_v15 = vcombine.high %v653_v10, %v657_v11  ;;  %v660_v16 = vld [vmem:[#allocation9 + $0x680] sm:$0xff] }
 0x16a   :  { %v5207_v37 = vcombine.low %v660_v16, %v664_v17 }
 0x16c   :  { %3620 = vmatpush1.bf16.msra.mxu0 %v5167_v23  ;;  %3792 = vmatpush1.bf16.msra.mxu1 %v5169_v24  ;;  %v5201_v23 = vcombine.low %v653_v10, %v657_v11  ;;  %v5208_v24 = vcombine.high %v660_v16, %v664_v17  ;;  %v704_v10 = vld [vmem:[#allocation9 + $0x7e0] sm:$0xff]  ;;  %v701_v11 = vld [vmem:[#allocation9 + $0x7c8] sm:$0xff] }
 0x16d   :  { %3621 = vmatprep.subr.bf16.mxu0 %v5176_v29  ;;  %3793 = vmatprep.subr.bf16.mxu1 %v5178_v30  ;;  %v668_v29 = vld [vmem:[#allocation9 + $0x6c0] sm:$0xff] }
 0x16e   :  { %v672_v30 = vld [vmem:[#allocation9 + $0x6e0] sm:$0xff] }
 0x16f   :  { %v5216_v42 = vcombine.high %v668_v29, %v672_v30  ;;  %v5215_v56 = vcombine.low %v668_v29, %v672_v30  ;;  %v708_v17 = vld [vmem:[#allocation9 + $0x800] sm:$0xff] }
 0x170   :  { %3622 = vmatpush1.bf16.msra.mxu0 %v5175_v52  ;;  %3794 = vmatpush1.bf16.msra.mxu1 %v5177_v53  ;;  %v677_v52 = vld [vmem:[#allocation9 + $0x708] sm:$0xff]  ;;  %v716_v30 = vld [vmem:[#allocation9 + $0x840] sm:$0xff] }
 0x171   :  { %3623 = vmatprep.subr.bf16.mxu0 %v5184_v60  ;;  %3795 = vmatprep.subr.bf16.mxu1 %v5186_v61  ;;  %v681_v53 = vld [vmem:[#allocation9 + $0x728] sm:$0xff]  ;;  %v684_v60 = vld [vmem:[#allocation9 + $0x740] sm:$0xff] }
 0x172   :  { %v5226_v59 = vcombine.high %v677_v52, %v681_v53  ;;  %v688_v61 = vld [vmem:[#allocation9 + $0x760] sm:$0xff]  ;;  %v5225_v36 = vcombine.low %v677_v52, %v681_v53  ;;  %v725_v53 = vld [vmem:[#allocation9 + $0x888] sm:$0xff] }
 0x173   :  { %v5232_v38 = vcombine.high %v684_v60, %v688_v61  ;;  %v728_v52 = vld [vmem:[#allocation9 + $0x8a0] sm:$0xff] }
 0x174   :  { %3624 = vmatpush1.bf16.msra.mxu0 %v5183_v2  ;;  %3796 = vmatpush1.bf16.msra.mxu1 %v5185_v3  ;;  %v697_v2 = vld [vmem:[#allocation9 + $0x7a8] sm:$0xff]  ;;  %v5231_v3 = vcombine.low %v684_v60, %v688_v61  ;;  %v732_v61 = vld [vmem:[#allocation9 + $0x8c0] sm:$0xff] }
 0x175   :  { %3625 = vmatprep.subr.bf16.mxu0 %v5192_v5  ;;  %3797 = vmatprep.subr.bf16.mxu1 %v5194_v6  ;;  %v5233_v5 = vcombine.low %v685_v62, %v689_v63  ;;  %v5240_v6 = vcombine.high %v692_v45, %v696_v0  ;;  %v5242_v7 = vcombine.high %v693_v1, %v697_v2  ;;  %v736_v62 = vld [vmem:[#allocation9 + $0x8e0] sm:$0xff]  ;;  %v733_v63 = vld [vmem:[#allocation9 + $0x8c8] sm:$0xff] }
 0x178   :  { %3626 = vmatpush1.bf16.msra.mxu0 %v5191_v12  ;;  %3798 = vmatpush1.bf16.msra.mxu1 %v5193_v13  ;;  %v705_v12 = vld [vmem:[#allocation9 + $0x7e8] sm:$0xff]  ;;  %v5239_v13 = vcombine.low %v692_v45, %v696_v0  ;;  %v740_v0 = vld [vmem:[#allocation9 + $0x900] sm:$0xff] }
 0x179   :  { %3627 = vmatprep.subr.bf16.mxu0 %v5200_v14  ;;  %3799 = vmatprep.subr.bf16.mxu1 %v5202_v15  ;;  %v5241_v14 = vcombine.low %v693_v1, %v697_v2  ;;  %v5248_v15 = vcombine.high %v700_v9, %v704_v10  ;;  %v5250_v16 = vcombine.high %v701_v11, %v705_v12  ;;  %v744_v1 = vld [vmem:[#allocation9 + $0x920] sm:$0xff]  ;;  %v741_v2 = vld [vmem:[#allocation9 + $0x908] sm:$0xff] }
 0x17c   :  { %3628 = vmatpush1.bf16.msra.mxu0 %v5199_v22  ;;  %3800 = vmatpush1.bf16.msra.mxu1 %v5201_v23  ;;  %v713_v22 = vld [vmem:[#allocation9 + $0x828] sm:$0xff]  ;;  %v5247_v23 = vcombine.low %v700_v9, %v704_v10  ;;  %v748_v10 = vld [vmem:[#allocation9 + $0x940] sm:$0xff] }
 0x17d   :  { %3629 = vmatprep.subr.bf16.mxu0 %v5208_v24  ;;  %3801 = vmatprep.subr.bf16.mxu1 %v5210_v26  ;;  %v5249_v24 = vcombine.low %v701_v11, %v705_v12  ;;  %v5256_v26 = vcombine.high %v708_v17, %v712_v18  ;;  %v5258_v29 = vcombine.high %v709_v20, %v713_v22  ;;  %v752_v11 = vld [vmem:[#allocation9 + $0x960] sm:$0xff]  ;;  %v749_v12 = vld [vmem:[#allocation9 + $0x948] sm:$0xff] }
 0x180   :  { %3630 = vmatpush1.bf16.msra.mxu0 %v5207_v37  ;;  %3802 = vmatpush1.bf16.msra.mxu1 %v5209_v41  ;;  %v721_v37 = vld [vmem:[#allocation9 + $0x868] sm:$0xff]  ;;  %v5255_v41 = vcombine.low %v708_v17, %v712_v18  ;;  %v756_v18 = vld [vmem:[#allocation9 + $0x980] sm:$0xff] }
 0x181   :  { %3631 = vmatprep.subr.bf16.mxu0 %v5216_v42  ;;  %3803 = vmatprep.subr.bf16.mxu1 %v5218_v49  ;;  %v5257_v42 = vcombine.low %v709_v20, %v713_v22  ;;  %v5264_v49 = vcombine.high %v716_v30, %v720_v31  ;;  %v5266_v50 = vcombine.high %v717_v32, %v721_v37  ;;  %v760_v20 = vld [vmem:[#allocation9 + $0x9a0] sm:$0xff]  ;;  %v757_v22 = vld [vmem:[#allocation9 + $0x988] sm:$0xff] }
 0x184   :  { %3632 = vmatpush1.bf16.msra.mxu0 %v5215_v56  ;;  %3804 = vmatpush1.bf16.msra.mxu1 %v5217_v57  ;;  %v729_v56 = vld [vmem:[#allocation9 + $0x8a8] sm:$0xff]  ;;  %v5263_v57 = vcombine.low %v716_v30, %v720_v31  ;;  %v764_v31 = vld [vmem:[#allocation9 + $0x9c0] sm:$0xff] }
 0x185   :  { %3633 = vmatprep.subr.bf16.mxu0 %v5224_v58  ;;  %3805 = vmatprep.subr.bf16.mxu1 %v5226_v59  ;;  %v5265_v58 = vcombine.low %v717_v32, %v721_v37  ;;  %v5272_v59 = vcombine.high %v724_v51, %v728_v52  ;;  %v5274_v60 = vcombine.high %v725_v53, %v729_v56  ;;  %v768_v32 = vld [vmem:[#allocation9 + $0x9e0] sm:$0xff]  ;;  %v765_v37 = vld [vmem:[#allocation9 + $0x9c8] sm:$0xff] }
 0x188   :  { %3634 = vmatpush1.bf16.msra.mxu0 %v5223_v34  ;;  %3806 = vmatpush1.bf16.msra.mxu1 %v5225_v36  ;;  %v737_v34 = vld [vmem:[#allocation9 + $0x8e8] sm:$0xff]  ;;  %v5271_v36 = vcombine.low %v724_v51, %v728_v52  ;;  %v772_v52 = vld [vmem:[#allocation9 + $0xa00] sm:$0xff] }
 0x189   :  { %3635 = vmatprep.subr.bf16.mxu0 %v5232_v38  ;;  %3807 = vmatprep.subr.bf16.mxu1 %v5234_v40  ;;  %v5273_v38 = vcombine.low %v725_v53, %v729_v56  ;;  %v5280_v40 = vcombine.high %v732_v61, %v736_v62  ;;  %v5282_v45 = vcombine.high %v733_v63, %v737_v34  ;;  %v776_v53 = vld [vmem:[#allocation9 + $0xa20] sm:$0xff]  ;;  %v773_v56 = vld [vmem:[#allocation9 + $0xa08] sm:$0xff] }
 0x18c   :  { %3636 = vmatpush1.bf16.msra.mxu0 %v5231_v3  ;;  %3808 = vmatpush1.bf16.msra.mxu1 %v5233_v5  ;;  %v745_v3 = vld [vmem:[#allocation9 + $0x928] sm:$0xff]  ;;  %v5279_v5 = vcombine.low %v732_v61, %v736_v62  ;;  %v780_v62 = vld [vmem:[#allocation9 + $0xa40] sm:$0xff] }
 0x18d   :  { %3637 = vmatprep.subr.bf16.mxu0 %v5240_v6  ;;  %3809 = vmatprep.subr.bf16.mxu1 %v5242_v7  ;;  %v5281_v6 = vcombine.low %v733_v63, %v737_v34  ;;  %v5288_v7 = vcombine.high %v740_v0, %v744_v1  ;;  %v5290_v9 = vcombine.high %v741_v2, %v745_v3  ;;  %v784_v63 = vld [vmem:[#allocation9 + $0xa60] sm:$0xff]  ;;  %v781_v34 = vld [vmem:[#allocation9 + $0xa48] sm:$0xff] }
 0x190   :  { %3638 = vmatpush1.bf16.msra.mxu0 %v5239_v13  ;;  %3810 = vmatpush1.bf16.msra.mxu1 %v5241_v14  ;;  %v753_v13 = vld [vmem:[#allocation9 + $0x968] sm:$0xff]  ;;  %v5287_v14 = vcombine.low %v740_v0, %v744_v1  ;;  %v788_v1 = vld [vmem:[#allocation9 + $0xa80] sm:$0xff] }
 0x191   :  { %3639 = vmatprep.subr.bf16.mxu0 %v5248_v15  ;;  %3811 = vmatprep.subr.bf16.mxu1 %v5250_v16  ;;  %v5289_v15 = vcombine.low %v741_v2, %v745_v3  ;;  %v5296_v16 = vcombine.high %v748_v10, %v752_v11  ;;  %v5298_v17 = vcombine.high %v749_v12, %v753_v13  ;;  %v792_v2 = vld [vmem:[#allocation9 + $0xaa0] sm:$0xff]  ;;  %v789_v3 = vld [vmem:[#allocation9 + $0xa88] sm:$0xff] }
 0x194   :  { %3640 = vmatpush1.bf16.msra.mxu0 %v5247_v23  ;;  %3812 = vmatpush1.bf16.msra.mxu1 %v5249_v24  ;;  %v761_v23 = vld [vmem:[#allocation9 + $0x9a8] sm:$0xff]  ;;  %v5295_v24 = vcombine.low %v748_v10, %v752_v11  ;;  %v796_v11 = vld [vmem:[#allocation9 + $0xac0] sm:$0xff] }
 0x195   :  { %3652 = vmatprep.subr.bf16.mxu0 %v5256_v26  ;;  %3824 = vmatprep.subr.bf16.mxu1 %v5258_v29  ;;  %v5297_v26 = vcombine.low %v749_v12, %v753_v13  ;;  %v5304_v29 = vcombine.high %v756_v18, %v760_v20  ;;  %v5306_v30 = vcombine.high %v757_v22, %v761_v23  ;;  %v800_v12 = vld [vmem:[#allocation9 + $0xae0] sm:$0xff]  ;;  %v797_v13 = vld [vmem:[#allocation9 + $0xac8] sm:$0xff] }
 0x197   :  { %3642 = vmatmul.mubr.bf16.vlgmr.msra.gmra.mrb[8].mxu0 %v6154_v27  ;;  %3814 = vmatmul.mubr.bf16.vlgmr.msra.gmra.mrb[8].mxu1 %v6154_v27 }
 0x198   :  { %3653 = vmatpush1.bf16.msra.mxu0 %v5255_v41  ;;  %3825 = vmatpush1.bf16.msra.mxu1 %v5257_v42  ;;  %v769_v41 = vld [vmem:[#allocation9 + $0x9e8] sm:$0xff]  ;;  %v5303_v42 = vcombine.low %v756_v18, %v760_v20  ;;  %v804_v20 = vld [vmem:[#allocation9 + $0xb00] sm:$0xff] }
 0x199   :  { %3654 = vmatprep.subr.bf16.mxu0 %v5264_v49  ;;  %3826 = vmatprep.subr.bf16.mxu1 %v5266_v50  ;;  %v5305_v49 = vcombine.low %v757_v22, %v761_v23  ;;  %v5312_v50 = vcombine.high %v764_v31, %v768_v32  ;;  %v5314_v51 = vcombine.high %v765_v37, %v769_v41  ;;  %v808_v22 = vld [vmem:[#allocation9 + $0xb20] sm:$0xff]  ;;  %v805_v23 = vld [vmem:[#allocation9 + $0xb08] sm:$0xff] }
 0x19a   :  { %3684 = vmatprep.mubr.bf16.mxu0 %v6172_v39  ;;  %3856 = vmatprep.mubr.bf16.mxu1 %v6172_v39 }
 0x19c   :  { %3655 = vmatpush1.bf16.msra.mxu0 %v5263_v57  ;;  %3827 = vmatpush1.bf16.msra.mxu1 %v5265_v58  ;;  %v777_v57 = vld [vmem:[#allocation9 + $0xa28] sm:$0xff]  ;;  %v5311_v58 = vcombine.low %v764_v31, %v768_v32  ;;  %v812_v32 = vld [vmem:[#allocation9 + $0xb40] sm:$0xff] }
 0x19d   :  { %3656 = vmatprep.subr.bf16.mxu0 %v5272_v59  ;;  %3828 = vmatprep.subr.bf16.mxu1 %v5274_v60  ;;  %v5313_v59 = vcombine.low %v765_v37, %v769_v41  ;;  %v5320_v60 = vcombine.high %v772_v52, %v776_v53  ;;  %v5322_v61 = vcombine.high %v773_v56, %v777_v57  ;;  %v816_v37 = vld [vmem:[#allocation9 + $0xb60] sm:$0xff]  ;;  %v813_v41 = vld [vmem:[#allocation9 + $0xb48] sm:$0xff] }
 0x1a0   :  { %3657 = vmatpush1.bf16.msra.mxu0 %v5271_v36  ;;  %3829 = vmatpush1.bf16.msra.mxu1 %v5273_v38  ;;  %v785_v36 = vld [vmem:[#allocation9 + $0xa68] sm:$0xff]  ;;  %v5319_v38 = vcombine.low %v772_v52, %v776_v53  ;;  %v820_v53 = vld [vmem:[#allocation9 + $0xb80] sm:$0xff] }
 0x1a1   :  { %3658 = vmatprep.subr.bf16.mxu0 %v5280_v40  ;;  %3830 = vmatprep.subr.bf16.mxu1 %v5282_v45  ;;  %v5321_v40 = vcombine.low %v773_v56, %v777_v57  ;;  %v5328_v45 = vcombine.high %v780_v62, %v784_v63  ;;  %v5330_v0 = vcombine.high %v781_v34, %v785_v36  ;;  %v824_v56 = vld [vmem:[#allocation9 + $0xba0] sm:$0xff]  ;;  %v821_v57 = vld [vmem:[#allocation9 + $0xb88] sm:$0xff] }
 0x1a4   :  { %3659 = vmatpush1.bf16.msra.mxu0 %v5279_v5  ;;  %3831 = vmatpush1.bf16.msra.mxu1 %v5281_v6  ;;  %v793_v5 = vld [vmem:[#allocation9 + $0xaa8] sm:$0xff]  ;;  %v5327_v6 = vcombine.low %v780_v62, %v784_v63  ;;  %v828_v63 = vld [vmem:[#allocation9 + $0xbc0] sm:$0xff] }
 0x1a5   :  { %3660 = vmatprep.subr.bf16.mxu0 %v5288_v7  ;;  %3832 = vmatprep.subr.bf16.mxu1 %v5290_v9  ;;  %v5329_v7 = vcombine.low %v781_v34, %v785_v36  ;;  %v5336_v9 = vcombine.high %v788_v1, %v792_v2  ;;  %v5338_v10 = vcombine.high %v789_v3, %v793_v5  ;;  %v832_v34 = vld [vmem:[#allocation9 + $0xbe0] sm:$0xff]  ;;  %v829_v36 = vld [vmem:[#allocation9 + $0xbc8] sm:$0xff] }
 0x1a8   :  { %3661 = vmatpush1.bf16.msra.mxu0 %v5287_v14  ;;  %3833 = vmatpush1.bf16.msra.mxu1 %v5289_v15  ;;  %v801_v14 = vld [vmem:[#allocation9 + $0xae8] sm:$0xff]  ;;  %v5335_v15 = vcombine.low %v788_v1, %v792_v2  ;;  %v836_v2 = vld [vmem:[#allocation9 + $0xc00] sm:$0xff] }
 0x1a9   :  { %3662 = vmatprep.subr.bf16.mxu0 %v5296_v16  ;;  %3834 = vmatprep.subr.bf16.mxu1 %v5298_v17  ;;  %v5337_v16 = vcombine.low %v789_v3, %v793_v5  ;;  %v5344_v17 = vcombine.high %v796_v11, %v800_v12  ;;  %v5346_v18 = vcombine.high %v797_v13, %v801_v14  ;;  %v840_v3 = vld [vmem:[#allocation9 + $0xc20] sm:$0xff]  ;;  %v837_v5 = vld [vmem:[#allocation9 + $0xc08] sm:$0xff] }
 0x1ac   :  { %3663 = vmatpush1.bf16.msra.mxu0 %v5295_v24  ;;  %3835 = vmatpush1.bf16.msra.mxu1 %v5297_v26  ;;  %v809_v24 = vld [vmem:[#allocation9 + $0xb28] sm:$0xff]  ;;  %v5343_v26 = vcombine.low %v796_v11, %v800_v12  ;;  %v844_v12 = vld [vmem:[#allocation9 + $0xc40] sm:$0xff] }
 0x1ad   :  { %3664 = vmatprep.subr.bf16.mxu0 %v5304_v29  ;;  %3836 = vmatprep.subr.bf16.mxu1 %v5306_v30  ;;  %v5345_v29 = vcombine.low %v797_v13, %v801_v14  ;;  %v5352_v30 = vcombine.high %v804_v20, %v808_v22  ;;  %v5354_v31 = vcombine.high %v805_v23, %v809_v24  ;;  %v848_v13 = vld [vmem:[#allocation9 + $0xc60] sm:$0xff]  ;;  %v845_v14 = vld [vmem:[#allocation9 + $0xc48] sm:$0xff] }
 0x1b0   :  { %3665 = vmatpush1.bf16.msra.mxu0 %v5303_v42  ;;  %3837 = vmatpush1.bf16.msra.mxu1 %v5305_v49  ;;  %v817_v42 = vld [vmem:[#allocation9 + $0xb68] sm:$0xff]  ;;  %v5351_v49 = vcombine.low %v804_v20, %v808_v22  ;;  %v852_v22 = vld [vmem:[#allocation9 + $0xc80] sm:$0xff] }
 0x1b1   :  { %3666 = vmatprep.subr.bf16.mxu0 %v5312_v50  ;;  %3838 = vmatprep.subr.bf16.mxu1 %v5314_v51  ;;  %v5353_v50 = vcombine.low %v805_v23, %v809_v24  ;;  %v5360_v51 = vcombine.high %v812_v32, %v816_v37  ;;  %v5362_v52 = vcombine.high %v813_v41, %v817_v42  ;;  %v856_v23 = vld [vmem:[#allocation9 + $0xca0] sm:$0xff]  ;;  %v853_v24 = vld [vmem:[#allocation9 + $0xc88] sm:$0xff] }
 0x1b4   :  { %3667 = vmatpush1.bf16.msra.mxu0 %v5311_v58  ;;  %3839 = vmatpush1.bf16.msra.mxu1 %v5313_v59  ;;  %v825_v58 = vld [vmem:[#allocation9 + $0xba8] sm:$0xff]  ;;  %v5359_v59 = vcombine.low %v812_v32, %v816_v37  ;;  %v860_v37 = vld [vmem:[#allocation9 + $0xcc0] sm:$0xff] }
 0x1b5   :  { %3668 = vmatprep.subr.bf16.mxu0 %v5320_v60  ;;  %3840 = vmatprep.subr.bf16.mxu1 %v5322_v61  ;;  %v5361_v60 = vcombine.low %v813_v41, %v817_v42  ;;  %v5368_v61 = vcombine.high %v820_v53, %v824_v56  ;;  %v5370_v62 = vcombine.high %v821_v57, %v825_v58  ;;  %v864_v41 = vld [vmem:[#allocation9 + $0xce0] sm:$0xff]  ;;  %v861_v42 = vld [vmem:[#allocation9 + $0xcc8] sm:$0xff] }
 0x1b8   :  { %3669 = vmatpush1.bf16.msra.mxu0 %v5319_v38  ;;  %3841 = vmatpush1.bf16.msra.mxu1 %v5321_v40  ;;  %v833_v38 = vld [vmem:[#allocation9 + $0xbe8] sm:$0xff]  ;;  %v5367_v40 = vcombine.low %v820_v53, %v824_v56  ;;  %v868_v56 = vld [vmem:[#allocation9 + $0xd00] sm:$0xff] }
 0x1b9   :  { %3670 = vmatprep.subr.bf16.mxu0 %v5328_v45  ;;  %3842 = vmatprep.subr.bf16.mxu1 %v5330_v0  ;;  %v5369_v45 = vcombine.low %v821_v57, %v825_v58  ;;  %v5376_v0 = vcombine.high %v828_v63, %v832_v34  ;;  %v5378_v1 = vcombine.high %v829_v36, %v833_v38  ;;  %v872_v57 = vld [vmem:[#allocation9 + $0xd20] sm:$0xff]  ;;  %v869_v58 = vld [vmem:[#allocation9 + $0xd08] sm:$0xff] }
 0x1bc   :  { %3671 = vmatpush1.bf16.msra.mxu0 %v5327_v6  ;;  %3843 = vmatpush1.bf16.msra.mxu1 %v5329_v7  ;;  %v841_v6 = vld [vmem:[#allocation9 + $0xc28] sm:$0xff]  ;;  %v5375_v7 = vcombine.low %v828_v63, %v832_v34  ;;  %v876_v34 = vld [vmem:[#allocation9 + $0xd40] sm:$0xff] }
 0x1bd   :  { %3672 = vmatprep.subr.bf16.mxu0 %v5336_v9  ;;  %3844 = vmatprep.subr.bf16.mxu1 %v5338_v10  ;;  %v5377_v9 = vcombine.low %v829_v36, %v833_v38  ;;  %v5384_v10 = vcombine.high %v836_v2, %v840_v3  ;;  %v5386_v11 = vcombine.high %v837_v5, %v841_v6  ;;  %v880_v36 = vld [vmem:[#allocation9 + $0xd60] sm:$0xff]  ;;  %v877_v38 = vld [vmem:[#allocation9 + $0xd48] sm:$0xff] }
 0x1c0   :  { %3673 = vmatpush1.bf16.msra.mxu0 %v5335_v15  ;;  %3845 = vmatpush1.bf16.msra.mxu1 %v5337_v16  ;;  %v849_v15 = vld [vmem:[#allocation9 + $0xc68] sm:$0xff]  ;;  %v5383_v16 = vcombine.low %v836_v2, %v840_v3  ;;  %v884_v3 = vld [vmem:[#allocation9 + $0xd80] sm:$0xff] }
 0x1c1   :  { %3674 = vmatprep.subr.bf16.mxu0 %v5344_v17  ;;  %3846 = vmatprep.subr.bf16.mxu1 %v5346_v18  ;;  %v5385_v17 = vcombine.low %v837_v5, %v841_v6  ;;  %v5392_v18 = vcombine.high %v844_v12, %v848_v13  ;;  %v5394_v20 = vcombine.high %v845_v14, %v849_v15  ;;  %v888_v5 = vld [vmem:[#allocation9 + $0xda0] sm:$0xff]  ;;  %v885_v6 = vld [vmem:[#allocation9 + $0xd88] sm:$0xff] }
 0x1c4   :  { %3675 = vmatpush1.bf16.msra.mxu0 %v5343_v26  ;;  %3847 = vmatpush1.bf16.msra.mxu1 %v5345_v29  ;;  %v857_v26 = vld [vmem:[#allocation9 + $0xca8] sm:$0xff]  ;;  %v5391_v29 = vcombine.low %v844_v12, %v848_v13  ;;  %v892_v13 = vld [vmem:[#allocation9 + $0xdc0] sm:$0xff] }
 0x1c5   :  { %3676 = vmatprep.subr.bf16.mxu0 %v5352_v30  ;;  %3848 = vmatprep.subr.bf16.mxu1 %v5354_v31  ;;  %v5393_v30 = vcombine.low %v845_v14, %v849_v15  ;;  %v5400_v31 = vcombine.high %v852_v22, %v856_v23  ;;  %v5402_v32 = vcombine.high %v853_v24, %v857_v26  ;;  %v896_v14 = vld [vmem:[#allocation9 + $0xde0] sm:$0xff]  ;;  %v893_v15 = vld [vmem:[#allocation9 + $0xdc8] sm:$0xff] }
 0x1c8   :  { %3677 = vmatpush1.bf16.msra.mxu0 %v5351_v49  ;;  %3849 = vmatpush1.bf16.msra.mxu1 %v5353_v50  ;;  %v865_v49 = vld [vmem:[#allocation9 + $0xce8] sm:$0xff]  ;;  %v5399_v50 = vcombine.low %v852_v22, %v856_v23  ;;  %v900_v23 = vld [vmem:[#allocation9 + $0xe00] sm:$0xff] }
 0x1c9   :  { %3678 = vmatprep.subr.bf16.mxu0 %v5360_v51  ;;  %3850 = vmatprep.subr.bf16.mxu1 %v5362_v52  ;;  %v5401_v51 = vcombine.low %v853_v24, %v857_v26  ;;  %v5408_v52 = vcombine.high %v860_v37, %v864_v41  ;;  %v5410_v53 = vcombine.high %v861_v42, %v865_v49  ;;  %v904_v24 = vld [vmem:[#allocation9 + $0xe20] sm:$0xff]  ;;  %v901_v26 = vld [vmem:[#allocation9 + $0xe08] sm:$0xff] }
 0x1cc   :  { %3679 = vmatpush1.bf16.msra.mxu0 %v5359_v59  ;;  %3851 = vmatpush1.bf16.msra.mxu1 %v5361_v60  ;;  %v873_v59 = vld [vmem:[#allocation9 + $0xd28] sm:$0xff]  ;;  %v5407_v60 = vcombine.low %v860_v37, %v864_v41  ;;  %v908_v41 = vld [vmem:[#allocation9 + $0xe40] sm:$0xff] }
 0x1cd   :  { %3680 = vmatprep.subr.bf16.mxu0 %v5368_v61  ;;  %3852 = vmatprep.subr.bf16.mxu1 %v5370_v62  ;;  %v5409_v61 = vcombine.low %v861_v42, %v865_v49  ;;  %v5416_v62 = vcombine.high %v868_v56, %v872_v57  ;;  %v5418_v63 = vcombine.high %v869_v58, %v873_v59  ;;  %v912_v42 = vld [vmem:[#allocation9 + $0xe60] sm:$0xff]  ;;  %v909_v49 = vld [vmem:[#allocation9 + $0xe48] sm:$0xff] }
 0x1d0   :  { %3681 = vmatpush1.bf16.msra.mxu0 %v5367_v40  ;;  %3853 = vmatpush1.bf16.msra.mxu1 %v5369_v45  ;;  %v881_v40 = vld [vmem:[#allocation9 + $0xd68] sm:$0xff]  ;;  %v5415_v45 = vcombine.low %v868_v56, %v872_v57  ;;  %v916_v57 = vld [vmem:[#allocation9 + $0xe80] sm:$0xff] }
 0x1d1   :  { %3682 = vmatprep.subr.bf16.mxu0 %v5376_v0  ;;  %3854 = vmatprep.subr.bf16.mxu1 %v5378_v1  ;;  %v5417_v0 = vcombine.low %v869_v58, %v873_v59  ;;  %v5424_v1 = vcombine.high %v876_v34, %v880_v36  ;;  %v5426_v2 = vcombine.high %v877_v38, %v881_v40  ;;  %v920_v58 = vld [vmem:[#allocation9 + $0xea0] sm:$0xff]  ;;  %v917_v59 = vld [vmem:[#allocation9 + $0xe88] sm:$0xff] }
 0x1d4   :  { %3683 = vmatpush1.bf16.msra.mxu0 %v5375_v7  ;;  %3855 = vmatpush1.bf16.msra.mxu1 %v5377_v9  ;;  %v889_v7 = vld [vmem:[#allocation9 + $0xda8] sm:$0xff]  ;;  %v5423_v9 = vcombine.low %v876_v34, %v880_v36  ;;  %v924_v36 = vld [vmem:[#allocation9 + $0xec0] sm:$0xff] }
 0x1d5   :  { %3695 = vmatprep.subr.bf16.mxu0 %v5384_v10  ;;  %3867 = vmatprep.subr.bf16.mxu1 %v5386_v11  ;;  %v5425_v10 = vcombine.low %v877_v38, %v881_v40  ;;  %v5432_v11 = vcombine.high %v884_v3, %v888_v5  ;;  %v5434_v12 = vcombine.high %v885_v6, %v889_v7  ;;  %v928_v38 = vld [vmem:[#allocation9 + $0xee0] sm:$0xff]  ;;  %v925_v40 = vld [vmem:[#allocation9 + $0xec8] sm:$0xff] }
 0x1d7   :  { %3685 = vmatmul.mubr.bf16.vlgmr.msra.gmra.mrb[8].mxu0 %v6170_v35  ;;  %3857 = vmatmul.mubr.bf16.vlgmr.msra.gmra.mrb[8].mxu1 %v6170_v35 }
 0x1d8   :  { %3696 = vmatpush1.bf16.msra.mxu0 %v5383_v16  ;;  %3868 = vmatpush1.bf16.msra.mxu1 %v5385_v17  ;;  %v897_v16 = vld [vmem:[#allocation9 + $0xde8] sm:$0xff]  ;;  %v5431_v17 = vcombine.low %v884_v3, %v888_v5  ;;  %v932_v5 = vld [vmem:[#allocation9 + $0xf00] sm:$0xff] }
 0x1d9   :  { %3697 = vmatprep.subr.bf16.mxu0 %v5392_v18  ;;  %3869 = vmatprep.subr.bf16.mxu1 %v5394_v20  ;;  %v5433_v18 = vcombine.low %v885_v6, %v889_v7  ;;  %v5440_v20 = vcombine.high %v892_v13, %v896_v14  ;;  %v5442_v22 = vcombine.high %v893_v15, %v897_v16  ;;  %v936_v6 = vld [vmem:[#allocation9 + $0xf20] sm:$0xff]  ;;  %v933_v7 = vld [vmem:[#allocation9 + $0xf08] sm:$0xff] }
 0x1da   :  { %3727 = vmatprep.mubr.bf16.mxu0 %v6184_v8  ;;  %3899 = vmatprep.mubr.bf16.mxu1 %v6184_v8 }
 0x1dc   :  { %3698 = vmatpush1.bf16.msra.mxu0 %v5391_v29  ;;  %3870 = vmatpush1.bf16.msra.mxu1 %v5393_v30  ;;  %v905_v29 = vld [vmem:[#allocation9 + $0xe28] sm:$0xff]  ;;  %v5439_v30 = vcombine.low %v892_v13, %v896_v14  ;;  %v940_v14 = vld [vmem:[#allocation9 + $0xf40] sm:$0xff] }
 0x1dd   :  { %3699 = vmatprep.subr.bf16.mxu0 %v5400_v31  ;;  %3871 = vmatprep.subr.bf16.mxu1 %v5402_v32  ;;  %v5441_v31 = vcombine.low %v893_v15, %v897_v16  ;;  %v5448_v32 = vcombine.high %v900_v23, %v904_v24  ;;  %v5450_v37 = vcombine.high %v901_v26, %v905_v29  ;;  %v944_v15 = vld [vmem:[#allocation9 + $0xf60] sm:$0xff]  ;;  %v941_v16 = vld [vmem:[#allocation9 + $0xf48] sm:$0xff] }
 0x1e0   :  { %3700 = vmatpush1.bf16.msra.mxu0 %v5399_v50  ;;  %3872 = vmatpush1.bf16.msra.mxu1 %v5401_v51  ;;  %v913_v50 = vld [vmem:[#allocation9 + $0xe68] sm:$0xff]  ;;  %v5447_v51 = vcombine.low %v900_v23, %v904_v24  ;;  %v948_v24 = vld [vmem:[#allocation9 + $0xf80] sm:$0xff] }
 0x1e1   :  { %3701 = vmatprep.subr.bf16.mxu0 %v5408_v52  ;;  %3873 = vmatprep.subr.bf16.mxu1 %v5410_v53  ;;  %v5449_v52 = vcombine.low %v901_v26, %v905_v29  ;;  %v5456_v53 = vcombine.high %v908_v41, %v912_v42  ;;  %v5458_v56 = vcombine.high %v909_v49, %v913_v50  ;;  %v952_v26 = vld [vmem:[#allocation9 + $0xfa0] sm:$0xff]  ;;  %v949_v29 = vld [vmem:[#allocation9 + $0xf88] sm:$0xff] }
 0x1e4   :  { %3702 = vmatpush1.bf16.msra.mxu0 %v5407_v60  ;;  %3874 = vmatpush1.bf16.msra.mxu1 %v5409_v61  ;;  %v921_v60 = vld [vmem:[#allocation9 + $0xea8] sm:$0xff]  ;;  %v5455_v61 = vcombine.low %v908_v41, %v912_v42  ;;  %v956_v42 = vld [vmem:[#allocation9 + $0xfc0] sm:$0xff] }
 0x1e5   :  { %3703 = vmatprep.subr.bf16.mxu0 %v5416_v62  ;;  %3875 = vmatprep.subr.bf16.mxu1 %v5418_v63  ;;  %v5457_v62 = vcombine.low %v909_v49, %v913_v50  ;;  %v5464_v63 = vcombine.high %v916_v57, %v920_v58  ;;  %v5466_v34 = vcombine.high %v917_v59, %v921_v60  ;;  %v960_v49 = vld [vmem:[#allocation9 + $0xfe0] sm:$0xff]  ;;  %v957_v50 = vld [vmem:[#allocation9 + $0xfc8] sm:$0xff] }
 0x1e8   :  { %3704 = vmatpush1.bf16.msra.mxu0 %v5415_v45  ;;  %3876 = vmatpush1.bf16.msra.mxu1 %v5417_v0  ;;  %v929_v45 = vld [vmem:[#allocation9 + $0xee8] sm:$0xff]  ;;  %v5463_v0 = vcombine.low %v916_v57, %v920_v58  ;;  %v454_v58 = vld [vmem:[#allocation9 + $0x10] sm:$0xff] }
 0x1e9   :  { %3705 = vmatprep.subr.bf16.mxu0 %v5424_v1  ;;  %3877 = vmatprep.subr.bf16.mxu1 %v5426_v2  ;;  %v5465_v1 = vcombine.low %v917_v59, %v921_v60  ;;  %v5472_v2 = vcombine.high %v924_v36, %v928_v38  ;;  %v5474_v3 = vcombine.high %v925_v40, %v929_v45  ;;  %v458_v59 = vld [vmem:[#allocation9 + $0x30] sm:$0xff]  ;;  %v455_v60 = vld [vmem:[#allocation9 + $0x18] sm:$0xff] }
 0x1ec   :  { %3706 = vmatpush1.bf16.msra.mxu0 %v5423_v9  ;;  %3878 = vmatpush1.bf16.msra.mxu1 %v5425_v10  ;;  %v937_v9 = vld [vmem:[#allocation9 + $0xf28] sm:$0xff]  ;;  %v5471_v10 = vcombine.low %v924_v36, %v928_v38  ;;  %v462_v38 = vld [vmem:[#allocation9 + $0x50] sm:$0xff] }
 0x1ed   :  { %3707 = vmatprep.subr.bf16.mxu0 %v5432_v11  ;;  %3879 = vmatprep.subr.bf16.mxu1 %v5434_v12  ;;  %v5473_v11 = vcombine.low %v925_v40, %v929_v45  ;;  %v5480_v12 = vcombine.high %v932_v5, %v936_v6  ;;  %v5482_v13 = vcombine.high %v933_v7, %v937_v9  ;;  %v466_v40 = vld [vmem:[#allocation9 + $0x70] sm:$0xff]  ;;  %v463_v45 = vld [vmem:[#allocation9 + $0x58] sm:$0xff] }
 0x1f0   :  { %3708 = vmatpush1.bf16.msra.mxu0 %v5431_v17  ;;  %3880 = vmatpush1.bf16.msra.mxu1 %v5433_v18  ;;  %v945_v17 = vld [vmem:[#allocation9 + $0xf68] sm:$0xff]  ;;  %v5479_v18 = vcombine.low %v932_v5, %v936_v6  ;;  %v470_v6 = vld [vmem:[#allocation9 + $0x90] sm:$0xff] }
 0x1f1   :  { %3709 = vmatprep.subr.bf16.mxu0 %v5440_v20  ;;  %3881 = vmatprep.subr.bf16.mxu1 %v5442_v22  ;;  %v5481_v20 = vcombine.low %v933_v7, %v937_v9  ;;  %v5488_v22 = vcombine.high %v940_v14, %v944_v15  ;;  %v5490_v23 = vcombine.high %v941_v16, %v945_v17  ;;  %v474_v7 = vld [vmem:[#allocation9 + $0xb0] sm:$0xff]  ;;  %v471_v9 = vld [vmem:[#allocation9 + $0x98] sm:$0xff] }
 0x1f4   :  { %3710 = vmatpush1.bf16.msra.mxu0 %v5439_v30  ;;  %3882 = vmatpush1.bf16.msra.mxu1 %v5441_v31  ;;  %v953_v30 = vld [vmem:[#allocation9 + $0xfa8] sm:$0xff]  ;;  %v5487_v31 = vcombine.low %v940_v14, %v944_v15  ;;  %v478_v15 = vld [vmem:[#allocation9 + $0xd0] sm:$0xff] }
 0x1f5   :  { %3711 = vmatprep.subr.bf16.mxu0 %v5448_v32  ;;  %3883 = vmatprep.subr.bf16.mxu1 %v5450_v37  ;;  %v5489_v32 = vcombine.low %v941_v16, %v945_v17  ;;  %v5496_v37 = vcombine.high %v948_v24, %v952_v26  ;;  %v5498_v41 = vcombine.high %v949_v29, %v953_v30  ;;  %v482_v16 = vld [vmem:[#allocation9 + $0xf0] sm:$0xff]  ;;  %v479_v17 = vld [vmem:[#allocation9 + $0xd8] sm:$0xff] }
 0x1f8   :  { %3712 = vmatpush1.bf16.msra.mxu0 %v5447_v51  ;;  %3884 = vmatpush1.bf16.msra.mxu1 %v5449_v52  ;;  %v961_v51 = vld [vmem:[#allocation9 + $0xfe8] sm:$0xff]  ;;  %v5495_v52 = vcombine.low %v948_v24, %v952_v26  ;;  %v486_v26 = vld [vmem:[#allocation9 + $0x110] sm:$0xff] }
 0x1f9   :  { %3713 = vmatprep.subr.bf16.mxu0 %v5456_v53  ;;  %3885 = vmatprep.subr.bf16.mxu1 %v5458_v56  ;;  %v5497_v53 = vcombine.low %v949_v29, %v953_v30  ;;  %v5504_v56 = vcombine.high %v956_v42, %v960_v49  ;;  %v5506_v57 = vcombine.high %v957_v50, %v961_v51  ;;  %v490_v29 = vld [vmem:[#allocation9 + $0x130] sm:$0xff]  ;;  %v491_v30 = vld [vmem:[#allocation9 + $0x138] sm:$0xff] }
 0x1fc   :  { %3714 = vmatpush1.bf16.msra.mxu0 %v5455_v61  ;;  %3886 = vmatpush1.bf16.msra.mxu1 %v5457_v62  ;;  %v459_v61 = vld [vmem:[#allocation9 + $0x38] sm:$0xff]  ;;  %v5503_v62 = vcombine.low %v956_v42, %v960_v49  ;;  %v494_v42 = vld [vmem:[#allocation9 + $0x150] sm:$0xff] }
 0x1fd   :  { %3715 = vmatprep.subr.bf16.mxu0 %v5464_v63  ;;  %3887 = vmatprep.subr.bf16.mxu1 %v5466_v34  ;;  %v5505_v63 = vcombine.low %v957_v50, %v961_v51  ;;  %v5004_v34 = vcombine.high %v454_v58, %v458_v59  ;;  %v5006_v36 = vcombine.high %v455_v60, %v459_v61  ;;  %v498_v49 = vld [vmem:[#allocation9 + $0x170] sm:$0xff]  ;;  %v495_v50 = vld [vmem:[#allocation9 + $0x158] sm:$0xff] }
 0x1fe   :  { %v499_v51 = vld [vmem:[#allocation9 + $0x178] sm:$0xff] }
 0x200   :  { %3716 = vmatpush1.bf16.msra.mxu0 %v5463_v0  ;;  %3888 = vmatpush1.bf16.msra.mxu1 %v5465_v1  ;;  %v467_v0 = vld [vmem:[#allocation9 + $0x78] sm:$0xff]  ;;  %v5003_v1 = vcombine.low %v454_v58, %v458_v59  ;;  %v502_v58 = vld [vmem:[#allocation9 + $0x190] sm:$0xff] }
 0x201   :  { %3717 = vmatprep.subr.bf16.mxu0 %v5472_v2  ;;  %3889 = vmatprep.subr.bf16.mxu1 %v5474_v3  ;;  %v5005_v2 = vcombine.low %v455_v60, %v459_v61  ;;  %v5012_v3 = vcombine.high %v462_v38, %v466_v40  ;;  %v5014_v5 = vcombine.high %v463_v45, %v467_v0  ;;  %v506_v59 = vld [vmem:[#allocation9 + $0x1b0] sm:$0xff]  ;;  %v503_v60 = vld [vmem:[#allocation9 + $0x198] sm:$0xff] }
 0x202   :  { %v507_v61 = vld [vmem:[#allocation9 + $0x1b8] sm:$0xff] }
 0x204   :  { %3718 = vmatpush1.bf16.msra.mxu0 %v5471_v10  ;;  %3890 = vmatpush1.bf16.msra.mxu1 %v5473_v11  ;;  %v475_v10 = vld [vmem:[#allocation9 + $0xb8] sm:$0xff]  ;;  %v5011_v11 = vcombine.low %v462_v38, %v466_v40  ;;  %v510_v38 = vld [vmem:[#allocation9 + $0x1d0] sm:$0xff] }
 0x205   :  { %3719 = vmatprep.subr.bf16.mxu0 %v5480_v12  ;;  %3891 = vmatprep.subr.bf16.mxu1 %v5482_v13  ;;  %v5013_v12 = vcombine.low %v463_v45, %v467_v0  ;;  %v5020_v13 = vcombine.high %v470_v6, %v474_v7  ;;  %v5022_v14 = vcombine.high %v471_v9, %v475_v10  ;;  %v514_v40 = vld [vmem:[#allocation9 + $0x1f0] sm:$0xff]  ;;  %v511_v45 = vld [vmem:[#allocation9 + $0x1d8] sm:$0xff] }
 0x206   :  { %v515_v0 = vld [vmem:[#allocation9 + $0x1f8] sm:$0xff] }
 0x208   :  { %3720 = vmatpush1.bf16.msra.mxu0 %v5479_v18  ;;  %3892 = vmatpush1.bf16.msra.mxu1 %v5481_v20  ;;  %v483_v18 = vld [vmem:[#allocation9 + $0xf8] sm:$0xff]  ;;  %v5019_v20 = vcombine.low %v470_v6, %v474_v7  ;;  %v518_v6 = vld [vmem:[#allocation9 + $0x210] sm:$0xff] }
 0x209   :  { %3721 = vmatprep.subr.bf16.mxu0 %v5488_v22  ;;  %3893 = vmatprep.subr.bf16.mxu1 %v5490_v23  ;;  %v5021_v22 = vcombine.low %v471_v9, %v475_v10  ;;  %v5028_v23 = vcombine.high %v478_v15, %v482_v16  ;;  %v5030_v24 = vcombine.high %v479_v17, %v483_v18  ;;  %v522_v7 = vld [vmem:[#allocation9 + $0x230] sm:$0xff]  ;;  %v519_v9 = vld [vmem:[#allocation9 + $0x218] sm:$0xff] }
 0x20a   :  { %v523_v10 = vld [vmem:[#allocation9 + $0x238] sm:$0xff] }
 0x20c   :  { %3722 = vmatpush1.bf16.msra.mxu0 %v5487_v31  ;;  %3894 = vmatpush1.bf16.msra.mxu1 %v5489_v32  ;;  %v5027_v31 = vcombine.low %v478_v15, %v482_v16  ;;  %v5029_v32 = vcombine.low %v479_v17, %v483_v18  ;;  %v526_v15 = vld [vmem:[#allocation9 + $0x250] sm:$0xff]  ;;  %v527_v17 = vld [vmem:[#allocation9 + $0x258] sm:$0xff] }
 0x20d   :  { %3723 = vmatprep.subr.bf16.mxu0 %v5496_v37  ;;  %3895 = vmatprep.subr.bf16.mxu1 %v5498_v41  ;;  %v5036_v37 = vcombine.high %v486_v26, %v490_v29  ;;  %v530_v16 = vld [vmem:[#allocation9 + $0x270] sm:$0xff]  ;;  %v531_v18 = vld [vmem:[#allocation9 + $0x278] sm:$0xff] }
 0x210   :  { %3724 = vmatpush1.bf16.msra.mxu0 %v5495_v52  ;;  %3896 = vmatpush1.bf16.msra.mxu1 %v5497_v53  ;;  %v5035_v52 = vcombine.low %v486_v26, %v490_v29  ;;  %v534_v26 = vld [vmem:[#allocation9 + $0x290] sm:$0xff] }
 0x211   :  { %3725 = vmatprep.subr.bf16.mxu0 %v5504_v56  ;;  %3897 = vmatprep.subr.bf16.mxu1 %v5506_v57  ;;  %v5044_v56 = vcombine.high %v494_v42, %v498_v49  ;;  %v5046_v57 = vcombine.high %v495_v50, %v499_v51  ;;  %v538_v29 = vld [vmem:[#allocation9 + $0x2b0] sm:$0xff] }
 0x214   :  { %3726 = vmatpush1.bf16.msra.mxu0 %v5503_v62  ;;  %3898 = vmatpush1.bf16.msra.mxu1 %v5505_v63  ;;  %v5043_v62 = vcombine.low %v494_v42, %v498_v49  ;;  %v5045_v63 = vcombine.low %v495_v50, %v499_v51  ;;  %v542_v42 = vld [vmem:[#allocation9 + $0x2d0] sm:$0xff]  ;;  %v543_v50 = vld [vmem:[#allocation9 + $0x2d8] sm:$0xff] }
 0x215   :  { %3910 = vmatprep.subr.bf16.mxu0 %v5004_v34  ;;  %4082 = vmatprep.subr.bf16.mxu1 %v5006_v36  ;;  %v5052_v34 = vcombine.high %v502_v58, %v506_v59  ;;  %v5054_v36 = vcombine.high %v503_v60, %v507_v61  ;;  %v546_v49 = vld [vmem:[#allocation9 + $0x2f0] sm:$0xff]  ;;  %v547_v51 = vld [vmem:[#allocation9 + $0x2f8] sm:$0xff] }
 0x217   :  { %3728 = vmatmul.mubr.bf16.vlgmr.msra.gmra.mrb[8].mxu0 %v6182_v4  ;;  %3900 = vmatmul.mubr.bf16.vlgmr.msra.gmra.mrb[8].mxu1 %v6182_v4 }
 0x218   :  { %3911 = vmatpush1.bf16.msra.mxu0 %v5003_v1  ;;  %3942 = vmatprep.mubr.bf16.mxu0 %v6152_v21  ;;  %v5051_v1 = vcombine.low %v502_v58, %v506_v59  ;;  %v550_v58 = vld [vmem:[#allocation9 + $0x310] sm:$0xff] }
 0x219   :  { %4083 = vmatpush1.bf16.msra.mxu1 %v5005_v2  ;;  %4114 = vmatprep.mubr.bf16.mxu1 %v6152_v21  ;;  %v487_v21 = vld [vmem:[#allocation9 + $0x118] sm:$0xff]  ;;  %v5053_v2 = vcombine.low %v503_v60, %v507_v61  ;;  %v554_v59 = vld [vmem:[#allocation9 + $0x330] sm:$0xff] }
 0x21a   :  { %3912 = vmatprep.subr.bf16.mxu0 %v5012_v3  ;;  %4084 = vmatprep.subr.bf16.mxu1 %v5014_v5  ;;  %v5038_v41 = vcombine.high %v487_v21, %v491_v30  ;;  %v5037_v53 = vcombine.low %v487_v21, %v491_v30  ;;  %v5060_v3 = vcombine.high %v510_v38, %v514_v40  ;;  %v535_v21 = vld [vmem:[#allocation9 + $0x298] sm:$0xff] }
 0x21b   :  { %v5062_v5 = vcombine.high %v511_v45, %v515_v0  ;;  %v539_v30 = vld [vmem:[#allocation9 + $0x2b8] sm:$0xff] }
 0x21c   :  { %3913 = vmatpush1.bf16.msra.mxu0 %v5011_v11  ;;  %v5059_v11 = vcombine.low %v510_v38, %v514_v40  ;;  %v551_v60 = vld [vmem:[#allocation9 + $0x318] sm:$0xff]  ;;  %v558_v38 = vld [vmem:[#allocation9 + $0x350] sm:$0xff] }
 0x21d   :  { %4085 = vmatpush1.bf16.msra.mxu1 %v5013_v12  ;;  %3914 = vmatprep.subr.bf16.mxu0 %v5020_v13  ;;  %v5061_v12 = vcombine.low %v511_v45, %v515_v0  ;;  %v5068_v13 = vcombine.high %v518_v6, %v522_v7  ;;  %v555_v61 = vld [vmem:[#allocation9 + $0x338] sm:$0xff]  ;;  %v562_v40 = vld [vmem:[#allocation9 + $0x370] sm:$0xff] }
 0x21e   :  { %4086 = vmatprep.subr.bf16.mxu1 %v5022_v14  ;;  %v5070_v14 = vcombine.high %v519_v9, %v523_v10  ;;  %v559_v45 = vld [vmem:[#allocation9 + $0x358] sm:$0xff] }
 0x21f   :  { %v563_v0 = vld [vmem:[#allocation9 + $0x378] sm:$0xff] }
 0x220   :  { %3915 = vmatpush1.bf16.msra.mxu0 %v5019_v20  ;;  %v5067_v20 = vcombine.low %v518_v6, %v522_v7  ;;  %v566_v6 = vld [vmem:[#allocation9 + $0x390] sm:$0xff] }
 0x221   :  { %4087 = vmatpush1.bf16.msra.mxu1 %v5021_v22  ;;  %3916 = vmatprep.subr.bf16.mxu0 %v5028_v23  ;;  %v5069_v22 = vcombine.low %v519_v9, %v523_v10  ;;  %v5076_v23 = vcombine.high %v526_v15, %v530_v16  ;;  %v570_v7 = vld [vmem:[#allocation9 + $0x3b0] sm:$0xff]  ;;  %v567_v9 = vld [vmem:[#allocation9 + $0x398] sm:$0xff] }
 0x222   :  { %4088 = vmatprep.subr.bf16.mxu1 %v5030_v24  ;;  %v5078_v24 = vcombine.high %v527_v17, %v531_v18  ;;  %v571_v10 = vld [vmem:[#allocation9 + $0x3b8] sm:$0xff] }
 0x224   :  { %3917 = vmatpush1.bf16.msra.mxu0 %v5027_v31  ;;  %v5075_v31 = vcombine.low %v526_v15, %v530_v16  ;;  %v574_v15 = vld [vmem:[#allocation9 + $0x3d0] sm:$0xff] }
 0x225   :  { %4089 = vmatpush1.bf16.msra.mxu1 %v5029_v32  ;;  %3918 = vmatprep.subr.bf16.mxu0 %v5036_v37  ;;  %v5077_v32 = vcombine.low %v527_v17, %v531_v18  ;;  %v5084_v37 = vcombine.high %v534_v26, %v538_v29  ;;  %v578_v16 = vld [vmem:[#allocation9 + $0x3f0] sm:$0xff]  ;;  %v575_v17 = vld [vmem:[#allocation9 + $0x3d8] sm:$0xff] }
 0x226   :  { %4090 = vmatprep.subr.bf16.mxu1 %v5038_v41  ;;  %v5086_v41 = vcombine.high %v535_v21, %v539_v30  ;;  %v579_v18 = vld [vmem:[#allocation9 + $0x3f8] sm:$0xff] }
 0x228   :  { %3919 = vmatpush1.bf16.msra.mxu0 %v5035_v52  ;;  %v5083_v52 = vcombine.low %v534_v26, %v538_v29  ;;  %v582_v26 = vld [vmem:[#allocation9 + $0x410] sm:$0xff] }
 0x229   :  { %4091 = vmatpush1.bf16.msra.mxu1 %v5037_v53  ;;  %3920 = vmatprep.subr.bf16.mxu0 %v5044_v56  ;;  %v5085_v53 = vcombine.low %v535_v21, %v539_v30  ;;  %v5092_v56 = vcombine.high %v542_v42, %v546_v49  ;;  %v586_v29 = vld [vmem:[#allocation9 + $0x430] sm:$0xff]  ;;  %v583_v21 = vld [vmem:[#allocation9 + $0x418] sm:$0xff] }
 0x22a   :  { %4092 = vmatprep.subr.bf16.mxu1 %v5046_v57  ;;  %v5094_v57 = vcombine.high %v543_v50, %v547_v51  ;;  %v587_v30 = vld [vmem:[#allocation9 + $0x438] sm:$0xff] }
 0x22c   :  { %3921 = vmatpush1.bf16.msra.mxu0 %v5043_v62  ;;  %v5091_v62 = vcombine.low %v542_v42, %v546_v49  ;;  %v590_v42 = vld [vmem:[#allocation9 + $0x450] sm:$0xff] }
 0x22d   :  { %4093 = vmatpush1.bf16.msra.mxu1 %v5045_v63  ;;  %3922 = vmatprep.subr.bf16.mxu0 %v5052_v34  ;;  %v5093_v63 = vcombine.low %v543_v50, %v547_v51  ;;  %v5100_v34 = vcombine.high %v550_v58, %v554_v59  ;;  %v594_v49 = vld [vmem:[#allocation9 + $0x470] sm:$0xff]  ;;  %v5131_v50 = vcombine.low %v582_v26, %v586_v29  ;;  %v591_v51 = vld [vmem:[#allocation9 + $0x458] sm:$0xff] }
 0x22e   :  { %4094 = vmatprep.subr.bf16.mxu1 %v5054_v36  ;;  %v5102_v36 = vcombine.high %v551_v60, %v555_v61 }
 0x230   :  { %3923 = vmatpush1.bf16.msra.mxu0 %v5051_v1  ;;  %v5099_v1 = vcombine.low %v550_v58, %v554_v59  ;;  %v602_v58 = vld [vmem:[#allocation9 + $0x4b0] sm:$0xff] }
 0x231   :  { %4095 = vmatpush1.bf16.msra.mxu1 %v5053_v2  ;;  %3924 = vmatprep.subr.bf16.mxu0 %v5060_v3  ;;  %v5101_v2 = vcombine.low %v551_v60, %v555_v61  ;;  %v5108_v3 = vcombine.high %v558_v38, %v562_v40  ;;  %v599_v60 = vld [vmem:[#allocation9 + $0x498] sm:$0xff] }
 0x232   :  { %4096 = vmatprep.subr.bf16.mxu1 %v5062_v5  ;;  %v5110_v5 = vcombine.high %v559_v45, %v563_v0  ;;  %v603_v61 = vld [vmem:[#allocation9 + $0x4b8] sm:$0xff] }
 0x234   :  { %3925 = vmatpush1.bf16.msra.mxu0 %v5059_v11  ;;  %v5107_v11 = vcombine.low %v558_v38, %v562_v40  ;;  %v606_v38 = vld [vmem:[#allocation9 + $0x4d0] sm:$0xff] }
 0x235   :  { %4097 = vmatpush1.bf16.msra.mxu1 %v5061_v12  ;;  %3926 = vmatprep.subr.bf16.mxu0 %v5068_v13  ;;  %v5109_v12 = vcombine.low %v559_v45, %v563_v0  ;;  %v5116_v13 = vcombine.high %v566_v6, %v570_v7  ;;  %v610_v40 = vld [vmem:[#allocation9 + $0x4f0] sm:$0xff]  ;;  %v607_v45 = vld [vmem:[#allocation9 + $0x4d8] sm:$0xff] }
 0x236   :  { %4098 = vmatprep.subr.bf16.mxu1 %v5070_v14  ;;  %v5118_v14 = vcombine.high %v567_v9, %v571_v10  ;;  %v611_v0 = vld [vmem:[#allocation9 + $0x4f8] sm:$0xff] }
 0x238   :  { %3927 = vmatpush1.bf16.msra.mxu0 %v5067_v20  ;;  %v5115_v20 = vcombine.low %v566_v6, %v570_v7  ;;  %v618_v6 = vld [vmem:[#allocation9 + $0x530] sm:$0xff]  ;;  %v615_v7 = vld [vmem:[#allocation9 + $0x518] sm:$0xff] }
 0x239   :  { %4099 = vmatpush1.bf16.msra.mxu1 %v5069_v22  ;;  %3928 = vmatprep.subr.bf16.mxu0 %v5076_v23  ;;  %v5117_v22 = vcombine.low %v567_v9, %v571_v10  ;;  %v5124_v23 = vcombine.high %v574_v15, %v578_v16  ;;  %v619_v9 = vld [vmem:[#allocation9 + $0x538] sm:$0xff]  ;;  %v5157_v10 = vcombine.low %v607_v45, %v611_v0 }
 0x23a   :  { %4100 = vmatprep.subr.bf16.mxu1 %v5078_v24  ;;  %v5126_v24 = vcombine.high %v575_v17, %v579_v18 }
 0x23c   :  { %3929 = vmatpush1.bf16.msra.mxu0 %v5075_v31  ;;  %v5123_v31 = vcombine.low %v574_v15, %v578_v16  ;;  %v623_v15 = vld [vmem:[#allocation9 + $0x558] sm:$0xff] }
 0x23d   :  { %4101 = vmatpush1.bf16.msra.mxu1 %v5077_v32  ;;  %3930 = vmatprep.subr.bf16.mxu0 %v5084_v37  ;;  %v5125_v32 = vcombine.low %v575_v17, %v579_v18  ;;  %v5132_v37 = vcombine.high %v582_v26, %v586_v29  ;;  %v627_v16 = vld [vmem:[#allocation9 + $0x578] sm:$0xff]  ;;  %v5165_v18 = vcombine.low %v615_v7, %v619_v9 }
 0x23e   :  { %4102 = vmatprep.subr.bf16.mxu1 %v5086_v41  ;;  %v5134_v41 = vcombine.high %v583_v21, %v587_v30  ;;  %v631_v26 = vld [vmem:[#allocation9 + $0x598] sm:$0xff] }
 0x23f   :  { %v635_v29 = vld [vmem:[#allocation9 + $0x5b8] sm:$0xff] }
 0x240   :  { %3931 = vmatpush1.bf16.msra.mxu0 %v5083_v52  ;;  %v595_v52 = vld [vmem:[#allocation9 + $0x478] sm:$0xff] }
 0x241   :  { %4103 = vmatpush1.bf16.msra.mxu1 %v5085_v53  ;;  %3932 = vmatprep.subr.bf16.mxu0 %v5092_v56  ;;  %v5133_v53 = vcombine.low %v583_v21, %v587_v30  ;;  %v5140_v56 = vcombine.high %v590_v42, %v594_v49  ;;  %v5142_v59 = vcombine.high %v591_v51, %v595_v52 }
 0x242   :  { %4104 = vmatprep.subr.bf16.mxu1 %v5094_v57  ;;  %v598_v57 = vld [vmem:[#allocation9 + $0x490] sm:$0xff]  ;;  %v5173_v30 = vcombine.low %v623_v15, %v627_v16 }
 0x244   :  { %3933 = vmatpush1.bf16.msra.mxu0 %v5091_v62  ;;  %v5139_v62 = vcombine.low %v590_v42, %v594_v49  ;;  %v639_v42 = vld [vmem:[#allocation9 + $0x5d8] sm:$0xff] }
 0x245   :  { %4105 = vmatpush1.bf16.msra.mxu1 %v5093_v63  ;;  %3934 = vmatprep.subr.bf16.mxu0 %v5100_v34  ;;  %v5141_v63 = vcombine.low %v591_v51, %v595_v52  ;;  %v5148_v34 = vcombine.high %v598_v57, %v602_v58  ;;  %v643_v49 = vld [vmem:[#allocation9 + $0x5f8] sm:$0xff]  ;;  %v5181_v51 = vcombine.low %v631_v26, %v635_v29 }
 0x246   :  { %4106 = vmatprep.subr.bf16.mxu1 %v5102_v36  ;;  %v5150_v36 = vcombine.high %v599_v60, %v603_v61 }
 0x248   :  { %3935 = vmatpush1.bf16.msra.mxu0 %v5099_v1  ;;  %v5147_v1 = vcombine.low %v598_v57, %v602_v58  ;;  %v650_v57 = vld [vmem:[#allocation9 + $0x630] sm:$0xff]  ;;  %v647_v58 = vld [vmem:[#allocation9 + $0x618] sm:$0xff] }
 0x249   :  { %4107 = vmatpush1.bf16.msra.mxu1 %v5101_v2  ;;  %3936 = vmatprep.subr.bf16.mxu0 %v5108_v3  ;;  %v5156_v2 = vcombine.high %v606_v38, %v610_v40  ;;  %v5158_v3 = vcombine.high %v607_v45, %v611_v0 }
 0x24a   :  { %4108 = vmatprep.subr.bf16.mxu1 %v5110_v5  ;;  %v614_v5 = vld [vmem:[#allocation9 + $0x510] sm:$0xff] }
 0x24b   :  { %v5163_v17 = vcombine.low %v614_v5, %v618_v6 }
 0x24c   :  { %3937 = vmatpush1.bf16.msra.mxu0 %v5107_v11  ;;  %v5164_v11 = vcombine.high %v614_v5, %v618_v6  ;;  %v663_v5 = vld [vmem:[#allocation9 + $0x698] sm:$0xff] }
 0x24d   :  { %4109 = vmatpush1.bf16.msra.mxu1 %v5109_v12  ;;  %3938 = vmatprep.subr.bf16.mxu0 %v5116_v13  ;;  %v5166_v12 = vcombine.high %v615_v7, %v619_v9  ;;  %v622_v13 = vld [vmem:[#allocation9 + $0x550] sm:$0xff]  ;;  %v667_v6 = vld [vmem:[#allocation9 + $0x6b8] sm:$0xff] }
 0x24e   :  { %4110 = vmatprep.subr.bf16.mxu1 %v5118_v14  ;;  %v626_v14 = vld [vmem:[#allocation9 + $0x570] sm:$0xff] }
 0x24f   :  { %v5171_v21 = vcombine.low %v622_v13, %v626_v14 }
 0x250   :  { %3939 = vmatpush1.bf16.msra.mxu0 %v5115_v20  ;;  %v5172_v20 = vcombine.high %v622_v13, %v626_v14  ;;  %v671_v13 = vld [vmem:[#allocation9 + $0x6d8] sm:$0xff] }
 0x251   :  { %4111 = vmatpush1.bf16.msra.mxu1 %v5117_v22  ;;  %3940 = vmatprep.subr.bf16.mxu0 %v5124_v23  ;;  %v5174_v22 = vcombine.high %v623_v15, %v627_v16  ;;  %v630_v23 = vld [vmem:[#allocation9 + $0x590] sm:$0xff]  ;;  %v675_v14 = vld [vmem:[#allocation9 + $0x6f8] sm:$0xff]  ;;  %v5213_v16 = vcombine.low %v663_v5, %v667_v6 }
 0x252   :  { %4112 = vmatprep.subr.bf16.mxu1 %v5126_v24  ;;  %v634_v24 = vld [vmem:[#allocation9 + $0x5b0] sm:$0xff] }
 0x254   :  { %3941 = vmatpush1.bf16.msra.mxu0 %v5123_v31  ;;  %v5180_v31 = vcombine.high %v630_v23, %v634_v24 }
 0x255   :  { %4113 = vmatpush1.bf16.msra.mxu1 %v5125_v32  ;;  %3953 = vmatprep.subr.bf16.mxu0 %v5132_v37  ;;  %v5182_v32 = vcombine.high %v631_v26, %v635_v29  ;;  %v638_v37 = vld [vmem:[#allocation9 + $0x5d0] sm:$0xff]  ;;  %v5221_v29 = vcombine.low %v671_v13, %v675_v14 }
 0x256   :  { %4125 = vmatprep.subr.bf16.mxu1 %v5134_v41  ;;  %v642_v41 = vld [vmem:[#allocation9 + $0x5f0] sm:$0xff] }
 0x257   :  { %3943 = vmatmul.mubr.bf16.vlgmr.msra.gmra.mrb[12].mxu0 %v6150_v19  ;;  %v5188_v52 = vcombine.high %v638_v37, %v642_v41 }
 0x258   :  { %4115 = vmatmul.mubr.bf16.vlgmr.msra.gmra.mrb[12].mxu1 %v6150_v19  ;;  %3954 = vmatpush1.bf16.msra.mxu0 %v5131_v50  ;;  %v5149_v19 = vcombine.low %v599_v60, %v603_v61  ;;  %v5179_v50 = vcombine.low %v630_v23, %v634_v24  ;;  %v5187_v60 = vcombine.low %v638_v37, %v642_v41  ;;  %v679_v23 = vld [vmem:[#allocation9 + $0x718] sm:$0xff] }
 0x259   :  { %3985 = vmatprep.mubr.bf16.mxu0 %v6158_v33  ;;  %4126 = vmatpush1.bf16.msra.mxu1 %v5133_v53  ;;  %v5190_v53 = vcombine.high %v639_v42, %v643_v49  ;;  %v5189_v61 = vcombine.low %v639_v42, %v643_v49  ;;  %v683_v24 = vld [vmem:[#allocation9 + $0x738] sm:$0xff] }
 0x25a   :  { %4157 = vmatprep.mubr.bf16.mxu1 %v6158_v33  ;;  %3955 = vmatprep.subr.bf16.mxu0 %v5140_v56  ;;  %v5155_v33 = vcombine.low %v606_v38, %v610_v40  ;;  %v646_v56 = vld [vmem:[#allocation9 + $0x610] sm:$0xff]  ;;  %v655_v38 = vld [vmem:[#allocation9 + $0x658] sm:$0xff]  ;;  %v5229_v49 = vcombine.low %v679_v23, %v683_v24 }
 0x25b   :  { %4127 = vmatprep.subr.bf16.mxu1 %v5142_v59  ;;  %v651_v59 = vld [vmem:[#allocation9 + $0x638] sm:$0xff]  ;;  %v5195_v45 = vcombine.low %v646_v56, %v650_v57 }
 0x25c   :  { %3956 = vmatpush1.bf16.msra.mxu0 %v5139_v62  ;;  %v5196_v62 = vcombine.high %v646_v56, %v650_v57  ;;  %v659_v40 = vld [vmem:[#allocation9 + $0x678] sm:$0xff]  ;;  %v5197_v0 = vcombine.low %v647_v58, %v651_v59 }
 0x25d   :  { %4128 = vmatpush1.bf16.msra.mxu1 %v5141_v63  ;;  %3957 = vmatprep.subr.bf16.mxu0 %v5148_v34  ;;  %v5198_v63 = vcombine.high %v647_v58, %v651_v59  ;;  %v654_v34 = vld [vmem:[#allocation9 + $0x650] sm:$0xff]  ;;  %v5205_v9 = vcombine.low %v655_v38, %v659_v40  ;;  %v687_v37 = vld [vmem:[#allocation9 + $0x758] sm:$0xff] }
 0x25e   :  { %4129 = vmatprep.subr.bf16.mxu1 %v5150_v36  ;;  %v658_v36 = vld [vmem:[#allocation9 + $0x670] sm:$0xff]  ;;  %v691_v41 = vld [vmem:[#allocation9 + $0x778] sm:$0xff] }
 0x25f   :  { %v5203_v7 = vcombine.low %v654_v34, %v658_v36  ;;  %v695_v56 = vld [vmem:[#allocation9 + $0x798] sm:$0xff]  ;;  %v5237_v59 = vcombine.low %v687_v37, %v691_v41 }
 0x260   :  { %3958 = vmatpush1.bf16.msra.mxu0 %v5147_v1  ;;  %v5204_v1 = vcombine.high %v654_v34, %v658_v36  ;;  %v699_v57 = vld [vmem:[#allocation9 + $0x7b8] sm:$0xff] }
 0x261   :  { %4130 = vmatpush1.bf16.msra.mxu1 %v5149_v19  ;;  %3959 = vmatprep.subr.bf16.mxu0 %v5156_v2  ;;  %v5206_v19 = vcombine.high %v655_v38, %v659_v40  ;;  %v662_v2 = vld [vmem:[#allocation9 + $0x690] sm:$0xff]  ;;  %v703_v34 = vld [vmem:[#allocation9 + $0x7d8] sm:$0xff]  ;;  %v5245_v40 = vcombine.low %v695_v56, %v699_v57 }
 0x262   :  { %4131 = vmatprep.subr.bf16.mxu1 %v5158_v3  ;;  %v666_v3 = vld [vmem:[#allocation9 + $0x6b0] sm:$0xff]  ;;  %v707_v36 = vld [vmem:[#allocation9 + $0x7f8] sm:$0xff] }
 0x263   :  { %v5211_v15 = vcombine.low %v662_v2, %v666_v3 }
 0x264   :  { %3960 = vmatpush1.bf16.msra.mxu0 %v5155_v33  ;;  %v5212_v33 = vcombine.high %v662_v2, %v666_v3  ;;  %v711_v2 = vld [vmem:[#allocation9 + $0x818] sm:$0xff] }
 0x265   :  { %4132 = vmatpush1.bf16.msra.mxu1 %v5157_v10  ;;  %3961 = vmatprep.subr.bf16.mxu0 %v5164_v11  ;;  %v5214_v10 = vcombine.high %v663_v5, %v667_v6  ;;  %v670_v11 = vld [vmem:[#allocation9 + $0x6d0] sm:$0xff]  ;;  %v715_v3 = vld [vmem:[#allocation9 + $0x838] sm:$0xff]  ;;  %v5253_v6 = vcombine.low %v703_v34, %v707_v36 }
 0x266   :  { %4133 = vmatprep.subr.bf16.mxu1 %v5166_v12  ;;  %v674_v12 = vld [vmem:[#allocation9 + $0x6f0] sm:$0xff] }
 0x267   :  { %v5219_v26 = vcombine.low %v670_v11, %v674_v12 }
 0x268   :  { %3962 = vmatpush1.bf16.msra.mxu0 %v5163_v17  ;;  %v5220_v17 = vcombine.high %v670_v11, %v674_v12  ;;  %v719_v12 = vld [vmem:[#allocation9 + $0x858] sm:$0xff] }
 0x269   :  { %4134 = vmatpush1.bf16.msra.mxu1 %v5165_v18  ;;  %3963 = vmatprep.subr.bf16.mxu0 %v5172_v20  ;;  %v5222_v18 = vcombine.high %v671_v13, %v675_v14  ;;  %v678_v20 = vld [vmem:[#allocation9 + $0x710] sm:$0xff]  ;;  %v723_v13 = vld [vmem:[#allocation9 + $0x878] sm:$0xff]  ;;  %v5261_v14 = vcombine.low %v711_v2, %v715_v3 }
 0x26a   :  { %4135 = vmatprep.subr.bf16.mxu1 %v5174_v22  ;;  %v682_v22 = vld [vmem:[#allocation9 + $0x730] sm:$0xff] }
 0x26b   :  { %v5227_v42 = vcombine.low %v678_v20, %v682_v22 }
 0x26c   :  { %3964 = vmatpush1.bf16.msra.mxu0 %v5171_v21  ;;  %v5228_v21 = vcombine.high %v678_v20, %v682_v22  ;;  %v727_v20 = vld [vmem:[#allocation9 + $0x898] sm:$0xff] }
 0x26d   :  { %4136 = vmatpush1.bf16.msra.mxu1 %v5173_v30  ;;  %3965 = vmatprep.subr.bf16.mxu0 %v5180_v31  ;;  %v5230_v30 = vcombine.high %v679_v23, %v683_v24  ;;  %v686_v31 = vld [vmem:[#allocation9 + $0x750] sm:$0xff]  ;;  %v731_v22 = vld [vmem:[#allocation9 + $0x8b8] sm:$0xff]  ;;  %v5269_v24 = vcombine.low %v719_v12, %v723_v13 }
 0x26e   :  { %4137 = vmatprep.subr.bf16.mxu1 %v5182_v32  ;;  %v690_v32 = vld [vmem:[#allocation9 + $0x770] sm:$0xff] }
 0x26f   :  { %v5235_v58 = vcombine.low %v686_v31, %v690_v32 }
 0x270   :  { %3966 = vmatpush1.bf16.msra.mxu0 %v5179_v50  ;;  %v5236_v50 = vcombine.high %v686_v31, %v690_v32  ;;  %v735_v31 = vld [vmem:[#allocation9 + $0x8d8] sm:$0xff] }
 0x271   :  { %4138 = vmatpush1.bf16.msra.mxu1 %v5181_v51  ;;  %3967 = vmatprep.subr.bf16.mxu0 %v5188_v52  ;;  %v5238_v51 = vcombine.high %v687_v37, %v691_v41  ;;  %v694_v52 = vld [vmem:[#allocation9 + $0x790] sm:$0xff]  ;;  %v739_v32 = vld [vmem:[#allocation9 + $0x8f8] sm:$0xff] }
 0x272   :  { %4139 = vmatprep.subr.bf16.mxu1 %v5190_v53  ;;  %v698_v53 = vld [vmem:[#allocation9 + $0x7b0] sm:$0xff] }
 0x273   :  { %v5243_v38 = vcombine.low %v694_v52, %v698_v53 }
 0x274   :  { %3968 = vmatpush1.bf16.msra.mxu0 %v5187_v60  ;;  %v5244_v60 = vcombine.high %v694_v52, %v698_v53  ;;  %v747_v52 = vld [vmem:[#allocation9 + $0x938] sm:$0xff]  ;;  %v5285_v53 = vcombine.low %v735_v31, %v739_v32 }
 0x275   :  { %4140 = vmatpush1.bf16.msra.mxu1 %v5189_v61  ;;  %3969 = vmatprep.subr.bf16.mxu0 %v5196_v62  ;;  %v5246_v61 = vcombine.high %v695_v56, %v699_v57  ;;  %v702_v62 = vld [vmem:[#allocation9 + $0x7d0] sm:$0xff] }
 0x276   :  { %4141 = vmatprep.subr.bf16.mxu1 %v5198_v63  ;;  %v706_v63 = vld [vmem:[#allocation9 + $0x7f0] sm:$0xff] }
 0x277   :  { %v5251_v5 = vcombine.low %v702_v62, %v706_v63 }
 0x278   :  { %3970 = vmatpush1.bf16.msra.mxu0 %v5195_v45  ;;  %v5252_v45 = vcombine.high %v702_v62, %v706_v63 }
 0x279   :  { %4142 = vmatpush1.bf16.msra.mxu1 %v5197_v0  ;;  %3971 = vmatprep.subr.bf16.mxu0 %v5204_v1  ;;  %v5254_v0 = vcombine.high %v703_v34, %v707_v36  ;;  %v710_v1 = vld [vmem:[#allocation9 + $0x810] sm:$0xff] }
 0x27a   :  { %4143 = vmatprep.subr.bf16.mxu1 %v5206_v19  ;;  %v714_v19 = vld [vmem:[#allocation9 + $0x830] sm:$0xff] }
 0x27b   :  { %v5259_v11 = vcombine.low %v710_v1, %v714_v19 }
 0x27c   :  { %3972 = vmatpush1.bf16.msra.mxu0 %v5203_v7  ;;  %v5260_v7 = vcombine.high %v710_v1, %v714_v19 }
 0x27d   :  { %4144 = vmatpush1.bf16.msra.mxu1 %v5205_v9  ;;  %3973 = vmatprep.subr.bf16.mxu0 %v5212_v33  ;;  %v5262_v9 = vcombine.high %v711_v2, %v715_v3  ;;  %v718_v33 = vld [vmem:[#allocation9 + $0x850] sm:$0xff] }
 0x27e   :  { %4145 = vmatprep.subr.bf16.mxu1 %v5214_v10  ;;  %v722_v10 = vld [vmem:[#allocation9 + $0x870] sm:$0xff] }
 0x27f   :  { %v5267_v23 = vcombine.low %v718_v33, %v722_v10 }
 0x280   :  { %3974 = vmatpush1.bf16.msra.mxu0 %v5211_v15  ;;  %v5268_v15 = vcombine.high %v718_v33, %v722_v10 }
 0x281   :  { %4146 = vmatpush1.bf16.msra.mxu1 %v5213_v16  ;;  %3975 = vmatprep.subr.bf16.mxu0 %v5220_v17  ;;  %v726_v16 = vld [vmem:[#allocation9 + $0x890] sm:$0xff] }
 0x282   :  { %4147 = vmatprep.subr.bf16.mxu1 %v5222_v18  ;;  %v730_v17 = vld [vmem:[#allocation9 + $0x8b0] sm:$0xff]  ;;  %v5270_v18 = vcombine.high %v719_v12, %v723_v13 }
 0x283   :  { %v5275_v37 = vcombine.low %v726_v16, %v730_v17  ;;  %v774_v13 = vld [vmem:[#allocation9 + $0xa10] sm:$0xff] }
 0x284   :  { %3976 = vmatpush1.bf16.msra.mxu0 %v5219_v26  ;;  %v5276_v26 = vcombine.high %v726_v16, %v730_v17  ;;  %v779_v16 = vld [vmem:[#allocation9 + $0xa38] sm:$0xff] }
 0x285   :  { %4148 = vmatpush1.bf16.msra.mxu1 %v5221_v29  ;;  %3977 = vmatprep.subr.bf16.mxu0 %v5228_v21  ;;  %v5278_v29 = vcombine.high %v727_v20, %v731_v22  ;;  %v734_v21 = vld [vmem:[#allocation9 + $0x8d0] sm:$0xff] }
 0x286   :  { %4149 = vmatprep.subr.bf16.mxu1 %v5230_v30  ;;  %v738_v30 = vld [vmem:[#allocation9 + $0x8f0] sm:$0xff] }
 0x287   :  { %v5284_v41 = vcombine.high %v734_v21, %v738_v30 }
 0x288   :  { %3978 = vmatpush1.bf16.msra.mxu0 %v5227_v42  ;;  %v5286_v42 = vcombine.high %v735_v31, %v739_v32 }
 0x289   :  { %4150 = vmatpush1.bf16.msra.mxu1 %v5229_v49  ;;  %3979 = vmatprep.subr.bf16.mxu0 %v5236_v50  ;;  %v742_v49 = vld [vmem:[#allocation9 + $0x910] sm:$0xff] }
 0x28a   :  { %4151 = vmatprep.subr.bf16.mxu1 %v5238_v51  ;;  %v746_v50 = vld [vmem:[#allocation9 + $0x930] sm:$0xff]  ;;  %v743_v51 = vld [vmem:[#allocation9 + $0x918] sm:$0xff] }
 0x28b   :  { %v5292_v56 = vcombine.high %v742_v49, %v746_v50  ;;  %v5294_v57 = vcombine.high %v743_v51, %v747_v52  ;;  %v5291_v62 = vcombine.low %v742_v49, %v746_v50  ;;  %v5293_v63 = vcombine.low %v743_v51, %v747_v52 }
 0x28c   :  { %3980 = vmatpush1.bf16.msra.mxu0 %v5235_v58  ;;  %v750_v58 = vld [vmem:[#allocation9 + $0x950] sm:$0xff] }
 0x28d   :  { %4152 = vmatpush1.bf16.msra.mxu1 %v5237_v59  ;;  %3981 = vmatprep.subr.bf16.mxu0 %v5244_v60  ;;  %v754_v59 = vld [vmem:[#allocation9 + $0x970] sm:$0xff]  ;;  %v751_v60 = vld [vmem:[#allocation9 + $0x958] sm:$0xff] }
 0x28e   :  { %4153 = vmatprep.subr.bf16.mxu1 %v5246_v61  ;;  %v755_v61 = vld [vmem:[#allocation9 + $0x978] sm:$0xff]  ;;  %v5300_v34 = vcombine.high %v750_v58, %v754_v59  ;;  %v5299_v1 = vcombine.low %v750_v58, %v754_v59 }
 0x28f   :  { %v5302_v36 = vcombine.high %v751_v60, %v755_v61  ;;  %v5301_v19 = vcombine.low %v751_v60, %v755_v61 }
 0x290   :  { %3982 = vmatpush1.bf16.msra.mxu0 %v5243_v38  ;;  %v758_v38 = vld [vmem:[#allocation9 + $0x990] sm:$0xff] }
 0x291   :  { %4154 = vmatpush1.bf16.msra.mxu1 %v5245_v40  ;;  %3983 = vmatprep.subr.bf16.mxu0 %v5252_v45  ;;  %v762_v40 = vld [vmem:[#allocation9 + $0x9b0] sm:$0xff]  ;;  %v759_v45 = vld [vmem:[#allocation9 + $0x998] sm:$0xff] }
 0x292   :  { %4155 = vmatprep.subr.bf16.mxu1 %v5254_v0  ;;  %v763_v0 = vld [vmem:[#allocation9 + $0x9b8] sm:$0xff]  ;;  %v5308_v2 = vcombine.high %v758_v38, %v762_v40  ;;  %v5307_v33 = vcombine.low %v758_v38, %v762_v40 }
 0x293   :  { %v5310_v3 = vcombine.high %v759_v45, %v763_v0  ;;  %v5309_v10 = vcombine.low %v759_v45, %v763_v0 }
 0x294   :  { %3984 = vmatpush1.bf16.msra.mxu0 %v5251_v5  ;;  %v766_v5 = vld [vmem:[#allocation9 + $0x9d0] sm:$0xff] }
 0x295   :  { %4156 = vmatpush1.bf16.msra.mxu1 %v5253_v6  ;;  %3996 = vmatprep.subr.bf16.mxu0 %v5260_v7  ;;  %v770_v6 = vld [vmem:[#allocation9 + $0x9f0] sm:$0xff]  ;;  %v767_v7 = vld [vmem:[#allocation9 + $0x9d8] sm:$0xff] }
 0x296   :  { %4168 = vmatprep.subr.bf16.mxu1 %v5262_v9  ;;  %v771_v9 = vld [vmem:[#allocation9 + $0x9f8] sm:$0xff]  ;;  %v5315_v17 = vcombine.low %v766_v5, %v770_v6 }
 0x297   :  { %3986 = vmatmul.mubr.bf16.vlgmr.msra.gmra.mrb[12].mxu0 %v6154_v27  ;;  %v5318_v12 = vcombine.high %v767_v7, %v771_v9 }
 0x298   :  { %4158 = vmatmul.mubr.bf16.vlgmr.msra.gmra.mrb[12].mxu1 %v6154_v27  ;;  %3997 = vmatpush1.bf16.msra.mxu0 %v5259_v11  ;;  %v5277_v27 = vcombine.low %v727_v20, %v731_v22  ;;  %v5316_v11 = vcombine.high %v766_v5, %v770_v6 }
 0x299   :  { %4028 = vmatprep.mubr.bf16.mxu0 %v6172_v39  ;;  %4169 = vmatpush1.bf16.msra.mxu1 %v5261_v14  ;;  %v778_v14 = vld [vmem:[#allocation9 + $0xa30] sm:$0xff] }
 0x29a   :  { %4200 = vmatprep.mubr.bf16.mxu1 %v6172_v39  ;;  %3998 = vmatprep.subr.bf16.mxu0 %v5268_v15  ;;  %v5283_v39 = vcombine.low %v734_v21, %v738_v30  ;;  %v775_v15 = vld [vmem:[#allocation9 + $0xa18] sm:$0xff]  ;;  %v5324_v20 = vcombine.high %v774_v13, %v778_v14  ;;  %v5323_v21 = vcombine.low %v774_v13, %v778_v14 }
 0x29b   :  { %4170 = vmatprep.subr.bf16.mxu1 %v5270_v18  ;;  %v5317_v18 = vcombine.low %v767_v7, %v771_v9  ;;  %v5326_v22 = vcombine.high %v775_v15, %v779_v16  ;;  %v5325_v30 = vcombine.low %v775_v15, %v779_v16 }
 0x29c   :  { %3999 = vmatpush1.bf16.msra.mxu0 %v5267_v23  ;;  %v782_v23 = vld [vmem:[#allocation9 + $0xa50] sm:$0xff] }
 0x29d   :  { %4171 = vmatpush1.bf16.msra.mxu1 %v5269_v24  ;;  %4000 = vmatprep.subr.bf16.mxu0 %v5276_v26  ;;  %v786_v24 = vld [vmem:[#allocation9 + $0xa70] sm:$0xff]  ;;  %v783_v26 = vld [vmem:[#allocation9 + $0xa58] sm:$0xff] }
 0x29e   :  { %4172 = vmatprep.subr.bf16.mxu1 %v5278_v29  ;;  %v787_v29 = vld [vmem:[#allocation9 + $0xa78] sm:$0xff]  ;;  %v5332_v31 = vcombine.high %v782_v23, %v786_v24  ;;  %v5331_v49 = vcombine.low %v782_v23, %v786_v24 }
 0x29f   :  { %v5334_v32 = vcombine.high %v783_v26, %v787_v29  ;;  %v5333_v50 = vcombine.low %v783_v26, %v787_v29 }
 0x2a0   :  { %4001 = vmatpush1.bf16.msra.mxu0 %v5275_v37  ;;  %v790_v37 = vld [vmem:[#allocation9 + $0xa90] sm:$0xff] }
 0x2a1   :  { %4173 = vmatpush1.bf16.msra.mxu1 %v5277_v27  ;;  %4002 = vmatprep.subr.bf16.mxu0 %v5284_v41  ;;  %v794_v27 = vld [vmem:[#allocation9 + $0xab0] sm:$0xff]  ;;  %v791_v41 = vld [vmem:[#allocation9 + $0xa98] sm:$0xff] }
 0x2a2   :  { %4174 = vmatprep.subr.bf16.mxu1 %v5286_v42  ;;  %v795_v42 = vld [vmem:[#allocation9 + $0xab8] sm:$0xff]  ;;  %v5340_v51 = vcombine.high %v790_v37, %v794_v27  ;;  %v5339_v58 = vcombine.low %v790_v37, %v794_v27 }
 0x2a3   :  { %v5342_v52 = vcombine.high %v791_v41, %v795_v42  ;;  %v5341_v59 = vcombine.low %v791_v41, %v795_v42 }
 0x2a4   :  { %4003 = vmatpush1.bf16.msra.mxu0 %v5283_v39  ;;  %v798_v39 = vld [vmem:[#allocation9 + $0xad0] sm:$0xff] }
 0x2a5   :  { %4175 = vmatpush1.bf16.msra.mxu1 %v5285_v53  ;;  %4004 = vmatprep.subr.bf16.mxu0 %v5292_v56  ;;  %v802_v53 = vld [vmem:[#allocation9 + $0xaf0] sm:$0xff]  ;;  %v799_v56 = vld [vmem:[#allocation9 + $0xad8] sm:$0xff] }
 0x2a6   :  { %4176 = vmatprep.subr.bf16.mxu1 %v5294_v57  ;;  %v803_v57 = vld [vmem:[#allocation9 + $0xaf8] sm:$0xff]  ;;  %v5348_v60 = vcombine.high %v798_v39, %v802_v53  ;;  %v5347_v38 = vcombine.low %v798_v39, %v802_v53 }
 0x2a7   :  { %v5350_v61 = vcombine.high %v799_v56, %v803_v57  ;;  %v5349_v40 = vcombine.low %v799_v56, %v803_v57  ;;  %v851_v39 = vld [vmem:[#allocation9 + $0xc78] sm:$0xff]  ;;  %v854_v57 = vld [vmem:[#allocation9 + $0xc90] sm:$0xff] }
 0x2a8   :  { %4005 = vmatpush1.bf16.msra.mxu0 %v5291_v62  ;;  %v806_v62 = vld [vmem:[#allocation9 + $0xb10] sm:$0xff] }
 0x2a9   :  { %4177 = vmatpush1.bf16.msra.mxu1 %v5293_v63  ;;  %4006 = vmatprep.subr.bf16.mxu0 %v5300_v34  ;;  %v810_v63 = vld [vmem:[#allocation9 + $0xb30] sm:$0xff]  ;;  %v807_v34 = vld [vmem:[#allocation9 + $0xb18] sm:$0xff] }
 0x2aa   :  { %4178 = vmatprep.subr.bf16.mxu1 %v5302_v36  ;;  %v811_v36 = vld [vmem:[#allocation9 + $0xb38] sm:$0xff]  ;;  %v5356_v45 = vcombine.high %v806_v62, %v810_v63  ;;  %v5355_v5 = vcombine.low %v806_v62, %v810_v63 }
 0x2ab   :  { %v5358_v0 = vcombine.high %v807_v34, %v811_v36  ;;  %v5357_v6 = vcombine.low %v807_v34, %v811_v36 }
 0x2ac   :  { %4007 = vmatpush1.bf16.msra.mxu0 %v5299_v1  ;;  %v814_v1 = vld [vmem:[#allocation9 + $0xb50] sm:$0xff] }
 0x2ad   :  { %4179 = vmatpush1.bf16.msra.mxu1 %v5301_v19  ;;  %4008 = vmatprep.subr.bf16.mxu0 %v5308_v2  ;;  %v818_v19 = vld [vmem:[#allocation9 + $0xb70] sm:$0xff]  ;;  %v815_v2 = vld [vmem:[#allocation9 + $0xb58] sm:$0xff] }
 0x2ae   :  { %4180 = vmatprep.subr.bf16.mxu1 %v5310_v3  ;;  %v819_v3 = vld [vmem:[#allocation9 + $0xb78] sm:$0xff]  ;;  %v5364_v7 = vcombine.high %v814_v1, %v818_v19  ;;  %v5363_v13 = vcombine.low %v814_v1, %v818_v19 }
 0x2af   :  { %v5366_v9 = vcombine.high %v815_v2, %v819_v3  ;;  %v5365_v14 = vcombine.low %v815_v2, %v819_v3  ;;  %v870_v3 = vld [vmem:[#allocation9 + $0xd10] sm:$0xff] }
 0x2b0   :  { %4009 = vmatpush1.bf16.msra.mxu0 %v5307_v33  ;;  %v822_v33 = vld [vmem:[#allocation9 + $0xb90] sm:$0xff] }
 0x2b1   :  { %4181 = vmatpush1.bf16.msra.mxu1 %v5309_v10  ;;  %4010 = vmatprep.subr.bf16.mxu0 %v5316_v11  ;;  %v826_v10 = vld [vmem:[#allocation9 + $0xbb0] sm:$0xff]  ;;  %v823_v11 = vld [vmem:[#allocation9 + $0xb98] sm:$0xff] }
 0x2b2   :  { %4182 = vmatprep.subr.bf16.mxu1 %v5318_v12  ;;  %v827_v12 = vld [vmem:[#allocation9 + $0xbb8] sm:$0xff]  ;;  %v5372_v15 = vcombine.high %v822_v33, %v826_v10  ;;  %v5371_v23 = vcombine.low %v822_v33, %v826_v10 }
 0x2b3   :  { %v5374_v16 = vcombine.high %v823_v11, %v827_v12  ;;  %v5373_v24 = vcombine.low %v823_v11, %v827_v12  ;;  %v878_v11 = vld [vmem:[#allocation9 + $0xd50] sm:$0xff] }
 0x2b4   :  { %4011 = vmatpush1.bf16.msra.mxu0 %v5315_v17  ;;  %v830_v17 = vld [vmem:[#allocation9 + $0xbd0] sm:$0xff] }
 0x2b5   :  { %4183 = vmatpush1.bf16.msra.mxu1 %v5317_v18  ;;  %4012 = vmatprep.subr.bf16.mxu0 %v5324_v20  ;;  %v834_v18 = vld [vmem:[#allocation9 + $0xbf0] sm:$0xff]  ;;  %v831_v20 = vld [vmem:[#allocation9 + $0xbd8] sm:$0xff] }
 0x2b6   :  { %4184 = vmatprep.subr.bf16.mxu1 %v5326_v22  ;;  %v835_v22 = vld [vmem:[#allocation9 + $0xbf8] sm:$0xff]  ;;  %v5380_v26 = vcombine.high %v830_v17, %v834_v18  ;;  %v5379_v37 = vcombine.low %v830_v17, %v834_v18  ;;  %v882_v12 = vld [vmem:[#allocation9 + $0xd70] sm:$0xff] }
 0x2b7   :  { %v5382_v29 = vcombine.high %v831_v20, %v835_v22  ;;  %v5381_v27 = vcombine.low %v831_v20, %v835_v22  ;;  %v5428_v18 = vcombine.high %v878_v11, %v882_v12  ;;  %v886_v22 = vld [vmem:[#allocation9 + $0xd90] sm:$0xff] }
 0x2b8   :  { %4013 = vmatpush1.bf16.msra.mxu0 %v5323_v21  ;;  %v838_v21 = vld [vmem:[#allocation9 + $0xc10] sm:$0xff] }
 0x2b9   :  { %4185 = vmatpush1.bf16.msra.mxu1 %v5325_v30  ;;  %4014 = vmatprep.subr.bf16.mxu0 %v5332_v31  ;;  %v842_v30 = vld [vmem:[#allocation9 + $0xc30] sm:$0xff]  ;;  %v839_v31 = vld [vmem:[#allocation9 + $0xc18] sm:$0xff] }
 0x2ba   :  { %4186 = vmatprep.subr.bf16.mxu1 %v5334_v32  ;;  %v843_v32 = vld [vmem:[#allocation9 + $0xc38] sm:$0xff]  ;;  %v5388_v41 = vcombine.high %v838_v21, %v842_v30 }
 0x2bb   :  { %v5390_v42 = vcombine.high %v839_v31, %v843_v32  ;;  %v5389_v53 = vcombine.low %v839_v31, %v843_v32  ;;  %v5427_v32 = vcombine.low %v878_v11, %v882_v12 }
 0x2bc   :  { %4015 = vmatpush1.bf16.msra.mxu0 %v5331_v49  ;;  %v846_v49 = vld [vmem:[#allocation9 + $0xc50] sm:$0xff] }
 0x2bd   :  { %4187 = vmatpush1.bf16.msra.mxu1 %v5333_v50  ;;  %4016 = vmatprep.subr.bf16.mxu0 %v5340_v51  ;;  %v850_v50 = vld [vmem:[#allocation9 + $0xc70] sm:$0xff]  ;;  %v5387_v51 = vcombine.low %v838_v21, %v842_v30  ;;  %v891_v21 = vld [vmem:[#allocation9 + $0xdb8] sm:$0xff] }
 0x2be   :  { %4188 = vmatprep.subr.bf16.mxu1 %v5342_v52  ;;  %v847_v52 = vld [vmem:[#allocation9 + $0xc58] sm:$0xff]  ;;  %v5396_v56 = vcombine.high %v846_v49, %v850_v50  ;;  %v5395_v62 = vcombine.low %v846_v49, %v850_v50 }
 0x2bf   :  { %v5397_v63 = vcombine.low %v847_v52, %v851_v39 }
 0x2c0   :  { %4017 = vmatpush1.bf16.msra.mxu0 %v5339_v58  ;;  %v858_v58 = vld [vmem:[#allocation9 + $0xcb0] sm:$0xff] }
 0x2c1   :  { %4189 = vmatpush1.bf16.msra.mxu1 %v5341_v59  ;;  %4018 = vmatprep.subr.bf16.mxu0 %v5348_v60  ;;  %v5398_v59 = vcombine.high %v847_v52, %v851_v39  ;;  %v855_v60 = vld [vmem:[#allocation9 + $0xc98] sm:$0xff]  ;;  %v5404_v34 = vcombine.high %v854_v57, %v858_v58  ;;  %v5403_v1 = vcombine.low %v854_v57, %v858_v58 }
 0x2c2   :  { %4190 = vmatprep.subr.bf16.mxu1 %v5350_v61  ;;  %v859_v61 = vld [vmem:[#allocation9 + $0xcb8] sm:$0xff] }
 0x2c3   :  { %v5406_v36 = vcombine.high %v855_v60, %v859_v61 }
 0x2c4   :  { %4019 = vmatpush1.bf16.msra.mxu0 %v5347_v38  ;;  %v862_v38 = vld [vmem:[#allocation9 + $0xcd0] sm:$0xff] }
 0x2c5   :  { %4191 = vmatpush1.bf16.msra.mxu1 %v5349_v40  ;;  %4020 = vmatprep.subr.bf16.mxu0 %v5356_v45  ;;  %v866_v40 = vld [vmem:[#allocation9 + $0xcf0] sm:$0xff]  ;;  %v863_v45 = vld [vmem:[#allocation9 + $0xcd8] sm:$0xff] }
 0x2c6   :  { %4192 = vmatprep.subr.bf16.mxu1 %v5358_v0  ;;  %v867_v0 = vld [vmem:[#allocation9 + $0xcf8] sm:$0xff]  ;;  %v5412_v19 = vcombine.high %v862_v38, %v866_v40 }
 0x2c7   :  { %v5414_v2 = vcombine.high %v863_v45, %v867_v0 }
 0x2c8   :  { %4021 = vmatpush1.bf16.msra.mxu0 %v5355_v5  ;;  %v874_v5 = vld [vmem:[#allocation9 + $0xd30] sm:$0xff] }
 0x2c9   :  { %4193 = vmatpush1.bf16.msra.mxu1 %v5357_v6  ;;  %4022 = vmatprep.subr.bf16.mxu0 %v5364_v7  ;;  %v871_v6 = vld [vmem:[#allocation9 + $0xd18] sm:$0xff]  ;;  %v5420_v33 = vcombine.high %v870_v3, %v874_v5 }
 0x2ca   :  { %4194 = vmatprep.subr.bf16.mxu1 %v5366_v9  ;;  %v875_v7 = vld [vmem:[#allocation9 + $0xd38] sm:$0xff]  ;;  %v5413_v9 = vcombine.low %v863_v45, %v867_v0 }
 0x2cb   :  { %v5422_v10 = vcombine.high %v871_v6, %v875_v7  ;;  %v5421_v17 = vcombine.low %v871_v6, %v875_v7  ;;  %v903_v7 = vld [vmem:[#allocation9 + $0xe18] sm:$0xff] }
 0x2cc   :  { %4023 = vmatpush1.bf16.msra.mxu0 %v5363_v13  ;;  %v879_v13 = vld [vmem:[#allocation9 + $0xd58] sm:$0xff] }
 0x2cd   :  { %4195 = vmatpush1.bf16.msra.mxu1 %v5365_v14  ;;  %4024 = vmatprep.subr.bf16.mxu0 %v5372_v15  ;;  %v883_v14 = vld [vmem:[#allocation9 + $0xd78] sm:$0xff]  ;;  %v5419_v15 = vcombine.low %v870_v3, %v874_v5 }
 0x2ce   :  { %4196 = vmatprep.subr.bf16.mxu1 %v5374_v16  ;;  %v6210_v16 = vld [vmem:[#allocation11] sm:$0xff]  ;;  %v5430_v20 = vcombine.high %v879_v13, %v883_v14 }
 0x2cf   :  { %v973_v30 = vrot.slane %v6210_v16, %v133_v46  ;;  %v981_v31 = vrot.slane %v6210_v16, %v141_v48 }
 0x2d0   :  { %4025 = vmatpush1.bf16.msra.mxu0 %v5371_v23  ;;  %v890_v23 = vld [vmem:[#allocation9 + $0xdb0] sm:$0xff] }
 0x2d1   :  { %4197 = vmatpush1.bf16.msra.mxu1 %v5373_v24  ;;  %4026 = vmatprep.subr.bf16.mxu0 %v5380_v26  ;;  %v969_v24 = vrot.slane %v6210_v16, %v129_v44  ;;  %v977_v26 = vrot.slane %v6210_v16, %v137_v47  ;;  %v5436_v44 = vcombine.high %v886_v22, %v890_v23 }
 0x2d2   :  { %4198 = vmatprep.subr.bf16.mxu1 %v5382_v29  ;;  %v887_v29 = vld [vmem:[#allocation9 + $0xd98] sm:$0xff]  ;;  %v5435_v46 = vcombine.low %v886_v22, %v890_v23  ;;  %v914_v22 = vld [vmem:[#allocation9 + $0xe70] sm:$0xff] }
 0x2d3   :  { %v5438_v49 = vcombine.high %v887_v29, %v891_v21  ;;  %v911_v23 = vld [vmem:[#allocation9 + $0xe58] sm:$0xff] }
 0x2d4   :  { %4027 = vmatpush1.bf16.msra.mxu0 %v5379_v37  ;;  %v5429_v37 = vcombine.low %v879_v13, %v883_v14 }
 0x2d5   :  { %4199 = vmatpush1.bf16.msra.mxu1 %v5381_v27  ;;  %4039 = vmatprep.subr.bf16.mxu0 %v5388_v41  ;;  %v894_v27 = vld [vmem:[#allocation9 + $0xdd0] sm:$0xff] }
 0x2d6   :  { %4211 = vmatprep.subr.bf16.mxu1 %v5390_v42  ;;  %v898_v41 = vld [vmem:[#allocation9 + $0xdf0] sm:$0xff] }
 0x2d7   :  { %4029 = vmatmul.mubr.bf16.vlgmr.msra.gmra.mrb[12].mxu0 %v6170_v35 }
 0x2d8   :  { %4201 = vmatmul.mubr.bf16.vlgmr.msra.gmra.mrb[12].mxu1 %v6170_v35  ;;  %4040 = vmatpush1.bf16.msra.mxu0 %v5387_v51  ;;  %v5405_v35 = vcombine.low %v855_v60, %v859_v61  ;;  %v5437_v60 = vcombine.low %v887_v29, %v891_v21  ;;  %v5443_v61 = vcombine.low %v894_v27, %v898_v41 }
 0x2d9   :  { %4071 = vmatprep.mubr.bf16.mxu0 %v6184_v8  ;;  %4212 = vmatpush1.bf16.msra.mxu1 %v5389_v53  ;;  %v895_v53 = vld [vmem:[#allocation9 + $0xdd8] sm:$0xff] }
 0x2da   :  { %4243 = vmatprep.mubr.bf16.mxu1 %v6184_v8  ;;  %4041 = vmatprep.subr.bf16.mxu0 %v5396_v56  ;;  %v5411_v8 = vcombine.low %v862_v38, %v866_v40  ;;  %v899_v56 = vld [vmem:[#allocation9 + $0xdf8] sm:$0xff]  ;;  %v5444_v38 = vcombine.high %v894_v27, %v898_v41 }
 0x2db   :  { %4213 = vmatprep.subr.bf16.mxu1 %v5398_v59  ;;  %v5445_v0 = vcombine.low %v895_v53, %v899_v56 }
 0x2dc   :  { %4042 = vmatpush1.bf16.msra.mxu0 %v5395_v62 }
 0x2dd   :  { %4214 = vmatpush1.bf16.msra.mxu1 %v5397_v63  ;;  %4043 = vmatprep.subr.bf16.mxu0 %v5404_v34 }
 0x2de   :  { %4215 = vmatprep.subr.bf16.mxu1 %v5406_v36 }
 0x2e0   :  { %4044 = vmatpush1.bf16.msra.mxu0 %v5403_v1  ;;  %v5446_v1 = vcombine.high %v895_v53, %v899_v56 }
 0x2e1   :  { %4216 = vmatpush1.bf16.msra.mxu1 %v5405_v35  ;;  %4045 = vmatprep.subr.bf16.mxu0 %v5412_v19  ;;  %v902_v35 = vld [vmem:[#allocation9 + $0xe10] sm:$0xff] }
 0x2e2   :  { %4217 = vmatprep.subr.bf16.mxu1 %v5414_v2  ;;  %v906_v19 = vld [vmem:[#allocation9 + $0xe30] sm:$0xff] }
 0x2e3   :  { %v5452_v14 = vcombine.high %v902_v35, %v906_v19 }
 0x2e4   :  { %4046 = vmatpush1.bf16.msra.mxu0 %v5411_v8  ;;  %v907_v8 = vld [vmem:[#allocation9 + $0xe38] sm:$0xff] }
 0x2e5   :  { %4218 = vmatpush1.bf16.msra.mxu1 %v5413_v9  ;;  %4047 = vmatprep.subr.bf16.mxu0 %v5420_v33  ;;  %v5453_v29 = vcombine.low %v903_v7, %v907_v8 }
 0x2e6   :  { %4219 = vmatprep.subr.bf16.mxu1 %v5422_v10 }
 0x2e8   :  { %4048 = vmatpush1.bf16.msra.mxu0 %v5419_v15 }
 0x2e9   :  { %4220 = vmatpush1.bf16.msra.mxu1 %v5421_v17  ;;  %4049 = vmatprep.subr.bf16.mxu0 %v5428_v18  ;;  %v5454_v18 = vcombine.high %v903_v7, %v907_v8 }
 0x2ea   :  { %v3729_v42 = vpop.f32.mrb[8].mxu0  ;;  %v3901_v47 = vpop.f32.mrb[8].mxu1  ;;  %4221 = vmatprep.subr.bf16.mxu1 %v5430_v20  ;;  %v910_v20 = vld [vmem:[#allocation9 + $0xe50] sm:$0xff] }
 0x2eb   :  { %v5663_v50 = vadd.f32 %v3729_v42, %v969_v24  ;;  %v5667_v51 = vadd.f32 %v3901_v47, %v977_v26  ;;  %v3731_v52 = vpop.f32.mrb[9].mxu0  ;;  %v3903_v39 = vpop.f32.mrb[9].mxu1  ;;  %v5460_v21 = vcombine.high %v910_v20, %v914_v22  ;;  %v5459_v27 = vcombine.low %v910_v20, %v914_v22 }
 0x2ec   :  { %v5664_v57 = vadd.f32 %v3731_v52, %v973_v30  ;;  %v5668_v48 = vadd.f32 %v3903_v39, %v981_v31  ;;  %v3733_v58 = vpop.f32.mrb[10].mxu0  ;;  %v3905_v59 = vpop.f32.mrb[10].mxu1  ;;  %4050 = vmatpush1.bf16.msra.mxu0 %v5427_v32  ;;  %v922_v32 = vld [vmem:[#allocation9 + $0xeb0] sm:$0xff]  ;;  %v931_v52 = vld [vmem:[#allocation9 + $0xef8] sm:$0xff] }
 0x2ed   :  { %v5665_v62 = vadd.f32 %v3733_v58, %v969_v24  ;;  %v5669_v63 = vadd.f32 %v3905_v59, %v977_v26  ;;  %4222 = vmatpush1.bf16.msra.mxu1 %v5429_v37  ;;  %v3735_v34 = vpop.f32.mrb[11].mxu0  ;;  %v3907_v36 = vpop.f32.mrb[11].mxu1  ;;  %4051 = vmatprep.subr.bf16.mxu0 %v5436_v44  ;;  %v4254_v2 = vmax.f32 %v5663_v50, 0.0  ;;  %v4256_v3 = vmax.f32 %v5667_v51, 0.0  ;;  %v915_v24 = vld [vmem:[#allocation9 + $0xe78] sm:$0xff]  ;;  %v930_v50 = vld [vmem:[#allocation9 + $0xef0] sm:$0xff] }
 0x2ee   :  { %v5666_v40 = vadd.f32 %v3735_v34, %v973_v30  ;;  %v5670_v45 = vadd.f32 %v3907_v36, %v981_v31  ;;  %4223 = vmatprep.subr.bf16.mxu1 %v5438_v49  ;;  %v4255_v9 = vmax.f32 %v5664_v57, 0.0  ;;  %v4257_v33 = vmax.f32 %v5668_v48, 0.0  ;;  %v918_v31 = vld [vmem:[#allocation9 + $0xe90] sm:$0xff]  ;;  %v919_v37 = vld [vmem:[#allocation9 + $0xe98] sm:$0xff] }
 0x2ef   :  { %v4262_v5 = vmax.f32 %v5665_v62, 0.0  ;;  %v4264_v6 = vmax.f32 %v5669_v63, 0.0  ;;  %v5451_v26 = vcombine.low %v902_v35, %v906_v19  ;;  %v5462_v30 = vcombine.high %v911_v23, %v915_v24  ;;  %v923_v44 = vld [vmem:[#allocation9 + $0xeb8] sm:$0xff]  ;;  %v926_v49 = vld [vmem:[#allocation9 + $0xed0] sm:$0xff] }
 0x2f0   :  { %v4263_v10 = vmax.f32 %v5666_v40, 0.0  ;;  %v4265_v11 = vmax.f32 %v5670_v45, 0.0  ;;  %4052 = vmatpush1.bf16.msra.mxu0 %v5435_v46  ;;  %v5461_v41 = vcombine.low %v911_v23, %v915_v24  ;;  %v5468_v42 = vcombine.high %v918_v31, %v922_v32  ;;  %v927_v51 = vld [vmem:[#allocation9 + $0xed8] sm:$0xff]  ;;  %v934_v57 = vld [vmem:[#allocation9 + $0xf10] sm:$0xff] }
 0x2f1   :  { %v6224_v12 = vpack.c.bf16 %v4262_v5, %v4254_v2  ;;  %v6226_v13 = vpack.c.bf16 %v4264_v6, %v4256_v3  ;;  %4224 = vmatpush1.bf16.msra.mxu1 %v5437_v60  ;;  %4053 = vmatprep.subr.bf16.mxu0 %v5444_v38  ;;  %v5470_v47 = vcombine.high %v919_v37, %v923_v44  ;;  %v938_v48 = vld [vmem:[#allocation9 + $0xf30] sm:$0xff]  ;;  %v935_v58 = vld [vmem:[#allocation9 + $0xf18] sm:$0xff] }
 0x2f2   :  { %v6228_v15 = vpack.c.bf16 %v4263_v10, %v4255_v9  ;;  %v6230_v17 = vpack.c.bf16 %v4265_v11, %v4257_v33  ;;  %4225 = vmatprep.subr.bf16.mxu1 %v5446_v1  ;;  %v5467_v39 = vcombine.low %v918_v31, %v922_v32  ;;  %v5469_v46 = vcombine.low %v919_v37, %v923_v44  ;;  %v939_v59 = vld [vmem:[#allocation9 + $0xf38] sm:$0xff]  ;;  %v942_v34 = vld [vmem:[#allocation9 + $0xf50] sm:$0xff]  ;;  %v5745_v31 = vld [vmem:[#allocation12 + $0x80] sm:$0xff]  }
 0x2f3   :  { %v5476_v53 = vcombine.high %v926_v49, %v930_v50  ;;  %v5478_v56 = vcombine.high %v927_v51, %v931_v52  ;;  %v5475_v60 = vcombine.low %v926_v49, %v930_v50  ;;  %v5484_v62 = vcombine.high %v934_v57, %v938_v48  ;;  %v946_v36 = vld [vmem:[#allocation9 + $0xf70] sm:$0xff]  ;;  %v943_v38 = vld [vmem:[#allocation9 + $0xf58] sm:$0xff]  ;;  %v5754_v50 = vld [vmem:[#allocation12 + $0x58] sm:$0xff]  }
 0x2f4   :  { %4054 = vmatpush1.bf16.msra.mxu0 %v5443_v61  ;;  %v5477_v61 = vcombine.low %v927_v51, %v931_v52  ;;  %v5486_v63 = vcombine.high %v935_v58, %v939_v59  ;;  %v947_v40 = vld [vmem:[#allocation9 + $0xf78] sm:$0xff]  ;;  %v5483_v45 = vcombine.low %v934_v57, %v938_v48  ;;  %v5492_v1 = vcombine.high %v942_v34, %v946_v36  ;;  %v950_v19 = vld [vmem:[#allocation9 + $0xf90] sm:$0xff]  ;;  %v5756_v51 = vld [vmem:[#allocation12 + $0x18] sm:$0xff]  }
 0x2f5   :  { %4226 = vmatpush1.bf16.msra.mxu1 %v5445_v0  ;;  %4055 = vmatprep.subr.bf16.mxu0 %v5452_v14  ;;  %v5485_v0 = vcombine.low %v935_v58, %v939_v59  ;;  %v5494_v35 = vcombine.high %v943_v38, %v947_v40  ;;  %v954_v2 = vld [vmem:[#allocation9 + $0xfb0] sm:$0xff]  ;;  %v951_v3 = vld [vmem:[#allocation9 + $0xf98] sm:$0xff]  ;;  %v5491_v6 = vcombine.low %v942_v34, %v946_v36  ;;  %v5758_v52 = vld [vmem:[#allocation12 + $0x60] sm:$0xff]  }
 0x2f6   :  { %4227 = vmatprep.subr.bf16.mxu1 %v5454_v18  ;;  %v955_v5 = vld [vmem:[#allocation9 + $0xfb8] sm:$0xff]  ;;  %v5493_v7 = vcombine.low %v943_v38, %v947_v40  ;;  %v5500_v8 = vcombine.high %v950_v19, %v954_v2  ;;  %v958_v33 = vld [vmem:[#allocation9 + $0xfd0] sm:$0xff]  ;;  %v5499_v18 = vcombine.low %v950_v19, %v954_v2  ;;  %v5772_v34 = vld [vmem:[#allocation12 + $0x38] sm:$0xff]  }
 0x2f7   :  { %v5502_v9 = vcombine.high %v951_v3, %v955_v5  ;;  %v962_v10 = vld [vmem:[#allocation9 + $0xff0] sm:$0xff]  ;;  %v959_v11 = vld [vmem:[#allocation9 + $0xfd8] sm:$0xff]  ;;  %v5501_v20 = vcombine.low %v951_v3, %v955_v5  ;;  %v5773_v36 = vld [vmem:[#allocation12 + $0xb8] sm:$0xff]  }
 0x2f8   :  { %4056 = vmatpush1.bf16.msra.mxu0 %v5451_v26  ;;  %v963_v14 = vld [vmem:[#allocation9 + $0xff8] sm:$0xff]  ;;  %v5508_v22 = vcombine.high %v958_v33, %v962_v10  ;;  %v5507_v24 = vcombine.low %v958_v33, %v962_v10  ;;  %v5746_v32 = vld [vmem:[#allocation12 + $0x48] sm:$0xff]   ;;  %v5774_v38 = vld [vmem:[#allocation12 + $0x140] sm:$0xff]  }
 0x2f9   :  { %4228 = vmatpush1.bf16.msra.mxu1 %v5453_v29  ;;  %4057 = vmatprep.subr.bf16.mxu0 %v5460_v21  ;;  %v5510_v23 = vcombine.high %v959_v11, %v963_v14  ;;  %v5509_v26 = vcombine.low %v959_v11, %v963_v14  ;;  %v5742_v29 = vld [vmem:[#allocation12 + $0x40] sm:$0xff]   ;;  %v5747_v37 = vld [vmem:[#allocation12 + $0xc8] sm:$0xff]   ;;  %v5753_v49 = vld [vmem:[#allocation12 + $0x90] sm:$0xff]  }
 0x2fa   :  { %4229 = vmatprep.subr.bf16.mxu1 %v5462_v30  ;;  %v5743_v21 = vld [vmem:[#allocation12 + $0xc0] sm:$0xff]   ;;  %v5748_v44 = vld [vmem:[#allocation12 + $0x8] sm:$0xff]   ;;  %v5766_v58 = vld [vmem:[#allocation12 + $0x70] sm:$0xff]  }
 0x2fb   :  { %v5744_v30 = vld [vmem:[#allocation12] sm:$0xff]   ;;  %v5764_v57 = vld [vmem:[#allocation12 + $0x28] sm:$0xff]   ;;  %v5767_v59 = vld [vmem:[#allocation12 + $0xf0] sm:$0xff]  }
 0x2fc   :  { %4058 = vmatpush1.bf16.msra.mxu0 %v5459_v27  ;;  %v5749_v27 = vld [vmem:[#allocation12 + $0x88] sm:$0xff]   ;;  %v5775_v40 = vld [vmem:[#allocation12 + $0x1c0] sm:$0xff]   ;;  %v5782_v3 = vld [vmem:[#allocation12 + $0x150] sm:$0xff]  }
 0x2fd   :  { %4230 = vmatpush1.bf16.msra.mxu1 %v5461_v41  ;;  %4059 = vmatprep.subr.bf16.mxu0 %v5468_v42  ;;  %v5750_v41 = vld [vmem:[#allocation12 + $0x50] sm:$0xff]   ;;  %v5765_v48 = vld [vmem:[#allocation12 + $0xa8] sm:$0xff]   ;;  %v5790_v33 = vld [vmem:[#allocation12 + $0x160] sm:$0xff]  }
 0x2fe   :  { %4231 = vmatprep.subr.bf16.mxu1 %v5470_v47  ;;  %v5751_v42 = vld [vmem:[#allocation12 + $0xd0] sm:$0xff]   ;;  %v5780_v19 = vld [vmem:[#allocation12 + $0x108] sm:$0xff]   ;;  %v5791_v10 = vld [vmem:[#allocation12 + $0x1e0] sm:$0xff]  }
 0x2ff   :  { %v5752_v47 = vld [vmem:[#allocation12 + $0x10] sm:$0xff]   ;;  %v5781_v2 = vld [vmem:[#allocation12 + $0x188] sm:$0xff]   ;;  %v5792_v11 = vld [vmem:[#allocation12 + $0x120] sm:$0xff]  }
 0x300   :  { %4060 = vmatpush1.bf16.msra.mxu0 %v5467_v39  ;;  %v5759_v39 = vld [vmem:[#allocation12 + $0xe0] sm:$0xff]   ;;  %v5783_v5 = vld [vmem:[#allocation12 + $0x1d0] sm:$0xff]  }
 0x301   :  { %4232 = vmatpush1.bf16.msra.mxu1 %v5469_v46  ;;  %4061 = vmatprep.subr.bf16.mxu0 %v5476_v53  ;;  %v5761_v46 = vld [vmem:[#allocation12 + $0xa0] sm:$0xff]   ;;  %v5762_v53 = vld [vmem:[#allocation12 + $0x68] sm:$0xff]  }
 0x302   :  { %4233 = vmatprep.subr.bf16.mxu1 %v5478_v56  ;;  %v5763_v56 = vld [vmem:[#allocation12 + $0xe8] sm:$0xff]   ;;  %v5793_v14 = vld [vmem:[#allocation12 + $0x1a0] sm:$0xff]  }
 0x304   :  { %4062 = vmatpush1.bf16.msra.mxu0 %v5475_v60  ;;  %v5768_v60 = vld [vmem:[#allocation12 + $0x30] sm:$0xff]  }
 0x305   :  { %4234 = vmatpush1.bf16.msra.mxu1 %v5477_v61  ;;  %4063 = vmatprep.subr.bf16.mxu0 %v5484_v62  ;;  %v5769_v61 = vld [vmem:[#allocation12 + $0xb0] sm:$0xff]   ;;  %v5770_v62 = vld [vmem:[#allocation12 + $0x78] sm:$0xff]  }
 0x306   :  { %4235 = vmatprep.subr.bf16.mxu1 %v5486_v63  ;;  %v5771_v63 = vld [vmem:[#allocation12 + $0xf8] sm:$0xff]  }
 0x308   :  { %4064 = vmatpush1.bf16.msra.mxu0 %v5483_v45  ;;  %v5776_v45 = vld [vmem:[#allocation12 + $0x100] sm:$0xff]  }
 0x309   :  { %4236 = vmatpush1.bf16.msra.mxu1 %v5485_v0  ;;  %4065 = vmatprep.subr.bf16.mxu0 %v5492_v1  ;;  %v5777_v0 = vld [vmem:[#allocation12 + $0x180] sm:$0xff]   ;;  %v5778_v1 = vld [vmem:[#allocation12 + $0x148] sm:$0xff]  }
 0x30a   :  { %4237 = vmatprep.subr.bf16.mxu1 %v5494_v35  ;;  %v5779_v35 = vld [vmem:[#allocation12 + $0x1c8] sm:$0xff]  }
 0x30c   :  { %4066 = vmatpush1.bf16.msra.mxu0 %v5491_v6  ;;  %v5784_v6 = vld [vmem:[#allocation12 + $0x110] sm:$0xff]  }
 0x30d   :  { %4238 = vmatpush1.bf16.msra.mxu1 %v5493_v7  ;;  %4067 = vmatprep.subr.bf16.mxu0 %v5500_v8  ;;  %v5785_v7 = vld [vmem:[#allocation12 + $0x190] sm:$0xff]   ;;  %v5786_v8 = vld [vmem:[#allocation12 + $0x158] sm:$0xff]  }
 0x30e   :  { %4239 = vmatprep.subr.bf16.mxu1 %v5502_v9  ;;  %v5787_v9 = vld [vmem:[#allocation12 + $0x1d8] sm:$0xff]  }
 0x310   :  { %4068 = vmatpush1.bf16.msra.mxu0 %v5499_v18  ;;  %v5794_v18 = vld [vmem:[#allocation12 + $0x168] sm:$0xff]  }
 0x311   :  { %4240 = vmatpush1.bf16.msra.mxu1 %v5501_v20  ;;  %4069 = vmatprep.subr.bf16.mxu0 %v5508_v22  ;;  %v5795_v20 = vld [vmem:[#allocation12 + $0x1e8] sm:$0xff]  }
 0x312   :  { %4241 = vmatprep.subr.bf16.mxu1 %v5510_v23  ;;  %v5796_v22 = vld [vmem:[#allocation12 + $0x128] sm:$0xff]  }
 0x313   :  { %v5797_v23 = vld [vmem:[#allocation12 + $0x1a8] sm:$0xff]  }
 0x314   :  { %4070 = vmatpush1.bf16.msra.mxu0 %v5507_v24  ;;  %v5798_v24 = vld [vmem:[#allocation12 + $0x170] sm:$0xff]  }
 0x315   :  { %4242 = vmatpush1.bf16.msra.mxu1 %v5509_v26  ;;  %5575 = vmatprep.subr.bf16.mxu0 %v5742_v29  ;;  %v5799_v26 = vld [vmem:[#allocation12 + $0x1f0] sm:$0xff]  }
 0x316   :  { %5597 = vmatprep.subr.bf16.mxu1 %v5743_v21  ;;  %v5800_v29 = vld [vmem:[#allocation12 + $0x130] sm:$0xff]  }
 0x317   :  { %4072 = vmatmul.mubr.bf16.vlgmr.msra.gmra.mrb[12].mxu0 %v6182_v4  ;;  %v5801_v21 = vld [vmem:[#allocation12 + $0x1b0] sm:$0xff]  }
 0x318   :  { %4244 = vmatmul.mubr.bf16.vlgmr.msra.gmra.mrb[12].mxu1 %v6182_v4  ;;  %5576 = vmatpush3.bf16.msra.mxu0 %v5744_v30  ;;  %v5755_v4 = vld [vmem:[#allocation12 + $0xd8] sm:$0xff]  }
 0x319   :  { %4824 = vmatprep.mubr.bf16.mxu0 %v6228_v15  ;;  %5598 = vmatpush3.bf16.msra.mxu1 %v5745_v31  ;;  %v5757_v15 = vld [vmem:[#allocation12 + $0x98] sm:$0xff]  }
 0x31a   :  { %4865 = vmatprep.mubr.bf16.mxu1 %v6230_v17  ;;  %5577 = vmatprep.subr.bf16.mxu0 %v5746_v32  ;;  %v5760_v17 = vld [vmem:[#allocation12 + $0x20] sm:$0xff]   ;;  %v5802_v30 = vld [vmem:[#allocation12 + $0x178] sm:$0xff]  }
 0x31b   :  { %5599 = vmatprep.subr.bf16.mxu1 %v5747_v37  ;;  %v5803_v31 = vld [vmem:[#allocation12 + $0x1f8] sm:$0xff]  }
 0x31c   :  { %5578 = vmatpush3.bf16.msra.mxu0 %v5748_v44  ;;  %v5804_v32 = vld [vmem:[#allocation12 + $0x138] sm:$0xff]   ;;  %v985_v44 = vrot.slane %v6210_v16, %v145_v54 }
 0x31d   :  { %5600 = vmatpush3.bf16.msra.mxu1 %v5749_v27  ;;  %5579 = vmatprep.subr.bf16.mxu0 %v5750_v41  ;;  %v5805_v37 = vld [vmem:[#allocation12 + $0x1b8] sm:$0xff]   ;;  %v993_v27 = vrot.slane %v6210_v16, %v153_v25  ;;  %v989_v41 = vrot.slane %v6210_v16, %v149_v55 }
 0x31e   :  { %5601 = vmatprep.subr.bf16.mxu1 %v5751_v42  ;;  %v997_v42 = vrot.slane %v6210_v16, %v157_v28 }
 0x320   :  { %5580 = vmatpush3.bf16.msra.mxu0 %v5752_v47 }
 0x321   :  { %5602 = vmatpush3.bf16.msra.mxu1 %v5753_v49  ;;  %5581 = vmatprep.subr.bf16.mxu0 %v5754_v50 }
 0x322   :  { %5603 = vmatprep.subr.bf16.mxu1 %v5755_v4 }
 0x324   :  { %5582 = vmatpush3.bf16.msra.mxu0 %v5756_v51 }
 0x325   :  { %5604 = vmatpush3.bf16.msra.mxu1 %v5757_v15  ;;  %5583 = vmatprep.subr.bf16.mxu0 %v5758_v52 }
 0x326   :  { %5605 = vmatprep.subr.bf16.mxu1 %v5759_v39 }
 0x328   :  { %5584 = vmatpush3.bf16.msra.mxu0 %v5760_v17 }
 0x329   :  { %5606 = vmatpush3.bf16.msra.mxu1 %v5761_v46  ;;  %5585 = vmatprep.subr.bf16.mxu0 %v5762_v53 }
 0x32a   :  { %5607 = vmatprep.subr.bf16.mxu1 %v5763_v56 }
 0x32c   :  { %5586 = vmatpush3.bf16.msra.mxu0 %v5764_v57 }
 0x32d   :  { %5608 = vmatpush3.bf16.msra.mxu1 %v5765_v48  ;;  %5587 = vmatprep.subr.bf16.mxu0 %v5766_v58 }
 0x32e   :  { %5609 = vmatprep.subr.bf16.mxu1 %v5767_v59 }
 0x330   :  { %5588 = vmatpush3.bf16.msra.mxu0 %v5768_v60 }
 0x331   :  { %5610 = vmatpush3.bf16.msra.mxu1 %v5769_v61  ;;  %5589 = vmatprep.subr.bf16.mxu0 %v5770_v62 }
 0x332   :  { %5611 = vmatprep.subr.bf16.mxu1 %v5771_v63 }
 0x334   :  { %5590 = vmatpush3.bf16.msra.mxu0 %v5772_v34 }
 0x335   :  { %5612 = vmatpush3.bf16.msra.mxu1 %v5773_v36  ;;  %5619 = vmatprep.subr.bf16.mxu0 %v5774_v38 }
 0x336   :  { %5641 = vmatprep.subr.bf16.mxu1 %v5775_v40 }
 0x337   :  { %4825 = vmatmul.mubr.bf16.vlgmr.msra.gmra.mrb[16].mxu0 %v6224_v12  ;;  %v5788_v12 = vld [vmem:[#allocation12 + $0x118] sm:$0xff]  }
 0x338   :  { %4866 = vmatmul.mubr.bf16.vlgmr.msra.gmra.mrb[16].mxu1 %v6226_v13  ;;  %5620 = vmatpush3.bf16.msra.mxu0 %v5776_v45  ;;  %v5789_v13 = vld [vmem:[#allocation12 + $0x198] sm:$0xff]   ;;  %v4407_v45 = vstv %s6271_s6  ;;  %s5981_s6 = smov [#allocation14]  }
 0x339   :  { %5642 = vmatpush3.bf16.msra.mxu1 %v5777_v0  ;;  %5621 = vmatprep.subr.bf16.mxu0 %v5778_v1  ;;  %s4963_s11 = sshll.u32 %s5981_s6, 4  ;;  %s4964_s11 = int_to_ptr.vmem [resolvable:$true] %s4963_s11 }
 0x33a   :  { %5643 = vmatprep.subr.bf16.mxu1 %v5779_v35  ;;  %s5938_s25 = scalar_lea.vmem %s4964_s11, 256  ;;  %p5943_p7 = scmp.lt.s32.totalorder %s4964_s11, %s4964_s11 }
 0x33b   :  { %p5939_p6 = scmp.ne.s32.totalorder %s4964_s11, %s5938_s25  ;;  %p5944_p8 = scmp.lt.s32.totalorder %s5938_s25, %s5938_s25 }
 0x33c   :  { %5622 = vmatpush3.bf16.msra.mxu0 %v5780_v19 }
 0x33d   :  { %5644 = vmatpush3.bf16.msra.mxu1 %v5781_v2  ;;  %5623 = vmatprep.subr.bf16.mxu0 %v5782_v3  ;;  %p5945_p9 = por %p5944_p8, %p5943_p7 }
 0x33e   :  { %5645 = vmatprep.subr.bf16.mxu1 %v5783_v5 }
 0x33f   :  { %p5946_p10 = pnand %p5945_p9, %p5939_p6 }
 0x340   :  { %5624 = vmatpush3.bf16.msra.mxu0 %v5784_v6 }
 0x341   :  { %5646 = vmatpush3.bf16.msra.mxu1 %v5785_v7  ;;  %5625 = vmatprep.subr.bf16.mxu0 %v5786_v8 }
 0x342   :  { %5647 = vmatprep.subr.bf16.mxu1 %v5787_v9 }
 0x344   :  { %5626 = vmatpush3.bf16.msra.mxu0 %v5788_v12 }
 0x345   :  { %5648 = vmatpush3.bf16.msra.mxu1 %v5789_v13  ;;  %5627 = vmatprep.subr.bf16.mxu0 %v5790_v33 }
 0x346   :  { %5649 = vmatprep.subr.bf16.mxu1 %v5791_v10 }
 0x348   :  { %5628 = vmatpush3.bf16.msra.mxu0 %v5792_v11 }
 0x349   :  { %5650 = vmatpush3.bf16.msra.mxu1 %v5793_v14  ;;  %5629 = vmatprep.subr.bf16.mxu0 %v5794_v18 }
 0x34a   :  { %5651 = vmatprep.subr.bf16.mxu1 %v5795_v20 }
 0x34c   :  { %5630 = vmatpush3.bf16.msra.mxu0 %v5796_v22 }
 0x34d   :  { %5652 = vmatpush3.bf16.msra.mxu1 %v5797_v23  ;;  %5631 = vmatprep.subr.bf16.mxu0 %v5798_v24 }
 0x34e   :  { %5653 = vmatprep.subr.bf16.mxu1 %v5799_v26 }
 0x350   :  { %5632 = vmatpush3.bf16.msra.mxu0 %v5800_v29 }
 0x351   :  { %5654 = vmatpush3.bf16.msra.mxu1 %v5801_v21  ;;  %5633 = vmatprep.subr.bf16.mxu0 %v5802_v30 }
 0x352   :  { %5655 = vmatprep.subr.bf16.mxu1 %v5803_v31 }
 0x354   :  { %5634 = vmatpush3.bf16.msra.mxu0 %v5804_v32 }
 0x355   :  { %5656 = vmatpush3.bf16.msra.mxu1 %v5805_v37 }
 0x3ea   :  { %v4073_v47 = vpop.f32.mrb[12].mxu0 }
 0x3eb   :  { %v5671_v49 = vadd.f32 %v4073_v47, %v985_v44  ;;  %v4245_v50 = vpop.f32.mrb[12].mxu1  ;;  %v4075_v4 = vpop.f32.mrb[13].mxu0 }
 0x3ec   :  { %v5675_v51 = vadd.f32 %v4245_v50, %v993_v27  ;;  %v5672_v15 = vadd.f32 %v4075_v4, %v989_v41  ;;  %v4247_v52 = vpop.f32.mrb[13].mxu1  ;;  %v4077_v54 = vpop.f32.mrb[14].mxu0 }
 0x3ed   :  { %v5676_v39 = vadd.f32 %v4247_v52, %v997_v42  ;;  %v5673_v17 = vadd.f32 %v4077_v54, %v985_v44  ;;  %v4249_v46 = vpop.f32.mrb[14].mxu1  ;;  %v4079_v25 = vpop.f32.mrb[15].mxu0  ;;  %v4258_v55 = vmax.f32 %v5671_v49, 0.0 }
 0x3ee   :  { %v5677_v53 = vadd.f32 %v4249_v46, %v993_v27  ;;  %v5674_v56 = vadd.f32 %v4079_v25, %v989_v41  ;;  %v4251_v57 = vpop.f32.mrb[15].mxu1  ;;  %v4260_v58 = vmax.f32 %v5675_v51, 0.0  ;;  %v4259_v28 = vmax.f32 %v5672_v15, 0.0 }
 0x3ef   :  { %v4266_v48 = vmax.f32 %v5673_v17, 0.0  ;;  %v5678_v43 = vadd.f32 %v4251_v57, %v997_v42  ;;  %v4261_v60 = vmax.f32 %v5676_v39, 0.0 }
 0x3f0   :  { %v4268_v16 = vmax.f32 %v5677_v53, 0.0  ;;  %v4267_v59 = vmax.f32 %v5674_v56, 0.0 }
 0x3f1   :  { %v4274_v61 = vpack.c.bf16 %v4266_v48, %v4258_v55  ;;  %v4269_v62 = vmax.f32 %v5678_v43, 0.0 }
 0x3f2   :  { %v4276_v63 = vpack.c.bf16 %v4268_v16, %v4260_v58  ;;  %v4275_v34 = vpack.c.bf16 %v4267_v59, %v4259_v28 }
 0x3f3   :  { %v4277_v36 = vpack.c.bf16 %v4269_v62, %v4261_v60 }
 0x3f4   :  { %4906 = vmatprep.mubr.bf16.mxu0 %v4275_v34 }
 0x3f5   :  { %4947 = vmatprep.mubr.bf16.mxu1 %v4277_v36  ;;  %4907 = vmatmul.mubr.bf16.vlgmr.msra.gmra.mrb[20].mxu0 %v4274_v61 }
 0x3f6   :  { %4948 = vmatmul.mubr.bf16.vlgmr.msra.gmra.mrb[20].mxu1 %v4276_v63 }
 0x40a   :  { %v5591_v38 = vpop.f32.mrb[16].mxu0 }
 0x40b   :  { %v5613_v40 = vpop.f32.mrb[16].mxu1  ;;  %v5592_v0 = vpop.f32.mrb[17].mxu0 }
 0x40c   :  { %v5593_v1 = vadd.f32 %v5592_v0, %v5591_v38  ;;  %v5614_v35 = vpop.f32.mrb[17].mxu1  ;;  %v5594_v19 = vpop.f32.mrb[18].mxu0 }
 0x40d   :  { %v5615_v2 = vadd.f32 %v5614_v35, %v5613_v40  ;;  %v5616_v3 = vpop.f32.mrb[18].mxu1  ;;  %v5595_v5 = vpop.f32.mrb[19].mxu0 }
 0x40e   :  { %v4827_v6 = vadd.f32 %v5593_v1, %v4407_v45  ;;  %v5596_v7 = vadd.f32 %v5595_v5, %v5594_v19  ;;  %v5617_v8 = vpop.f32.mrb[19].mxu1 }
 0x40f   :  { %v5618_v9 = vadd.f32 %v5617_v8, %v5616_v3 }
 0x410   :  { %v4868_v12 = vadd.f32 %v5615_v2, %v4827_v6  ;;  %v4830_v13 = vadd.f32 %v5596_v7, %v4407_v45 }
 0x412   :  { %v4871_v33 = vadd.f32 %v5618_v9, %v4830_v13 }
 0x4c8   :  { %v5635_v10 = vpop.f32.mrb[20].mxu0 }
 0x4c9   :  { %v5657_v11 = vpop.f32.mrb[20].mxu1  ;;  %v5636_v14 = vpop.f32.mrb[21].mxu0 }
 0x4ca   :  { %v5637_v18 = vadd.f32 %v5636_v14, %v5635_v10  ;;  %v5658_v20 = vpop.f32.mrb[21].mxu1  ;;  %v5638_v22 = vpop.f32.mrb[22].mxu0 }
 0x4cb   :  { %v5659_v23 = vadd.f32 %v5658_v20, %v5657_v11  ;;  %v5660_v24 = vpop.f32.mrb[22].mxu1  ;;  %v5639_v26 = vpop.f32.mrb[23].mxu0 }
 0x4cc   :  { %v4909_v29 = vadd.f32 %v5637_v18, %v4868_v12  ;;  %v5640_v21 = vadd.f32 %v5639_v26, %v5638_v22  ;;  %v5661_v30 = vpop.f32.mrb[23].mxu1 }
 0x4cd   :  { %v5662_v31 = vadd.f32 %v5661_v30, %v5660_v24 }
 0x4ce   :  { %v4950_v32 = vadd.f32 %v5659_v23, %v4909_v29  ;;  %v4912_v37 = vadd.f32 %v5640_v21, %v4871_v33 }
 0x4d0   :  { %4956 = vst [vmem:[#allocation14] sm:$0xff] %v4950_v32  ;;  %v4953_v44 = vadd.f32 %v5662_v31, %v4912_v37 }
 0x4d2   :  { %4957 = vst [vmem:[#allocation14 + $0x8] sm:$0xff] %v4953_v44 }
 0x4d3   :  { %5949 = shalt.err (!%p5946_p10)
}
 0x4d4   :  { %s5950_s27 = scalar_lea.hbm %s6272_s7, 256 }
 0x4d5   :  { %p5951_p11 = scmp.ne.s32.totalorder %s6272_s7, %s5950_s27  ;;  %p5954_p12 = scmp.lt.u32.totalorder %s5950_s27, %s6272_s7 }
 0x4d7   :  { %p5956_p13 = pnand %p5954_p12, %p5951_p11 }
 0x4d9   :  { %5959 = shalt.err (!%p5956_p13)
}
 0x4da   :  { %s5982_s9 = smov 128   ;;  %s5983_s10 = smov 8  }
 0x4db   :  { %4969 = dma.vmem_to_hbm [thread:$0]  %s4964_s11, 256, %s6272_s7, [#allocation5], %s5982_s9, %s5982_s9, %s5983_s10  }
 0x4dc   :  { %5968 = dma.done.wait [#allocation5], 256  }
 0x4dd   :  { %5969 = vsyncadd [#allocation5], 4294967040 }
 0x4de   :  { %4973 = vsyncpa [#allocation4], 1 }
 0x4df   :  { %4974 = vsyncpa [#allocation7], 1 }
 0x4e0   :  { %4975 = vsyncpa [#allocation10], 1 }
 0x4e1   :  { %4976 = vsyncpa [#allocation13], 1 }
 0x4e2   :  { %4977 = vsyncpa [#allocation5], 1 }

// kernel: _forward_padded.1
= control target key start
LH: loop header
LB: loop body
LE: loop exit
PB: predicated region body
PF: predicated region fallthrough
CT: control target
= control target key end

     0   :  { %13 = vsyncpa [#allocation4], 0  ;;  %s6265_s0 = inlined_call_operand.hbm [shape: bf16[16,32], index: 0, kind: input, shape index: {}]   ;;  %s6266_s1 = inlined_call_operand.hbm [shape: bf16[32,1024], index: 1, kind: input, shape index: {}]   ;;  %s6267_s2 = inlined_call_operand.hbm [shape: f32[1,1024], index: 2, kind: input, shape index: {}]   ;;  %s6268_s3 = inlined_call_operand.hbm [shape: bf16[1024,1024], index: 3, kind: input, shape index: {}]   ;;  %s6269_s4 = inlined_call_operand.hbm [shape: f32[1,1024], index: 4, kind: input, shape index: {}]   ;;  %s6270_s5 = inlined_call_operand.hbm [shape: bf16[1024,128], index: 5, kind: input, shape index: {}]   ;;  %s6271_s6 = inlined_call_operand.<no memory space> [shape: f32[1,1], index: 6, kind: input, shape index: {}]   ;;  %s6272_s7 = inlined_call_operand.hbm [shape: f32[16,128], index: 7, kind: output, shape index: {}]  }
   0x1   :  { %14 = vsyncpa [#allocation7], 0 }
   0x2   :  { %15 = vsyncpa [#allocation10], 0 }
   0x3   :  { %16 = vsyncpa [#allocation13], 0 }
   0x4   :  { %17 = vsyncpa [#allocation5], 0  ;;  %s5970_s24 = smov [#allocation6]   ;;  %s5806_s28 = scalar_lea.hbm %s6266_s1, 2048 }
   0x5   :  { %s35_s25 = sshll.u32 %s5970_s24, 4  ;;  %p5807_p0 = scmp.ne.s32.totalorder %s6266_s1, %s5806_s28  ;;  %s36_s25 = int_to_ptr.vmem [resolvable:$true] %s35_s25 }
   0x6   :  { %p5810_p1 = scmp.lt.u32.totalorder %s5806_s28, %s6266_s1 }
   0x8   :  { %p5812_p2 = pnand %p5810_p1, %p5807_p0 }
   0xa   :  { %5815 = shalt.err (!%p5812_p2)
}
   0xb   :  { %s5816_s10 = scalar_lea.vmem %s36_s25, 2048  ;;  %p5821_p4 = scmp.lt.s32.totalorder %s36_s25, %s36_s25 }
   0xc   :  { %p5817_p3 = scmp.ne.s32.totalorder %s36_s25, %s5816_s10  ;;  %p5822_p5 = scmp.lt.s32.totalorder %s5816_s10, %s5816_s10 }
   0xe   :  { %p5823_p6 = por %p5822_p5, %p5821_p4 }
  0x10   :  { %p5824_p7 = pnand %p5823_p6, %p5817_p3 }
  0x12   :  { %5827 = shalt.err (!%p5824_p7)
}
  0x13   :  { %s5971_s11 = smov 512   ;;  %s5972_s12 = smov 32  }
  0x14   :  { %41 = dma.hbm_to_vmem [thread:$0]  %s6266_s1, 2048, %s36_s25, [#allocation7], %s5971_s11, %s5971_s11, %s5972_s12  }
  0x15   :  { %s5973_s15 = smov [#allocation9]   ;;  %s5974_s17 = smov [#allocation3]  }
  0x16   :  { %s57_s16 = sshll.u32 %s5973_s15, 4  ;;  %s23_s18 = sshll.u32 %s5974_s17, 4  ;;  %s58_s16 = int_to_ptr.vmem [resolvable:$true] %s57_s16  ;;  %s24_s18 = int_to_ptr.vmem [resolvable:$true] %s23_s18 }
  0x17   :  { %s5828_s21 = scalar_lea.hbm %s6268_s3, 65536 }
  0x18   :  { %p5829_p8 = scmp.ne.s32.totalorder %s6268_s3, %s5828_s21  ;;  %p5832_p9 = scmp.lt.u32.totalorder %s5828_s21, %s6268_s3 }
  0x1a   :  { %p5834_p10 = pnand %p5832_p9, %p5829_p8 }
  0x1c   :  { %5837 = shalt.err (!%p5834_p10)
}
  0x1d   :  { %s5838_s1 = scalar_lea.vmem %s58_s16, 65536  ;;  %p5843_p12 = scmp.lt.s32.totalorder %s58_s16, %s58_s16 }
  0x1e   :  { %p5839_p11 = scmp.ne.s32.totalorder %s58_s16, %s5838_s1  ;;  %p5844_p13 = scmp.lt.s32.totalorder %s5838_s1, %s5838_s1 }
  0x20   :  { %p5845_p0 = por %p5844_p13, %p5843_p12 }
  0x22   :  { %p5846_p1 = pnand %p5845_p0, %p5839_p11 }
  0x24   :  { %5849 = shalt.err (!%p5846_p1)
}
  0x25   :  { %63 = dma.hbm_to_vmem [thread:$0]  %s6268_s3, 65536, %s58_s16, [#allocation10], %s5971_s11, %s5971_s11, %s5972_s12  }
  0x26   :  { %s5850_s30 = scalar_lea.hbm %s6265_s0, 128 }
  0x27   :  { %p5851_p2 = scmp.ne.s32.totalorder %s6265_s0, %s5850_s30  ;;  %p5854_p3 = scmp.lt.u32.totalorder %s5850_s30, %s6265_s0 }
  0x29   :  { %p5856_p4 = pnand %p5854_p3, %p5851_p2 }
  0x2b   :  { %5859 = shalt.err (!%p5856_p4)
}
  0x2c   :  { %s5860_s14 = scalar_lea.vmem %s24_s18, 128  ;;  %p5865_p6 = scmp.lt.s32.totalorder %s24_s18, %s24_s18 }
  0x2d   :  { %p5861_p5 = scmp.ne.s32.totalorder %s24_s18, %s5860_s14  ;;  %p5866_p7 = scmp.lt.s32.totalorder %s5860_s14, %s5860_s14 }
  0x2f   :  { %p5867_p8 = por %p5866_p7, %p5865_p6 }
  0x31   :  { %p5868_p9 = pnand %p5867_p8, %p5861_p5 }
  0x33   :  { %5871 = shalt.err (!%p5868_p9)
}
  0x34   :  { %s5975_s3 = smov 64   ;;  %s5976_s11 = smov 4  }
  0x35   :  { %29 = dma.hbm_to_vmem [thread:$0]  %s6265_s0, 128, %s24_s18, [#allocation4], %s5975_s3, %s5975_s3, %s5976_s11  }
  0x36   :  { %s5977_s16 = smov [#allocation8]   ;;  %s5978_s19 = smov [#allocation11]  }
  0x37   :  { %s48_s17 = sshll.u32 %s5977_s16, 4  ;;  %s70_s20 = sshll.u32 %s5978_s19, 4  ;;  %s49_s17 = int_to_ptr.vmem [resolvable:$true] %s48_s17  ;;  %s71_s20 = int_to_ptr.vmem [resolvable:$true] %s70_s20 }
  0x38   :  { %s5872_s23 = scalar_lea.hbm %s6267_s2, 128 }
  0x39   :  { %p5873_p10 = scmp.ne.s32.totalorder %s6267_s2, %s5872_s23  ;;  %p5876_p11 = scmp.lt.u32.totalorder %s5872_s23, %s6267_s2 }
  0x3b   :  { %p5878_p12 = pnand %p5876_p11, %p5873_p10 }
  0x3d   :  { %5881 = shalt.err (!%p5878_p12)
}
  0x3e   :  { %s5882_s0 = scalar_lea.vmem %s49_s17, 128  ;;  %p5887_p0 = scmp.lt.s32.totalorder %s49_s17, %s49_s17 }
  0x3f   :  { %p5883_p13 = scmp.ne.s32.totalorder %s49_s17, %s5882_s0  ;;  %p5888_p1 = scmp.lt.s32.totalorder %s5882_s0, %s5882_s0 }
  0x41   :  { %p5889_p2 = por %p5888_p1, %p5887_p0 }
  0x43   :  { %p5890_p3 = pnand %p5889_p2, %p5883_p13 }
  0x45   :  { %5893 = shalt.err (!%p5890_p3)
}
  0x46   :  { %51 = dma.hbm_to_vmem [thread:$0]  %s6267_s2, 128, %s49_s17, [#allocation7]  }
  0x47   :  { %s5894_s30 = scalar_lea.hbm %s6269_s4, 128 }
  0x48   :  { %p5895_p4 = scmp.ne.s32.totalorder %s6269_s4, %s5894_s30  ;;  %p5898_p5 = scmp.lt.u32.totalorder %s5894_s30, %s6269_s4 }
  0x4a   :  { %p5900_p6 = pnand %p5898_p5, %p5895_p4 }
  0x4c   :  { %5903 = shalt.err (!%p5900_p6)
}
  0x4d   :  { %s5904_s14 = scalar_lea.vmem %s71_s20, 128  ;;  %p5909_p8 = scmp.lt.s32.totalorder %s71_s20, %s71_s20 }
  0x4e   :  { %p5905_p7 = scmp.ne.s32.totalorder %s71_s20, %s5904_s14  ;;  %p5910_p9 = scmp.lt.s32.totalorder %s5904_s14, %s5904_s14 }
  0x50   :  { %p5911_p10 = por %p5910_p9, %p5909_p8 }
  0x52   :  { %p5912_p11 = pnand %p5911_p10, %p5905_p7 }
  0x54   :  { %5915 = shalt.err (!%p5912_p11)
}
  0x55   :  { %73 = dma.hbm_to_vmem [thread:$0]  %s6269_s4, 128, %s71_s20, [#allocation10]  }
  0x56   :  { %s5979_s15 = smov [#allocation12]   ;;  %s5916_s21 = scalar_lea.hbm %s6270_s5, 8192 }
  0x57   :  { %s79_s16 = sshll.u32 %s5979_s15, 4  ;;  %p5917_p12 = scmp.ne.s32.totalorder %s6270_s5, %s5916_s21  ;;  %s80_s16 = int_to_ptr.vmem [resolvable:$true] %s79_s16 }
  0x58   :  { %p5920_p13 = scmp.lt.u32.totalorder %s5916_s21, %s6270_s5 }
  0x5a   :  { %p5922_p0 = pnand %p5920_p13, %p5917_p12 }
  0x5c   :  { %5925 = shalt.err (!%p5922_p0)
}
  0x5d   :  { %s5926_s1 = scalar_lea.vmem %s80_s16, 8192  ;;  %p5931_p2 = scmp.lt.s32.totalorder %s80_s16, %s80_s16 }
  0x5e   :  { %p5927_p1 = scmp.ne.s32.totalorder %s80_s16, %s5926_s1  ;;  %p5932_p3 = scmp.lt.s32.totalorder %s5926_s1, %s5926_s1 }
  0x60   :  { %p5933_p4 = por %p5932_p3, %p5931_p2 }
  0x62   :  { %p5934_p5 = pnand %p5933_p4, %p5927_p1 }
  0x64   :  { %5937 = shalt.err (!%p5934_p5)
}
  0x65   :  { %85 = dma.hbm_to_vmem [thread:$0]  %s6270_s5, 8192, %s80_s16, [#allocation13], %s5975_s3, %s5975_s3, %s5976_s11  }
  0x66   :  { %5960 = dma.done.wait [#allocation4], 128  }
  0x67   :  { %5961 = vsyncadd [#allocation4], 4294967168 }
  0x68   :  { %5962 = dma.done.wait [#allocation7], 2176  }
  0x69   :  { %5963 = vsyncadd [#allocation7], 4294965120 }
  0x6a   :  { %5964 = dma.done.wait [#allocation10], 65664  }
  0x6b   :  { %5965 = vsyncadd [#allocation10], 4294901632 }
  0x6c   :  { %5966 = dma.done.wait [#allocation13], 8192  }
  0x6d   :  { %5967 = vsyncadd [#allocation13], 4294959104  ;;  %v5980_v0 = vmov 0   ;;  %v109_v1 = vld [vmem:[#allocation6] sm:$0xff]  ;;  %v110_v8 = vld [vmem:[#allocation6 + $0x8] sm:$0xff]  ;;  %vm252_vm0 = vcmask 261120  }
  0x6e   :  { %288 = vmatprep.mubr.bf16.mxu0 %v5980_v0  ;;  %331 = vmatprep.mubr.bf16.mxu1 %v5980_v0  ;;  %v113_v2 = vld [vmem:[#allocation6 + $0x20] sm:$0xff]  ;;  %v114_v9 = vld [vmem:[#allocation6 + $0x28] sm:$0xff]  ;;  %v111_v14 = vld [vmem:[#allocation6 + $0x10] sm:$0xff] }
  0x6f   :  { %v117_v3 = vld [vmem:[#allocation6 + $0x40] sm:$0xff]  ;;  %v4980_v4 = vcombine.high %v109_v1, %v113_v2  ;;  %v4979_v5 = vcombine.low %v109_v1, %v113_v2  ;;  %v4982_v10 = vcombine.high %v110_v8, %v114_v9  ;;  %v4981_v11 = vcombine.low %v110_v8, %v114_v9  ;;  %v118_v12 = vld [vmem:[#allocation6 + $0x48] sm:$0xff]  ;;  %v115_v17 = vld [vmem:[#allocation6 + $0x30] sm:$0xff] }
  0x70   :  { %v121_v6 = vld [vmem:[#allocation6 + $0x60] sm:$0xff]  ;;  %v122_v13 = vld [vmem:[#allocation6 + $0x68] sm:$0xff]  ;;  %v4984_v18 = vcombine.high %v111_v14, %v115_v17  ;;  %v112_v19 = vld [vmem:[#allocation6 + $0x18] sm:$0xff]  ;;  %v4983_v26 = vcombine.low %v111_v14, %v115_v17 }
  0x71   :  { %v4988_v7 = vcombine.high %v117_v3, %v121_v6  ;;  %256 = vmatprep.subr.bf16.mxu0 %v4980_v4  ;;  %v4987_v15 = vcombine.low %v117_v3, %v121_v6  ;;  %v4990_v16 = vcombine.high %v118_v12, %v122_v13  ;;  %299 = vmatprep.subr.bf16.mxu1 %v4982_v10  ;;  %v116_v20 = vld [vmem:[#allocation6 + $0x38] sm:$0xff]  ;;  %v119_v22 = vld [vmem:[#allocation6 + $0x50] sm:$0xff]  ;;  %v452_v31 = vld [vmem:[#allocation9] sm:$0xff] }
  0x72   :  { %257 = vmatpush1.bf16.msra.mxu0 %v4979_v5  ;;  %300 = vmatpush1.bf16.msra.mxu1 %v4981_v11  ;;  %v4989_v21 = vcombine.low %v118_v12, %v122_v13  ;;  %v123_v23 = vld [vmem:[#allocation6 + $0x70] sm:$0xff]  ;;  %v5741_v24 = vld [vmem:[#allocation3] sm:$0xff]   ;;  %v4986_v25 = vcombine.high %v112_v19, %v116_v20  ;;  %v4985_v30 = vcombine.low %v112_v19, %v116_v20  ;;  %v456_v32 = vld [vmem:[#allocation9 + $0x20] sm:$0xff] }
  0x73   :  { %258 = vmatprep.subr.bf16.mxu0 %v4988_v7  ;;  %301 = vmatprep.subr.bf16.mxu1 %v4990_v16  ;;  %v120_v27 = vld [vmem:[#allocation6 + $0x58] sm:$0xff]  ;;  %v4992_v29 = vcombine.high %v119_v22, %v123_v23  ;;  %v4991_v34 = vcombine.low %v119_v22, %v123_v23  ;;  %v453_v35 = vld [vmem:[#allocation9 + $0x8] sm:$0xff]  ;;  %v5000_v37 = vcombine.high %v452_v31, %v456_v32  ;;  %v460_v39 = vld [vmem:[#allocation9 + $0x40] sm:$0xff] }
  0x74   :  { %v124_v28 = vld [vmem:[#allocation6 + $0x78] sm:$0xff]  ;;  %v457_v36 = vld [vmem:[#allocation9 + $0x28] sm:$0xff]  ;;  %v464_v40 = vld [vmem:[#allocation9 + $0x60] sm:$0xff]  ;;  %v4999_v42 = vcombine.low %v452_v31, %v456_v32 }
  0x75   :  { %v4994_v33 = vcombine.high %v120_v27, %v124_v28  ;;  %v4993_v38 = vcombine.low %v120_v27, %v124_v28  ;;  %v5002_v41 = vcombine.high %v453_v35, %v457_v36  ;;  %v461_v43 = vld [vmem:[#allocation9 + $0x48] sm:$0xff]  ;;  %v5008_v45 = vcombine.high %v460_v39, %v464_v40  ;;  %v468_v47 = vld [vmem:[#allocation9 + $0x80] sm:$0xff] }
  0x76   :  { %259 = vmatpush1.bf16.msra.mxu0 %v4987_v15  ;;  %302 = vmatpush1.bf16.msra.mxu1 %v4989_v21  ;;  %v465_v44 = vld [vmem:[#allocation9 + $0x68] sm:$0xff]  ;;  %v5001_v46 = vcombine.low %v453_v35, %v457_v36  ;;  %v472_v48 = vld [vmem:[#allocation9 + $0xa0] sm:$0xff]  ;;  %v5007_v50 = vcombine.low %v460_v39, %v464_v40 }
  0x77   :  { %342 = vmatprep.subr.bf16.mxu0 %v4984_v18  ;;  %385 = vmatprep.subr.bf16.mxu1 %v4986_v25  ;;  %v5010_v49 = vcombine.high %v461_v43, %v465_v44  ;;  %v469_v51 = vld [vmem:[#allocation9 + $0x88] sm:$0xff]  ;;  %v5016_v53 = vcombine.high %v468_v47, %v472_v48  ;;  %v5009_v54 = vcombine.low %v461_v43, %v465_v44  ;;  %v476_v55 = vld [vmem:[#allocation9 + $0xc0] sm:$0xff] }
  0x78   :  { %v473_v52 = vld [vmem:[#allocation9 + $0xa8] sm:$0xff]  ;;  %v480_v56 = vld [vmem:[#allocation9 + $0xe0] sm:$0xff]  ;;  %v5015_v58 = vcombine.low %v468_v47, %v472_v48 }
  0x79   :  { %4995 = vmatmul.mubr.msk.bf16.vlgmr.msra.gmra.mrb[0].mxu0 %vm252_vm0, %v5741_v24  ;;  %4996 = vmatmul.mubr.msk.bf16.vlgmr.msra.gmra.mrb[0].mxu1 %vm252_vm0, %v5741_v24  ;;  %v5018_v57 = vcombine.high %v469_v51, %v473_v52  ;;  %v477_v59 = vld [vmem:[#allocation9 + $0xc8] sm:$0xff]  ;;  %v484_v61 = vld [vmem:[#allocation9 + $0x100] sm:$0xff]  ;;  %v5024_v62 = vcombine.high %v476_v55, %v480_v56  ;;  %v5023_v4 = vcombine.low %v476_v55, %v480_v56 }
  0x7a   :  { %343 = vmatpush1.bf16.msra.mxu0 %v4983_v26  ;;  %374 = vmatprep.mubr.bf16.mxu0 %v5980_v0  ;;  %v481_v60 = vld [vmem:[#allocation9 + $0xe8] sm:$0xff]  ;;  %v488_v63 = vld [vmem:[#allocation9 + $0x120] sm:$0xff] }
  0x7b   :  { %344 = vmatprep.subr.bf16.mxu0 %v4992_v29  ;;  %386 = vmatpush1.bf16.msra.mxu1 %v4985_v30  ;;  %v485_v1 = vld [vmem:[#allocation9 + $0x108] sm:$0xff]  ;;  %v5026_v3 = vcombine.high %v477_v59, %v481_v60  ;;  %v492_v5 = vld [vmem:[#allocation9 + $0x140] sm:$0xff]  ;;  %v5032_v7 = vcombine.high %v484_v61, %v488_v63  ;;  %v5025_v8 = vcombine.low %v477_v59, %v481_v60 }
  0x7c   :  { %417 = vmatprep.mubr.bf16.mxu1 %v5980_v0  ;;  %387 = vmatprep.subr.bf16.mxu1 %v4994_v33  ;;  %v5017_v0 = vcombine.low %v469_v51, %v473_v52  ;;  %v489_v2 = vld [vmem:[#allocation9 + $0x128] sm:$0xff]  ;;  %v496_v6 = vld [vmem:[#allocation9 + $0x160] sm:$0xff]  ;;  %v5031_v12 = vcombine.low %v484_v61, %v488_v63 }
  0x7d   :  { %v493_v9 = vld [vmem:[#allocation9 + $0x148] sm:$0xff]  ;;  %v5034_v11 = vcombine.high %v485_v1, %v489_v2  ;;  %v500_v13 = vld [vmem:[#allocation9 + $0x180] sm:$0xff]  ;;  %v5040_v15 = vcombine.high %v492_v5, %v496_v6  ;;  %v5033_v16 = vcombine.low %v485_v1, %v489_v2  ;;  %v5039_v20 = vcombine.low %v492_v5, %v496_v6 }
  0x7e   :  { %345 = vmatpush1.bf16.msra.mxu0 %v4991_v34  ;;  %v497_v10 = vld [vmem:[#allocation9 + $0x168] sm:$0xff]  ;;  %v504_v14 = vld [vmem:[#allocation9 + $0x1a0] sm:$0xff] }
  0x7f   :  { %3566 = vmatprep.subr.bf16.mxu0 %v5000_v37  ;;  %388 = vmatpush1.bf16.msra.mxu1 %v4993_v38  ;;  %v501_v17 = vld [vmem:[#allocation9 + $0x188] sm:$0xff]  ;;  %v5042_v19 = vcombine.high %v493_v9, %v497_v10  ;;  %v508_v21 = vld [vmem:[#allocation9 + $0x1c0] sm:$0xff]  ;;  %v5048_v23 = vcombine.high %v500_v13, %v504_v14  ;;  %v5047_v28 = vcombine.low %v500_v13, %v504_v14 }
  0x80   :  { %3738 = vmatprep.subr.bf16.mxu1 %v5002_v41  ;;  %v505_v18 = vld [vmem:[#allocation9 + $0x1a8] sm:$0xff]  ;;  %v512_v22 = vld [vmem:[#allocation9 + $0x1e0] sm:$0xff] }
  0x81   :  { %4997 = vmatmul.mubr.msk.bf16.vlgmr.msra.gmra.mrb[4].mxu0 %vm252_vm0, %v5741_v24  ;;  %v509_v25 = vld [vmem:[#allocation9 + $0x1c8] sm:$0xff]  ;;  %v5050_v27 = vcombine.high %v501_v17, %v505_v18  ;;  %v516_v29 = vld [vmem:[#allocation9 + $0x200] sm:$0xff]  ;;  %v5056_v31 = vcombine.high %v508_v21, %v512_v22  ;;  %v5049_v32 = vcombine.low %v501_v17, %v505_v18  ;;  %v5055_v36 = vcombine.low %v508_v21, %v512_v22 }
  0x82   :  { %3567 = vmatpush1.bf16.msra.mxu0 %v4999_v42  ;;  %4998 = vmatmul.mubr.msk.bf16.vlgmr.msra.gmra.mrb[4].mxu1 %vm252_vm0, %v5741_v24  ;;  %v5041_v24 = vcombine.low %v493_v9, %v497_v10  ;;  %v513_v26 = vld [vmem:[#allocation9 + $0x1e8] sm:$0xff]  ;;  %v520_v30 = vld [vmem:[#allocation9 + $0x220] sm:$0xff] }
  0x83   :  { %3568 = vmatprep.subr.bf16.mxu0 %v5008_v45  ;;  %3739 = vmatpush1.bf16.msra.mxu1 %v5001_v46  ;;  %v517_v33 = vld [vmem:[#allocation9 + $0x208] sm:$0xff]  ;;  %v5058_v35 = vcombine.high %v509_v25, %v513_v26  ;;  %v524_v37 = vld [vmem:[#allocation9 + $0x240] sm:$0xff]  ;;  %v5064_v39 = vcombine.high %v516_v29, %v520_v30  ;;  %v5057_v40 = vcombine.low %v509_v25, %v513_v26 }
  0x84   :  { %3740 = vmatprep.subr.bf16.mxu1 %v5010_v49  ;;  %v521_v34 = vld [vmem:[#allocation9 + $0x228] sm:$0xff]  ;;  %v528_v38 = vld [vmem:[#allocation9 + $0x260] sm:$0xff]  ;;  %v5063_v44 = vcombine.low %v516_v29, %v520_v30 }
  0x85   :  { %v525_v41 = vld [vmem:[#allocation9 + $0x248] sm:$0xff]  ;;  %v5066_v43 = vcombine.high %v517_v33, %v521_v34  ;;  %v532_v45 = vld [vmem:[#allocation9 + $0x280] sm:$0xff]  ;;  %v5072_v47 = vcombine.high %v524_v37, %v528_v38  ;;  %v5065_v48 = vcombine.low %v517_v33, %v521_v34  ;;  %v5071_v52 = vcombine.low %v524_v37, %v528_v38 }
  0x86   :  { %3569 = vmatpush1.bf16.msra.mxu0 %v5007_v50  ;;  %v529_v42 = vld [vmem:[#allocation9 + $0x268] sm:$0xff]  ;;  %v536_v46 = vld [vmem:[#allocation9 + $0x2a0] sm:$0xff] }
  0x87   :  { %3570 = vmatprep.subr.bf16.mxu0 %v5016_v53  ;;  %3741 = vmatpush1.bf16.msra.mxu1 %v5009_v54  ;;  %v533_v49 = vld [vmem:[#allocation9 + $0x288] sm:$0xff]  ;;  %v5074_v51 = vcombine.high %v525_v41, %v529_v42  ;;  %v540_v53 = vld [vmem:[#allocation9 + $0x2c0] sm:$0xff]  ;;  %v5080_v55 = vcombine.high %v532_v45, %v536_v46  ;;  %v5073_v56 = vcombine.low %v525_v41, %v529_v42  ;;  %v127_v42 = vlaneseq }
  0x88   :  { %3742 = vmatprep.subr.bf16.mxu1 %v5018_v57  ;;  %v537_v50 = vld [vmem:[#allocation9 + $0x2a8] sm:$0xff]  ;;  %v544_v54 = vld [vmem:[#allocation9 + $0x2e0] sm:$0xff]  ;;  %v5079_v60 = vcombine.low %v532_v45, %v536_v46  ;;  %v6125_v45 = vld [vmem:[#allocation8] sm:$0xff] }
  0x89   :  { %v541_v57 = vld [vmem:[#allocation9 + $0x2c8] sm:$0xff]  ;;  %v5082_v59 = vcombine.high %v533_v49, %v537_v50  ;;  %v548_v61 = vld [vmem:[#allocation9 + $0x300] sm:$0xff]  ;;  %v5088_v63 = vcombine.high %v540_v53, %v544_v54 }
  0x8a   :  { %3571 = vmatpush1.bf16.msra.mxu0 %v5015_v58  ;;  %v545_v58 = vld [vmem:[#allocation9 + $0x2e8] sm:$0xff]  ;;  %v556_v5 = vld [vmem:[#allocation9 + $0x340] sm:$0xff] }
  0x8b   :  { %3572 = vmatprep.subr.bf16.mxu0 %v5024_v62  ;;  %3743 = vmatpush1.bf16.msra.mxu1 %v5017_v0  ;;  %v552_v62 = vld [vmem:[#allocation9 + $0x320] sm:$0xff]  ;;  %v5081_v0 = vcombine.low %v533_v49, %v537_v50  ;;  %v549_v1 = vld [vmem:[#allocation9 + $0x308] sm:$0xff] }
  0x8c   :  { %3744 = vmatprep.subr.bf16.mxu1 %v5026_v3  ;;  %v553_v2 = vld [vmem:[#allocation9 + $0x328] sm:$0xff]  ;;  %v5090_v3 = vcombine.high %v541_v57, %v545_v58  ;;  %v560_v6 = vld [vmem:[#allocation9 + $0x360] sm:$0xff] }
  0x8d   :  { %v557_v9 = vld [vmem:[#allocation9 + $0x348] sm:$0xff]  ;;  %v5104_v13 = vcombine.high %v556_v5, %v560_v6  ;;  %v5097_v14 = vcombine.low %v549_v1, %v553_v2  ;;  %v564_v18 = vld [vmem:[#allocation9 + $0x380] sm:$0xff] }
  0x8e   :  { %3573 = vmatpush1.bf16.msra.mxu0 %v5023_v4  ;;  %v5087_v4 = vcombine.low %v540_v53, %v544_v54  ;;  %v561_v10 = vld [vmem:[#allocation9 + $0x368] sm:$0xff]  ;;  %v572_v26 = vld [vmem:[#allocation9 + $0x3c0] sm:$0xff] }
  0x8f   :  { %3574 = vmatprep.subr.bf16.mxu0 %v5032_v7  ;;  %3745 = vmatpush1.bf16.msra.mxu1 %v5025_v8  ;;  %v5096_v7 = vcombine.high %v548_v61, %v552_v62  ;;  %v5089_v8 = vcombine.low %v541_v57, %v545_v58  ;;  %v5105_v17 = vcombine.low %v557_v9, %v561_v10  ;;  %v569_v22 = vld [vmem:[#allocation9 + $0x3a8] sm:$0xff]  ;;  %v6106_v34 = vld [vmem:[#allocation9 + $0x400] sm:$0xff] }
  0x90   :  { %3746 = vmatprep.subr.bf16.mxu1 %v5034_v11  ;;  %v5098_v11 = vcombine.high %v549_v1, %v553_v2  ;;  %v577_v30 = vld [vmem:[#allocation9 + $0x3e8] sm:$0xff] }
  0x91   :  { %v6114_v38 = vld [vmem:[#allocation9 + $0x428] sm:$0xff] }
  0x92   :  { %3575 = vmatpush1.bf16.msra.mxu0 %v5031_v12  ;;  %v5095_v12 = vcombine.low %v548_v61, %v552_v62 }
  0x93   :  { %3576 = vmatprep.subr.bf16.mxu0 %v5040_v15  ;;  %3747 = vmatpush1.bf16.msra.mxu1 %v5033_v16  ;;  %v5106_v15 = vcombine.high %v557_v9, %v561_v10  ;;  %v5103_v16 = vcombine.low %v556_v5, %v560_v6 }
  0x94   :  { %3748 = vmatprep.subr.bf16.mxu1 %v5042_v19  ;;  %v568_v19 = vld [vmem:[#allocation9 + $0x3a0] sm:$0xff] }
  0x95   :  { %v5112_v21 = vcombine.high %v564_v18, %v568_v19 }
  0x96   :  { %3577 = vmatpush1.bf16.msra.mxu0 %v5039_v20  ;;  %v565_v20 = vld [vmem:[#allocation9 + $0x388] sm:$0xff] }
  0x97   :  { %3578 = vmatprep.subr.bf16.mxu0 %v5048_v23  ;;  %3749 = vmatpush1.bf16.msra.mxu1 %v5041_v24  ;;  %v5111_v23 = vcombine.low %v564_v18, %v568_v19  ;;  %v5113_v24 = vcombine.low %v565_v20, %v569_v22  ;;  %v5114_v25 = vcombine.high %v565_v20, %v569_v22 }
  0x98   :  { %3750 = vmatprep.subr.bf16.mxu1 %v5050_v27  ;;  %v576_v27 = vld [vmem:[#allocation9 + $0x3e0] sm:$0xff] }
  0x99   :  { %v5120_v29 = vcombine.high %v572_v26, %v576_v27 }
  0x9a   :  { %3579 = vmatpush1.bf16.msra.mxu0 %v5047_v28  ;;  %v573_v28 = vld [vmem:[#allocation9 + $0x3c8] sm:$0xff] }
  0x9b   :  { %3580 = vmatprep.subr.bf16.mxu0 %v5056_v31  ;;  %3751 = vmatpush1.bf16.msra.mxu1 %v5049_v32  ;;  %v5119_v31 = vcombine.low %v572_v26, %v576_v27  ;;  %v5121_v32 = vcombine.low %v573_v28, %v577_v30  ;;  %v5122_v33 = vcombine.high %v573_v28, %v577_v30  ;;  %v596_v26 = vld [vmem:[#allocation9 + $0x480] sm:$0xff] }
  0x9c   :  { %3752 = vmatprep.subr.bf16.mxu1 %v5058_v35  ;;  %v6108_v35 = vld [vmem:[#allocation9 + $0x420] sm:$0xff] }
  0x9d   :  { %v5128_v37 = vcombine.high %v6106_v34, %v6108_v35  ;;  %v600_v30 = vld [vmem:[#allocation9 + $0x4a0] sm:$0xff] }
  0x9e   :  { %3581 = vmatpush1.bf16.msra.mxu0 %v5055_v36  ;;  %v6110_v36 = vld [vmem:[#allocation9 + $0x408] sm:$0xff] }
  0x9f   :  { %3582 = vmatprep.subr.bf16.mxu0 %v5064_v39  ;;  %3753 = vmatpush1.bf16.msra.mxu1 %v5057_v40  ;;  %v5127_v39 = vcombine.low %v6106_v34, %v6108_v35  ;;  %v5129_v40 = vcombine.low %v6110_v36, %v6114_v38  ;;  %v5130_v41 = vcombine.high %v6110_v36, %v6114_v38 }
  0xa0   :  { %3754 = vmatprep.subr.bf16.mxu1 %v5066_v43  ;;  %v6122_v43 = vshrl.u32 %v127_v42, 7  ;;  %v5143_v36 = vcombine.low %v596_v26, %v600_v30 }
  0xa2   :  { %3583 = vmatpush1.bf16.msra.mxu0 %v5063_v44  ;;  %v129_v44 = vsub.s32 0, %v6122_v43  ;;  %v133_v46 = vsub.s32 1, %v6122_v43  ;;  %v145_v54 = vsub.s32 4, %v6122_v43 }
  0xa3   :  { %3584 = vmatprep.subr.bf16.mxu0 %v5072_v47  ;;  %3755 = vmatpush1.bf16.msra.mxu1 %v5065_v48  ;;  %v137_v47 = vsub.s32 2, %v6122_v43  ;;  %v141_v48 = vsub.s32 3, %v6122_v43 }
  0xa4   :  { %3756 = vmatprep.subr.bf16.mxu1 %v5074_v51  ;;  %v130_v49 = vrot.slane %v6125_v45, %v129_v44  ;;  %v134_v50 = vrot.slane %v6125_v45, %v133_v46 }
  0xa5   :  { %v138_v51 = vrot.slane %v6125_v45, %v137_v47  ;;  %v142_v53 = vrot.slane %v6125_v45, %v141_v48 }
  0xa6   :  { %3585 = vmatpush1.bf16.msra.mxu0 %v5071_v52 }
  0xa7   :  { %3586 = vmatprep.subr.bf16.mxu0 %v5080_v55  ;;  %3757 = vmatpush1.bf16.msra.mxu1 %v5073_v56  ;;  %v149_v55 = vsub.s32 5, %v6122_v43 }
  0xa8   :  { %3758 = vmatprep.subr.bf16.mxu1 %v5082_v59 }
  0xa9   :  { %v150_v5 = vrot.slane %v6125_v45, %v149_v55 }
  0xaa   :  { %3587 = vmatpush1.bf16.msra.mxu0 %v5079_v60 }
  0xab   :  { %3588 = vmatprep.subr.bf16.mxu0 %v5088_v63  ;;  %3759 = vmatpush1.bf16.msra.mxu1 %v5081_v0 }
  0xac   :  { %3760 = vmatprep.subr.bf16.mxu1 %v5090_v3 }
  0xae   :  { %3589 = vmatpush1.bf16.msra.mxu0 %v5087_v4  ;;  %v146_v4 = vrot.slane %v6125_v45, %v145_v54 }
  0xaf   :  { %3590 = vmatprep.subr.bf16.mxu0 %v5096_v7  ;;  %3761 = vmatpush1.bf16.msra.mxu1 %v5089_v8  ;;  %v588_v8 = vld [vmem:[#allocation9 + $0x440] sm:$0xff] }
  0xb0   :  { %3762 = vmatprep.subr.bf16.mxu1 %v5098_v11 }
  0xb2   :  { %3591 = vmatpush1.bf16.msra.mxu0 %v5095_v12 }
  0xb3   :  { %3592 = vmatprep.subr.bf16.mxu0 %v5104_v13  ;;  %3763 = vmatpush1.bf16.msra.mxu1 %v5097_v14  ;;  %v592_v14 = vld [vmem:[#allocation9 + $0x460] sm:$0xff] }
  0xb4   :  { %3764 = vmatprep.subr.bf16.mxu1 %v5106_v15  ;;  %v589_v15 = vld [vmem:[#allocation9 + $0x448] sm:$0xff] }
  0xb6   :  { %3593 = vmatpush1.bf16.msra.mxu0 %v5103_v16  ;;  %v593_v16 = vld [vmem:[#allocation9 + $0x468] sm:$0xff] }
  0xb7   :  { %3765 = vmatpush1.bf16.msra.mxu1 %v5105_v17  ;;  %3594 = vmatprep.subr.bf16.mxu0 %v5112_v21 }
  0xb8   :  { %3766 = vmatprep.subr.bf16.mxu1 %v5114_v25  ;;  %v5138_v25 = vcombine.high %v589_v15, %v593_v16 }
  0xba   :  { %3595 = vmatpush1.bf16.msra.mxu0 %v5111_v23 }
  0xbb   :  { %3767 = vmatpush1.bf16.msra.mxu1 %v5113_v24  ;;  %3596 = vmatprep.subr.bf16.mxu0 %v5120_v29  ;;  %v5136_v24 = vcombine.high %v588_v8, %v592_v14 }
  0xbc   :  { %3768 = vmatprep.subr.bf16.mxu1 %v5122_v33 }
  0xbe   :  { %3597 = vmatpush1.bf16.msra.mxu0 %v5119_v31  ;;  %v597_v31 = vld [vmem:[#allocation9 + $0x488] sm:$0xff] }
  0xbf   :  { %3769 = vmatpush1.bf16.msra.mxu1 %v5121_v32  ;;  %3609 = vmatprep.subr.bf16.mxu0 %v5128_v37  ;;  %v601_v32 = vld [vmem:[#allocation9 + $0x4a8] sm:$0xff] }
  0xc0   :  { %3781 = vmatprep.subr.bf16.mxu1 %v5130_v41  ;;  %v5145_v38 = vcombine.low %v597_v31, %v601_v32 }
 0x14c   :  { %v290_v52 = vpop.f32.mrb[0].mxu0  ;;  %v333_v60 = vpop.f32.mrb[0].mxu1 }
 0x14d   :  { %v291_v56 = vadd.f32 %v290_v52, %v130_v49  ;;  %v292_v57 = vpop.f32.mrb[1].mxu0  ;;  %v334_v63 = vadd.f32 %v333_v60, %v138_v51  ;;  %v335_v0 = vpop.f32.mrb[1].mxu1  ;;  %v5137_v52 = vcombine.low %v589_v15, %v593_v16 }
 0x14e   :  { %v293_v58 = vadd.f32 %v292_v57, %v134_v50  ;;  %v294_v59 = vpop.f32.mrb[2].mxu0  ;;  %v336_v2 = vadd.f32 %v335_v0, %v142_v53  ;;  %v337_v3 = vpop.f32.mrb[2].mxu1  ;;  %v5144_v57 = vcombine.high %v596_v26, %v600_v30 }
 0x14f   :  { %v295_v61 = vadd.f32 %v294_v59, %v130_v49  ;;  %v296_v62 = vpop.f32.mrb[3].mxu0  ;;  %v428_v6 = vmax.f32 %v291_v56, 0.0  ;;  %v430_v9 = vmax.f32 %v334_v63, 0.0  ;;  %v338_v10 = vadd.f32 %v337_v3, %v138_v51  ;;  %v339_v11 = vpop.f32.mrb[3].mxu1  ;;  %v604_v59 = vld [vmem:[#allocation9 + $0x4c0] sm:$0xff]  ;;  %v609_v63 = vld [vmem:[#allocation9 + $0x4e8] sm:$0xff] }
 0x150   :  { %v297_v1 = vadd.f32 %v296_v62, %v134_v50  ;;  %v429_v12 = vmax.f32 %v293_v58, 0.0  ;;  %v431_v17 = vmax.f32 %v336_v2, 0.0  ;;  %v340_v18 = vadd.f32 %v339_v11, %v142_v53  ;;  %v605_v62 = vld [vmem:[#allocation9 + $0x4c8] sm:$0xff]  ;;  %v616_v2 = vld [vmem:[#allocation9 + $0x520] sm:$0xff] }
 0x151   :  { %v436_v7 = vmax.f32 %v295_v61, 0.0  ;;  %v438_v20 = vmax.f32 %v338_v10, 0.0  ;;  %v5135_v51 = vcombine.low %v588_v8, %v592_v14  ;;  %v5146_v58 = vcombine.high %v597_v31, %v601_v32  ;;  %v608_v61 = vld [vmem:[#allocation9 + $0x4e0] sm:$0xff]  ;;  %v613_v3 = vld [vmem:[#allocation9 + $0x508] sm:$0xff] }
 0x152   :  { %v437_v13 = vmax.f32 %v297_v1, 0.0  ;;  %v439_v22 = vmax.f32 %v340_v18, 0.0  ;;  %v5154_v0 = vcombine.high %v605_v62, %v609_v63  ;;  %v612_v1 = vld [vmem:[#allocation9 + $0x500] sm:$0xff]  ;;  %v621_v11 = vld [vmem:[#allocation9 + $0x548] sm:$0xff] }
 0x153   :  { %v6150_v19 = vpack.c.bf16 %v436_v7, %v428_v6  ;;  %v6154_v27 = vpack.c.bf16 %v438_v20, %v430_v9  ;;  %v5153_v6 = vcombine.low %v605_v62, %v609_v63  ;;  %v5160_v7 = vcombine.high %v612_v1, %v616_v2  ;;  %v620_v9 = vld [vmem:[#allocation9 + $0x540] sm:$0xff]  ;;  %v629_v20 = vld [vmem:[#allocation9 + $0x588] sm:$0xff] }
 0x154   :  { %v6152_v21 = vpack.c.bf16 %v437_v13, %v429_v12  ;;  %v376_v23 = vpop.f32.mrb[4].mxu0  ;;  %v6158_v33 = vpack.c.bf16 %v439_v22, %v431_v17  ;;  %v624_v10 = vld [vmem:[#allocation9 + $0x560] sm:$0xff]  ;;  %v625_v12 = vld [vmem:[#allocation9 + $0x568] sm:$0xff]  ;;  %v5159_v13 = vcombine.low %v612_v1, %v616_v2 }
 0x155   :  { %v377_v28 = vadd.f32 %v376_v23, %v146_v4  ;;  %v378_v29 = vpop.f32.mrb[5].mxu0  ;;  %v5168_v15 = vcombine.high %v620_v9, %v624_v10  ;;  %v5170_v16 = vcombine.high %v621_v11, %v625_v12  ;;  %v628_v17 = vld [vmem:[#allocation9 + $0x580] sm:$0xff]  ;;  %v633_v22 = vld [vmem:[#allocation9 + $0x5a8] sm:$0xff]  ;;  %v5167_v23 = vcombine.low %v620_v9, %v624_v10  ;;  %v419_v26 = vpop.f32.mrb[4].mxu1 }
 0x156   :  { %3598 = vmatprep.mubr.bf16.mxu0 %v6152_v21  ;;  %3770 = vmatprep.mubr.bf16.mxu1 %v6152_v21  ;;  %v379_v37 = vadd.f32 %v378_v29, %v150_v5  ;;  %v380_v41 = vpop.f32.mrb[6].mxu0  ;;  %v632_v18 = vld [vmem:[#allocation9 + $0x5a0] sm:$0xff]  ;;  %v5178_v30 = vcombine.high %v629_v20, %v633_v22  ;;  %v421_v32 = vpop.f32.mrb[5].mxu1  ;;  %v653_v10 = vld [vmem:[#allocation9 + $0x648] sm:$0xff] }
 0x157   :  { %3599 = vmatmul.mubr.bf16.vlgmr.msra.gmra.mrb[8].mxu0 %v6150_v19  ;;  %3771 = vmatmul.mubr.bf16.vlgmr.msra.gmra.mrb[8].mxu1 %v6150_v19  ;;  %v432_v42 = vmax.f32 %v377_v28, 0.0  ;;  %v381_v49 = vadd.f32 %v380_v41, %v146_v4  ;;  %v382_v50 = vpop.f32.mrb[7].mxu0  ;;  %v617_v4 = vld [vmem:[#allocation9 + $0x528] sm:$0xff]  ;;  %v157_v28 = vsub.s32 7, %v6122_v43  ;;  %v5176_v29 = vcombine.high %v628_v17, %v632_v18  ;;  %v636_v31 = vld [vmem:[#allocation9 + $0x5c0] sm:$0xff] }
 0x158   :  { %3610 = vmatpush1.bf16.msra.mxu0 %v5127_v39  ;;  %3782 = vmatpush1.bf16.msra.mxu1 %v5129_v40  ;;  %v433_v53 = vmax.f32 %v379_v37, 0.0  ;;  %v383_v56 = vadd.f32 %v382_v50, %v150_v5  ;;  %v5152_v40 = vcombine.high %v604_v59, %v608_v61  ;;  %v5151_v5 = vcombine.low %v604_v59, %v608_v61  ;;  %v640_v37 = vld [vmem:[#allocation9 + $0x5e0] sm:$0xff]  ;;  %v637_v41 = vld [vmem:[#allocation9 + $0x5c8] sm:$0xff] }
 0x159   :  { %3611 = vmatprep.subr.bf16.mxu0 %v5136_v24  ;;  %3783 = vmatprep.subr.bf16.mxu1 %v5138_v25  ;;  %v440_v60 = vmax.f32 %v381_v49, 0.0  ;;  %v5162_v8 = vcombine.high %v613_v3, %v617_v4  ;;  %v5161_v14 = vcombine.low %v613_v3, %v617_v4  ;;  %v5169_v24 = vcombine.low %v621_v11, %v625_v12  ;;  %v644_v62 = vld [vmem:[#allocation9 + $0x600] sm:$0xff]  ;;  %v657_v11 = vld [vmem:[#allocation9 + $0x668] sm:$0xff] }
 0x15a   :  { %3641 = vmatprep.mubr.bf16.mxu0 %v6158_v33  ;;  %3813 = vmatprep.mubr.bf16.mxu1 %v6158_v33  ;;  %v441_v34 = vmax.f32 %v383_v56, 0.0  ;;  %v153_v25 = vsub.s32 6, %v6122_v43  ;;  %v158_v50 = vrot.slane %v6125_v45, %v157_v28  ;;  %v5183_v2 = vcombine.low %v636_v31, %v640_v37  ;;  %v656_v9 = vld [vmem:[#allocation9 + $0x660] sm:$0xff] }
 0x15b   :  { %v6170_v35 = vpack.c.bf16 %v440_v60, %v432_v42  ;;  %v641_v42 = vld [vmem:[#allocation9 + $0x5e8] sm:$0xff]  ;;  %v5184_v60 = vcombine.high %v636_v31, %v640_v37 }
 0x15c   :  { %3612 = vmatpush1.bf16.msra.mxu0 %v5135_v51  ;;  %3784 = vmatpush1.bf16.msra.mxu1 %v5137_v52  ;;  %v6172_v39 = vpack.c.bf16 %v441_v34, %v433_v53  ;;  %v154_v49 = vrot.slane %v6125_v45, %v153_v25  ;;  %v423_v51 = vpop.f32.mrb[6].mxu1  ;;  %v5175_v52 = vcombine.low %v628_v17, %v632_v18  ;;  %v648_v34 = vld [vmem:[#allocation9 + $0x620] sm:$0xff]  ;;  %v661_v18 = vld [vmem:[#allocation9 + $0x688] sm:$0xff] }
 0x15d   :  { %3613 = vmatprep.subr.bf16.mxu0 %v5144_v57  ;;  %3785 = vmatprep.subr.bf16.mxu1 %v5146_v58  ;;  %v5177_v53 = vcombine.low %v629_v20, %v633_v22  ;;  %v422_v57 = vadd.f32 %v421_v32, %v158_v50  ;;  %v425_v59 = vpop.f32.mrb[7].mxu1  ;;  %v5186_v61 = vcombine.high %v637_v41, %v641_v42  ;;  %v664_v17 = vld [vmem:[#allocation9 + $0x6a0] sm:$0xff]  ;;  %v665_v20 = vld [vmem:[#allocation9 + $0x6a8] sm:$0xff] }
 0x15e   :  { %v420_v56 = vadd.f32 %v419_v26, %v154_v49  ;;  %v424_v58 = vadd.f32 %v423_v51, %v154_v49  ;;  %v426_v63 = vadd.f32 %v425_v59, %v158_v50  ;;  %v5185_v3 = vcombine.low %v637_v41, %v641_v42  ;;  %v669_v31 = vld [vmem:[#allocation9 + $0x6c8] sm:$0xff]  ;;  %v676_v50 = vld [vmem:[#allocation9 + $0x700] sm:$0xff] }
 0x15f   :  { %v435_v45 = vmax.f32 %v422_v57, 0.0  ;;  %v5191_v12 = vcombine.low %v644_v62, %v648_v34  ;;  %v5210_v26 = vcombine.high %v661_v18, %v665_v20  ;;  %v673_v32 = vld [vmem:[#allocation9 + $0x6e8] sm:$0xff]  ;;  %v5209_v41 = vcombine.low %v661_v18, %v665_v20  ;;  %v680_v51 = vld [vmem:[#allocation9 + $0x720] sm:$0xff] }
 0x160   :  { %3614 = vmatpush1.bf16.msra.mxu0 %v5143_v36  ;;  %3786 = vmatpush1.bf16.msra.mxu1 %v5145_v38  ;;  %v645_v36 = vld [vmem:[#allocation9 + $0x608] sm:$0xff]  ;;  %v443_v1 = vmax.f32 %v426_v63, 0.0  ;;  %v5218_v49 = vcombine.high %v669_v31, %v673_v32  ;;  %v5217_v57 = vcombine.low %v669_v31, %v673_v32  ;;  %v712_v18 = vld [vmem:[#allocation9 + $0x820] sm:$0xff] }
 0x161   :  { %3615 = vmatprep.subr.bf16.mxu0 %v5152_v40  ;;  %3787 = vmatprep.subr.bf16.mxu1 %v5154_v0  ;;  %v649_v38 = vld [vmem:[#allocation9 + $0x628] sm:$0xff]  ;;  %v434_v40 = vmax.f32 %v420_v56, 0.0  ;;  %v442_v0 = vmax.f32 %v424_v58, 0.0  ;;  %v5224_v58 = vcombine.high %v676_v50, %v680_v51  ;;  %v720_v31 = vld [vmem:[#allocation9 + $0x860] sm:$0xff] }
 0x162   :  { %v689_v63 = vld [vmem:[#allocation9 + $0x768] sm:$0xff] }
 0x163   :  { %v6182_v4 = vpack.c.bf16 %v442_v0, %v434_v40  ;;  %v696_v0 = vld [vmem:[#allocation9 + $0x7a0] sm:$0xff]  ;;  %v709_v20 = vld [vmem:[#allocation9 + $0x808] sm:$0xff] }
 0x164   :  { %3616 = vmatpush1.bf16.msra.mxu0 %v5151_v5  ;;  %3788 = vmatpush1.bf16.msra.mxu1 %v5153_v6  ;;  %v5192_v5 = vcombine.high %v644_v62, %v648_v34  ;;  %v5194_v6 = vcombine.high %v645_v36, %v649_v38  ;;  %v685_v62 = vld [vmem:[#allocation9 + $0x748] sm:$0xff]  ;;  %v5223_v34 = vcombine.low %v676_v50, %v680_v51  ;;  %v724_v51 = vld [vmem:[#allocation9 + $0x880] sm:$0xff] }
 0x165   :  { %3617 = vmatprep.subr.bf16.mxu0 %v5160_v7  ;;  %3789 = vmatprep.subr.bf16.mxu1 %v5162_v8  ;;  %v652_v7 = vld [vmem:[#allocation9 + $0x640] sm:$0xff]  ;;  %v6184_v8 = vpack.c.bf16 %v443_v1, %v435_v45  ;;  %v5234_v40 = vcombine.high %v685_v62, %v689_v63  ;;  %v693_v1 = vld [vmem:[#allocation9 + $0x788] sm:$0xff] }
 0x166   :  { %v5199_v22 = vcombine.low %v652_v7, %v656_v9  ;;  %v692_v45 = vld [vmem:[#allocation9 + $0x780] sm:$0xff]  ;;  %v717_v32 = vld [vmem:[#allocation9 + $0x848] sm:$0xff] }
 0x168   :  { %3618 = vmatpush1.bf16.msra.mxu0 %v5159_v13  ;;  %3790 = vmatpush1.bf16.msra.mxu1 %v5161_v14  ;;  %v5193_v13 = vcombine.low %v645_v36, %v649_v38  ;;  %v5200_v14 = vcombine.high %v652_v7, %v656_v9  ;;  %v700_v9 = vld [vmem:[#allocation9 + $0x7c0] sm:$0xff] }
 0x169   :  { %3619 = vmatprep.subr.bf16.mxu0 %v5168_v15  ;;  %3791 = vmatprep.subr.bf16.mxu1 %v5170_v16  ;;  %v5202_v15 = vcombine.high %v653_v10, %v657_v11  ;;  %v660_v16 = vld [vmem:[#allocation9 + $0x680] sm:$0xff] }
 0x16a   :  { %v5207_v37 = vcombine.low %v660_v16, %v664_v17 }
 0x16c   :  { %3620 = vmatpush1.bf16.msra.mxu0 %v5167_v23  ;;  %3792 = vmatpush1.bf16.msra.mxu1 %v5169_v24  ;;  %v5201_v23 = vcombine.low %v653_v10, %v657_v11  ;;  %v5208_v24 = vcombine.high %v660_v16, %v664_v17  ;;  %v704_v10 = vld [vmem:[#allocation9 + $0x7e0] sm:$0xff]  ;;  %v701_v11 = vld [vmem:[#allocation9 + $0x7c8] sm:$0xff] }
 0x16d   :  { %3621 = vmatprep.subr.bf16.mxu0 %v5176_v29  ;;  %3793 = vmatprep.subr.bf16.mxu1 %v5178_v30  ;;  %v668_v29 = vld [vmem:[#allocation9 + $0x6c0] sm:$0xff] }
 0x16e   :  { %v672_v30 = vld [vmem:[#allocation9 + $0x6e0] sm:$0xff] }
 0x16f   :  { %v5216_v42 = vcombine.high %v668_v29, %v672_v30  ;;  %v5215_v56 = vcombine.low %v668_v29, %v672_v30  ;;  %v708_v17 = vld [vmem:[#allocation9 + $0x800] sm:$0xff] }
 0x170   :  { %3622 = vmatpush1.bf16.msra.mxu0 %v5175_v52  ;;  %3794 = vmatpush1.bf16.msra.mxu1 %v5177_v53  ;;  %v677_v52 = vld [vmem:[#allocation9 + $0x708] sm:$0xff]  ;;  %v716_v30 = vld [vmem:[#allocation9 + $0x840] sm:$0xff] }
 0x171   :  { %3623 = vmatprep.subr.bf16.mxu0 %v5184_v60  ;;  %3795 = vmatprep.subr.bf16.mxu1 %v5186_v61  ;;  %v681_v53 = vld [vmem:[#allocation9 + $0x728] sm:$0xff]  ;;  %v684_v60 = vld [vmem:[#allocation9 + $0x740] sm:$0xff] }
 0x172   :  { %v5226_v59 = vcombine.high %v677_v52, %v681_v53  ;;  %v688_v61 = vld [vmem:[#allocation9 + $0x760] sm:$0xff]  ;;  %v5225_v36 = vcombine.low %v677_v52, %v681_v53  ;;  %v725_v53 = vld [vmem:[#allocation9 + $0x888] sm:$0xff] }
 0x173   :  { %v5232_v38 = vcombine.high %v684_v60, %v688_v61  ;;  %v728_v52 = vld [vmem:[#allocation9 + $0x8a0] sm:$0xff] }
 0x174   :  { %3624 = vmatpush1.bf16.msra.mxu0 %v5183_v2  ;;  %3796 = vmatpush1.bf16.msra.mxu1 %v5185_v3  ;;  %v697_v2 = vld [vmem:[#allocation9 + $0x7a8] sm:$0xff]  ;;  %v5231_v3 = vcombine.low %v684_v60, %v688_v61  ;;  %v732_v61 = vld [vmem:[#allocation9 + $0x8c0] sm:$0xff] }
 0x175   :  { %3625 = vmatprep.subr.bf16.mxu0 %v5192_v5  ;;  %3797 = vmatprep.subr.bf16.mxu1 %v5194_v6  ;;  %v5233_v5 = vcombine.low %v685_v62, %v689_v63  ;;  %v5240_v6 = vcombine.high %v692_v45, %v696_v0  ;;  %v5242_v7 = vcombine.high %v693_v1, %v697_v2  ;;  %v736_v62 = vld [vmem:[#allocation9 + $0x8e0] sm:$0xff]  ;;  %v733_v63 = vld [vmem:[#allocation9 + $0x8c8] sm:$0xff] }
 0x178   :  { %3626 = vmatpush1.bf16.msra.mxu0 %v5191_v12  ;;  %3798 = vmatpush1.bf16.msra.mxu1 %v5193_v13  ;;  %v705_v12 = vld [vmem:[#allocation9 + $0x7e8] sm:$0xff]  ;;  %v5239_v13 = vcombine.low %v692_v45, %v696_v0  ;;  %v740_v0 = vld [vmem:[#allocation9 + $0x900] sm:$0xff] }
 0x179   :  { %3627 = vmatprep.subr.bf16.mxu0 %v5200_v14  ;;  %3799 = vmatprep.subr.bf16.mxu1 %v5202_v15  ;;  %v5241_v14 = vcombine.low %v693_v1, %v697_v2  ;;  %v5248_v15 = vcombine.high %v700_v9, %v704_v10  ;;  %v5250_v16 = vcombine.high %v701_v11, %v705_v12  ;;  %v744_v1 = vld [vmem:[#allocation9 + $0x920] sm:$0xff]  ;;  %v741_v2 = vld [vmem:[#allocation9 + $0x908] sm:$0xff] }
 0x17c   :  { %3628 = vmatpush1.bf16.msra.mxu0 %v5199_v22  ;;  %3800 = vmatpush1.bf16.msra.mxu1 %v5201_v23  ;;  %v713_v22 = vld [vmem:[#allocation9 + $0x828] sm:$0xff]  ;;  %v5247_v23 = vcombine.low %v700_v9, %v704_v10  ;;  %v748_v10 = vld [vmem:[#allocation9 + $0x940] sm:$0xff] }
 0x17d   :  { %3629 = vmatprep.subr.bf16.mxu0 %v5208_v24  ;;  %3801 = vmatprep.subr.bf16.mxu1 %v5210_v26  ;;  %v5249_v24 = vcombine.low %v701_v11, %v705_v12  ;;  %v5256_v26 = vcombine.high %v708_v17, %v712_v18  ;;  %v5258_v29 = vcombine.high %v709_v20, %v713_v22  ;;  %v752_v11 = vld [vmem:[#allocation9 + $0x960] sm:$0xff]  ;;  %v749_v12 = vld [vmem:[#allocation9 + $0x948] sm:$0xff] }
 0x180   :  { %3630 = vmatpush1.bf16.msra.mxu0 %v5207_v37  ;;  %3802 = vmatpush1.bf16.msra.mxu1 %v5209_v41  ;;  %v721_v37 = vld [vmem:[#allocation9 + $0x868] sm:$0xff]  ;;  %v5255_v41 = vcombine.low %v708_v17, %v712_v18  ;;  %v756_v18 = vld [vmem:[#allocation9 + $0x980] sm:$0xff] }
 0x181   :  { %3631 = vmatprep.subr.bf16.mxu0 %v5216_v42  ;;  %3803 = vmatprep.subr.bf16.mxu1 %v5218_v49  ;;  %v5257_v42 = vcombine.low %v709_v20, %v713_v22  ;;  %v5264_v49 = vcombine.high %v716_v30, %v720_v31  ;;  %v5266_v50 = vcombine.high %v717_v32, %v721_v37  ;;  %v760_v20 = vld [vmem:[#allocation9 + $0x9a0] sm:$0xff]  ;;  %v757_v22 = vld [vmem:[#allocation9 + $0x988] sm:$0xff] }
 0x184   :  { %3632 = vmatpush1.bf16.msra.mxu0 %v5215_v56  ;;  %3804 = vmatpush1.bf16.msra.mxu1 %v5217_v57  ;;  %v729_v56 = vld [vmem:[#allocation9 + $0x8a8] sm:$0xff]  ;;  %v5263_v57 = vcombine.low %v716_v30, %v720_v31  ;;  %v764_v31 = vld [vmem:[#allocation9 + $0x9c0] sm:$0xff] }
 0x185   :  { %3633 = vmatprep.subr.bf16.mxu0 %v5224_v58  ;;  %3805 = vmatprep.subr.bf16.mxu1 %v5226_v59  ;;  %v5265_v58 = vcombine.low %v717_v32, %v721_v37  ;;  %v5272_v59 = vcombine.high %v724_v51, %v728_v52  ;;  %v5274_v60 = vcombine.high %v725_v53, %v729_v56  ;;  %v768_v32 = vld [vmem:[#allocation9 + $0x9e0] sm:$0xff]  ;;  %v765_v37 = vld [vmem:[#allocation9 + $0x9c8] sm:$0xff] }
 0x188   :  { %3634 = vmatpush1.bf16.msra.mxu0 %v5223_v34  ;;  %3806 = vmatpush1.bf16.msra.mxu1 %v5225_v36  ;;  %v737_v34 = vld [vmem:[#allocation9 + $0x8e8] sm:$0xff]  ;;  %v5271_v36 = vcombine.low %v724_v51, %v728_v52  ;;  %v772_v52 = vld [vmem:[#allocation9 + $0xa00] sm:$0xff] }
 0x189   :  { %3635 = vmatprep.subr.bf16.mxu0 %v5232_v38  ;;  %3807 = vmatprep.subr.bf16.mxu1 %v5234_v40  ;;  %v5273_v38 = vcombine.low %v725_v53, %v729_v56  ;;  %v5280_v40 = vcombine.high %v732_v61, %v736_v62  ;;  %v5282_v45 = vcombine.high %v733_v63, %v737_v34  ;;  %v776_v53 = vld [vmem:[#allocation9 + $0xa20] sm:$0xff]  ;;  %v773_v56 = vld [vmem:[#allocation9 + $0xa08] sm:$0xff] }
 0x18c   :  { %3636 = vmatpush1.bf16.msra.mxu0 %v5231_v3  ;;  %3808 = vmatpush1.bf16.msra.mxu1 %v5233_v5  ;;  %v745_v3 = vld [vmem:[#allocation9 + $0x928] sm:$0xff]  ;;  %v5279_v5 = vcombine.low %v732_v61, %v736_v62  ;;  %v780_v62 = vld [vmem:[#allocation9 + $0xa40] sm:$0xff] }
 0x18d   :  { %3637 = vmatprep.subr.bf16.mxu0 %v5240_v6  ;;  %3809 = vmatprep.subr.bf16.mxu1 %v5242_v7  ;;  %v5281_v6 = vcombine.low %v733_v63, %v737_v34  ;;  %v5288_v7 = vcombine.high %v740_v0, %v744_v1  ;;  %v5290_v9 = vcombine.high %v741_v2, %v745_v3  ;;  %v784_v63 = vld [vmem:[#allocation9 + $0xa60] sm:$0xff]  ;;  %v781_v34 = vld [vmem:[#allocation9 + $0xa48] sm:$0xff] }
 0x190   :  { %3638 = vmatpush1.bf16.msra.mxu0 %v5239_v13  ;;  %3810 = vmatpush1.bf16.msra.mxu1 %v5241_v14  ;;  %v753_v13 = vld [vmem:[#allocation9 + $0x968] sm:$0xff]  ;;  %v5287_v14 = vcombine.low %v740_v0, %v744_v1  ;;  %v788_v1 = vld [vmem:[#allocation9 + $0xa80] sm:$0xff] }
 0x191   :  { %3639 = vmatprep.subr.bf16.mxu0 %v5248_v15  ;;  %3811 = vmatprep.subr.bf16.mxu1 %v5250_v16  ;;  %v5289_v15 = vcombine.low %v741_v2, %v745_v3  ;;  %v5296_v16 = vcombine.high %v748_v10, %v752_v11  ;;  %v5298_v17 = vcombine.high %v749_v12, %v753_v13  ;;  %v792_v2 = vld [vmem:[#allocation9 + $0xaa0] sm:$0xff]  ;;  %v789_v3 = vld [vmem:[#allocation9 + $0xa88] sm:$0xff] }
 0x194   :  { %3640 = vmatpush1.bf16.msra.mxu0 %v5247_v23  ;;  %3812 = vmatpush1.bf16.msra.mxu1 %v5249_v24  ;;  %v761_v23 = vld [vmem:[#allocation9 + $0x9a8] sm:$0xff]  ;;  %v5295_v24 = vcombine.low %v748_v10, %v752_v11  ;;  %v796_v11 = vld [vmem:[#allocation9 + $0xac0] sm:$0xff] }
 0x195   :  { %3652 = vmatprep.subr.bf16.mxu0 %v5256_v26  ;;  %3824 = vmatprep.subr.bf16.mxu1 %v5258_v29  ;;  %v5297_v26 = vcombine.low %v749_v12, %v753_v13  ;;  %v5304_v29 = vcombine.high %v756_v18, %v760_v20  ;;  %v5306_v30 = vcombine.high %v757_v22, %v761_v23  ;;  %v800_v12 = vld [vmem:[#allocation9 + $0xae0] sm:$0xff]  ;;  %v797_v13 = vld [vmem:[#allocation9 + $0xac8] sm:$0xff] }
 0x197   :  { %3642 = vmatmul.mubr.bf16.vlgmr.msra.gmra.mrb[8].mxu0 %v6154_v27  ;;  %3814 = vmatmul.mubr.bf16.vlgmr.msra.gmra.mrb[8].mxu1 %v6154_v27 }
 0x198   :  { %3653 = vmatpush1.bf16.msra.mxu0 %v5255_v41  ;;  %3825 = vmatpush1.bf16.msra.mxu1 %v5257_v42  ;;  %v769_v41 = vld [vmem:[#allocation9 + $0x9e8] sm:$0xff]  ;;  %v5303_v42 = vcombine.low %v756_v18, %v760_v20  ;;  %v804_v20 = vld [vmem:[#allocation9 + $0xb00] sm:$0xff] }
 0x199   :  { %3654 = vmatprep.subr.bf16.mxu0 %v5264_v49  ;;  %3826 = vmatprep.subr.bf16.mxu1 %v5266_v50  ;;  %v5305_v49 = vcombine.low %v757_v22, %v761_v23  ;;  %v5312_v50 = vcombine.high %v764_v31, %v768_v32  ;;  %v5314_v51 = vcombine.high %v765_v37, %v769_v41  ;;  %v808_v22 = vld [vmem:[#allocation9 + $0xb20] sm:$0xff]  ;;  %v805_v23 = vld [vmem:[#allocation9 + $0xb08] sm:$0xff] }
 0x19a   :  { %3684 = vmatprep.mubr.bf16.mxu0 %v6172_v39  ;;  %3856 = vmatprep.mubr.bf16.mxu1 %v6172_v39 }
 0x19c   :  { %3655 = vmatpush1.bf16.msra.mxu0 %v5263_v57  ;;  %3827 = vmatpush1.bf16.msra.mxu1 %v5265_v58  ;;  %v777_v57 = vld [vmem:[#allocation9 + $0xa28] sm:$0xff]  ;;  %v5311_v58 = vcombine.low %v764_v31, %v768_v32  ;;  %v812_v32 = vld [vmem:[#allocation9 + $0xb40] sm:$0xff] }
 0x19d   :  { %3656 = vmatprep.subr.bf16.mxu0 %v5272_v59  ;;  %3828 = vmatprep.subr.bf16.mxu1 %v5274_v60  ;;  %v5313_v59 = vcombine.low %v765_v37, %v769_v41  ;;  %v5320_v60 = vcombine.high %v772_v52, %v776_v53  ;;  %v5322_v61 = vcombine.high %v773_v56, %v777_v57  ;;  %v816_v37 = vld [vmem:[#allocation9 + $0xb60] sm:$0xff]  ;;  %v813_v41 = vld [vmem:[#allocation9 + $0xb48] sm:$0xff] }
 0x1a0   :  { %3657 = vmatpush1.bf16.msra.mxu0 %v5271_v36  ;;  %3829 = vmatpush1.bf16.msra.mxu1 %v5273_v38  ;;  %v785_v36 = vld [vmem:[#allocation9 + $0xa68] sm:$0xff]  ;;  %v5319_v38 = vcombine.low %v772_v52, %v776_v53  ;;  %v820_v53 = vld [vmem:[#allocation9 + $0xb80] sm:$0xff] }
 0x1a1   :  { %3658 = vmatprep.subr.bf16.mxu0 %v5280_v40  ;;  %3830 = vmatprep.subr.bf16.mxu1 %v5282_v45  ;;  %v5321_v40 = vcombine.low %v773_v56, %v777_v57  ;;  %v5328_v45 = vcombine.high %v780_v62, %v784_v63  ;;  %v5330_v0 = vcombine.high %v781_v34, %v785_v36  ;;  %v824_v56 = vld [vmem:[#allocation9 + $0xba0] sm:$0xff]  ;;  %v821_v57 = vld [vmem:[#allocation9 + $0xb88] sm:$0xff] }
 0x1a4   :  { %3659 = vmatpush1.bf16.msra.mxu0 %v5279_v5  ;;  %3831 = vmatpush1.bf16.msra.mxu1 %v5281_v6  ;;  %v793_v5 = vld [vmem:[#allocation9 + $0xaa8] sm:$0xff]  ;;  %v5327_v6 = vcombine.low %v780_v62, %v784_v63  ;;  %v828_v63 = vld [vmem:[#allocation9 + $0xbc0] sm:$0xff] }
 0x1a5   :  { %3660 = vmatprep.subr.bf16.mxu0 %v5288_v7  ;;  %3832 = vmatprep.subr.bf16.mxu1 %v5290_v9  ;;  %v5329_v7 = vcombine.low %v781_v34, %v785_v36  ;;  %v5336_v9 = vcombine.high %v788_v1, %v792_v2  ;;  %v5338_v10 = vcombine.high %v789_v3, %v793_v5  ;;  %v832_v34 = vld [vmem:[#allocation9 + $0xbe0] sm:$0xff]  ;;  %v829_v36 = vld [vmem:[#allocation9 + $0xbc8] sm:$0xff] }
 0x1a8   :  { %3661 = vmatpush1.bf16.msra.mxu0 %v5287_v14  ;;  %3833 = vmatpush1.bf16.msra.mxu1 %v5289_v15  ;;  %v801_v14 = vld [vmem:[#allocation9 + $0xae8] sm:$0xff]  ;;  %v5335_v15 = vcombine.low %v788_v1, %v792_v2  ;;  %v836_v2 = vld [vmem:[#allocation9 + $0xc00] sm:$0xff] }
 0x1a9   :  { %3662 = vmatprep.subr.bf16.mxu0 %v5296_v16  ;;  %3834 = vmatprep.subr.bf16.mxu1 %v5298_v17  ;;  %v5337_v16 = vcombine.low %v789_v3, %v793_v5  ;;  %v5344_v17 = vcombine.high %v796_v11, %v800_v12  ;;  %v5346_v18 = vcombine.high %v797_v13, %v801_v14  ;;  %v840_v3 = vld [vmem:[#allocation9 + $0xc20] sm:$0xff]  ;;  %v837_v5 = vld [vmem:[#allocation9 + $0xc08] sm:$0xff] }
 0x1ac   :  { %3663 = vmatpush1.bf16.msra.mxu0 %v5295_v24  ;;  %3835 = vmatpush1.bf16.msra.mxu1 %v5297_v26  ;;  %v809_v24 = vld [vmem:[#allocation9 + $0xb28] sm:$0xff]  ;;  %v5343_v26 = vcombine.low %v796_v11, %v800_v12  ;;  %v844_v12 = vld [vmem:[#allocation9 + $0xc40] sm:$0xff] }
 0x1ad   :  { %3664 = vmatprep.subr.bf16.mxu0 %v5304_v29  ;;  %3836 = vmatprep.subr.bf16.mxu1 %v5306_v30  ;;  %v5345_v29 = vcombine.low %v797_v13, %v801_v14  ;;  %v5352_v30 = vcombine.high %v804_v20, %v808_v22  ;;  %v5354_v31 = vcombine.high %v805_v23, %v809_v24  ;;  %v848_v13 = vld [vmem:[#allocation9 + $0xc60] sm:$0xff]  ;;  %v845_v14 = vld [vmem:[#allocation9 + $0xc48] sm:$0xff] }
 0x1b0   :  { %3665 = vmatpush1.bf16.msra.mxu0 %v5303_v42  ;;  %3837 = vmatpush1.bf16.msra.mxu1 %v5305_v49  ;;  %v817_v42 = vld [vmem:[#allocation9 + $0xb68] sm:$0xff]  ;;  %v5351_v49 = vcombine.low %v804_v20, %v808_v22  ;;  %v852_v22 = vld [vmem:[#allocation9 + $0xc80] sm:$0xff] }
 0x1b1   :  { %3666 = vmatprep.subr.bf16.mxu0 %v5312_v50  ;;  %3838 = vmatprep.subr.bf16.mxu1 %v5314_v51  ;;  %v5353_v50 = vcombine.low %v805_v23, %v809_v24  ;;  %v5360_v51 = vcombine.high %v812_v32, %v816_v37  ;;  %v5362_v52 = vcombine.high %v813_v41, %v817_v42  ;;  %v856_v23 = vld [vmem:[#allocation9 + $0xca0] sm:$0xff]  ;;  %v853_v24 = vld [vmem:[#allocation9 + $0xc88] sm:$0xff] }
 0x1b4   :  { %3667 = vmatpush1.bf16.msra.mxu0 %v5311_v58  ;;  %3839 = vmatpush1.bf16.msra.mxu1 %v5313_v59  ;;  %v825_v58 = vld [vmem:[#allocation9 + $0xba8] sm:$0xff]  ;;  %v5359_v59 = vcombine.low %v812_v32, %v816_v37  ;;  %v860_v37 = vld [vmem:[#allocation9 + $0xcc0] sm:$0xff] }
 0x1b5   :  { %3668 = vmatprep.subr.bf16.mxu0 %v5320_v60  ;;  %3840 = vmatprep.subr.bf16.mxu1 %v5322_v61  ;;  %v5361_v60 = vcombine.low %v813_v41, %v817_v42  ;;  %v5368_v61 = vcombine.high %v820_v53, %v824_v56  ;;  %v5370_v62 = vcombine.high %v821_v57, %v825_v58  ;;  %v864_v41 = vld [vmem:[#allocation9 + $0xce0] sm:$0xff]  ;;  %v861_v42 = vld [vmem:[#allocation9 + $0xcc8] sm:$0xff] }
 0x1b8   :  { %3669 = vmatpush1.bf16.msra.mxu0 %v5319_v38  ;;  %3841 = vmatpush1.bf16.msra.mxu1 %v5321_v40  ;;  %v833_v38 = vld [vmem:[#allocation9 + $0xbe8] sm:$0xff]  ;;  %v5367_v40 = vcombine.low %v820_v53, %v824_v56  ;;  %v868_v56 = vld [vmem:[#allocation9 + $0xd00] sm:$0xff] }
 0x1b9   :  { %3670 = vmatprep.subr.bf16.mxu0 %v5328_v45  ;;  %3842 = vmatprep.subr.bf16.mxu1 %v5330_v0  ;;  %v5369_v45 = vcombine.low %v821_v57, %v825_v58  ;;  %v5376_v0 = vcombine.high %v828_v63, %v832_v34  ;;  %v5378_v1 = vcombine.high %v829_v36, %v833_v38  ;;  %v872_v57 = vld [vmem:[#allocation9 + $0xd20] sm:$0xff]  ;;  %v869_v58 = vld [vmem:[#allocation9 + $0xd08] sm:$0xff] }
 0x1bc   :  { %3671 = vmatpush1.bf16.msra.mxu0 %v5327_v6  ;;  %3843 = vmatpush1.bf16.msra.mxu1 %v5329_v7  ;;  %v841_v6 = vld [vmem:[#allocation9 + $0xc28] sm:$0xff]  ;;  %v5375_v7 = vcombine.low %v828_v63, %v832_v34  ;;  %v876_v34 = vld [vmem:[#allocation9 + $0xd40] sm:$0xff] }
 0x1bd   :  { %3672 = vmatprep.subr.bf16.mxu0 %v5336_v9  ;;  %3844 = vmatprep.subr.bf16.mxu1 %v5338_v10  ;;  %v5377_v9 = vcombine.low %v829_v36, %v833_v38  ;;  %v5384_v10 = vcombine.high %v836_v2, %v840_v3  ;;  %v5386_v11 = vcombine.high %v837_v5, %v841_v6  ;;  %v880_v36 = vld [vmem:[#allocation9 + $0xd60] sm:$0xff]  ;;  %v877_v38 = vld [vmem:[#allocation9 + $0xd48] sm:$0xff] }
 0x1c0   :  { %3673 = vmatpush1.bf16.msra.mxu0 %v5335_v15  ;;  %3845 = vmatpush1.bf16.msra.mxu1 %v5337_v16  ;;  %v849_v15 = vld [vmem:[#allocation9 + $0xc68] sm:$0xff]  ;;  %v5383_v16 = vcombine.low %v836_v2, %v840_v3  ;;  %v884_v3 = vld [vmem:[#allocation9 + $0xd80] sm:$0xff] }
 0x1c1   :  { %3674 = vmatprep.subr.bf16.mxu0 %v5344_v17  ;;  %3846 = vmatprep.subr.bf16.mxu1 %v5346_v18  ;;  %v5385_v17 = vcombine.low %v837_v5, %v841_v6  ;;  %v5392_v18 = vcombine.high %v844_v12, %v848_v13  ;;  %v5394_v20 = vcombine.high %v845_v14, %v849_v15  ;;  %v888_v5 = vld [vmem:[#allocation9 + $0xda0] sm:$0xff]  ;;  %v885_v6 = vld [vmem:[#allocation9 + $0xd88] sm:$0xff] }
 0x1c4   :  { %3675 = vmatpush1.bf16.msra.mxu0 %v5343_v26  ;;  %3847 = vmatpush1.bf16.msra.mxu1 %v5345_v29  ;;  %v857_v26 = vld [vmem:[#allocation9 + $0xca8] sm:$0xff]  ;;  %v5391_v29 = vcombine.low %v844_v12, %v848_v13  ;;  %v892_v13 = vld [vmem:[#allocation9 + $0xdc0] sm:$0xff] }
 0x1c5   :  { %3676 = vmatprep.subr.bf16.mxu0 %v5352_v30  ;;  %3848 = vmatprep.subr.bf16.mxu1 %v5354_v31  ;;  %v5393_v30 = vcombine.low %v845_v14, %v849_v15  ;;  %v5400_v31 = vcombine.high %v852_v22, %v856_v23  ;;  %v5402_v32 = vcombine.high %v853_v24, %v857_v26  ;;  %v896_v14 = vld [vmem:[#allocation9 + $0xde0] sm:$0xff]  ;;  %v893_v15 = vld [vmem:[#allocation9 + $0xdc8] sm:$0xff] }
 0x1c8   :  { %3677 = vmatpush1.bf16.msra.mxu0 %v5351_v49  ;;  %3849 = vmatpush1.bf16.msra.mxu1 %v5353_v50  ;;  %v865_v49 = vld [vmem:[#allocation9 + $0xce8] sm:$0xff]  ;;  %v5399_v50 = vcombine.low %v852_v22, %v856_v23  ;;  %v900_v23 = vld [vmem:[#allocation9 + $0xe00] sm:$0xff] }
 0x1c9   :  { %3678 = vmatprep.subr.bf16.mxu0 %v5360_v51  ;;  %3850 = vmatprep.subr.bf16.mxu1 %v5362_v52  ;;  %v5401_v51 = vcombine.low %v853_v24, %v857_v26  ;;  %v5408_v52 = vcombine.high %v860_v37, %v864_v41  ;;  %v5410_v53 = vcombine.high %v861_v42, %v865_v49  ;;  %v904_v24 = vld [vmem:[#allocation9 + $0xe20] sm:$0xff]  ;;  %v901_v26 = vld [vmem:[#allocation9 + $0xe08] sm:$0xff] }
 0x1cc   :  { %3679 = vmatpush1.bf16.msra.mxu0 %v5359_v59  ;;  %3851 = vmatpush1.bf16.msra.mxu1 %v5361_v60  ;;  %v873_v59 = vld [vmem:[#allocation9 + $0xd28] sm:$0xff]  ;;  %v5407_v60 = vcombine.low %v860_v37, %v864_v41  ;;  %v908_v41 = vld [vmem:[#allocation9 + $0xe40] sm:$0xff] }
 0x1cd   :  { %3680 = vmatprep.subr.bf16.mxu0 %v5368_v61  ;;  %3852 = vmatprep.subr.bf16.mxu1 %v5370_v62  ;;  %v5409_v61 = vcombine.low %v861_v42, %v865_v49  ;;  %v5416_v62 = vcombine.high %v868_v56, %v872_v57  ;;  %v5418_v63 = vcombine.high %v869_v58, %v873_v59  ;;  %v912_v42 = vld [vmem:[#allocation9 + $0xe60] sm:$0xff]  ;;  %v909_v49 = vld [vmem:[#allocation9 + $0xe48] sm:$0xff] }
 0x1d0   :  { %3681 = vmatpush1.bf16.msra.mxu0 %v5367_v40  ;;  %3853 = vmatpush1.bf16.msra.mxu1 %v5369_v45  ;;  %v881_v40 = vld [vmem:[#allocation9 + $0xd68] sm:$0xff]  ;;  %v5415_v45 = vcombine.low %v868_v56, %v872_v57  ;;  %v916_v57 = vld [vmem:[#allocation9 + $0xe80] sm:$0xff] }
 0x1d1   :  { %3682 = vmatprep.subr.bf16.mxu0 %v5376_v0  ;;  %3854 = vmatprep.subr.bf16.mxu1 %v5378_v1  ;;  %v5417_v0 = vcombine.low %v869_v58, %v873_v59  ;;  %v5424_v1 = vcombine.high %v876_v34, %v880_v36  ;;  %v5426_v2 = vcombine.high %v877_v38, %v881_v40  ;;  %v920_v58 = vld [vmem:[#allocation9 + $0xea0] sm:$0xff]  ;;  %v917_v59 = vld [vmem:[#allocation9 + $0xe88] sm:$0xff] }
 0x1d4   :  { %3683 = vmatpush1.bf16.msra.mxu0 %v5375_v7  ;;  %3855 = vmatpush1.bf16.msra.mxu1 %v5377_v9  ;;  %v889_v7 = vld [vmem:[#allocation9 + $0xda8] sm:$0xff]  ;;  %v5423_v9 = vcombine.low %v876_v34, %v880_v36  ;;  %v924_v36 = vld [vmem:[#allocation9 + $0xec0] sm:$0xff] }
 0x1d5   :  { %3695 = vmatprep.subr.bf16.mxu0 %v5384_v10  ;;  %3867 = vmatprep.subr.bf16.mxu1 %v5386_v11  ;;  %v5425_v10 = vcombine.low %v877_v38, %v881_v40  ;;  %v5432_v11 = vcombine.high %v884_v3, %v888_v5  ;;  %v5434_v12 = vcombine.high %v885_v6, %v889_v7  ;;  %v928_v38 = vld [vmem:[#allocation9 + $0xee0] sm:$0xff]  ;;  %v925_v40 = vld [vmem:[#allocation9 + $0xec8] sm:$0xff] }
 0x1d7   :  { %3685 = vmatmul.mubr.bf16.vlgmr.msra.gmra.mrb[8].mxu0 %v6170_v35  ;;  %3857 = vmatmul.mubr.bf16.vlgmr.msra.gmra.mrb[8].mxu1 %v6170_v35 }
 0x1d8   :  { %3696 = vmatpush1.bf16.msra.mxu0 %v5383_v16  ;;  %3868 = vmatpush1.bf16.msra.mxu1 %v5385_v17  ;;  %v897_v16 = vld [vmem:[#allocation9 + $0xde8] sm:$0xff]  ;;  %v5431_v17 = vcombine.low %v884_v3, %v888_v5  ;;  %v932_v5 = vld [vmem:[#allocation9 + $0xf00] sm:$0xff] }
 0x1d9   :  { %3697 = vmatprep.subr.bf16.mxu0 %v5392_v18  ;;  %3869 = vmatprep.subr.bf16.mxu1 %v5394_v20  ;;  %v5433_v18 = vcombine.low %v885_v6, %v889_v7  ;;  %v5440_v20 = vcombine.high %v892_v13, %v896_v14  ;;  %v5442_v22 = vcombine.high %v893_v15, %v897_v16  ;;  %v936_v6 = vld [vmem:[#allocation9 + $0xf20] sm:$0xff]  ;;  %v933_v7 = vld [vmem:[#allocation9 + $0xf08] sm:$0xff] }
 0x1da   :  { %3727 = vmatprep.mubr.bf16.mxu0 %v6184_v8  ;;  %3899 = vmatprep.mubr.bf16.mxu1 %v6184_v8 }
 0x1dc   :  { %3698 = vmatpush1.bf16.msra.mxu0 %v5391_v29  ;;  %3870 = vmatpush1.bf16.msra.mxu1 %v5393_v30  ;;  %v905_v29 = vld [vmem:[#allocation9 + $0xe28] sm:$0xff]  ;;  %v5439_v30 = vcombine.low %v892_v13, %v896_v14  ;;  %v940_v14 = vld [vmem:[#allocation9 + $0xf40] sm:$0xff] }
 0x1dd   :  { %3699 = vmatprep.subr.bf16.mxu0 %v5400_v31  ;;  %3871 = vmatprep.subr.bf16.mxu1 %v5402_v32  ;;  %v5441_v31 = vcombine.low %v893_v15, %v897_v16  ;;  %v5448_v32 = vcombine.high %v900_v23, %v904_v24  ;;  %v5450_v37 = vcombine.high %v901_v26, %v905_v29  ;;  %v944_v15 = vld [vmem:[#allocation9 + $0xf60] sm:$0xff]  ;;  %v941_v16 = vld [vmem:[#allocation9 + $0xf48] sm:$0xff] }
 0x1e0   :  { %3700 = vmatpush1.bf16.msra.mxu0 %v5399_v50  ;;  %3872 = vmatpush1.bf16.msra.mxu1 %v5401_v51  ;;  %v913_v50 = vld [vmem:[#allocation9 + $0xe68] sm:$0xff]  ;;  %v5447_v51 = vcombine.low %v900_v23, %v904_v24  ;;  %v948_v24 = vld [vmem:[#allocation9 + $0xf80] sm:$0xff] }
 0x1e1   :  { %3701 = vmatprep.subr.bf16.mxu0 %v5408_v52  ;;  %3873 = vmatprep.subr.bf16.mxu1 %v5410_v53  ;;  %v5449_v52 = vcombine.low %v901_v26, %v905_v29  ;;  %v5456_v53 = vcombine.high %v908_v41, %v912_v42  ;;  %v5458_v56 = vcombine.high %v909_v49, %v913_v50  ;;  %v952_v26 = vld [vmem:[#allocation9 + $0xfa0] sm:$0xff]  ;;  %v949_v29 = vld [vmem:[#allocation9 + $0xf88] sm:$0xff] }
 0x1e4   :  { %3702 = vmatpush1.bf16.msra.mxu0 %v5407_v60  ;;  %3874 = vmatpush1.bf16.msra.mxu1 %v5409_v61  ;;  %v921_v60 = vld [vmem:[#allocation9 + $0xea8] sm:$0xff]  ;;  %v5455_v61 = vcombine.low %v908_v41, %v912_v42  ;;  %v956_v42 = vld [vmem:[#allocation9 + $0xfc0] sm:$0xff] }
 0x1e5   :  { %3703 = vmatprep.subr.bf16.mxu0 %v5416_v62  ;;  %3875 = vmatprep.subr.bf16.mxu1 %v5418_v63  ;;  %v5457_v62 = vcombine.low %v909_v49, %v913_v50  ;;  %v5464_v63 = vcombine.high %v916_v57, %v920_v58  ;;  %v5466_v34 = vcombine.high %v917_v59, %v921_v60  ;;  %v960_v49 = vld [vmem:[#allocation9 + $0xfe0] sm:$0xff]  ;;  %v957_v50 = vld [vmem:[#allocation9 + $0xfc8] sm:$0xff] }
 0x1e8   :  { %3704 = vmatpush1.bf16.msra.mxu0 %v5415_v45  ;;  %3876 = vmatpush1.bf16.msra.mxu1 %v5417_v0  ;;  %v929_v45 = vld [vmem:[#allocation9 + $0xee8] sm:$0xff]  ;;  %v5463_v0 = vcombine.low %v916_v57, %v920_v58  ;;  %v454_v58 = vld [vmem:[#allocation9 + $0x10] sm:$0xff] }
 0x1e9   :  { %3705 = vmatprep.subr.bf16.mxu0 %v5424_v1  ;;  %3877 = vmatprep.subr.bf16.mxu1 %v5426_v2  ;;  %v5465_v1 = vcombine.low %v917_v59, %v921_v60  ;;  %v5472_v2 = vcombine.high %v924_v36, %v928_v38  ;;  %v5474_v3 = vcombine.high %v925_v40, %v929_v45  ;;  %v458_v59 = vld [vmem:[#allocation9 + $0x30] sm:$0xff]  ;;  %v455_v60 = vld [vmem:[#allocation9 + $0x18] sm:$0xff] }
 0x1ec   :  { %3706 = vmatpush1.bf16.msra.mxu0 %v5423_v9  ;;  %3878 = vmatpush1.bf16.msra.mxu1 %v5425_v10  ;;  %v937_v9 = vld [vmem:[#allocation9 + $0xf28] sm:$0xff]  ;;  %v5471_v10 = vcombine.low %v924_v36, %v928_v38  ;;  %v462_v38 = vld [vmem:[#allocation9 + $0x50] sm:$0xff] }
 0x1ed   :  { %3707 = vmatprep.subr.bf16.mxu0 %v5432_v11  ;;  %3879 = vmatprep.subr.bf16.mxu1 %v5434_v12  ;;  %v5473_v11 = vcombine.low %v925_v40, %v929_v45  ;;  %v5480_v12 = vcombine.high %v932_v5, %v936_v6  ;;  %v5482_v13 = vcombine.high %v933_v7, %v937_v9  ;;  %v466_v40 = vld [vmem:[#allocation9 + $0x70] sm:$0xff]  ;;  %v463_v45 = vld [vmem:[#allocation9 + $0x58] sm:$0xff] }
 0x1f0   :  { %3708 = vmatpush1.bf16.msra.mxu0 %v5431_v17  ;;  %3880 = vmatpush1.bf16.msra.mxu1 %v5433_v18  ;;  %v945_v17 = vld [vmem:[#allocation9 + $0xf68] sm:$0xff]  ;;  %v5479_v18 = vcombine.low %v932_v5, %v936_v6  ;;  %v470_v6 = vld [vmem:[#allocation9 + $0x90] sm:$0xff] }
 0x1f1   :  { %3709 = vmatprep.subr.bf16.mxu0 %v5440_v20  ;;  %3881 = vmatprep.subr.bf16.mxu1 %v5442_v22  ;;  %v5481_v20 = vcombine.low %v933_v7, %v937_v9  ;;  %v5488_v22 = vcombine.high %v940_v14, %v944_v15  ;;  %v5490_v23 = vcombine.high %v941_v16, %v945_v17  ;;  %v474_v7 = vld [vmem:[#allocation9 + $0xb0] sm:$0xff]  ;;  %v471_v9 = vld [vmem:[#allocation9 + $0x98] sm:$0xff] }
 0x1f4   :  { %3710 = vmatpush1.bf16.msra.mxu0 %v5439_v30  ;;  %3882 = vmatpush1.bf16.msra.mxu1 %v5441_v31  ;;  %v953_v30 = vld [vmem:[#allocation9 + $0xfa8] sm:$0xff]  ;;  %v5487_v31 = vcombine.low %v940_v14, %v944_v15  ;;  %v478_v15 = vld [vmem:[#allocation9 + $0xd0] sm:$0xff] }
 0x1f5   :  { %3711 = vmatprep.subr.bf16.mxu0 %v5448_v32  ;;  %3883 = vmatprep.subr.bf16.mxu1 %v5450_v37  ;;  %v5489_v32 = vcombine.low %v941_v16, %v945_v17  ;;  %v5496_v37 = vcombine.high %v948_v24, %v952_v26  ;;  %v5498_v41 = vcombine.high %v949_v29, %v953_v30  ;;  %v482_v16 = vld [vmem:[#allocation9 + $0xf0] sm:$0xff]  ;;  %v479_v17 = vld [vmem:[#allocation9 + $0xd8] sm:$0xff] }
 0x1f8   :  { %3712 = vmatpush1.bf16.msra.mxu0 %v5447_v51  ;;  %3884 = vmatpush1.bf16.msra.mxu1 %v5449_v52  ;;  %v961_v51 = vld [vmem:[#allocation9 + $0xfe8] sm:$0xff]  ;;  %v5495_v52 = vcombine.low %v948_v24, %v952_v26  ;;  %v486_v26 = vld [vmem:[#allocation9 + $0x110] sm:$0xff] }
 0x1f9   :  { %3713 = vmatprep.subr.bf16.mxu0 %v5456_v53  ;;  %3885 = vmatprep.subr.bf16.mxu1 %v5458_v56  ;;  %v5497_v53 = vcombine.low %v949_v29, %v953_v30  ;;  %v5504_v56 = vcombine.high %v956_v42, %v960_v49  ;;  %v5506_v57 = vcombine.high %v957_v50, %v961_v51  ;;  %v490_v29 = vld [vmem:[#allocation9 + $0x130] sm:$0xff]  ;;  %v491_v30 = vld [vmem:[#allocation9 + $0x138] sm:$0xff] }
 0x1fc   :  { %3714 = vmatpush1.bf16.msra.mxu0 %v5455_v61  ;;  %3886 = vmatpush1.bf16.msra.mxu1 %v5457_v62  ;;  %v459_v61 = vld [vmem:[#allocation9 + $0x38] sm:$0xff]  ;;  %v5503_v62 = vcombine.low %v956_v42, %v960_v49  ;;  %v494_v42 = vld [vmem:[#allocation9 + $0x150] sm:$0xff] }
 0x1fd   :  { %3715 = vmatprep.subr.bf16.mxu0 %v5464_v63  ;;  %3887 = vmatprep.subr.bf16.mxu1 %v5466_v34  ;;  %v5505_v63 = vcombine.low %v957_v50, %v961_v51  ;;  %v5004_v34 = vcombine.high %v454_v58, %v458_v59  ;;  %v5006_v36 = vcombine.high %v455_v60, %v459_v61  ;;  %v498_v49 = vld [vmem:[#allocation9 + $0x170] sm:$0xff]  ;;  %v495_v50 = vld [vmem:[#allocation9 + $0x158] sm:$0xff] }
 0x1fe   :  { %v499_v51 = vld [vmem:[#allocation9 + $0x178] sm:$0xff] }
 0x200   :  { %3716 = vmatpush1.bf16.msra.mxu0 %v5463_v0  ;;  %3888 = vmatpush1.bf16.msra.mxu1 %v5465_v1  ;;  %v467_v0 = vld [vmem:[#allocation9 + $0x78] sm:$0xff]  ;;  %v5003_v1 = vcombine.low %v454_v58, %v458_v59  ;;  %v502_v58 = vld [vmem:[#allocation9 + $0x190] sm:$0xff] }
 0x201   :  { %3717 = vmatprep.subr.bf16.mxu0 %v5472_v2  ;;  %3889 = vmatprep.subr.bf16.mxu1 %v5474_v3  ;;  %v5005_v2 = vcombine.low %v455_v60, %v459_v61  ;;  %v5012_v3 = vcombine.high %v462_v38, %v466_v40  ;;  %v5014_v5 = vcombine.high %v463_v45, %v467_v0  ;;  %v506_v59 = vld [vmem:[#allocation9 + $0x1b0] sm:$0xff]  ;;  %v503_v60 = vld [vmem:[#allocation9 + $0x198] sm:$0xff] }
 0x202   :  { %v507_v61 = vld [vmem:[#allocation9 + $0x1b8] sm:$0xff] }
 0x204   :  { %3718 = vmatpush1.bf16.msra.mxu0 %v5471_v10  ;;  %3890 = vmatpush1.bf16.msra.mxu1 %v5473_v11  ;;  %v475_v10 = vld [vmem:[#allocation9 + $0xb8] sm:$0xff]  ;;  %v5011_v11 = vcombine.low %v462_v38, %v466_v40  ;;  %v510_v38 = vld [vmem:[#allocation9 + $0x1d0] sm:$0xff] }
 0x205   :  { %3719 = vmatprep.subr.bf16.mxu0 %v5480_v12  ;;  %3891 = vmatprep.subr.bf16.mxu1 %v5482_v13  ;;  %v5013_v12 = vcombine.low %v463_v45, %v467_v0  ;;  %v5020_v13 = vcombine.high %v470_v6, %v474_v7  ;;  %v5022_v14 = vcombine.high %v471_v9, %v475_v10  ;;  %v514_v40 = vld [vmem:[#allocation9 + $0x1f0] sm:$0xff]  ;;  %v511_v45 = vld [vmem:[#allocation9 + $0x1d8] sm:$0xff] }
 0x206   :  { %v515_v0 = vld [vmem:[#allocation9 + $0x1f8] sm:$0xff] }
 0x208   :  { %3720 = vmatpush1.bf16.msra.mxu0 %v5479_v18  ;;  %3892 = vmatpush1.bf16.msra.mxu1 %v5481_v20  ;;  %v483_v18 = vld [vmem:[#allocation9 + $0xf8] sm:$0xff]  ;;  %v5019_v20 = vcombine.low %v470_v6, %v474_v7  ;;  %v518_v6 = vld [vmem:[#allocation9 + $0x210] sm:$0xff] }
 0x209   :  { %3721 = vmatprep.subr.bf16.mxu0 %v5488_v22  ;;  %3893 = vmatprep.subr.bf16.mxu1 %v5490_v23  ;;  %v5021_v22 = vcombine.low %v471_v9, %v475_v10  ;;  %v5028_v23 = vcombine.high %v478_v15, %v482_v16  ;;  %v5030_v24 = vcombine.high %v479_v17, %v483_v18  ;;  %v522_v7 = vld [vmem:[#allocation9 + $0x230] sm:$0xff]  ;;  %v519_v9 = vld [vmem:[#allocation9 + $0x218] sm:$0xff] }
 0x20a   :  { %v523_v10 = vld [vmem:[#allocation9 + $0x238] sm:$0xff] }
 0x20c   :  { %3722 = vmatpush1.bf16.msra.mxu0 %v5487_v31  ;;  %3894 = vmatpush1.bf16.msra.mxu1 %v5489_v32  ;;  %v5027_v31 = vcombine.low %v478_v15, %v482_v16  ;;  %v5029_v32 = vcombine.low %v479_v17, %v483_v18  ;;  %v526_v15 = vld [vmem:[#allocation9 + $0x250] sm:$0xff]  ;;  %v527_v17 = vld [vmem:[#allocation9 + $0x258] sm:$0xff] }
 0x20d   :  { %3723 = vmatprep.subr.bf16.mxu0 %v5496_v37  ;;  %3895 = vmatprep.subr.bf16.mxu1 %v5498_v41  ;;  %v5036_v37 = vcombine.high %v486_v26, %v490_v29  ;;  %v530_v16 = vld [vmem:[#allocation9 + $0x270] sm:$0xff]  ;;  %v531_v18 = vld [vmem:[#allocation9 + $0x278] sm:$0xff] }
 0x210   :  { %3724 = vmatpush1.bf16.msra.mxu0 %v5495_v52  ;;  %3896 = vmatpush1.bf16.msra.mxu1 %v5497_v53  ;;  %v5035_v52 = vcombine.low %v486_v26, %v490_v29  ;;  %v534_v26 = vld [vmem:[#allocation9 + $0x290] sm:$0xff] }
 0x211   :  { %3725 = vmatprep.subr.bf16.mxu0 %v5504_v56  ;;  %3897 = vmatprep.subr.bf16.mxu1 %v5506_v57  ;;  %v5044_v56 = vcombine.high %v494_v42, %v498_v49  ;;  %v5046_v57 = vcombine.high %v495_v50, %v499_v51  ;;  %v538_v29 = vld [vmem:[#allocation9 + $0x2b0] sm:$0xff] }
 0x214   :  { %3726 = vmatpush1.bf16.msra.mxu0 %v5503_v62  ;;  %3898 = vmatpush1.bf16.msra.mxu1 %v5505_v63  ;;  %v5043_v62 = vcombine.low %v494_v42, %v498_v49  ;;  %v5045_v63 = vcombine.low %v495_v50, %v499_v51  ;;  %v542_v42 = vld [vmem:[#allocation9 + $0x2d0] sm:$0xff]  ;;  %v543_v50 = vld [vmem:[#allocation9 + $0x2d8] sm:$0xff] }
 0x215   :  { %3910 = vmatprep.subr.bf16.mxu0 %v5004_v34  ;;  %4082 = vmatprep.subr.bf16.mxu1 %v5006_v36  ;;  %v5052_v34 = vcombine.high %v502_v58, %v506_v59  ;;  %v5054_v36 = vcombine.high %v503_v60, %v507_v61  ;;  %v546_v49 = vld [vmem:[#allocation9 + $0x2f0] sm:$0xff]  ;;  %v547_v51 = vld [vmem:[#allocation9 + $0x2f8] sm:$0xff] }
 0x217   :  { %3728 = vmatmul.mubr.bf16.vlgmr.msra.gmra.mrb[8].mxu0 %v6182_v4  ;;  %3900 = vmatmul.mubr.bf16.vlgmr.msra.gmra.mrb[8].mxu1 %v6182_v4 }
 0x218   :  { %3911 = vmatpush1.bf16.msra.mxu0 %v5003_v1  ;;  %3942 = vmatprep.mubr.bf16.mxu0 %v6152_v21  ;;  %v5051_v1 = vcombine.low %v502_v58, %v506_v59  ;;  %v550_v58 = vld [vmem:[#allocation9 + $0x310] sm:$0xff] }
 0x219   :  { %4083 = vmatpush1.bf16.msra.mxu1 %v5005_v2  ;;  %4114 = vmatprep.mubr.bf16.mxu1 %v6152_v21  ;;  %v487_v21 = vld [vmem:[#allocation9 + $0x118] sm:$0xff]  ;;  %v5053_v2 = vcombine.low %v503_v60, %v507_v61  ;;  %v554_v59 = vld [vmem:[#allocation9 + $0x330] sm:$0xff] }
 0x21a   :  { %3912 = vmatprep.subr.bf16.mxu0 %v5012_v3  ;;  %4084 = vmatprep.subr.bf16.mxu1 %v5014_v5  ;;  %v5038_v41 = vcombine.high %v487_v21, %v491_v30  ;;  %v5037_v53 = vcombine.low %v487_v21, %v491_v30  ;;  %v5060_v3 = vcombine.high %v510_v38, %v514_v40  ;;  %v535_v21 = vld [vmem:[#allocation9 + $0x298] sm:$0xff] }
 0x21b   :  { %v5062_v5 = vcombine.high %v511_v45, %v515_v0  ;;  %v539_v30 = vld [vmem:[#allocation9 + $0x2b8] sm:$0xff] }
 0x21c   :  { %3913 = vmatpush1.bf16.msra.mxu0 %v5011_v11  ;;  %v5059_v11 = vcombine.low %v510_v38, %v514_v40  ;;  %v551_v60 = vld [vmem:[#allocation9 + $0x318] sm:$0xff]  ;;  %v558_v38 = vld [vmem:[#allocation9 + $0x350] sm:$0xff] }
 0x21d   :  { %4085 = vmatpush1.bf16.msra.mxu1 %v5013_v12  ;;  %3914 = vmatprep.subr.bf16.mxu0 %v5020_v13  ;;  %v5061_v12 = vcombine.low %v511_v45, %v515_v0  ;;  %v5068_v13 = vcombine.high %v518_v6, %v522_v7  ;;  %v555_v61 = vld [vmem:[#allocation9 + $0x338] sm:$0xff]  ;;  %v562_v40 = vld [vmem:[#allocation9 + $0x370] sm:$0xff] }
 0x21e   :  { %4086 = vmatprep.subr.bf16.mxu1 %v5022_v14  ;;  %v5070_v14 = vcombine.high %v519_v9, %v523_v10  ;;  %v559_v45 = vld [vmem:[#allocation9 + $0x358] sm:$0xff] }
 0x21f   :  { %v563_v0 = vld [vmem:[#allocation9 + $0x378] sm:$0xff] }
 0x220   :  { %3915 = vmatpush1.bf16.msra.mxu0 %v5019_v20  ;;  %v5067_v20 = vcombine.low %v518_v6, %v522_v7  ;;  %v566_v6 = vld [vmem:[#allocation9 + $0x390] sm:$0xff] }
 0x221   :  { %4087 = vmatpush1.bf16.msra.mxu1 %v5021_v22  ;;  %3916 = vmatprep.subr.bf16.mxu0 %v5028_v23  ;;  %v5069_v22 = vcombine.low %v519_v9, %v523_v10  ;;  %v5076_v23 = vcombine.high %v526_v15, %v530_v16  ;;  %v570_v7 = vld [vmem:[#allocation9 + $0x3b0] sm:$0xff]  ;;  %v567_v9 = vld [vmem:[#allocation9 + $0x398] sm:$0xff] }
 0x222   :  { %4088 = vmatprep.subr.bf16.mxu1 %v5030_v24  ;;  %v5078_v24 = vcombine.high %v527_v17, %v531_v18  ;;  %v571_v10 = vld [vmem:[#allocation9 + $0x3b8] sm:$0xff] }
 0x224   :  { %3917 = vmatpush1.bf16.msra.mxu0 %v5027_v31  ;;  %v5075_v31 = vcombine.low %v526_v15, %v530_v16  ;;  %v574_v15 = vld [vmem:[#allocation9 + $0x3d0] sm:$0xff] }
 0x225   :  { %4089 = vmatpush1.bf16.msra.mxu1 %v5029_v32  ;;  %3918 = vmatprep.subr.bf16.mxu0 %v5036_v37  ;;  %v5077_v32 = vcombine.low %v527_v17, %v531_v18  ;;  %v5084_v37 = vcombine.high %v534_v26, %v538_v29  ;;  %v578_v16 = vld [vmem:[#allocation9 + $0x3f0] sm:$0xff]  ;;  %v575_v17 = vld [vmem:[#allocation9 + $0x3d8] sm:$0xff] }
 0x226   :  { %4090 = vmatprep.subr.bf16.mxu1 %v5038_v41  ;;  %v5086_v41 = vcombine.high %v535_v21, %v539_v30  ;;  %v579_v18 = vld [vmem:[#allocation9 + $0x3f8] sm:$0xff] }
 0x228   :  { %3919 = vmatpush1.bf16.msra.mxu0 %v5035_v52  ;;  %v5083_v52 = vcombine.low %v534_v26, %v538_v29  ;;  %v582_v26 = vld [vmem:[#allocation9 + $0x410] sm:$0xff] }
 0x229   :  { %4091 = vmatpush1.bf16.msra.mxu1 %v5037_v53  ;;  %3920 = vmatprep.subr.bf16.mxu0 %v5044_v56  ;;  %v5085_v53 = vcombine.low %v535_v21, %v539_v30  ;;  %v5092_v56 = vcombine.high %v542_v42, %v546_v49  ;;  %v586_v29 = vld [vmem:[#allocation9 + $0x430] sm:$0xff]  ;;  %v583_v21 = vld [vmem:[#allocation9 + $0x418] sm:$0xff] }
 0x22a   :  { %4092 = vmatprep.subr.bf16.mxu1 %v5046_v57  ;;  %v5094_v57 = vcombine.high %v543_v50, %v547_v51  ;;  %v587_v30 = vld [vmem:[#allocation9 + $0x438] sm:$0xff] }
 0x22c   :  { %3921 = vmatpush1.bf16.msra.mxu0 %v5043_v62  ;;  %v5091_v62 = vcombine.low %v542_v42, %v546_v49  ;;  %v590_v42 = vld [vmem:[#allocation9 + $0x450] sm:$0xff] }
 0x22d   :  { %4093 = vmatpush1.bf16.msra.mxu1 %v5045_v63  ;;  %3922 = vmatprep.subr.bf16.mxu0 %v5052_v34  ;;  %v5093_v63 = vcombine.low %v543_v50, %v547_v51  ;;  %v5100_v34 = vcombine.high %v550_v58, %v554_v59  ;;  %v594_v49 = vld [vmem:[#allocation9 + $0x470] sm:$0xff]  ;;  %v5131_v50 = vcombine.low %v582_v26, %v586_v29  ;;  %v591_v51 = vld [vmem:[#allocation9 + $0x458] sm:$0xff] }
 0x22e   :  { %4094 = vmatprep.subr.bf16.mxu1 %v5054_v36  ;;  %v5102_v36 = vcombine.high %v551_v60, %v555_v61 }
 0x230   :  { %3923 = vmatpush1.bf16.msra.mxu0 %v5051_v1  ;;  %v5099_v1 = vcombine.low %v550_v58, %v554_v59  ;;  %v602_v58 = vld [vmem:[#allocation9 + $0x4b0] sm:$0xff] }
 0x231   :  { %4095 = vmatpush1.bf16.msra.mxu1 %v5053_v2  ;;  %3924 = vmatprep.subr.bf16.mxu0 %v5060_v3  ;;  %v5101_v2 = vcombine.low %v551_v60, %v555_v61  ;;  %v5108_v3 = vcombine.high %v558_v38, %v562_v40  ;;  %v599_v60 = vld [vmem:[#allocation9 + $0x498] sm:$0xff] }
 0x232   :  { %4096 = vmatprep.subr.bf16.mxu1 %v5062_v5  ;;  %v5110_v5 = vcombine.high %v559_v45, %v563_v0  ;;  %v603_v61 = vld [vmem:[#allocation9 + $0x4b8] sm:$0xff] }
 0x234   :  { %3925 = vmatpush1.bf16.msra.mxu0 %v5059_v11  ;;  %v5107_v11 = vcombine.low %v558_v38, %v562_v40  ;;  %v606_v38 = vld [vmem:[#allocation9 + $0x4d0] sm:$0xff] }
 0x235   :  { %4097 = vmatpush1.bf16.msra.mxu1 %v5061_v12  ;;  %3926 = vmatprep.subr.bf16.mxu0 %v5068_v13  ;;  %v5109_v12 = vcombine.low %v559_v45, %v563_v0  ;;  %v5116_v13 = vcombine.high %v566_v6, %v570_v7  ;;  %v610_v40 = vld [vmem:[#allocation9 + $0x4f0] sm:$0xff]  ;;  %v607_v45 = vld [vmem:[#allocation9 + $0x4d8] sm:$0xff] }
 0x236   :  { %4098 = vmatprep.subr.bf16.mxu1 %v5070_v14  ;;  %v5118_v14 = vcombine.high %v567_v9, %v571_v10  ;;  %v611_v0 = vld [vmem:[#allocation9 + $0x4f8] sm:$0xff] }
 0x238   :  { %3927 = vmatpush1.bf16.msra.mxu0 %v5067_v20  ;;  %v5115_v20 = vcombine.low %v566_v6, %v570_v7  ;;  %v618_v6 = vld [vmem:[#allocation9 + $0x530] sm:$0xff]  ;;  %v615_v7 = vld [vmem:[#allocation9 + $0x518] sm:$0xff] }
 0x239   :  { %4099 = vmatpush1.bf16.msra.mxu1 %v5069_v22  ;;  %3928 = vmatprep.subr.bf16.mxu0 %v5076_v23  ;;  %v5117_v22 = vcombine.low %v567_v9, %v571_v10  ;;  %v5124_v23 = vcombine.high %v574_v15, %v578_v16  ;;  %v619_v9 = vld [vmem:[#allocation9 + $0x538] sm:$0xff]  ;;  %v5157_v10 = vcombine.low %v607_v45, %v611_v0 }
 0x23a   :  { %4100 = vmatprep.subr.bf16.mxu1 %v5078_v24  ;;  %v5126_v24 = vcombine.high %v575_v17, %v579_v18 }
 0x23c   :  { %3929 = vmatpush1.bf16.msra.mxu0 %v5075_v31  ;;  %v5123_v31 = vcombine.low %v574_v15, %v578_v16  ;;  %v623_v15 = vld [vmem:[#allocation9 + $0x558] sm:$0xff] }
 0x23d   :  { %4101 = vmatpush1.bf16.msra.mxu1 %v5077_v32  ;;  %3930 = vmatprep.subr.bf16.mxu0 %v5084_v37  ;;  %v5125_v32 = vcombine.low %v575_v17, %v579_v18  ;;  %v5132_v37 = vcombine.high %v582_v26, %v586_v29  ;;  %v627_v16 = vld [vmem:[#allocation9 + $0x578] sm:$0xff]  ;;  %v5165_v18 = vcombine.low %v615_v7, %v619_v9 }
 0x23e   :  { %4102 = vmatprep.subr.bf16.mxu1 %v5086_v41  ;;  %v5134_v41 = vcombine.high %v583_v21, %v587_v30  ;;  %v631_v26 = vld [vmem:[#allocation9 + $0x598] sm:$0xff] }
 0x23f   :  { %v635_v29 = vld [vmem:[#allocation9 + $0x5b8] sm:$0xff] }
 0x240   :  { %3931 = vmatpush1.bf16.msra.mxu0 %v5083_v52  ;;  %v595_v52 = vld [vmem:[#allocation9 + $0x478] sm:$0xff] }
 0x241   :  { %4103 = vmatpush1.bf16.msra.mxu1 %v5085_v53  ;;  %3932 = vmatprep.subr.bf16.mxu0 %v5092_v56  ;;  %v5133_v53 = vcombine.low %v583_v21, %v587_v30  ;;  %v5140_v56 = vcombine.high %v590_v42, %v594_v49  ;;  %v5142_v59 = vcombine.high %v591_v51, %v595_v52 }
 0x242   :  { %4104 = vmatprep.subr.bf16.mxu1 %v5094_v57  ;;  %v598_v57 = vld [vmem:[#allocation9 + $0x490] sm:$0xff]  ;;  %v5173_v30 = vcombine.low %v623_v15, %v627_v16 }
 0x244   :  { %3933 = vmatpush1.bf16.msra.mxu0 %v5091_v62  ;;  %v5139_v62 = vcombine.low %v590_v42, %v594_v49  ;;  %v639_v42 = vld [vmem:[#allocation9 + $0x5d8] sm:$0xff] }
 0x245   :  { %4105 = vmatpush1.bf16.msra.mxu1 %v5093_v63  ;;  %3934 = vmatprep.subr.bf16.mxu0 %v5100_v34  ;;  %v5141_v63 = vcombine.low %v591_v51, %v595_v52  ;;  %v5148_v34 = vcombine.high %v598_v57, %v602_v58  ;;  %v643_v49 = vld [vmem:[#allocation9 + $0x5f8] sm:$0xff]  ;;  %v5181_v51 = vcombine.low %v631_v26, %v635_v29 }
 0x246   :  { %4106 = vmatprep.subr.bf16.mxu1 %v5102_v36  ;;  %v5150_v36 = vcombine.high %v599_v60, %v603_v61 }
 0x248   :  { %3935 = vmatpush1.bf16.msra.mxu0 %v5099_v1  ;;  %v5147_v1 = vcombine.low %v598_v57, %v602_v58  ;;  %v650_v57 = vld [vmem:[#allocation9 + $0x630] sm:$0xff]  ;;  %v647_v58 = vld [vmem:[#allocation9 + $0x618] sm:$0xff] }
 0x249   :  { %4107 = vmatpush1.bf16.msra.mxu1 %v5101_v2  ;;  %3936 = vmatprep.subr.bf16.mxu0 %v5108_v3  ;;  %v5156_v2 = vcombine.high %v606_v38, %v610_v40  ;;  %v5158_v3 = vcombine.high %v607_v45, %v611_v0 }
 0x24a   :  { %4108 = vmatprep.subr.bf16.mxu1 %v5110_v5  ;;  %v614_v5 = vld [vmem:[#allocation9 + $0x510] sm:$0xff] }
 0x24b   :  { %v5163_v17 = vcombine.low %v614_v5, %v618_v6 }
 0x24c   :  { %3937 = vmatpush1.bf16.msra.mxu0 %v5107_v11  ;;  %v5164_v11 = vcombine.high %v614_v5, %v618_v6  ;;  %v663_v5 = vld [vmem:[#allocation9 + $0x698] sm:$0xff] }
 0x24d   :  { %4109 = vmatpush1.bf16.msra.mxu1 %v5109_v12  ;;  %3938 = vmatprep.subr.bf16.mxu0 %v5116_v13  ;;  %v5166_v12 = vcombine.high %v615_v7, %v619_v9  ;;  %v622_v13 = vld [vmem:[#allocation9 + $0x550] sm:$0xff]  ;;  %v667_v6 = vld [vmem:[#allocation9 + $0x6b8] sm:$0xff] }
 0x24e   :  { %4110 = vmatprep.subr.bf16.mxu1 %v5118_v14  ;;  %v626_v14 = vld [vmem:[#allocation9 + $0x570] sm:$0xff] }
 0x24f   :  { %v5171_v21 = vcombine.low %v622_v13, %v626_v14 }
 0x250   :  { %3939 = vmatpush1.bf16.msra.mxu0 %v5115_v20  ;;  %v5172_v20 = vcombine.high %v622_v13, %v626_v14  ;;  %v671_v13 = vld [vmem:[#allocation9 + $0x6d8] sm:$0xff] }
 0x251   :  { %4111 = vmatpush1.bf16.msra.mxu1 %v5117_v22  ;;  %3940 = vmatprep.subr.bf16.mxu0 %v5124_v23  ;;  %v5174_v22 = vcombine.high %v623_v15, %v627_v16  ;;  %v630_v23 = vld [vmem:[#allocation9 + $0x590] sm:$0xff]  ;;  %v675_v14 = vld [vmem:[#allocation9 + $0x6f8] sm:$0xff]  ;;  %v5213_v16 = vcombine.low %v663_v5, %v667_v6 }
 0x252   :  { %4112 = vmatprep.subr.bf16.mxu1 %v5126_v24  ;;  %v634_v24 = vld [vmem:[#allocation9 + $0x5b0] sm:$0xff] }
 0x254   :  { %3941 = vmatpush1.bf16.msra.mxu0 %v5123_v31  ;;  %v5180_v31 = vcombine.high %v630_v23, %v634_v24 }
 0x255   :  { %4113 = vmatpush1.bf16.msra.mxu1 %v5125_v32  ;;  %3953 = vmatprep.subr.bf16.mxu0 %v5132_v37  ;;  %v5182_v32 = vcombine.high %v631_v26, %v635_v29  ;;  %v638_v37 = vld [vmem:[#allocation9 + $0x5d0] sm:$0xff]  ;;  %v5221_v29 = vcombine.low %v671_v13, %v675_v14 }
 0x256   :  { %4125 = vmatprep.subr.bf16.mxu1 %v5134_v41  ;;  %v642_v41 = vld [vmem:[#allocation9 + $0x5f0] sm:$0xff] }
 0x257   :  { %3943 = vmatmul.mubr.bf16.vlgmr.msra.gmra.mrb[12].mxu0 %v6150_v19  ;;  %v5188_v52 = vcombine.high %v638_v37, %v642_v41 }
 0x258   :  { %4115 = vmatmul.mubr.bf16.vlgmr.msra.gmra.mrb[12].mxu1 %v6150_v19  ;;  %3954 = vmatpush1.bf16.msra.mxu0 %v5131_v50  ;;  %v5149_v19 = vcombine.low %v599_v60, %v603_v61  ;;  %v5179_v50 = vcombine.low %v630_v23, %v634_v24  ;;  %v5187_v60 = vcombine.low %v638_v37, %v642_v41  ;;  %v679_v23 = vld [vmem:[#allocation9 + $0x718] sm:$0xff] }
 0x259   :  { %3985 = vmatprep.mubr.bf16.mxu0 %v6158_v33  ;;  %4126 = vmatpush1.bf16.msra.mxu1 %v5133_v53  ;;  %v5190_v53 = vcombine.high %v639_v42, %v643_v49  ;;  %v5189_v61 = vcombine.low %v639_v42, %v643_v49  ;;  %v683_v24 = vld [vmem:[#allocation9 + $0x738] sm:$0xff] }
 0x25a   :  { %4157 = vmatprep.mubr.bf16.mxu1 %v6158_v33  ;;  %3955 = vmatprep.subr.bf16.mxu0 %v5140_v56  ;;  %v5155_v33 = vcombine.low %v606_v38, %v610_v40  ;;  %v646_v56 = vld [vmem:[#allocation9 + $0x610] sm:$0xff]  ;;  %v655_v38 = vld [vmem:[#allocation9 + $0x658] sm:$0xff]  ;;  %v5229_v49 = vcombine.low %v679_v23, %v683_v24 }
 0x25b   :  { %4127 = vmatprep.subr.bf16.mxu1 %v5142_v59  ;;  %v651_v59 = vld [vmem:[#allocation9 + $0x638] sm:$0xff]  ;;  %v5195_v45 = vcombine.low %v646_v56, %v650_v57 }
 0x25c   :  { %3956 = vmatpush1.bf16.msra.mxu0 %v5139_v62  ;;  %v5196_v62 = vcombine.high %v646_v56, %v650_v57  ;;  %v659_v40 = vld [vmem:[#allocation9 + $0x678] sm:$0xff]  ;;  %v5197_v0 = vcombine.low %v647_v58, %v651_v59 }
 0x25d   :  { %4128 = vmatpush1.bf16.msra.mxu1 %v5141_v63  ;;  %3957 = vmatprep.subr.bf16.mxu0 %v5148_v34  ;;  %v5198_v63 = vcombine.high %v647_v58, %v651_v59  ;;  %v654_v34 = vld [vmem:[#allocation9 + $0x650] sm:$0xff]  ;;  %v5205_v9 = vcombine.low %v655_v38, %v659_v40  ;;  %v687_v37 = vld [vmem:[#allocation9 + $0x758] sm:$0xff] }
 0x25e   :  { %4129 = vmatprep.subr.bf16.mxu1 %v5150_v36  ;;  %v658_v36 = vld [vmem:[#allocation9 + $0x670] sm:$0xff]  ;;  %v691_v41 = vld [vmem:[#allocation9 + $0x778] sm:$0xff] }
 0x25f   :  { %v5203_v7 = vcombine.low %v654_v34, %v658_v36  ;;  %v695_v56 = vld [vmem:[#allocation9 + $0x798] sm:$0xff]  ;;  %v5237_v59 = vcombine.low %v687_v37, %v691_v41 }
 0x260   :  { %3958 = vmatpush1.bf16.msra.mxu0 %v5147_v1  ;;  %v5204_v1 = vcombine.high %v654_v34, %v658_v36  ;;  %v699_v57 = vld [vmem:[#allocation9 + $0x7b8] sm:$0xff] }
 0x261   :  { %4130 = vmatpush1.bf16.msra.mxu1 %v5149_v19  ;;  %3959 = vmatprep.subr.bf16.mxu0 %v5156_v2  ;;  %v5206_v19 = vcombine.high %v655_v38, %v659_v40  ;;  %v662_v2 = vld [vmem:[#allocation9 + $0x690] sm:$0xff]  ;;  %v703_v34 = vld [vmem:[#allocation9 + $0x7d8] sm:$0xff]  ;;  %v5245_v40 = vcombine.low %v695_v56, %v699_v57 }
 0x262   :  { %4131 = vmatprep.subr.bf16.mxu1 %v5158_v3  ;;  %v666_v3 = vld [vmem:[#allocation9 + $0x6b0] sm:$0xff]  ;;  %v707_v36 = vld [vmem:[#allocation9 + $0x7f8] sm:$0xff] }
 0x263   :  { %v5211_v15 = vcombine.low %v662_v2, %v666_v3 }
 0x264   :  { %3960 = vmatpush1.bf16.msra.mxu0 %v5155_v33  ;;  %v5212_v33 = vcombine.high %v662_v2, %v666_v3  ;;  %v711_v2 = vld [vmem:[#allocation9 + $0x818] sm:$0xff] }
 0x265   :  { %4132 = vmatpush1.bf16.msra.mxu1 %v5157_v10  ;;  %3961 = vmatprep.subr.bf16.mxu0 %v5164_v11  ;;  %v5214_v10 = vcombine.high %v663_v5, %v667_v6  ;;  %v670_v11 = vld [vmem:[#allocation9 + $0x6d0] sm:$0xff]  ;;  %v715_v3 = vld [vmem:[#allocation9 + $0x838] sm:$0xff]  ;;  %v5253_v6 = vcombine.low %v703_v34, %v707_v36 }
 0x266   :  { %4133 = vmatprep.subr.bf16.mxu1 %v5166_v12  ;;  %v674_v12 = vld [vmem:[#allocation9 + $0x6f0] sm:$0xff] }
 0x267   :  { %v5219_v26 = vcombine.low %v670_v11, %v674_v12 }
 0x268   :  { %3962 = vmatpush1.bf16.msra.mxu0 %v5163_v17  ;;  %v5220_v17 = vcombine.high %v670_v11, %v674_v12  ;;  %v719_v12 = vld [vmem:[#allocation9 + $0x858] sm:$0xff] }
 0x269   :  { %4134 = vmatpush1.bf16.msra.mxu1 %v5165_v18  ;;  %3963 = vmatprep.subr.bf16.mxu0 %v5172_v20  ;;  %v5222_v18 = vcombine.high %v671_v13, %v675_v14  ;;  %v678_v20 = vld [vmem:[#allocation9 + $0x710] sm:$0xff]  ;;  %v723_v13 = vld [vmem:[#allocation9 + $0x878] sm:$0xff]  ;;  %v5261_v14 = vcombine.low %v711_v2, %v715_v3 }
 0x26a   :  { %4135 = vmatprep.subr.bf16.mxu1 %v5174_v22  ;;  %v682_v22 = vld [vmem:[#allocation9 + $0x730] sm:$0xff] }
 0x26b   :  { %v5227_v42 = vcombine.low %v678_v20, %v682_v22 }
 0x26c   :  { %3964 = vmatpush1.bf16.msra.mxu0 %v5171_v21  ;;  %v5228_v21 = vcombine.high %v678_v20, %v682_v22  ;;  %v727_v20 = vld [vmem:[#allocation9 + $0x898] sm:$0xff] }
 0x26d   :  { %4136 = vmatpush1.bf16.msra.mxu1 %v5173_v30  ;;  %3965 = vmatprep.subr.bf16.mxu0 %v5180_v31  ;;  %v5230_v30 = vcombine.high %v679_v23, %v683_v24  ;;  %v686_v31 = vld [vmem:[#allocation9 + $0x750] sm:$0xff]  ;;  %v731_v22 = vld [vmem:[#allocation9 + $0x8b8] sm:$0xff]  ;;  %v5269_v24 = vcombine.low %v719_v12, %v723_v13 }
 0x26e   :  { %4137 = vmatprep.subr.bf16.mxu1 %v5182_v32  ;;  %v690_v32 = vld [vmem:[#allocation9 + $0x770] sm:$0xff] }
 0x26f   :  { %v5235_v58 = vcombine.low %v686_v31, %v690_v32 }
 0x270   :  { %3966 = vmatpush1.bf16.msra.mxu0 %v5179_v50  ;;  %v5236_v50 = vcombine.high %v686_v31, %v690_v32  ;;  %v735_v31 = vld [vmem:[#allocation9 + $0x8d8] sm:$0xff] }
 0x271   :  { %4138 = vmatpush1.bf16.msra.mxu1 %v5181_v51  ;;  %3967 = vmatprep.subr.bf16.mxu0 %v5188_v52  ;;  %v5238_v51 = vcombine.high %v687_v37, %v691_v41  ;;  %v694_v52 = vld [vmem:[#allocation9 + $0x790] sm:$0xff]  ;;  %v739_v32 = vld [vmem:[#allocation9 + $0x8f8] sm:$0xff] }
 0x272   :  { %4139 = vmatprep.subr.bf16.mxu1 %v5190_v53  ;;  %v698_v53 = vld [vmem:[#allocation9 + $0x7b0] sm:$0xff] }
 0x273   :  { %v5243_v38 = vcombine.low %v694_v52, %v698_v53 }
 0x274   :  { %3968 = vmatpush1.bf16.msra.mxu0 %v5187_v60  ;;  %v5244_v60 = vcombine.high %v694_v52, %v698_v53  ;;  %v747_v52 = vld [vmem:[#allocation9 + $0x938] sm:$0xff]  ;;  %v5285_v53 = vcombine.low %v735_v31, %v739_v32 }
 0x275   :  { %4140 = vmatpush1.bf16.msra.mxu1 %v5189_v61  ;;  %3969 = vmatprep.subr.bf16.mxu0 %v5196_v62  ;;  %v5246_v61 = vcombine.high %v695_v56, %v699_v57  ;;  %v702_v62 = vld [vmem:[#allocation9 + $0x7d0] sm:$0xff] }
 0x276   :  { %4141 = vmatprep.subr.bf16.mxu1 %v5198_v63  ;;  %v706_v63 = vld [vmem:[#allocation9 + $0x7f0] sm:$0xff] }
 0x277   :  { %v5251_v5 = vcombine.low %v702_v62, %v706_v63 }
 0x278   :  { %3970 = vmatpush1.bf16.msra.mxu0 %v5195_v45  ;;  %v5252_v45 = vcombine.high %v702_v62, %v706_v63 }
 0x279   :  { %4142 = vmatpush1.bf16.msra.mxu1 %v5197_v0  ;;  %3971 = vmatprep.subr.bf16.mxu0 %v5204_v1  ;;  %v5254_v0 = vcombine.high %v703_v34, %v707_v36  ;;  %v710_v1 = vld [vmem:[#allocation9 + $0x810] sm:$0xff] }
 0x27a   :  { %4143 = vmatprep.subr.bf16.mxu1 %v5206_v19  ;;  %v714_v19 = vld [vmem:[#allocation9 + $0x830] sm:$0xff] }
 0x27b   :  { %v5259_v11 = vcombine.low %v710_v1, %v714_v19 }
 0x27c   :  { %3972 = vmatpush1.bf16.msra.mxu0 %v5203_v7  ;;  %v5260_v7 = vcombine.high %v710_v1, %v714_v19 }
 0x27d   :  { %4144 = vmatpush1.bf16.msra.mxu1 %v5205_v9  ;;  %3973 = vmatprep.subr.bf16.mxu0 %v5212_v33  ;;  %v5262_v9 = vcombine.high %v711_v2, %v715_v3  ;;  %v718_v33 = vld [vmem:[#allocation9 + $0x850] sm:$0xff] }
 0x27e   :  { %4145 = vmatprep.subr.bf16.mxu1 %v5214_v10  ;;  %v722_v10 = vld [vmem:[#allocation9 + $0x870] sm:$0xff] }
 0x27f   :  { %v5267_v23 = vcombine.low %v718_v33, %v722_v10 }
 0x280   :  { %3974 = vmatpush1.bf16.msra.mxu0 %v5211_v15  ;;  %v5268_v15 = vcombine.high %v718_v33, %v722_v10 }
 0x281   :  { %4146 = vmatpush1.bf16.msra.mxu1 %v5213_v16  ;;  %3975 = vmatprep.subr.bf16.mxu0 %v5220_v17  ;;  %v726_v16 = vld [vmem:[#allocation9 + $0x890] sm:$0xff] }
 0x282   :  { %4147 = vmatprep.subr.bf16.mxu1 %v5222_v18  ;;  %v730_v17 = vld [vmem:[#allocation9 + $0x8b0] sm:$0xff]  ;;  %v5270_v18 = vcombine.high %v719_v12, %v723_v13 }
 0x283   :  { %v5275_v37 = vcombine.low %v726_v16, %v730_v17  ;;  %v774_v13 = vld [vmem:[#allocation9 + $0xa10] sm:$0xff] }
 0x284   :  { %3976 = vmatpush1.bf16.msra.mxu0 %v5219_v26  ;;  %v5276_v26 = vcombine.high %v726_v16, %v730_v17  ;;  %v779_v16 = vld [vmem:[#allocation9 + $0xa38] sm:$0xff] }
 0x285   :  { %4148 = vmatpush1.bf16.msra.mxu1 %v5221_v29  ;;  %3977 = vmatprep.subr.bf16.mxu0 %v5228_v21  ;;  %v5278_v29 = vcombine.high %v727_v20, %v731_v22  ;;  %v734_v21 = vld [vmem:[#allocation9 + $0x8d0] sm:$0xff] }
 0x286   :  { %4149 = vmatprep.subr.bf16.mxu1 %v5230_v30  ;;  %v738_v30 = vld [vmem:[#allocation9 + $0x8f0] sm:$0xff] }
 0x287   :  { %v5284_v41 = vcombine.high %v734_v21, %v738_v30 }
 0x288   :  { %3978 = vmatpush1.bf16.msra.mxu0 %v5227_v42  ;;  %v5286_v42 = vcombine.high %v735_v31, %v739_v32 }
 0x289   :  { %4150 = vmatpush1.bf16.msra.mxu1 %v5229_v49  ;;  %3979 = vmatprep.subr.bf16.mxu0 %v5236_v50  ;;  %v742_v49 = vld [vmem:[#allocation9 + $0x910] sm:$0xff] }
 0x28a   :  { %4151 = vmatprep.subr.bf16.mxu1 %v5238_v51  ;;  %v746_v50 = vld [vmem:[#allocation9 + $0x930] sm:$0xff]  ;;  %v743_v51 = vld [vmem:[#allocation9 + $0x918] sm:$0xff] }
 0x28b   :  { %v5292_v56 = vcombine.high %v742_v49, %v746_v50  ;;  %v5294_v57 = vcombine.high %v743_v51, %v747_v52  ;;  %v5291_v62 = vcombine.low %v742_v49, %v746_v50  ;;  %v5293_v63 = vcombine.low %v743_v51, %v747_v52 }
 0x28c   :  { %3980 = vmatpush1.bf16.msra.mxu0 %v5235_v58  ;;  %v750_v58 = vld [vmem:[#allocation9 + $0x950] sm:$0xff] }
 0x28d   :  { %4152 = vmatpush1.bf16.msra.mxu1 %v5237_v59  ;;  %3981 = vmatprep.subr.bf16.mxu0 %v5244_v60  ;;  %v754_v59 = vld [vmem:[#allocation9 + $0x970] sm:$0xff]  ;;  %v751_v60 = vld [vmem:[#allocation9 + $0x958] sm:$0xff] }
 0x28e   :  { %4153 = vmatprep.subr.bf16.mxu1 %v5246_v61  ;;  %v755_v61 = vld [vmem:[#allocation9 + $0x978] sm:$0xff]  ;;  %v5300_v34 = vcombine.high %v750_v58, %v754_v59  ;;  %v5299_v1 = vcombine.low %v750_v58, %v754_v59 }
 0x28f   :  { %v5302_v36 = vcombine.high %v751_v60, %v755_v61  ;;  %v5301_v19 = vcombine.low %v751_v60, %v755_v61 }
 0x290   :  { %3982 = vmatpush1.bf16.msra.mxu0 %v5243_v38  ;;  %v758_v38 = vld [vmem:[#allocation9 + $0x990] sm:$0xff] }
 0x291   :  { %4154 = vmatpush1.bf16.msra.mxu1 %v5245_v40  ;;  %3983 = vmatprep.subr.bf16.mxu0 %v5252_v45  ;;  %v762_v40 = vld [vmem:[#allocation9 + $0x9b0] sm:$0xff]  ;;  %v759_v45 = vld [vmem:[#allocation9 + $0x998] sm:$0xff] }
 0x292   :  { %4155 = vmatprep.subr.bf16.mxu1 %v5254_v0  ;;  %v763_v0 = vld [vmem:[#allocation9 + $0x9b8] sm:$0xff]  ;;  %v5308_v2 = vcombine.high %v758_v38, %v762_v40  ;;  %v5307_v33 = vcombine.low %v758_v38, %v762_v40 }
 0x293   :  { %v5310_v3 = vcombine.high %v759_v45, %v763_v0  ;;  %v5309_v10 = vcombine.low %v759_v45, %v763_v0 }
 0x294   :  { %3984 = vmatpush1.bf16.msra.mxu0 %v5251_v5  ;;  %v766_v5 = vld [vmem:[#allocation9 + $0x9d0] sm:$0xff] }
 0x295   :  { %4156 = vmatpush1.bf16.msra.mxu1 %v5253_v6  ;;  %3996 = vmatprep.subr.bf16.mxu0 %v5260_v7  ;;  %v770_v6 = vld [vmem:[#allocation9 + $0x9f0] sm:$0xff]  ;;  %v767_v7 = vld [vmem:[#allocation9 + $0x9d8] sm:$0xff] }
 0x296   :  { %4168 = vmatprep.subr.bf16.mxu1 %v5262_v9  ;;  %v771_v9 = vld [vmem:[#allocation9 + $0x9f8] sm:$0xff]  ;;  %v5315_v17 = vcombine.low %v766_v5, %v770_v6 }
 0x297   :  { %3986 = vmatmul.mubr.bf16.vlgmr.msra.gmra.mrb[12].mxu0 %v6154_v27  ;;  %v5318_v12 = vcombine.high %v767_v7, %v771_v9 }
 0x298   :  { %4158 = vmatmul.mubr.bf16.vlgmr.msra.gmra.mrb[12].mxu1 %v6154_v27  ;;  %3997 = vmatpush1.bf16.msra.mxu0 %v5259_v11  ;;  %v5277_v27 = vcombine.low %v727_v20, %v731_v22  ;;  %v5316_v11 = vcombine.high %v766_v5, %v770_v6 }
 0x299   :  { %4028 = vmatprep.mubr.bf16.mxu0 %v6172_v39  ;;  %4169 = vmatpush1.bf16.msra.mxu1 %v5261_v14  ;;  %v778_v14 = vld [vmem:[#allocation9 + $0xa30] sm:$0xff] }
 0x29a   :  { %4200 = vmatprep.mubr.bf16.mxu1 %v6172_v39  ;;  %3998 = vmatprep.subr.bf16.mxu0 %v5268_v15  ;;  %v5283_v39 = vcombine.low %v734_v21, %v738_v30  ;;  %v775_v15 = vld [vmem:[#allocation9 + $0xa18] sm:$0xff]  ;;  %v5324_v20 = vcombine.high %v774_v13, %v778_v14  ;;  %v5323_v21 = vcombine.low %v774_v13, %v778_v14 }
 0x29b   :  { %4170 = vmatprep.subr.bf16.mxu1 %v5270_v18  ;;  %v5317_v18 = vcombine.low %v767_v7, %v771_v9  ;;  %v5326_v22 = vcombine.high %v775_v15, %v779_v16  ;;  %v5325_v30 = vcombine.low %v775_v15, %v779_v16 }
 0x29c   :  { %3999 = vmatpush1.bf16.msra.mxu0 %v5267_v23  ;;  %v782_v23 = vld [vmem:[#allocation9 + $0xa50] sm:$0xff] }
 0x29d   :  { %4171 = vmatpush1.bf16.msra.mxu1 %v5269_v24  ;;  %4000 = vmatprep.subr.bf16.mxu0 %v5276_v26  ;;  %v786_v24 = vld [vmem:[#allocation9 + $0xa70] sm:$0xff]  ;;  %v783_v26 = vld [vmem:[#allocation9 + $0xa58] sm:$0xff] }
 0x29e   :  { %4172 = vmatprep.subr.bf16.mxu1 %v5278_v29  ;;  %v787_v29 = vld [vmem:[#allocation9 + $0xa78] sm:$0xff]  ;;  %v5332_v31 = vcombine.high %v782_v23, %v786_v24  ;;  %v5331_v49 = vcombine.low %v782_v23, %v786_v24 }
 0x29f   :  { %v5334_v32 = vcombine.high %v783_v26, %v787_v29  ;;  %v5333_v50 = vcombine.low %v783_v26, %v787_v29 }
 0x2a0   :  { %4001 = vmatpush1.bf16.msra.mxu0 %v5275_v37  ;;  %v790_v37 = vld [vmem:[#allocation9 + $0xa90] sm:$0xff] }
 0x2a1   :  { %4173 = vmatpush1.bf16.msra.mxu1 %v5277_v27  ;;  %4002 = vmatprep.subr.bf16.mxu0 %v5284_v41  ;;  %v794_v27 = vld [vmem:[#allocation9 + $0xab0] sm:$0xff]  ;;  %v791_v41 = vld [vmem:[#allocation9 + $0xa98] sm:$0xff] }
 0x2a2   :  { %4174 = vmatprep.subr.bf16.mxu1 %v5286_v42  ;;  %v795_v42 = vld [vmem:[#allocation9 + $0xab8] sm:$0xff]  ;;  %v5340_v51 = vcombine.high %v790_v37, %v794_v27  ;;  %v5339_v58 = vcombine.low %v790_v37, %v794_v27 }
 0x2a3   :  { %v5342_v52 = vcombine.high %v791_v41, %v795_v42  ;;  %v5341_v59 = vcombine.low %v791_v41, %v795_v42 }
 0x2a4   :  { %4003 = vmatpush1.bf16.msra.mxu0 %v5283_v39  ;;  %v798_v39 = vld [vmem:[#allocation9 + $0xad0] sm:$0xff] }
 0x2a5   :  { %4175 = vmatpush1.bf16.msra.mxu1 %v5285_v53  ;;  %4004 = vmatprep.subr.bf16.mxu0 %v5292_v56  ;;  %v802_v53 = vld [vmem:[#allocation9 + $0xaf0] sm:$0xff]  ;;  %v799_v56 = vld [vmem:[#allocation9 + $0xad8] sm:$0xff] }
 0x2a6   :  { %4176 = vmatprep.subr.bf16.mxu1 %v5294_v57  ;;  %v803_v57 = vld [vmem:[#allocation9 + $0xaf8] sm:$0xff]  ;;  %v5348_v60 = vcombine.high %v798_v39, %v802_v53  ;;  %v5347_v38 = vcombine.low %v798_v39, %v802_v53 }
 0x2a7   :  { %v5350_v61 = vcombine.high %v799_v56, %v803_v57  ;;  %v5349_v40 = vcombine.low %v799_v56, %v803_v57  ;;  %v851_v39 = vld [vmem:[#allocation9 + $0xc78] sm:$0xff]  ;;  %v854_v57 = vld [vmem:[#allocation9 + $0xc90] sm:$0xff] }
 0x2a8   :  { %4005 = vmatpush1.bf16.msra.mxu0 %v5291_v62  ;;  %v806_v62 = vld [vmem:[#allocation9 + $0xb10] sm:$0xff] }
 0x2a9   :  { %4177 = vmatpush1.bf16.msra.mxu1 %v5293_v63  ;;  %4006 = vmatprep.subr.bf16.mxu0 %v5300_v34  ;;  %v810_v63 = vld [vmem:[#allocation9 + $0xb30] sm:$0xff]  ;;  %v807_v34 = vld [vmem:[#allocation9 + $0xb18] sm:$0xff] }
 0x2aa   :  { %4178 = vmatprep.subr.bf16.mxu1 %v5302_v36  ;;  %v811_v36 = vld [vmem:[#allocation9 + $0xb38] sm:$0xff]  ;;  %v5356_v45 = vcombine.high %v806_v62, %v810_v63  ;;  %v5355_v5 = vcombine.low %v806_v62, %v810_v63 }
 0x2ab   :  { %v5358_v0 = vcombine.high %v807_v34, %v811_v36  ;;  %v5357_v6 = vcombine.low %v807_v34, %v811_v36 }
 0x2ac   :  { %4007 = vmatpush1.bf16.msra.mxu0 %v5299_v1  ;;  %v814_v1 = vld [vmem:[#allocation9 + $0xb50] sm:$0xff] }
 0x2ad   :  { %4179 = vmatpush1.bf16.msra.mxu1 %v5301_v19  ;;  %4008 = vmatprep.subr.bf16.mxu0 %v5308_v2  ;;  %v818_v19 = vld [vmem:[#allocation9 + $0xb70] sm:$0xff]  ;;  %v815_v2 = vld [vmem:[#allocation9 + $0xb58] sm:$0xff] }
 0x2ae   :  { %4180 = vmatprep.subr.bf16.mxu1 %v5310_v3  ;;  %v819_v3 = vld [vmem:[#allocation9 + $0xb78] sm:$0xff]  ;;  %v5364_v7 = vcombine.high %v814_v1, %v818_v19  ;;  %v5363_v13 = vcombine.low %v814_v1, %v818_v19 }
 0x2af   :  { %v5366_v9 = vcombine.high %v815_v2, %v819_v3  ;;  %v5365_v14 = vcombine.low %v815_v2, %v819_v3  ;;  %v870_v3 = vld [vmem:[#allocation9 + $0xd10] sm:$0xff] }
 0x2b0   :  { %4009 = vmatpush1.bf16.msra.mxu0 %v5307_v33  ;;  %v822_v33 = vld [vmem:[#allocation9 + $0xb90] sm:$0xff] }
 0x2b1   :  { %4181 = vmatpush1.bf16.msra.mxu1 %v5309_v10  ;;  %4010 = vmatprep.subr.bf16.mxu0 %v5316_v11  ;;  %v826_v10 = vld [vmem:[#allocation9 + $0xbb0] sm:$0xff]  ;;  %v823_v11 = vld [vmem:[#allocation9 + $0xb98] sm:$0xff] }
 0x2b2   :  { %4182 = vmatprep.subr.bf16.mxu1 %v5318_v12  ;;  %v827_v12 = vld [vmem:[#allocation9 + $0xbb8] sm:$0xff]  ;;  %v5372_v15 = vcombine.high %v822_v33, %v826_v10  ;;  %v5371_v23 = vcombine.low %v822_v33, %v826_v10 }
 0x2b3   :  { %v5374_v16 = vcombine.high %v823_v11, %v827_v12  ;;  %v5373_v24 = vcombine.low %v823_v11, %v827_v12  ;;  %v878_v11 = vld [vmem:[#allocation9 + $0xd50] sm:$0xff] }
 0x2b4   :  { %4011 = vmatpush1.bf16.msra.mxu0 %v5315_v17  ;;  %v830_v17 = vld [vmem:[#allocation9 + $0xbd0] sm:$0xff] }
 0x2b5   :  { %4183 = vmatpush1.bf16.msra.mxu1 %v5317_v18  ;;  %4012 = vmatprep.subr.bf16.mxu0 %v5324_v20  ;;  %v834_v18 = vld [vmem:[#allocation9 + $0xbf0] sm:$0xff]  ;;  %v831_v20 = vld [vmem:[#allocation9 + $0xbd8] sm:$0xff] }
 0x2b6   :  { %4184 = vmatprep.subr.bf16.mxu1 %v5326_v22  ;;  %v835_v22 = vld [vmem:[#allocation9 + $0xbf8] sm:$0xff]  ;;  %v5380_v26 = vcombine.high %v830_v17, %v834_v18  ;;  %v5379_v37 = vcombine.low %v830_v17, %v834_v18  ;;  %v882_v12 = vld [vmem:[#allocation9 + $0xd70] sm:$0xff] }
 0x2b7   :  { %v5382_v29 = vcombine.high %v831_v20, %v835_v22  ;;  %v5381_v27 = vcombine.low %v831_v20, %v835_v22  ;;  %v5428_v18 = vcombine.high %v878_v11, %v882_v12  ;;  %v886_v22 = vld [vmem:[#allocation9 + $0xd90] sm:$0xff] }
 0x2b8   :  { %4013 = vmatpush1.bf16.msra.mxu0 %v5323_v21  ;;  %v838_v21 = vld [vmem:[#allocation9 + $0xc10] sm:$0xff] }
 0x2b9   :  { %4185 = vmatpush1.bf16.msra.mxu1 %v5325_v30  ;;  %4014 = vmatprep.subr.bf16.mxu0 %v5332_v31  ;;  %v842_v30 = vld [vmem:[#allocation9 + $0xc30] sm:$0xff]  ;;  %v839_v31 = vld [vmem:[#allocation9 + $0xc18] sm:$0xff] }
 0x2ba   :  { %4186 = vmatprep.subr.bf16.mxu1 %v5334_v32  ;;  %v843_v32 = vld [vmem:[#allocation9 + $0xc38] sm:$0xff]  ;;  %v5388_v41 = vcombine.high %v838_v21, %v842_v30 }
 0x2bb   :  { %v5390_v42 = vcombine.high %v839_v31, %v843_v32  ;;  %v5389_v53 = vcombine.low %v839_v31, %v843_v32  ;;  %v5427_v32 = vcombine.low %v878_v11, %v882_v12 }
 0x2bc   :  { %4015 = vmatpush1.bf16.msra.mxu0 %v5331_v49  ;;  %v846_v49 = vld [vmem:[#allocation9 + $0xc50] sm:$0xff] }
 0x2bd   :  { %4187 = vmatpush1.bf16.msra.mxu1 %v5333_v50  ;;  %4016 = vmatprep.subr.bf16.mxu0 %v5340_v51  ;;  %v850_v50 = vld [vmem:[#allocation9 + $0xc70] sm:$0xff]  ;;  %v5387_v51 = vcombine.low %v838_v21, %v842_v30  ;;  %v891_v21 = vld [vmem:[#allocation9 + $0xdb8] sm:$0xff] }
 0x2be   :  { %4188 = vmatprep.subr.bf16.mxu1 %v5342_v52  ;;  %v847_v52 = vld [vmem:[#allocation9 + $0xc58] sm:$0xff]  ;;  %v5396_v56 = vcombine.high %v846_v49, %v850_v50  ;;  %v5395_v62 = vcombine.low %v846_v49, %v850_v50 }
 0x2bf   :  { %v5397_v63 = vcombine.low %v847_v52, %v851_v39 }
 0x2c0   :  { %4017 = vmatpush1.bf16.msra.mxu0 %v5339_v58  ;;  %v858_v58 = vld [vmem:[#allocation9 + $0xcb0] sm:$0xff] }
 0x2c1   :  { %4189 = vmatpush1.bf16.msra.mxu1 %v5341_v59  ;;  %4018 = vmatprep.subr.bf16.mxu0 %v5348_v60  ;;  %v5398_v59 = vcombine.high %v847_v52, %v851_v39  ;;  %v855_v60 = vld [vmem:[#allocation9 + $0xc98] sm:$0xff]  ;;  %v5404_v34 = vcombine.high %v854_v57, %v858_v58  ;;  %v5403_v1 = vcombine.low %v854_v57, %v858_v58 }
 0x2c2   :  { %4190 = vmatprep.subr.bf16.mxu1 %v5350_v61  ;;  %v859_v61 = vld [vmem:[#allocation9 + $0xcb8] sm:$0xff] }
 0x2c3   :  { %v5406_v36 = vcombine.high %v855_v60, %v859_v61 }
 0x2c4   :  { %4019 = vmatpush1.bf16.msra.mxu0 %v5347_v38  ;;  %v862_v38 = vld [vmem:[#allocation9 + $0xcd0] sm:$0xff] }
 0x2c5   :  { %4191 = vmatpush1.bf16.msra.mxu1 %v5349_v40  ;;  %4020 = vmatprep.subr.bf16.mxu0 %v5356_v45  ;;  %v866_v40 = vld [vmem:[#allocation9 + $0xcf0] sm:$0xff]  ;;  %v863_v45 = vld [vmem:[#allocation9 + $0xcd8] sm:$0xff] }
 0x2c6   :  { %4192 = vmatprep.subr.bf16.mxu1 %v5358_v0  ;;  %v867_v0 = vld [vmem:[#allocation9 + $0xcf8] sm:$0xff]  ;;  %v5412_v19 = vcombine.high %v862_v38, %v866_v40 }
 0x2c7   :  { %v5414_v2 = vcombine.high %v863_v45, %v867_v0 }
 0x2c8   :  { %4021 = vmatpush1.bf16.msra.mxu0 %v5355_v5  ;;  %v874_v5 = vld [vmem:[#allocation9 + $0xd30] sm:$0xff] }
 0x2c9   :  { %4193 = vmatpush1.bf16.msra.mxu1 %v5357_v6  ;;  %4022 = vmatprep.subr.bf16.mxu0 %v5364_v7  ;;  %v871_v6 = vld [vmem:[#allocation9 + $0xd18] sm:$0xff]  ;;  %v5420_v33 = vcombine.high %v870_v3, %v874_v5 }
 0x2ca   :  { %4194 = vmatprep.subr.bf16.mxu1 %v5366_v9  ;;  %v875_v7 = vld [vmem:[#allocation9 + $0xd38] sm:$0xff]  ;;  %v5413_v9 = vcombine.low %v863_v45, %v867_v0 }
 0x2cb   :  { %v5422_v10 = vcombine.high %v871_v6, %v875_v7  ;;  %v5421_v17 = vcombine.low %v871_v6, %v875_v7  ;;  %v903_v7 = vld [vmem:[#allocation9 + $0xe18] sm:$0xff] }
 0x2cc   :  { %4023 = vmatpush1.bf16.msra.mxu0 %v5363_v13  ;;  %v879_v13 = vld [vmem:[#allocation9 + $0xd58] sm:$0xff] }
 0x2cd   :  { %4195 = vmatpush1.bf16.msra.mxu1 %v5365_v14  ;;  %4024 = vmatprep.subr.bf16.mxu0 %v5372_v15  ;;  %v883_v14 = vld [vmem:[#allocation9 + $0xd78] sm:$0xff]  ;;  %v5419_v15 = vcombine.low %v870_v3, %v874_v5 }
 0x2ce   :  { %4196 = vmatprep.subr.bf16.mxu1 %v5374_v16  ;;  %v6210_v16 = vld [vmem:[#allocation11] sm:$0xff]  ;;  %v5430_v20 = vcombine.high %v879_v13, %v883_v14 }
 0x2cf   :  { %v973_v30 = vrot.slane %v6210_v16, %v133_v46  ;;  %v981_v31 = vrot.slane %v6210_v16, %v141_v48 }
 0x2d0   :  { %4025 = vmatpush1.bf16.msra.mxu0 %v5371_v23  ;;  %v890_v23 = vld [vmem:[#allocation9 + $0xdb0] sm:$0xff] }
 0x2d1   :  { %4197 = vmatpush1.bf16.msra.mxu1 %v5373_v24  ;;  %4026 = vmatprep.subr.bf16.mxu0 %v5380_v26  ;;  %v969_v24 = vrot.slane %v6210_v16, %v129_v44  ;;  %v977_v26 = vrot.slane %v6210_v16, %v137_v47  ;;  %v5436_v44 = vcombine.high %v886_v22, %v890_v23 }
 0x2d2   :  { %4198 = vmatprep.subr.bf16.mxu1 %v5382_v29  ;;  %v887_v29 = vld [vmem:[#allocation9 + $0xd98] sm:$0xff]  ;;  %v5435_v46 = vcombine.low %v886_v22, %v890_v23  ;;  %v914_v22 = vld [vmem:[#allocation9 + $0xe70] sm:$0xff] }
 0x2d3   :  { %v5438_v49 = vcombine.high %v887_v29, %v891_v21  ;;  %v911_v23 = vld [vmem:[#allocation9 + $0xe58] sm:$0xff] }
 0x2d4   :  { %4027 = vmatpush1.bf16.msra.mxu0 %v5379_v37  ;;  %v5429_v37 = vcombine.low %v879_v13, %v883_v14 }
 0x2d5   :  { %4199 = vmatpush1.bf16.msra.mxu1 %v5381_v27  ;;  %4039 = vmatprep.subr.bf16.mxu0 %v5388_v41  ;;  %v894_v27 = vld [vmem:[#allocation9 + $0xdd0] sm:$0xff] }
 0x2d6   :  { %4211 = vmatprep.subr.bf16.mxu1 %v5390_v42  ;;  %v898_v41 = vld [vmem:[#allocation9 + $0xdf0] sm:$0xff] }
 0x2d7   :  { %4029 = vmatmul.mubr.bf16.vlgmr.msra.gmra.mrb[12].mxu0 %v6170_v35 }
 0x2d8   :  { %4201 = vmatmul.mubr.bf16.vlgmr.msra.gmra.mrb[12].mxu1 %v6170_v35  ;;  %4040 = vmatpush1.bf16.msra.mxu0 %v5387_v51  ;;  %v5405_v35 = vcombine.low %v855_v60, %v859_v61  ;;  %v5437_v60 = vcombine.low %v887_v29, %v891_v21  ;;  %v5443_v61 = vcombine.low %v894_v27, %v898_v41 }
 0x2d9   :  { %4071 = vmatprep.mubr.bf16.mxu0 %v6184_v8  ;;  %4212 = vmatpush1.bf16.msra.mxu1 %v5389_v53  ;;  %v895_v53 = vld [vmem:[#allocation9 + $0xdd8] sm:$0xff] }
 0x2da   :  { %4243 = vmatprep.mubr.bf16.mxu1 %v6184_v8  ;;  %4041 = vmatprep.subr.bf16.mxu0 %v5396_v56  ;;  %v5411_v8 = vcombine.low %v862_v38, %v866_v40  ;;  %v899_v56 = vld [vmem:[#allocation9 + $0xdf8] sm:$0xff]  ;;  %v5444_v38 = vcombine.high %v894_v27, %v898_v41 }
 0x2db   :  { %4213 = vmatprep.subr.bf16.mxu1 %v5398_v59  ;;  %v5445_v0 = vcombine.low %v895_v53, %v899_v56 }
 0x2dc   :  { %4042 = vmatpush1.bf16.msra.mxu0 %v5395_v62 }
 0x2dd   :  { %4214 = vmatpush1.bf16.msra.mxu1 %v5397_v63  ;;  %4043 = vmatprep.subr.bf16.mxu0 %v5404_v34 }
 0x2de   :  { %4215 = vmatprep.subr.bf16.mxu1 %v5406_v36 }
 0x2e0   :  { %4044 = vmatpush1.bf16.msra.mxu0 %v5403_v1  ;;  %v5446_v1 = vcombine.high %v895_v53, %v899_v56 }
 0x2e1   :  { %4216 = vmatpush1.bf16.msra.mxu1 %v5405_v35  ;;  %4045 = vmatprep.subr.bf16.mxu0 %v5412_v19  ;;  %v902_v35 = vld [vmem:[#allocation9 + $0xe10] sm:$0xff] }
 0x2e2   :  { %4217 = vmatprep.subr.bf16.mxu1 %v5414_v2  ;;  %v906_v19 = vld [vmem:[#allocation9 + $0xe30] sm:$0xff] }
 0x2e3   :  { %v5452_v14 = vcombine.high %v902_v35, %v906_v19 }
 0x2e4   :  { %4046 = vmatpush1.bf16.msra.mxu0 %v5411_v8  ;;  %v907_v8 = vld [vmem:[#allocation9 + $0xe38] sm:$0xff] }
 0x2e5   :  { %4218 = vmatpush1.bf16.msra.mxu1 %v5413_v9  ;;  %4047 = vmatprep.subr.bf16.mxu0 %v5420_v33  ;;  %v5453_v29 = vcombine.low %v903_v7, %v907_v8 }
 0x2e6   :  { %4219 = vmatprep.subr.bf16.mxu1 %v5422_v10 }
 0x2e8   :  { %4048 = vmatpush1.bf16.msra.mxu0 %v5419_v15 }
 0x2e9   :  { %4220 = vmatpush1.bf16.msra.mxu1 %v5421_v17  ;;  %4049 = vmatprep.subr.bf16.mxu0 %v5428_v18  ;;  %v5454_v18 = vcombine.high %v903_v7, %v907_v8 }
 0x2ea   :  { %v3729_v42 = vpop.f32.mrb[8].mxu0  ;;  %v3901_v47 = vpop.f32.mrb[8].mxu1  ;;  %4221 = vmatprep.subr.bf16.mxu1 %v5430_v20  ;;  %v910_v20 = vld [vmem:[#allocation9 + $0xe50] sm:$0xff] }
 0x2eb   :  { %v5663_v50 = vadd.f32 %v3729_v42, %v969_v24  ;;  %v5667_v51 = vadd.f32 %v3901_v47, %v977_v26  ;;  %v3731_v52 = vpop.f32.mrb[9].mxu0  ;;  %v3903_v39 = vpop.f32.mrb[9].mxu1  ;;  %v5460_v21 = vcombine.high %v910_v20, %v914_v22  ;;  %v5459_v27 = vcombine.low %v910_v20, %v914_v22 }
 0x2ec   :  { %v5664_v57 = vadd.f32 %v3731_v52, %v973_v30  ;;  %v5668_v48 = vadd.f32 %v3903_v39, %v981_v31  ;;  %v3733_v58 = vpop.f32.mrb[10].mxu0  ;;  %v3905_v59 = vpop.f32.mrb[10].mxu1  ;;  %4050 = vmatpush1.bf16.msra.mxu0 %v5427_v32  ;;  %v922_v32 = vld [vmem:[#allocation9 + $0xeb0] sm:$0xff]  ;;  %v931_v52 = vld [vmem:[#allocation9 + $0xef8] sm:$0xff] }
 0x2ed   :  { %v5665_v62 = vadd.f32 %v3733_v58, %v969_v24  ;;  %v5669_v63 = vadd.f32 %v3905_v59, %v977_v26  ;;  %4222 = vmatpush1.bf16.msra.mxu1 %v5429_v37  ;;  %v3735_v34 = vpop.f32.mrb[11].mxu0  ;;  %v3907_v36 = vpop.f32.mrb[11].mxu1  ;;  %4051 = vmatprep.subr.bf16.mxu0 %v5436_v44  ;;  %v4254_v2 = vmax.f32 %v5663_v50, 0.0  ;;  %v4256_v3 = vmax.f32 %v5667_v51, 0.0  ;;  %v915_v24 = vld [vmem:[#allocation9 + $0xe78] sm:$0xff]  ;;  %v930_v50 = vld [vmem:[#allocation9 + $0xef0] sm:$0xff] }
 0x2ee   :  { %v5666_v40 = vadd.f32 %v3735_v34, %v973_v30  ;;  %v5670_v45 = vadd.f32 %v3907_v36, %v981_v31  ;;  %4223 = vmatprep.subr.bf16.mxu1 %v5438_v49  ;;  %v4255_v9 = vmax.f32 %v5664_v57, 0.0  ;;  %v4257_v33 = vmax.f32 %v5668_v48, 0.0  ;;  %v918_v31 = vld [vmem:[#allocation9 + $0xe90] sm:$0xff]  ;;  %v919_v37 = vld [vmem:[#allocation9 + $0xe98] sm:$0xff] }
 0x2ef   :  { %v4262_v5 = vmax.f32 %v5665_v62, 0.0  ;;  %v4264_v6 = vmax.f32 %v5669_v63, 0.0  ;;  %v5451_v26 = vcombine.low %v902_v35, %v906_v19  ;;  %v5462_v30 = vcombine.high %v911_v23, %v915_v24  ;;  %v923_v44 = vld [vmem:[#allocation9 + $0xeb8] sm:$0xff]  ;;  %v926_v49 = vld [vmem:[#allocation9 + $0xed0] sm:$0xff] }
 0x2f0   :  { %v4263_v10 = vmax.f32 %v5666_v40, 0.0  ;;  %v4265_v11 = vmax.f32 %v5670_v45, 0.0  ;;  %4052 = vmatpush1.bf16.msra.mxu0 %v5435_v46  ;;  %v5461_v41 = vcombine.low %v911_v23, %v915_v24  ;;  %v5468_v42 = vcombine.high %v918_v31, %v922_v32  ;;  %v927_v51 = vld [vmem:[#allocation9 + $0xed8] sm:$0xff]  ;;  %v934_v57 = vld [vmem:[#allocation9 + $0xf10] sm:$0xff] }
 0x2f1   :  { %v6224_v12 = vpack.c.bf16 %v4262_v5, %v4254_v2  ;;  %v6226_v13 = vpack.c.bf16 %v4264_v6, %v4256_v3  ;;  %4224 = vmatpush1.bf16.msra.mxu1 %v5437_v60  ;;  %4053 = vmatprep.subr.bf16.mxu0 %v5444_v38  ;;  %v5470_v47 = vcombine.high %v919_v37, %v923_v44  ;;  %v938_v48 = vld [vmem:[#allocation9 + $0xf30] sm:$0xff]  ;;  %v935_v58 = vld [vmem:[#allocation9 + $0xf18] sm:$0xff] }
 0x2f2   :  { %v6228_v15 = vpack.c.bf16 %v4263_v10, %v4255_v9  ;;  %v6230_v17 = vpack.c.bf16 %v4265_v11, %v4257_v33  ;;  %4225 = vmatprep.subr.bf16.mxu1 %v5446_v1  ;;  %v5467_v39 = vcombine.low %v918_v31, %v922_v32  ;;  %v5469_v46 = vcombine.low %v919_v37, %v923_v44  ;;  %v939_v59 = vld [vmem:[#allocation9 + $0xf38] sm:$0xff]  ;;  %v942_v34 = vld [vmem:[#allocation9 + $0xf50] sm:$0xff]  ;;  %v5745_v31 = vld [vmem:[#allocation12 + $0x80] sm:$0xff]  }
 0x2f3   :  { %v5476_v53 = vcombine.high %v926_v49, %v930_v50  ;;  %v5478_v56 = vcombine.high %v927_v51, %v931_v52  ;;  %v5475_v60 = vcombine.low %v926_v49, %v930_v50  ;;  %v5484_v62 = vcombine.high %v934_v57, %v938_v48  ;;  %v946_v36 = vld [vmem:[#allocation9 + $0xf70] sm:$0xff]  ;;  %v943_v38 = vld [vmem:[#allocation9 + $0xf58] sm:$0xff]  ;;  %v5754_v50 = vld [vmem:[#allocation12 + $0x58] sm:$0xff]  }
 0x2f4   :  { %4054 = vmatpush1.bf16.msra.mxu0 %v5443_v61  ;;  %v5477_v61 = vcombine.low %v927_v51, %v931_v52  ;;  %v5486_v63 = vcombine.high %v935_v58, %v939_v59  ;;  %v947_v40 = vld [vmem:[#allocation9 + $0xf78] sm:$0xff]  ;;  %v5483_v45 = vcombine.low %v934_v57, %v938_v48  ;;  %v5492_v1 = vcombine.high %v942_v34, %v946_v36  ;;  %v950_v19 = vld [vmem:[#allocation9 + $0xf90] sm:$0xff]  ;;  %v5756_v51 = vld [vmem:[#allocation12 + $0x18] sm:$0xff]  }
 0x2f5   :  { %4226 = vmatpush1.bf16.msra.mxu1 %v5445_v0  ;;  %4055 = vmatprep.subr.bf16.mxu0 %v5452_v14  ;;  %v5485_v0 = vcombine.low %v935_v58, %v939_v59  ;;  %v5494_v35 = vcombine.high %v943_v38, %v947_v40  ;;  %v954_v2 = vld [vmem:[#allocation9 + $0xfb0] sm:$0xff]  ;;  %v951_v3 = vld [vmem:[#allocation9 + $0xf98] sm:$0xff]  ;;  %v5491_v6 = vcombine.low %v942_v34, %v946_v36  ;;  %v5758_v52 = vld [vmem:[#allocation12 + $0x60] sm:$0xff]  }
 0x2f6   :  { %4227 = vmatprep.subr.bf16.mxu1 %v5454_v18  ;;  %v955_v5 = vld [vmem:[#allocation9 + $0xfb8] sm:$0xff]  ;;  %v5493_v7 = vcombine.low %v943_v38, %v947_v40  ;;  %v5500_v8 = vcombine.high %v950_v19, %v954_v2  ;;  %v958_v33 = vld [vmem:[#allocation9 + $0xfd0] sm:$0xff]  ;;  %v5499_v18 = vcombine.low %v950_v19, %v954_v2  ;;  %v5772_v34 = vld [vmem:[#allocation12 + $0x38] sm:$0xff]  }
 0x2f7   :  { %v5502_v9 = vcombine.high %v951_v3, %v955_v5  ;;  %v962_v10 = vld [vmem:[#allocation9 + $0xff0] sm:$0xff]  ;;  %v959_v11 = vld [vmem:[#allocation9 + $0xfd8] sm:$0xff]  ;;  %v5501_v20 = vcombine.low %v951_v3, %v955_v5  ;;  %v5773_v36 = vld [vmem:[#allocation12 + $0xb8] sm:$0xff]  }
 0x2f8   :  { %4056 = vmatpush1.bf16.msra.mxu0 %v5451_v26  ;;  %v963_v14 = vld [vmem:[#allocation9 + $0xff8] sm:$0xff]  ;;  %v5508_v22 = vcombine.high %v958_v33, %v962_v10  ;;  %v5507_v24 = vcombine.low %v958_v33, %v962_v10  ;;  %v5746_v32 = vld [vmem:[#allocation12 + $0x48] sm:$0xff]   ;;  %v5774_v38 = vld [vmem:[#allocation12 + $0x140] sm:$0xff]  }
 0x2f9   :  { %4228 = vmatpush1.bf16.msra.mxu1 %v5453_v29  ;;  %4057 = vmatprep.subr.bf16.mxu0 %v5460_v21  ;;  %v5510_v23 = vcombine.high %v959_v11, %v963_v14  ;;  %v5509_v26 = vcombine.low %v959_v11, %v963_v14  ;;  %v5742_v29 = vld [vmem:[#allocation12 + $0x40] sm:$0xff]   ;;  %v5747_v37 = vld [vmem:[#allocation12 + $0xc8] sm:$0xff]   ;;  %v5753_v49 = vld [vmem:[#allocation12 + $0x90] sm:$0xff]  }
 0x2fa   :  { %4229 = vmatprep.subr.bf16.mxu1 %v5462_v30  ;;  %v5743_v21 = vld [vmem:[#allocation12 + $0xc0] sm:$0xff]   ;;  %v5748_v44 = vld [vmem:[#allocation12 + $0x8] sm:$0xff]   ;;  %v5766_v58 = vld [vmem:[#allocation12 + $0x70] sm:$0xff]  }
 0x2fb   :  { %v5744_v30 = vld [vmem:[#allocation12] sm:$0xff]   ;;  %v5764_v57 = vld [vmem:[#allocation12 + $0x28] sm:$0xff]   ;;  %v5767_v59 = vld [vmem:[#allocation12 + $0xf0] sm:$0xff]  }
 0x2fc   :  { %4058 = vmatpush1.bf16.msra.mxu0 %v5459_v27  ;;  %v5749_v27 = vld [vmem:[#allocation12 + $0x88] sm:$0xff]   ;;  %v5775_v40 = vld [vmem:[#allocation12 + $0x1c0] sm:$0xff]   ;;  %v5782_v3 = vld [vmem:[#allocation12 + $0x150] sm:$0xff]  }
 0x2fd   :  { %4230 = vmatpush1.bf16.msra.mxu1 %v5461_v41  ;;  %4059 = vmatprep.subr.bf16.mxu0 %v5468_v42  ;;  %v5750_v41 = vld [vmem:[#allocation12 + $0x50] sm:$0xff]   ;;  %v5765_v48 = vld [vmem:[#allocation12 + $0xa8] sm:$0xff]   ;;  %v5790_v33 = vld [vmem:[#allocation12 + $0x160] sm:$0xff]  }
 0x2fe   :  { %4231 = vmatprep.subr.bf16.mxu1 %v5470_v47  ;;  %v5751_v42 = vld [vmem:[#allocation12 + $0xd0] sm:$0xff]   ;;  %v5780_v19 = vld [vmem:[#allocation12 + $0x108] sm:$0xff]   ;;  %v5791_v10 = vld [vmem:[#allocation12 + $0x1e0] sm:$0xff]  }
 0x2ff   :  { %v5752_v47 = vld [vmem:[#allocation12 + $0x10] sm:$0xff]   ;;  %v5781_v2 = vld [vmem:[#allocation12 + $0x188] sm:$0xff]   ;;  %v5792_v11 = vld [vmem:[#allocation12 + $0x120] sm:$0xff]  }
 0x300   :  { %4060 = vmatpush1.bf16.msra.mxu0 %v5467_v39  ;;  %v5759_v39 = vld [vmem:[#allocation12 + $0xe0] sm:$0xff]   ;;  %v5783_v5 = vld [vmem:[#allocation12 + $0x1d0] sm:$0xff]  }
 0x301   :  { %4232 = vmatpush1.bf16.msra.mxu1 %v5469_v46  ;;  %4061 = vmatprep.subr.bf16.mxu0 %v5476_v53  ;;  %v5761_v46 = vld [vmem:[#allocation12 + $0xa0] sm:$0xff]   ;;  %v5762_v53 = vld [vmem:[#allocation12 + $0x68] sm:$0xff]  }
 0x302   :  { %4233 = vmatprep.subr.bf16.mxu1 %v5478_v56  ;;  %v5763_v56 = vld [vmem:[#allocation12 + $0xe8] sm:$0xff]   ;;  %v5793_v14 = vld [vmem:[#allocation12 + $0x1a0] sm:$0xff]  }
 0x304   :  { %4062 = vmatpush1.bf16.msra.mxu0 %v5475_v60  ;;  %v5768_v60 = vld [vmem:[#allocation12 + $0x30] sm:$0xff]  }
 0x305   :  { %4234 = vmatpush1.bf16.msra.mxu1 %v5477_v61  ;;  %4063 = vmatprep.subr.bf16.mxu0 %v5484_v62  ;;  %v5769_v61 = vld [vmem:[#allocation12 + $0xb0] sm:$0xff]   ;;  %v5770_v62 = vld [vmem:[#allocation12 + $0x78] sm:$0xff]  }
 0x306   :  { %4235 = vmatprep.subr.bf16.mxu1 %v5486_v63  ;;  %v5771_v63 = vld [vmem:[#allocation12 + $0xf8] sm:$0xff]  }
 0x308   :  { %4064 = vmatpush1.bf16.msra.mxu0 %v5483_v45  ;;  %v5776_v45 = vld [vmem:[#allocation12 + $0x100] sm:$0xff]  }
 0x309   :  { %4236 = vmatpush1.bf16.msra.mxu1 %v5485_v0  ;;  %4065 = vmatprep.subr.bf16.mxu0 %v5492_v1  ;;  %v5777_v0 = vld [vmem:[#allocation12 + $0x180] sm:$0xff]   ;;  %v5778_v1 = vld [vmem:[#allocation12 + $0x148] sm:$0xff]  }
 0x30a   :  { %4237 = vmatprep.subr.bf16.mxu1 %v5494_v35  ;;  %v5779_v35 = vld [vmem:[#allocation12 + $0x1c8] sm:$0xff]  }
 0x30c   :  { %4066 = vmatpush1.bf16.msra.mxu0 %v5491_v6  ;;  %v5784_v6 = vld [vmem:[#allocation12 + $0x110] sm:$0xff]  }
 0x30d   :  { %4238 = vmatpush1.bf16.msra.mxu1 %v5493_v7  ;;  %4067 = vmatprep.subr.bf16.mxu0 %v5500_v8  ;;  %v5785_v7 = vld [vmem:[#allocation12 + $0x190] sm:$0xff]   ;;  %v5786_v8 = vld [vmem:[#allocation12 + $0x158] sm:$0xff]  }
 0x30e   :  { %4239 = vmatprep.subr.bf16.mxu1 %v5502_v9  ;;  %v5787_v9 = vld [vmem:[#allocation12 + $0x1d8] sm:$0xff]  }
 0x310   :  { %4068 = vmatpush1.bf16.msra.mxu0 %v5499_v18  ;;  %v5794_v18 = vld [vmem:[#allocation12 + $0x168] sm:$0xff]  }
 0x311   :  { %4240 = vmatpush1.bf16.msra.mxu1 %v5501_v20  ;;  %4069 = vmatprep.subr.bf16.mxu0 %v5508_v22  ;;  %v5795_v20 = vld [vmem:[#allocation12 + $0x1e8] sm:$0xff]  }
 0x312   :  { %4241 = vmatprep.subr.bf16.mxu1 %v5510_v23  ;;  %v5796_v22 = vld [vmem:[#allocation12 + $0x128] sm:$0xff]  }
 0x313   :  { %v5797_v23 = vld [vmem:[#allocation12 + $0x1a8] sm:$0xff]  }
 0x314   :  { %4070 = vmatpush1.bf16.msra.mxu0 %v5507_v24  ;;  %v5798_v24 = vld [vmem:[#allocation12 + $0x170] sm:$0xff]  }
 0x315   :  { %4242 = vmatpush1.bf16.msra.mxu1 %v5509_v26  ;;  %5575 = vmatprep.subr.bf16.mxu0 %v5742_v29  ;;  %v5799_v26 = vld [vmem:[#allocation12 + $0x1f0] sm:$0xff]  }
 0x316   :  { %5597 = vmatprep.subr.bf16.mxu1 %v5743_v21  ;;  %v5800_v29 = vld [vmem:[#allocation12 + $0x130] sm:$0xff]  }
 0x317   :  { %4072 = vmatmul.mubr.bf16.vlgmr.msra.gmra.mrb[12].mxu0 %v6182_v4  ;;  %v5801_v21 = vld [vmem:[#allocation12 + $0x1b0] sm:$0xff]  }
 0x318   :  { %4244 = vmatmul.mubr.bf16.vlgmr.msra.gmra.mrb[12].mxu1 %v6182_v4  ;;  %5576 = vmatpush3.bf16.msra.mxu0 %v5744_v30  ;;  %v5755_v4 = vld [vmem:[#allocation12 + $0xd8] sm:$0xff]  }
 0x319   :  { %4824 = vmatprep.mubr.bf16.mxu0 %v6228_v15  ;;  %5598 = vmatpush3.bf16.msra.mxu1 %v5745_v31  ;;  %v5757_v15 = vld [vmem:[#allocation12 + $0x98] sm:$0xff]  }
 0x31a   :  { %4865 = vmatprep.mubr.bf16.mxu1 %v6230_v17  ;;  %5577 = vmatprep.subr.bf16.mxu0 %v5746_v32  ;;  %v5760_v17 = vld [vmem:[#allocation12 + $0x20] sm:$0xff]   ;;  %v5802_v30 = vld [vmem:[#allocation12 + $0x178] sm:$0xff]  }
 0x31b   :  { %5599 = vmatprep.subr.bf16.mxu1 %v5747_v37  ;;  %v5803_v31 = vld [vmem:[#allocation12 + $0x1f8] sm:$0xff]  }
 0x31c   :  { %5578 = vmatpush3.bf16.msra.mxu0 %v5748_v44  ;;  %v5804_v32 = vld [vmem:[#allocation12 + $0x138] sm:$0xff]   ;;  %v985_v44 = vrot.slane %v6210_v16, %v145_v54 }
 0x31d   :  { %5600 = vmatpush3.bf16.msra.mxu1 %v5749_v27  ;;  %5579 = vmatprep.subr.bf16.mxu0 %v5750_v41  ;;  %v5805_v37 = vld [vmem:[#allocation12 + $0x1b8] sm:$0xff]   ;;  %v993_v27 = vrot.slane %v6210_v16, %v153_v25  ;;  %v989_v41 = vrot.slane %v6210_v16, %v149_v55 }
 0x31e   :  { %5601 = vmatprep.subr.bf16.mxu1 %v5751_v42  ;;  %v997_v42 = vrot.slane %v6210_v16, %v157_v28 }
 0x320   :  { %5580 = vmatpush3.bf16.msra.mxu0 %v5752_v47 }
 0x321   :  { %5602 = vmatpush3.bf16.msra.mxu1 %v5753_v49  ;;  %5581 = vmatprep.subr.bf16.mxu0 %v5754_v50 }
 0x322   :  { %5603 = vmatprep.subr.bf16.mxu1 %v5755_v4 }
 0x324   :  { %5582 = vmatpush3.bf16.msra.mxu0 %v5756_v51 }
 0x325   :  { %5604 = vmatpush3.bf16.msra.mxu1 %v5757_v15  ;;  %5583 = vmatprep.subr.bf16.mxu0 %v5758_v52 }
 0x326   :  { %5605 = vmatprep.subr.bf16.mxu1 %v5759_v39 }
 0x328   :  { %5584 = vmatpush3.bf16.msra.mxu0 %v5760_v17 }
 0x329   :  { %5606 = vmatpush3.bf16.msra.mxu1 %v5761_v46  ;;  %5585 = vmatprep.subr.bf16.mxu0 %v5762_v53 }
 0x32a   :  { %5607 = vmatprep.subr.bf16.mxu1 %v5763_v56 }
 0x32c   :  { %5586 = vmatpush3.bf16.msra.mxu0 %v5764_v57 }
 0x32d   :  { %5608 = vmatpush3.bf16.msra.mxu1 %v5765_v48  ;;  %5587 = vmatprep.subr.bf16.mxu0 %v5766_v58 }
 0x32e   :  { %5609 = vmatprep.subr.bf16.mxu1 %v5767_v59 }
 0x330   :  { %5588 = vmatpush3.bf16.msra.mxu0 %v5768_v60 }
 0x331   :  { %5610 = vmatpush3.bf16.msra.mxu1 %v5769_v61  ;;  %5589 = vmatprep.subr.bf16.mxu0 %v5770_v62 }
 0x332   :  { %5611 = vmatprep.subr.bf16.mxu1 %v5771_v63 }
 0x334   :  { %5590 = vmatpush3.bf16.msra.mxu0 %v5772_v34 }
 0x335   :  { %5612 = vmatpush3.bf16.msra.mxu1 %v5773_v36  ;;  %5619 = vmatprep.subr.bf16.mxu0 %v5774_v38 }
 0x336   :  { %5641 = vmatprep.subr.bf16.mxu1 %v5775_v40 }
 0x337   :  { %4825 = vmatmul.mubr.bf16.vlgmr.msra.gmra.mrb[16].mxu0 %v6224_v12  ;;  %v5788_v12 = vld [vmem:[#allocation12 + $0x118] sm:$0xff]  }
 0x338   :  { %4866 = vmatmul.mubr.bf16.vlgmr.msra.gmra.mrb[16].mxu1 %v6226_v13  ;;  %5620 = vmatpush3.bf16.msra.mxu0 %v5776_v45  ;;  %v5789_v13 = vld [vmem:[#allocation12 + $0x198] sm:$0xff]   ;;  %v4407_v45 = vstv %s6271_s6  ;;  %s5981_s6 = smov [#allocation14]  }
 0x339   :  { %5642 = vmatpush3.bf16.msra.mxu1 %v5777_v0  ;;  %5621 = vmatprep.subr.bf16.mxu0 %v5778_v1  ;;  %s4963_s11 = sshll.u32 %s5981_s6, 4  ;;  %s4964_s11 = int_to_ptr.vmem [resolvable:$true] %s4963_s11 }
 0x33a   :  { %5643 = vmatprep.subr.bf16.mxu1 %v5779_v35  ;;  %s5938_s25 = scalar_lea.vmem %s4964_s11, 256  ;;  %p5943_p7 = scmp.lt.s32.totalorder %s4964_s11, %s4964_s11 }
 0x33b   :  { %p5939_p6 = scmp.ne.s32.totalorder %s4964_s11, %s5938_s25  ;;  %p5944_p8 = scmp.lt.s32.totalorder %s5938_s25, %s5938_s25 }
 0x33c   :  { %5622 = vmatpush3.bf16.msra.mxu0 %v5780_v19 }
 0x33d   :  { %5644 = vmatpush3.bf16.msra.mxu1 %v5781_v2  ;;  %5623 = vmatprep.subr.bf16.mxu0 %v5782_v3  ;;  %p5945_p9 = por %p5944_p8, %p5943_p7 }
 0x33e   :  { %5645 = vmatprep.subr.bf16.mxu1 %v5783_v5 }
 0x33f   :  { %p5946_p10 = pnand %p5945_p9, %p5939_p6 }
 0x340   :  { %5624 = vmatpush3.bf16.msra.mxu0 %v5784_v6 }
 0x341   :  { %5646 = vmatpush3.bf16.msra.mxu1 %v5785_v7  ;;  %5625 = vmatprep.subr.bf16.mxu0 %v5786_v8 }
 0x342   :  { %5647 = vmatprep.subr.bf16.mxu1 %v5787_v9 }
 0x344   :  { %5626 = vmatpush3.bf16.msra.mxu0 %v5788_v12 }
 0x345   :  { %5648 = vmatpush3.bf16.msra.mxu1 %v5789_v13  ;;  %5627 = vmatprep.subr.bf16.mxu0 %v5790_v33 }
 0x346   :  { %5649 = vmatprep.subr.bf16.mxu1 %v5791_v10 }
 0x348   :  { %5628 = vmatpush3.bf16.msra.mxu0 %v5792_v11 }
 0x349   :  { %5650 = vmatpush3.bf16.msra.mxu1 %v5793_v14  ;;  %5629 = vmatprep.subr.bf16.mxu0 %v5794_v18 }
 0x34a   :  { %5651 = vmatprep.subr.bf16.mxu1 %v5795_v20 }
 0x34c   :  { %5630 = vmatpush3.bf16.msra.mxu0 %v5796_v22 }
 0x34d   :  { %5652 = vmatpush3.bf16.msra.mxu1 %v5797_v23  ;;  %5631 = vmatprep.subr.bf16.mxu0 %v5798_v24 }
 0x34e   :  { %5653 = vmatprep.subr.bf16.mxu1 %v5799_v26 }
 0x350   :  { %5632 = vmatpush3.bf16.msra.mxu0 %v5800_v29 }
 0x351   :  { %5654 = vmatpush3.bf16.msra.mxu1 %v5801_v21  ;;  %5633 = vmatprep.subr.bf16.mxu0 %v5802_v30 }
 0x352   :  { %5655 = vmatprep.subr.bf16.mxu1 %v5803_v31 }
 0x354   :  { %5634 = vmatpush3.bf16.msra.mxu0 %v5804_v32 }
 0x355   :  { %5656 = vmatpush3.bf16.msra.mxu1 %v5805_v37 }
 0x3ea   :  { %v4073_v47 = vpop.f32.mrb[12].mxu0 }
 0x3eb   :  { %v5671_v49 = vadd.f32 %v4073_v47, %v985_v44  ;;  %v4245_v50 = vpop.f32.mrb[12].mxu1  ;;  %v4075_v4 = vpop.f32.mrb[13].mxu0 }
 0x3ec   :  { %v5675_v51 = vadd.f32 %v4245_v50, %v993_v27  ;;  %v5672_v15 = vadd.f32 %v4075_v4, %v989_v41  ;;  %v4247_v52 = vpop.f32.mrb[13].mxu1  ;;  %v4077_v54 = vpop.f32.mrb[14].mxu0 }
 0x3ed   :  { %v5676_v39 = vadd.f32 %v4247_v52, %v997_v42  ;;  %v5673_v17 = vadd.f32 %v4077_v54, %v985_v44  ;;  %v4249_v46 = vpop.f32.mrb[14].mxu1  ;;  %v4079_v25 = vpop.f32.mrb[15].mxu0  ;;  %v4258_v55 = vmax.f32 %v5671_v49, 0.0 }
 0x3ee   :  { %v5677_v53 = vadd.f32 %v4249_v46, %v993_v27  ;;  %v5674_v56 = vadd.f32 %v4079_v25, %v989_v41  ;;  %v4251_v57 = vpop.f32.mrb[15].mxu1  ;;  %v4260_v58 = vmax.f32 %v5675_v51, 0.0  ;;  %v4259_v28 = vmax.f32 %v5672_v15, 0.0 }
 0x3ef   :  { %v4266_v48 = vmax.f32 %v5673_v17, 0.0  ;;  %v5678_v43 = vadd.f32 %v4251_v57, %v997_v42  ;;  %v4261_v60 = vmax.f32 %v5676_v39, 0.0 }
 0x3f0   :  { %v4268_v16 = vmax.f32 %v5677_v53, 0.0  ;;  %v4267_v59 = vmax.f32 %v5674_v56, 0.0 }
 0x3f1   :  { %v4274_v61 = vpack.c.bf16 %v4266_v48, %v4258_v55  ;;  %v4269_v62 = vmax.f32 %v5678_v43, 0.0 }
 0x3f2   :  { %v4276_v63 = vpack.c.bf16 %v4268_v16, %v4260_v58  ;;  %v4275_v34 = vpack.c.bf16 %v4267_v59, %v4259_v28 }
 0x3f3   :  { %v4277_v36 = vpack.c.bf16 %v4269_v62, %v4261_v60 }
 0x3f4   :  { %4906 = vmatprep.mubr.bf16.mxu0 %v4275_v34 }
 0x3f5   :  { %4947 = vmatprep.mubr.bf16.mxu1 %v4277_v36  ;;  %4907 = vmatmul.mubr.bf16.vlgmr.msra.gmra.mrb[20].mxu0 %v4274_v61 }
 0x3f6   :  { %4948 = vmatmul.mubr.bf16.vlgmr.msra.gmra.mrb[20].mxu1 %v4276_v63 }
 0x40a   :  { %v5591_v38 = vpop.f32.mrb[16].mxu0 }
 0x40b   :  { %v5613_v40 = vpop.f32.mrb[16].mxu1  ;;  %v5592_v0 = vpop.f32.mrb[17].mxu0 }
 0x40c   :  { %v5593_v1 = vadd.f32 %v5592_v0, %v5591_v38  ;;  %v5614_v35 = vpop.f32.mrb[17].mxu1  ;;  %v5594_v19 = vpop.f32.mrb[18].mxu0 }
 0x40d   :  { %v5615_v2 = vadd.f32 %v5614_v35, %v5613_v40  ;;  %v5616_v3 = vpop.f32.mrb[18].mxu1  ;;  %v5595_v5 = vpop.f32.mrb[19].mxu0 }
 0x40e   :  { %v4827_v6 = vadd.f32 %v5593_v1, %v4407_v45  ;;  %v5596_v7 = vadd.f32 %v5595_v5, %v5594_v19  ;;  %v5617_v8 = vpop.f32.mrb[19].mxu1 }
 0x40f   :  { %v5618_v9 = vadd.f32 %v5617_v8, %v5616_v3 }
 0x410   :  { %v4868_v12 = vadd.f32 %v5615_v2, %v4827_v6  ;;  %v4830_v13 = vadd.f32 %v5596_v7, %v4407_v45 }
 0x412   :  { %v4871_v33 = vadd.f32 %v5618_v9, %v4830_v13 }
 0x4c8   :  { %v5635_v10 = vpop.f32.mrb[20].mxu0 }
 0x4c9   :  { %v5657_v11 = vpop.f32.mrb[20].mxu1  ;;  %v5636_v14 = vpop.f32.mrb[21].mxu0 }
 0x4ca   :  { %v5637_v18 = vadd.f32 %v5636_v14, %v5635_v10  ;;  %v5658_v20 = vpop.f32.mrb[21].mxu1  ;;  %v5638_v22 = vpop.f32.mrb[22].mxu0 }
 0x4cb   :  { %v5659_v23 = vadd.f32 %v5658_v20, %v5657_v11  ;;  %v5660_v24 = vpop.f32.mrb[22].mxu1  ;;  %v5639_v26 = vpop.f32.mrb[23].mxu0 }
 0x4cc   :  { %v4909_v29 = vadd.f32 %v5637_v18, %v4868_v12  ;;  %v5640_v21 = vadd.f32 %v5639_v26, %v5638_v22  ;;  %v5661_v30 = vpop.f32.mrb[23].mxu1 }
 0x4cd   :  { %v5662_v31 = vadd.f32 %v5661_v30, %v5660_v24 }
 0x4ce   :  { %v4950_v32 = vadd.f32 %v5659_v23, %v4909_v29  ;;  %v4912_v37 = vadd.f32 %v5640_v21, %v4871_v33 }
 0x4d0   :  { %4956 = vst [vmem:[#allocation14] sm:$0xff] %v4950_v32  ;;  %v4953_v44 = vadd.f32 %v5662_v31, %v4912_v37 }
 0x4d2   :  { %4957 = vst [vmem:[#allocation14 + $0x8] sm:$0xff] %v4953_v44 }
 0x4d3   :  { %5949 = shalt.err (!%p5946_p10)
}
 0x4d4   :  { %s5950_s27 = scalar_lea.hbm %s6272_s7, 256 }
 0x4d5   :  { %p5951_p11 = scmp.ne.s32.totalorder %s6272_s7, %s5950_s27  ;;  %p5954_p12 = scmp.lt.u32.totalorder %s5950_s27, %s6272_s7 }
 0x4d7   :  { %p5956_p13 = pnand %p5954_p12, %p5951_p11 }
 0x4d9   :  { %5959 = shalt.err (!%p5956_p13)
}
 0x4da   :  { %s5982_s9 = smov 128   ;;  %s5983_s10 = smov 8  }
 0x4db   :  { %4969 = dma.vmem_to_hbm [thread:$0]  %s4964_s11, 256, %s6272_s7, [#allocation5], %s5982_s9, %s5982_s9, %s5983_s10  }
 0x4dc   :  { %5968 = dma.done.wait [#allocation5], 256  }
 0x4dd   :  { %5969 = vsyncadd [#allocation5], 4294967040 }
 0x4de   :  { %4973 = vsyncpa [#allocation4], 1 }
 0x4df   :  { %4974 = vsyncpa [#allocation7], 1 }
 0x4e0   :  { %4975 = vsyncpa [#allocation10], 1 }
 0x4e1   :  { %4976 = vsyncpa [#allocation13], 1 }
 0x4e2   :  { %4977 = vsyncpa [#allocation5], 1 }

</bundles_post_ra>
